<compile_context>
chip_gen: v7x
topology: tpu7x:2x2x1
jax: 0.10.0
libtpu: 0.0.40
codegen_flags: <defaults>
</compile_context>

<pallas_src>
import functools

import jax
import jax.numpy as jnp
from jax.experimental import pallas as pl
from jax.experimental.pallas import tpu as pltpu


# ----------------------------------------------------------------------------------
# Per-generation tile defaults (v5e: 128-wide MXU tiles, v6e/v7x: 256-wide)
# ----------------------------------------------------------------------------------
def _default_tiles():
    try:
        kind = jax.devices()[0].device_kind.lower()
    except Exception:
        kind = ""
    if "v5" in kind:
        return 128, 128, 512
    return 256, 256, 512


TILE_M, TILE_N, TILE_K = _default_tiles()


# ----------------------------------------------------------------------------------
# Generic tiled matmul:  (M, K) @ (K, N) + bias (+activation)
# ----------------------------------------------------------------------------------
def _matmul_kernel(a_ref, b_ref, bias_ref, o_ref, acc_ref, *, act):
    @pl.when(pl.program_id(2) == 0)
    def _init():
        acc_ref[...] = jnp.zeros_like(acc_ref)

    acc_ref[...] += jnp.dot(
        a_ref[...].astype(jnp.bfloat16),
        b_ref[...].astype(jnp.bfloat16),
        preferred_element_type=jnp.float32,
    )

    @pl.when(pl.program_id(2) == pl.num_programs(2) - 1)
    def _fin():
        acc = acc_ref[...] + bias_ref[...]
        if act == "relu":
            acc = jnp.maximum(acc, 0.0)
        elif act == "gelu":
            acc = jax.nn.gelu(acc, approximate=True)
        o_ref[...] = acc.astype(o_ref.dtype)


def pallas_matmul(a, b, bias=None, act=None):
    """Tiled matmul on the MXU; bf16 operands, f32 VMEM accumulator, fused bias/act."""
    M, K = a.shape
    _, N = b.shape
    if bias is None:
        bias = jnp.zeros((N,), jnp.float32)
    bias = bias.reshape(1, N).astype(jnp.float32)
    b = b.astype(jnp.bfloat16)

    tm = TILE_M if M > TILE_M else M
    tn = TILE_N if N > TILE_N else N
    if K > TILE_K:
        tk = TILE_K
        kpad = (-K) % TILE_K
        if kpad:  # zero padding of K is exact
            a = jnp.pad(a, ((0, 0), (0, kpad)))
            b = jnp.pad(b, ((0, kpad), (0, 0)))
        K = K + kpad
    else:
        tk = K
    grid = (pl.cdiv(M, tm), pl.cdiv(N, tn), K // tk)

    return pl.pallas_call(
        functools.partial(_matmul_kernel, act=act),
        out_shape=jax.ShapeDtypeStruct((M, N), jnp.float32),
        grid=grid,
        in_specs=[
            pl.BlockSpec((tm, tk), lambda i, j, k: (i, k)),
            pl.BlockSpec((tk, tn), lambda i, j, k: (k, j)),
            pl.BlockSpec((1, tn), lambda i, j, k: (0, j)),
        ],
        out_specs=pl.BlockSpec((tm, tn), lambda i, j, k: (i, j)),
        scratch_shapes=[pltpu.VMEM((tm, tn), jnp.float32)],
        compiler_params=pltpu.CompilerParams(
            dimension_semantics=("parallel", "parallel", "arbitrary")
        ),
    )(a, b, bias)


# ----------------------------------------------------------------------------------
# Fused linear -> LayerNorm  (patch embed, patch merging)
# ----------------------------------------------------------------------------------
def _linear_ln_kernel(x_ref, w_ref, b_ref, g_ref, be_ref, o_ref, *, eps, dim):
    z = jnp.dot(
        x_ref[...].astype(jnp.bfloat16), w_ref[...], preferred_element_type=jnp.float32
    ) + b_ref[...]
    mean = jnp.sum(z, axis=1, keepdims=True) * (1.0 / dim)
    zc = z - mean
    var = jnp.sum(zc * zc, axis=1, keepdims=True) * (1.0 / dim)
    y = zc * jax.lax.rsqrt(var + eps) * g_ref[...] + be_ref[...]
    o_ref[...] = y.astype(o_ref.dtype)


def pallas_linear_ln(x, w, b, g, beta, eps=1e-5):
    M, K = x.shape
    _, N = w.shape
    tm = TILE_M if M > TILE_M else M
    return pl.pallas_call(
        functools.partial(_linear_ln_kernel, eps=eps, dim=float(N)),
        out_shape=jax.ShapeDtypeStruct((M, N), jnp.float32),
        grid=(pl.cdiv(M, tm),),
        in_specs=[
            pl.BlockSpec((tm, K), lambda i: (i, 0)),
            pl.BlockSpec((K, N), lambda i: (0, 0)),
            pl.BlockSpec((1, N), lambda i: (0, 0)),
            pl.BlockSpec((1, N), lambda i: (0, 0)),
            pl.BlockSpec((1, N), lambda i: (0, 0)),
        ],
        out_specs=pl.BlockSpec((tm, N), lambda i: (i, 0)),
        compiler_params=pltpu.CompilerParams(dimension_semantics=("parallel",)),
    )(
        x.astype(jnp.float32),
        w.astype(jnp.bfloat16),
        b.reshape(1, N).astype(jnp.float32),
        g.reshape(1, N).astype(jnp.float32),
        beta.reshape(1, N).astype(jnp.float32),
    )


# ----------------------------------------------------------------------------------
# Fused Swin-stage MLP: h + W2(GELU(W1(LN(h))))   (single kernel, activations in VMEM)
# ----------------------------------------------------------------------------------
def _stage_mlp_kernel(h_ref, g_ref, bt_ref, w1_ref, b1_ref, w2_ref, b2_ref, o_ref, *, eps, dim):
    h = h_ref[...].astype(jnp.float32)
    mean = jnp.sum(h, axis=1, keepdims=True) * (1.0 / dim)
    hc = h - mean
    var = jnp.sum(hc * hc, axis=1, keepdims=True) * (1.0 / dim)
    z = hc * jax.lax.rsqrt(var + eps) * g_ref[...] + bt_ref[...]
    z1 = jnp.dot(z.astype(jnp.bfloat16), w1_ref[...], preferred_element_type=jnp.float32)
    z1 = jax.nn.gelu(z1 + b1_ref[...], approximate=True)  # tanh approx (EUP-friendly)
    z2 = jnp.dot(z1.astype(jnp.bfloat16), w2_ref[...], preferred_element_type=jnp.float32)
    o_ref[...] = (h + z2 + b2_ref[...]).astype(o_ref.dtype)


def pallas_stage_mlp(h, g, b, w1, b1, w2, b2, eps=1e-5):
    M, C = h.shape
    C2 = w1.shape[1]
    tm = TILE_M if M > TILE_M else M
    return pl.pallas_call(
        functools.partial(_stage_mlp_kernel, eps=eps, dim=float(C)),
        out_shape=jax.ShapeDtypeStruct((M, C), jnp.float32),
        grid=(pl.cdiv(M, tm),),
        in_specs=[
            pl.BlockSpec((tm, C), lambda i: (i, 0)),
            pl.BlockSpec((1, C), lambda i: (0, 0)),
            pl.BlockSpec((1, C), lambda i: (0, 0)),
            pl.BlockSpec((C, C2), lambda i: (0, 0)),
            pl.BlockSpec((1, C2), lambda i: (0, 0)),
            pl.BlockSpec((C2, C), lambda i: (0, 0)),
            pl.BlockSpec((1, C), lambda i: (0, 0)),
        ],
        out_specs=pl.BlockSpec((tm, C), lambda i: (i, 0)),
        compiler_params=pltpu.CompilerParams(dimension_semantics=("parallel",)),
    )(
        h.astype(jnp.float32),
        g.reshape(1, C).astype(jnp.float32),
        b.reshape(1, C).astype(jnp.float32),
        w1.astype(jnp.bfloat16),
        b1.reshape(1, C2).astype(jnp.float32),
        w2.astype(jnp.bfloat16),
        b2.reshape(1, C).astype(jnp.float32),
    )


# ----------------------------------------------------------------------------------
# Standalone LayerNorm over last dim of a (M, C) tensor
# ----------------------------------------------------------------------------------
def _ln_kernel(x_ref, g_ref, b_ref, o_ref, *, eps, dim):
    x = x_ref[...].astype(jnp.float32)
    mean = jnp.sum(x, axis=1, keepdims=True) * (1.0 / dim)
    xc = x - mean
    var = jnp.sum(xc * xc, axis=1, keepdims=True) * (1.0 / dim)
    o_ref[...] = (xc * jax.lax.rsqrt(var + eps) * g_ref[...] + b_ref[...]).astype(o_ref.dtype)


def pallas_layernorm(x2d, gamma, beta, eps=1e-5):
    M, C = x2d.shape
    tm = TILE_M if M > TILE_M else M
    return pl.pallas_call(
        functools.partial(_ln_kernel, eps=eps, dim=float(C)),
        out_shape=jax.ShapeDtypeStruct((M, C), jnp.float32),
        grid=(pl.cdiv(M, tm),),
        in_specs=[
            pl.BlockSpec((tm, C), lambda i: (i, 0)),
            pl.BlockSpec((1, C), lambda i: (0, 0)),
            pl.BlockSpec((1, C), lambda i: (0, 0)),
        ],
        out_specs=pl.BlockSpec((tm, C), lambda i: (i, 0)),
        compiler_params=pltpu.CompilerParams(dimension_semantics=("parallel",)),
    )(
        x2d.astype(jnp.float32),
        gamma.reshape(1, C).astype(jnp.float32),
        beta.reshape(1, C).astype(jnp.float32),
    )


# ----------------------------------------------------------------------------------
# BatchNorm2d (training-mode batch statistics) without any HBM transpose.
# Data viewed as (N*H, W*C): per-channel stats come from column sums folded over W.
# ----------------------------------------------------------------------------------
def _bn_stats_kernel(x_ref, sum_ref, sq_ref):
    @pl.when(pl.program_id(0) == 0)
    def _init():
        sum_ref[...] = jnp.zeros_like(sum_ref)
        sq_ref[...] = jnp.zeros_like(sq_ref)

    x = x_ref[...].astype(jnp.float32)
    sum_ref[...] += jnp.sum(x, axis=0, keepdims=True)
    sq_ref[...] += jnp.sum(x * x, axis=0, keepdims=True)


def _bn_apply_kernel(x_ref, scale_ref, shift_ref, o_ref, *, relu):
    y = x_ref[...].astype(jnp.float32) * scale_ref[...] + shift_ref[...]
    if relu:
        y = jnp.maximum(y, 0.0)
    o_ref[...] = y.astype(o_ref.dtype)


def _pick_row_tile(rows, target):
    if rows <= target:
        return rows
    t = target
    while t >= 8:
        if rows % t == 0:
            return t
        t //= 2
    return rows


def pallas_batchnorm_nhwc(x, gamma, beta, eps=1e-5, relu=False):
    N, H, W, C = x.shape
    R, Ccols = N * H, W * C
    x2 = x.reshape(R, Ccols).astype(jnp.float32)
    tr = _pick_row_tile(R, TILE_M)
    grid = (R // tr,)

    sums, sqs = pl.pallas_call(
        _bn_stats_kernel,
        out_shape=[
            jax.ShapeDtypeStruct((1, Ccols), jnp.float32),
            jax.ShapeDtypeStruct((1, Ccols), jnp.float32),
        ],
        grid=grid,
        in_specs=[pl.BlockSpec((tr, Ccols), lambda i: (i, 0))],
        out_specs=[
            pl.BlockSpec((1, Ccols), lambda i: (0, 0)),
            pl.BlockSpec((1, Ccols), lambda i: (0, 0)),
        ],
        compiler_params=pltpu.CompilerParams(dimension_semantics=("arbitrary",)),
    )(x2)

    # Fold the per-column sums over W to get per-channel statistics (tiny glue ops).
    count = float(N * H * W)
    ch_sum = sums.reshape(W, C).sum(axis=0)
    ch_sq = sqs.reshape(W, C).sum(axis=0)
    mean = ch_sum / count
    var = ch_sq / count - mean * mean  # biased variance, as in torch BN training
    scale = gamma.astype(jnp.float32) * jax.lax.rsqrt(var + eps)
    shift = beta.astype(jnp.float32) - mean * scale
    scale_t = jnp.tile(scale, W).reshape(1, Ccols)
    shift_t = jnp.tile(shift, W).reshape(1, Ccols)

    out = pl.pallas_call(
        functools.partial(_bn_apply_kernel, relu=relu),
        out_shape=jax.ShapeDtypeStruct((R, Ccols), jnp.float32),
        grid=grid,
        in_specs=[
            pl.BlockSpec((tr, Ccols), lambda i: (i, 0)),
            pl.BlockSpec((1, Ccols), lambda i: (0, 0)),
            pl.BlockSpec((1, Ccols), lambda i: (0, 0)),
        ],
        out_specs=pl.BlockSpec((tr, Ccols), lambda i: (i, 0)),
        compiler_params=pltpu.CompilerParams(dimension_semantics=("parallel",)),
    )(x2, scale_t, shift_t)
    return out.reshape(N, H, W, C)


# ----------------------------------------------------------------------------------
# Conv / ConvTranspose / bilinear resize built on the Pallas matmul kernel
# ----------------------------------------------------------------------------------
def conv2d_nhwc(x, w, b, stride=1, padding=0, dilation=1, act=None):
    """x: (N,H,W,Cin), w: (KH,KW,Cin,Cout). bf16 im2col patches + tiled Pallas matmul."""
    N, H, W, Cin = x.shape
    KH, KW, _, Cout = w.shape
    if isinstance(padding, int):
        padding = ((padding, padding), (padding, padding))
    (ph0, ph1), (pw0, pw1) = padding
    xp = jnp.pad(x.astype(jnp.bfloat16), ((0, 0), (ph0, ph1), (pw0, pw1), (0, 0)))
    Hp, Wp = H + ph0 + ph1, W + pw0 + pw1
    OH = (Hp - dilation * (KH - 1) - 1) // stride + 1
    OW = (Wp - dilation * (KW - 1) - 1) // stride + 1
    cols = []
    for kh in range(KH):
        for kw in range(KW):
            h0, w0 = kh * dilation, kw * dilation
            cols.append(
                xp[:, h0:h0 + (OH - 1) * stride + 1:stride,
                      w0:w0 + (OW - 1) * stride + 1:stride, :]
            )
    a = jnp.concatenate(cols, axis=-1).reshape(N * OH * OW, KH * KW * Cin)
    out = pallas_matmul(a, w.reshape(KH * KW * Cin, Cout), b, act=act)
    return out.reshape(N, OH, OW, Cout)


def conv_transpose2d_nhwc(x, w, b):
    """nn.ConvTranspose2d(k=4, s=2, p=1) via sub-pixel (phase) decomposition.

    Each output phase (r, s) in {0,1}^2 is an ordinary 2x2 stride-1 conv of the
    *un-dilated* input with the corresponding 2x2 sub-kernel; the four phase outputs
    interleave into the 2x-upsampled result. Exactly the same math as PyTorch, with
    4x fewer MACs than the zero-dilation formulation.
    w is in PyTorch ConvTranspose2d layout (Cin, Cout, KH, KW).
    """
    N, H, W, Cin = x.shape
    _, Cout, KH, KW = w.shape
    assert KH == 4 and KW == 4
    ksel = [[3, 1], [2, 0]]  # tap indices per phase, in window order
    phases = []
    for r in (0, 1):
        for s in (0, 1):
            wk = w[:, :, ksel[r], :][:, :, :, ksel[s]]          # (Cin, Cout, 2, 2)
            wk = jnp.transpose(wk, (2, 3, 0, 1))                # (2, 2, Cin, Cout)
            pad_h = (1, 0) if r == 0 else (0, 1)
            pad_w = (1, 0) if s == 0 else (0, 1)
            phases.append(conv2d_nhwc(x, wk, b, stride=1, padding=(pad_h, pad_w)))
    ph = jnp.stack(phases, axis=0).reshape(2, 2, N, H, W, Cout)
    out = jnp.transpose(ph, (2, 3, 0, 4, 1, 5)).reshape(N, 2 * H, 2 * W, Cout)
    return out


def bilinear_matrix(in_size, out_size):
    """Interpolation matrix matching nn.Upsample(mode='bilinear', align_corners=False)."""
    o = jnp.arange(out_size, dtype=jnp.float32)
    src = (o + 0.5) * (in_size / out_size) - 0.5
    src = jnp.maximum(src, 0.0)
    i0 = jnp.minimum(jnp.floor(src).astype(jnp.int32), in_size - 1)
    i1 = jnp.minimum(i0 + 1, in_size - 1)
    w1 = src - i0.astype(jnp.float32)
    w0 = 1.0 - w1
    m = jnp.zeros((out_size, in_size), jnp.float32)
    m = m.at[jnp.arange(out_size), i0].add(w0)
    m = m.at[jnp.arange(out_size), i1].add(w1)
    return m


# ----------------------------------------------------------------------------------
# Parameters (deterministic synthetic init; shapes follow the module with
# num_channels scaled 1024 -> 32, input_resolution 384 -> 64, output 400 -> 80)
# ----------------------------------------------------------------------------------
NUM_CHANNELS = 32                        # stands in for 1024
STAGE_C = [NUM_CHANNELS // 8, NUM_CHANNELS // 4, NUM_CHANNELS // 2, NUM_CHANNELS]
INPUT_RES = 64                           # stands in for 384
OUTPUT_RES = 80                          # stands in for 400


def init_params(key):
    def nrm(k, shape, scale=0.05):
        return scale * jax.random.normal(k, shape, jnp.float32)

    keys = iter(jax.random.split(key, 64))
    E = STAGE_C[0]
    p = {}
    p["patch_w"] = nrm(next(keys), (4, 4, 3, E))
    p["patch_b"] = jnp.zeros((E,), jnp.float32)
    p["patch_ln_g"] = jnp.ones((E,), jnp.float32)
    p["patch_ln_b"] = jnp.zeros((E,), jnp.float32)
    p["stages"] = []
    for i, ci in enumerate(STAGE_C):
        s = {}
        if i > 0:
            s["red_w"] = nrm(next(keys), (4 * STAGE_C[i - 1], ci))
            s["red_ln_g"] = jnp.ones((ci,), jnp.float32)
            s["red_ln_b"] = jnp.zeros((ci,), jnp.float32)
        s["ln_g"] = jnp.ones((ci,), jnp.float32)
        s["ln_b"] = jnp.zeros((ci,), jnp.float32)
        s["w1"] = nrm(next(keys), (ci, 2 * ci))
        s["b1"] = jnp.zeros((2 * ci,), jnp.float32)
        s["w2"] = nrm(next(keys), (2 * ci, ci))
        s["b2"] = jnp.zeros((ci,), jnp.float32)
        p["stages"].append(s)
    p["norm_g"] = jnp.ones((NUM_CHANNELS,), jnp.float32)
    p["norm_b"] = jnp.zeros((NUM_CHANNELS,), jnp.float32)
    p["reduce_w"] = nrm(next(keys), (NUM_CHANNELS, 1))       # 1x1 conv 32 -> 1
    p["reduce_b"] = jnp.zeros((1,), jnp.float32)

    def convt(cin, cout):
        return (nrm(next(keys), (cin, cout, 4, 4)), jnp.zeros((cout,), jnp.float32),
                jnp.ones((cout,), jnp.float32), jnp.zeros((cout,), jnp.float32))

    p["up0"] = convt(NUM_CHANNELS, NUM_CHANNELS // 2)                    # 32 -> 16
    p["up1"] = convt(NUM_CHANNELS, NUM_CHANNELS // 2)                    # 32 -> 16
    p["up2"] = convt(NUM_CHANNELS // 2 + NUM_CHANNELS // 4,              # 24 -> 12
                     NUM_CHANNELS // 4 + NUM_CHANNELS // 8)
    p["nu3_w"] = nrm(next(keys), (3, 3, NUM_CHANNELS // 2, NUM_CHANNELS // 2))
    p["nu3_b"] = jnp.zeros((NUM_CHANNELS // 2,), jnp.float32)
    p["nu3_g"] = jnp.ones((NUM_CHANNELS // 2,), jnp.float32)
    p["nu3_be"] = jnp.zeros((NUM_CHANNELS // 2,), jnp.float32)
    p["up4"] = convt(NUM_CHANNELS // 2, NUM_CHANNELS // 4)               # 16 -> 8
    p["up5"] = convt(NUM_CHANNELS // 4, 1)                               # 8 -> 1
    p["bn_g"] = jnp.ones((1,), jnp.float32)
    p["bn_b"] = jnp.zeros((1,), jnp.float32)
    return p


# ----------------------------------------------------------------------------------
# Model
# ----------------------------------------------------------------------------------
def swin_backbone(x_nchw, p):
    """Synthetic Swin-like backbone producing stage0..stage3 feature maps (NHWC)."""
    x = jnp.transpose(x_nchw, (0, 2, 3, 1))  # -> NHWC
    B, H, W, _ = x.shape
    # patch_embed: 4x4 stride-4 conv == space-to-depth + fused linear+LayerNorm.
    xs = (x.reshape(B, H // 4, 4, W // 4, 4, 3)
            .transpose(0, 1, 3, 2, 4, 5)
            .reshape(B * (H // 4) * (W // 4), 48))
    E = p["patch_w"].shape[-1]
    e = pallas_linear_ln(xs, p["patch_w"].reshape(48, E), p["patch_b"],
                         p["patch_ln_g"], p["patch_ln_b"])
    h = e.reshape(B, H // 4, W // 4, E)
    feats = []
    for i, s in enumerate(p["stages"]):
        if i > 0:  # patch merging: 2x2 -> fused linear(4C->2C)+LN
            Bb, Hh, Ww, Cc = h.shape
            h4 = (h.reshape(Bb, Hh // 2, 2, Ww // 2, 2, Cc)
                    .transpose(0, 1, 3, 2, 4, 5)
                    .reshape(Bb * (Hh // 2) * (Ww // 2), 4 * Cc))
            Cn = s["red_w"].shape[1]
            h = pallas_linear_ln(h4, s["red_w"], jnp.zeros((Cn,), jnp.float32),
                                 s["red_ln_g"], s["red_ln_b"]).reshape(Bb, Hh // 2, Ww // 2, Cn)
        Bb, Hh, Ww, Cc = h.shape
        h = pallas_stage_mlp(h.reshape(-1, Cc), s["ln_g"], s["ln_b"],
                             s["w1"], s["b1"], s["w2"], s["b2"]).reshape(Bb, Hh, Ww, Cc)
        feats.append(h)
    return feats  # [stage0, stage1, stage2, stage3], NHWC


def up_block(x, params):
    """ConvTranspose2d(k=4, s=2, p=1) -> BatchNorm2d (batch stats) -> ReLU."""
    w, b, g, be = params
    y = conv_transpose2d_nhwc(x, w, b)
    return pallas_batchnorm_nhwc(y, g, be, relu=True)


def pixel_swin_t_forward(x_nchw, p):
    """Forward pass of PixelSwinT in its constructed state
    (epoch_loss_threshold_achieved=False, training=True). Returns (x, intermediate) in NCHW."""
    # self.resize: input is already supplied at input_resolution -> identity.
    stage0, stage1, stage2, stage3 = swin_backbone(x_nchw, p)

    # decoder (executed exactly as in the PyTorch forward, even though this branch
    # does not use up5 in its return value)
    up0 = up_block(stage3, p["up0"])
    up1 = up_block(jnp.concatenate([up0, stage2], axis=-1), p["up1"])
    up2 = up_block(jnp.concatenate([up1, stage1], axis=-1), p["up2"])
    nu3 = conv2d_nhwc(jnp.concatenate([up2, stage0], axis=-1),
                      p["nu3_w"], p["nu3_b"], stride=1, padding=2, dilation=2)
    nu3 = pallas_batchnorm_nhwc(nu3, p["nu3_g"], p["nu3_be"], relu=True)
    up4 = up_block(nu3, p["up4"])
    up5 = up_block(up4, p["up5"])
    del up5  # unused in the epoch_loss_threshold_achieved == False branch

    # swin_x = self.swin(x) with head = Identity  -> final LayerNorm of stage3 (NHWC)
    B, H3, W3, C3 = stage3.shape
    swin_x = pallas_layernorm(stage3.reshape(-1, C3), p["norm_g"], p["norm_b"])  # (B*H3*W3, C3)

    # reduce_channels (1x1 conv) and bilinear upsampling are both linear maps acting
    # on different axes, and the bilinear weights sum to 1, so
    #   upsample(reduce(z)) == reduce(upsample(z))   (exact in real arithmetic).
    # Hence `intermediate` and the pre-BatchNorm `x` of the original module are the
    # same tensor: compute it once, lane-dense, as a (B, OH*OW) matmul.
    v = pallas_matmul(swin_x, p["reduce_w"], p["reduce_b"])          # (B*H3*W3, 1)
    mh = bilinear_matrix(H3, OUTPUT_RES)                             # (OH, H3)
    mw = bilinear_matrix(W3, OUTPUT_RES)                             # (OW, W3)
    m2 = (mh[:, None, :, None] * mw[None, :, None, :]).reshape(
        OUTPUT_RES * OUTPUT_RES, H3 * W3)                            # kron(mh, mw)
    rows = pallas_matmul(v.reshape(B, H3 * W3), m2.T)                # (B, OH*OW), lane-dense

    inter = rows.reshape(B, 1, OUTPUT_RES, OUTPUT_RES)               # NCHW (C=1: pure reshape)

    xo = pallas_batchnorm_nhwc(rows.reshape(B, OUTPUT_RES, OUTPUT_RES, 1),
                               p["bn_g"], p["bn_b"], relu=False)
    xo = xo.reshape(B, 1, OUTPUT_RES, OUTPUT_RES)                    # NCHW
    # (torch.sigmoid only applies in the other branch when not training -> not reached)
    return xo, inter


# ----------------------------------------------------------------------------------
if __name__ == "__main__":
    key = jax.random.PRNGKey(0)
    k_param, k_x = jax.random.split(key)
    params = init_params(k_param)
    x = jax.random.normal(k_x, (2, 3, INPUT_RES, INPUT_RES), jnp.float32)  # NCHW input

    fwd = jax.jit(pixel_swin_t_forward)
    out, intermediate = fwd(x, params)
    jax.block_until_ready((out, intermediate))

    assert out.shape == (2, 1, OUTPUT_RES, OUTPUT_RES), out.shape
    assert intermediate.shape == (2, 1, OUTPUT_RES, OUTPUT_RES), intermediate.shape
    print("KERNEL_OK")
</pallas_src>

<mosaic_0001>
module attributes {stable_mosaic.version = 11 : i64} {
  func.func private @main(%arg0: i32) attributes {dimension_semantics = [#tpu.dimension_semantics<core_parallel>], iteration_bounds = array<i64: 2>, tpu.core_type = #tpu.core_type<sc_scalar_subcore>, window_params = []} {
    return
  }
}

module attributes {stable_mosaic.version = 11 : i64} {
  func.func private @main(%arg0: i32) attributes {dimension_semantics = [#tpu.dimension_semantics<core_parallel>], iteration_bounds = array<i64: 2>, tpu.core_type = #tpu.core_type<sc_scalar_subcore>, window_params = []} {
    return
  }
}

module attributes {stable_mosaic.version = 11 : i64} {
  func.func @_linear_ln_kernel(%arg0: i32, %arg1: memref<256x48xf32, #tpu.memory_space<vmem>>, %arg2: memref<48x4xbf16, #tpu.memory_space<vmem>>, %arg3: memref<1x4xf32, #tpu.memory_space<vmem>>, %arg4: memref<1x4xf32, #tpu.memory_space<vmem>>, %arg5: memref<1x4xf32, #tpu.memory_space<vmem>>, %arg6: memref<256x4xf32, #tpu.memory_space<vmem>>) attributes {dimension_semantics = [#tpu.dimension_semantics<parallel>], iteration_bounds = array<i64: 2>, scalar_prefetch = 0 : i64, scratch_operands = 0 : i64, tpu.core_type = #tpu.core_type<tc>, window_params = [{transform_indices = @transform_0, window_bounds = array<i64: 256, 48>}, {pipeline_mode = #tpu.pipeline_mode<synchronous>, transform_indices = @transform_1, window_bounds = array<i64: 48, 4>}, {pipeline_mode = #tpu.pipeline_mode<synchronous>, transform_indices = @transform_2, window_bounds = array<i64: 1, 4>}, {pipeline_mode = #tpu.pipeline_mode<synchronous>, transform_indices = @transform_3, window_bounds = array<i64: 1, 4>}, {pipeline_mode = #tpu.pipeline_mode<synchronous>, transform_indices = @transform_4, window_bounds = array<i64: 1, 4>}, {transform_indices = @transform_5, window_bounds = array<i64: 256, 4>}]} {
    %c0 = arith.constant 0 : index
    %c0_0 = arith.constant 0 : index
    %0 = vector.load %arg1[%c0, %c0_0] : memref<256x48xf32, #tpu.memory_space<vmem>>, vector<256x48xf32>
    %1 = arith.truncf %0 : vector<256x48xf32> to vector<256x48xbf16>
    %c0_1 = arith.constant 0 : index
    %c0_2 = arith.constant 0 : index
    %2 = vector.load %arg2[%c0_1, %c0_2] : memref<48x4xbf16, #tpu.memory_space<vmem>>, vector<48x4xbf16>
    %cst = arith.constant dense<0.000000e+00> : vector<256x4xf32>
    %3 = tpu.matmul %1, %2, %cst {dimension_numbers = #tpu.dot_dimension_numbers<[1], [0], [0], [1], [0, 0, 1, 1], [], []>} : vector<256x48xbf16>, vector<48x4xbf16>, vector<256x4xf32> -> vector<256x4xf32>
    %c0_3 = arith.constant 0 : index
    %c0_4 = arith.constant 0 : index
    %4 = vector.load %arg3[%c0_3, %c0_4] : memref<1x4xf32, #tpu.memory_space<vmem>>, vector<1x4xf32>
    %5 = vector.broadcast %4 : vector<1x4xf32> to vector<256x4xf32>
    %6 = arith.addf %3, %5 : vector<256x4xf32>
    %cst_5 = arith.constant dense<0.000000e+00> : vector<256xf32>
    %7 = vector.multi_reduction <add>, %6, %cst_5 [1] : vector<256x4xf32> to vector<256xf32>
    %8 = vector.shape_cast %7 : vector<256xf32> to vector<256x1xf32>
    %cst_6 = arith.constant 2.500000e-01 : f32
    %9 = vector.broadcast %cst_6 : f32 to vector<256x1xf32>
    %10 = arith.mulf %8, %9 : vector<256x1xf32>
    %11 = vector.broadcast %10 : vector<256x1xf32> to vector<256x4xf32>
    %12 = arith.subf %6, %11 : vector<256x4xf32>
    %13 = arith.mulf %12, %12 : vector<256x4xf32>
    %cst_7 = arith.constant dense<0.000000e+00> : vector<256xf32>
    %14 = vector.multi_reduction <add>, %13, %cst_7 [1] : vector<256x4xf32> to vector<256xf32>
    %15 = vector.shape_cast %14 : vector<256xf32> to vector<256x1xf32>
    %cst_8 = arith.constant 2.500000e-01 : f32
    %16 = vector.broadcast %cst_8 : f32 to vector<256x1xf32>
    %17 = arith.mulf %15, %16 : vector<256x1xf32>
    %cst_9 = arith.constant 9.99999974E-6 : f32
    %18 = vector.broadcast %cst_9 : f32 to vector<256x1xf32>
    %19 = arith.addf %17, %18 : vector<256x1xf32>
    %20 = math.rsqrt %19 : vector<256x1xf32>
    %21 = vector.broadcast %20 : vector<256x1xf32> to vector<256x4xf32>
    %22 = arith.mulf %12, %21 : vector<256x4xf32>
    %c0_10 = arith.constant 0 : index
    %c0_11 = arith.constant 0 : index
    %23 = vector.load %arg4[%c0_10, %c0_11] : memref<1x4xf32, #tpu.memory_space<vmem>>, vector<1x4xf32>
    %24 = vector.broadcast %23 : vector<1x4xf32> to vector<256x4xf32>
    %25 = arith.mulf %22, %24 : vector<256x4xf32>
    %c0_12 = arith.constant 0 : index
    %c0_13 = arith.constant 0 : index
    %26 = vector.load %arg5[%c0_12, %c0_13] : memref<1x4xf32, #tpu.memory_space<vmem>>, vector<1x4xf32>
    %27 = vector.broadcast %26 : vector<1x4xf32> to vector<256x4xf32>
    %28 = arith.addf %25, %27 : vector<256x4xf32>
    %c0_14 = arith.constant 0 : index
    %c0_15 = arith.constant 0 : index
    %29 = vector.load %arg6[%c0_14, %c0_15] : memref<256x4xf32, #tpu.memory_space<vmem>>, vector<256x4xf32>
    tpu.vector_store %arg6[%c0_14, %c0_15], %28 {strides = array<i32>} : memref<256x4xf32, #tpu.memory_space<vmem>>, vector<256x4xf32>,
    return
  }
  func.func @transform_0(%arg0: i32) -> (i32, i32) {
    %c0_i32 = arith.constant 0 : i32
    %c0_i32_0 = arith.constant 0 : i32
    return %arg0, %c0_i32 : i32, i32
  }
  func.func @transform_1(%arg0: i32) -> (i32, i32) {
    %c0_i32 = arith.constant 0 : i32
    %c0_i32_0 = arith.constant 0 : i32
    %c0_i32_1 = arith.constant 0 : i32
    return %c0_i32, %c0_i32_0 : i32, i32
  }
  func.func @transform_2(%arg0: i32) -> (i32, i32) {
    %c0_i32 = arith.constant 0 : i32
    %c0_i32_0 = arith.constant 0 : i32
    %c0_i32_1 = arith.constant 0 : i32
    return %c0_i32, %c0_i32_0 : i32, i32
  }
  func.func @transform_3(%arg0: i32) -> (i32, i32) {
    %c0_i32 = arith.constant 0 : i32
    %c0_i32_0 = arith.constant 0 : i32
    %c0_i32_1 = arith.constant 0 : i32
    return %c0_i32, %c0_i32_0 : i32, i32
  }
  func.func @transform_4(%arg0: i32) -> (i32, i32) {
    %c0_i32 = arith.constant 0 : i32
    %c0_i32_0 = arith.constant 0 : i32
    %c0_i32_1 = arith.constant 0 : i32
    return %c0_i32, %c0_i32_0 : i32, i32
  }
  func.func @transform_5(%arg0: i32) -> (i32, i32) {
    %c0_i32 = arith.constant 0 : i32
    %c0_i32_0 = arith.constant 0 : i32
    return %arg0, %c0_i32 : i32, i32
  }
}

module attributes {stable_mosaic.version = 11 : i64} {
  func.func @_stage_mlp_kernel(%arg0: i32, %arg1: memref<256x4xf32, #tpu.memory_space<vmem>>, %arg2: memref<1x4xf32, #tpu.memory_space<vmem>>, %arg3: memref<1x4xf32, #tpu.memory_space<vmem>>, %arg4: memref<4x8xbf16, #tpu.memory_space<vmem>>, %arg5: memref<1x8xf32, #tpu.memory_space<vmem>>, %arg6: memref<8x4xbf16, #tpu.memory_space<vmem>>, %arg7: memref<1x4xf32, #tpu.memory_space<vmem>>, %arg8: memref<256x4xf32, #tpu.memory_space<vmem>>) attributes {dimension_semantics = [#tpu.dimension_semantics<parallel>], iteration_bounds = array<i64: 2>, scalar_prefetch = 0 : i64, scratch_operands = 0 : i64, tpu.core_type = #tpu.core_type<tc>, window_params = [{transform_indices = @transform_0, window_bounds = array<i64: 256, 4>}, {pipeline_mode = #tpu.pipeline_mode<synchronous>, transform_indices = @transform_1, window_bounds = array<i64: 1, 4>}, {pipeline_mode = #tpu.pipeline_mode<synchronous>, transform_indices = @transform_2, window_bounds = array<i64: 1, 4>}, {pipeline_mode = #tpu.pipeline_mode<synchronous>, transform_indices = @transform_3, window_bounds = array<i64: 4, 8>}, {pipeline_mode = #tpu.pipeline_mode<synchronous>, transform_indices = @transform_4, window_bounds = array<i64: 1, 8>}, {pipeline_mode = #tpu.pipeline_mode<synchronous>, transform_indices = @transform_5, window_bounds = array<i64: 8, 4>}, {pipeline_mode = #tpu.pipeline_mode<synchronous>, transform_indices = @transform_6, window_bounds = array<i64: 1, 4>}, {transform_indices = @transform_7, window_bounds = array<i64: 256, 4>}]} {
    %c0 = arith.constant 0 : index
    %c0_0 = arith.constant 0 : index
    %0 = vector.load %arg1[%c0, %c0_0] : memref<256x4xf32, #tpu.memory_space<vmem>>, vector<256x4xf32>
    %cst = arith.constant dense<0.000000e+00> : vector<256xf32>
    %1 = vector.multi_reduction <add>, %0, %cst [1] : vector<256x4xf32> to vector<256xf32>
    %2 = vector.shape_cast %1 : vector<256xf32> to vector<256x1xf32>
    %cst_1 = arith.constant 2.500000e-01 : f32
    %3 = vector.broadcast %cst_1 : f32 to vector<256x1xf32>
    %4 = arith.mulf %2, %3 : vector<256x1xf32>
    %5 = vector.broadcast %4 : vector<256x1xf32> to vector<256x4xf32>
    %6 = arith.subf %0, %5 : vector<256x4xf32>
    %7 = arith.mulf %6, %6 : vector<256x4xf32>
    %cst_2 = arith.constant dense<0.000000e+00> : vector<256xf32>
    %8 = vector.multi_reduction <add>, %7, %cst_2 [1] : vector<256x4xf32> to vector<256xf32>
    %9 = vector.shape_cast %8 : vector<256xf32> to vector<256x1xf32>
    %cst_3 = arith.constant 2.500000e-01 : f32
    %10 = vector.broadcast %cst_3 : f32 to vector<256x1xf32>
    %11 = arith.mulf %9, %10 : vector<256x1xf32>
    %cst_4 = arith.constant 9.99999974E-6 : f32
    %12 = vector.broadcast %cst_4 : f32 to vector<256x1xf32>
    %13 = arith.addf %11, %12 : vector<256x1xf32>
    %14 = math.rsqrt %13 : vector<256x1xf32>
    %15 = vector.broadcast %14 : vector<256x1xf32> to vector<256x4xf32>
    %16 = arith.mulf %6, %15 : vector<256x4xf32>
    %c0_5 = arith.constant 0 : index
    %c0_6 = arith.constant 0 : index
    %17 = vector.load %arg2[%c0_5, %c0_6] : memref<1x4xf32, #tpu.memory_space<vmem>>, vector<1x4xf32>
    %18 = vector.broadcast %17 : vector<1x4xf32> to vector<256x4xf32>
    %19 = arith.mulf %16, %18 : vector<256x4xf32>
    %c0_7 = arith.constant 0 : index
    %c0_8 = arith.constant 0 : index
    %20 = vector.load %arg3[%c0_7, %c0_8] : memref<1x4xf32, #tpu.memory_space<vmem>>, vector<1x4xf32>
    %21 = vector.broadcast %20 : vector<1x4xf32> to vector<256x4xf32>
    %22 = arith.addf %19, %21 : vector<256x4xf32>
    %23 = arith.truncf %22 : vector<256x4xf32> to vector<256x4xbf16>
    %c0_9 = arith.constant 0 : index
    %c0_10 = arith.constant 0 : index
    %24 = vector.load %arg4[%c0_9, %c0_10] : memref<4x8xbf16, #tpu.memory_space<vmem>>, vector<4x8xbf16>
    %cst_11 = arith.constant dense<0.000000e+00> : vector<256x8xf32>
    %25 = tpu.matmul %23, %24, %cst_11 {dimension_numbers = #tpu.dot_dimension_numbers<[1], [0], [0], [1], [0, 0, 1, 1], [], []>} : vector<256x4xbf16>, vector<4x8xbf16>, vector<256x8xf32> -> vector<256x8xf32>
    %c0_12 = arith.constant 0 : index
    %c0_13 = arith.constant 0 : index
    %26 = vector.load %arg5[%c0_12, %c0_13] : memref<1x8xf32, #tpu.memory_space<vmem>>, vector<1x8xf32>
    %27 = vector.broadcast %26 : vector<1x8xf32> to vector<256x8xf32>
    %28 = arith.addf %25, %27 : vector<256x8xf32>
    %29 = arith.mulf %28, %28 : vector<256x8xf32>
    %30 = arith.mulf %28, %29 : vector<256x8xf32>
    %cst_14 = arith.constant 4.471500e-02 : f32
    %31 = vector.broadcast %cst_14 : f32 to vector<256x8xf32>
    %32 = arith.mulf %31, %30 : vector<256x8xf32>
    %33 = arith.addf %28, %32 : vector<256x8xf32>
    %cst_15 = arith.constant 0.797884583 : f32
    %34 = vector.broadcast %cst_15 : f32 to vector<256x8xf32>
    %35 = arith.mulf %34, %33 : vector<256x8xf32>
    %36 = math.tanh %35 : vector<256x8xf32>
    %cst_16 = arith.constant 1.000000e+00 : f32
    %37 = vector.broadcast %cst_16 : f32 to vector<256x8xf32>
    %38 = arith.addf %37, %36 : vector<256x8xf32>
    %cst_17 = arith.constant 5.000000e-01 : f32
    %39 = vector.broadcast %cst_17 : f32 to vector<256x8xf32>
    %40 = arith.mulf %39, %38 : vector<256x8xf32>
    %41 = arith.mulf %28, %40 : vector<256x8xf32>
    %42 = arith.truncf %41 : vector<256x8xf32> to vector<256x8xbf16>
    %c0_18 = arith.constant 0 : index
    %c0_19 = arith.constant 0 : index
    %43 = vector.load %arg6[%c0_18, %c0_19] : memref<8x4xbf16, #tpu.memory_space<vmem>>, vector<8x4xbf16>
    %cst_20 = arith.constant dense<0.000000e+00> : vector<256x4xf32>
    %44 = tpu.matmul %42, %43, %cst_20 {dimension_numbers = #tpu.dot_dimension_numbers<[1], [0], [0], [1], [0, 0, 1, 1], [], []>} : vector<256x8xbf16>, vector<8x4xbf16>, vector<256x4xf32> -> vector<256x4xf32>
    %45 = arith.addf %0, %44 : vector<256x4xf32>
    %c0_21 = arith.constant 0 : index
    %c0_22 = arith.constant 0 : index
    %46 = vector.load %arg7[%c0_21, %c0_22] : memref<1x4xf32, #tpu.memory_space<vmem>>, vector<1x4xf32>
    %47 = vector.broadcast %46 : vector<1x4xf32> to vector<256x4xf32>
    %48 = arith.addf %45, %47 : vector<256x4xf32>
    %c0_23 = arith.constant 0 : index
    %c0_24 = arith.constant 0 : index
    %49 = vector.load %arg8[%c0_23, %c0_24] : memref<256x4xf32, #tpu.memory_space<vmem>>, vector<256x4xf32>
    tpu.vector_store %arg8[%c0_23, %c0_24], %48 {strides = array<i32>} : memref<256x4xf32, #tpu.memory_space<vmem>>, vector<256x4xf32>,
    return
  }
  func.func @transform_0(%arg0: i32) -> (i32, i32) {
    %c0_i32 = arith.constant 0 : i32
    %c0_i32_0 = arith.constant 0 : i32
    return %arg0, %c0_i32 : i32, i32
  }
  func.func @transform_1(%arg0: i32) -> (i32, i32) {
    %c0_i32 = arith.constant 0 : i32
    %c0_i32_0 = arith.constant 0 : i32
    %c0_i32_1 = arith.constant 0 : i32
    return %c0_i32, %c0_i32_0 : i32, i32
  }
  func.func @transform_2(%arg0: i32) -> (i32, i32) {
    %c0_i32 = arith.constant 0 : i32
    %c0_i32_0 = arith.constant 0 : i32
    %c0_i32_1 = arith.constant 0 : i32
    return %c0_i32, %c0_i32_0 : i32, i32
  }
  func.func @transform_3(%arg0: i32) -> (i32, i32) {
    %c0_i32 = arith.constant 0 : i32
    %c0_i32_0 = arith.constant 0 : i32
    %c0_i32_1 = arith.constant 0 : i32
    return %c0_i32, %c0_i32_0 : i32, i32
  }
  func.func @transform_4(%arg0: i32) -> (i32, i32) {
    %c0_i32 = arith.constant 0 : i32
    %c0_i32_0 = arith.constant 0 : i32
    %c0_i32_1 = arith.constant 0 : i32
    return %c0_i32, %c0_i32_0 : i32, i32
  }
  func.func @transform_5(%arg0: i32) -> (i32, i32) {
    %c0_i32 = arith.constant 0 : i32
    %c0_i32_0 = arith.constant 0 : i32
    %c0_i32_1 = arith.constant 0 : i32
    return %c0_i32, %c0_i32_0 : i32, i32
  }
  func.func @transform_6(%arg0: i32) -> (i32, i32) {
    %c0_i32 = arith.constant 0 : i32
    %c0_i32_0 = arith.constant 0 : i32
    %c0_i32_1 = arith.constant 0 : i32
    return %c0_i32, %c0_i32_0 : i32, i32
  }
  func.func @transform_7(%arg0: i32) -> (i32, i32) {
    %c0_i32 = arith.constant 0 : i32
    %c0_i32_0 = arith.constant 0 : i32
    return %arg0, %c0_i32 : i32, i32
  }
}

module attributes {stable_mosaic.version = 11 : i64} {
  func.func @_stage_mlp_kernel(%arg0: i32, %arg1: memref<128x8xf32, #tpu.memory_space<vmem>>, %arg2: memref<1x8xf32, #tpu.memory_space<vmem>>, %arg3: memref<1x8xf32, #tpu.memory_space<vmem>>, %arg4: memref<8x16xbf16, #tpu.memory_space<vmem>>, %arg5: memref<1x16xf32, #tpu.memory_space<vmem>>, %arg6: memref<16x8xbf16, #tpu.memory_space<vmem>>, %arg7: memref<1x8xf32, #tpu.memory_space<vmem>>, %arg8: memref<128x8xf32, #tpu.memory_space<vmem>>) attributes {dimension_semantics = [#tpu.dimension_semantics<parallel>], iteration_bounds = array<i64: 1>, scalar_prefetch = 0 : i64, scratch_operands = 0 : i64, tpu.core_type = #tpu.core_type<tc>, window_params = [{transform_indices = @transform_0, window_bounds = array<i64: 128, 8>}, {pipeline_mode = #tpu.pipeline_mode<synchronous>, transform_indices = @transform_1, window_bounds = array<i64: 1, 8>}, {pipeline_mode = #tpu.pipeline_mode<synchronous>, transform_indices = @transform_2, window_bounds = array<i64: 1, 8>}, {pipeline_mode = #tpu.pipeline_mode<synchronous>, transform_indices = @transform_3, window_bounds = array<i64: 8, 16>}, {pipeline_mode = #tpu.pipeline_mode<synchronous>, transform_indices = @transform_4, window_bounds = array<i64: 1, 16>}, {pipeline_mode = #tpu.pipeline_mode<synchronous>, transform_indices = @transform_5, window_bounds = array<i64: 16, 8>}, {pipeline_mode = #tpu.pipeline_mode<synchronous>, transform_indices = @transform_6, window_bounds = array<i64: 1, 8>}, {transform_indices = @transform_7, window_bounds = array<i64: 128, 8>}]} {
    %c0 = arith.constant 0 : index
    %c0_0 = arith.constant 0 : index
    %0 = vector.load %arg1[%c0, %c0_0] : memref<128x8xf32, #tpu.memory_space<vmem>>, vector<128x8xf32>
    %cst = arith.constant dense<0.000000e+00> : vector<128xf32>
    %1 = vector.multi_reduction <add>, %0, %cst [1] : vector<128x8xf32> to vector<128xf32>
    %2 = vector.shape_cast %1 : vector<128xf32> to vector<128x1xf32>
    %cst_1 = arith.constant 1.250000e-01 : f32
    %3 = vector.broadcast %cst_1 : f32 to vector<128x1xf32>
    %4 = arith.mulf %2, %3 : vector<128x1xf32>
    %5 = vector.broadcast %4 : vector<128x1xf32> to vector<128x8xf32>
    %6 = arith.subf %0, %5 : vector<128x8xf32>
    %7 = arith.mulf %6, %6 : vector<128x8xf32>
    %cst_2 = arith.constant dense<0.000000e+00> : vector<128xf32>
    %8 = vector.multi_reduction <add>, %7, %cst_2 [1] : vector<128x8xf32> to vector<128xf32>
    %9 = vector.shape_cast %8 : vector<128xf32> to vector<128x1xf32>
    %cst_3 = arith.constant 1.250000e-01 : f32
    %10 = vector.broadcast %cst_3 : f32 to vector<128x1xf32>
    %11 = arith.mulf %9, %10 : vector<128x1xf32>
    %cst_4 = arith.constant 9.99999974E-6 : f32
    %12 = vector.broadcast %cst_4 : f32 to vector<128x1xf32>
    %13 = arith.addf %11, %12 : vector<128x1xf32>
    %14 = math.rsqrt %13 : vector<128x1xf32>
    %15 = vector.broadcast %14 : vector<128x1xf32> to vector<128x8xf32>
    %16 = arith.mulf %6, %15 : vector<128x8xf32>
    %c0_5 = arith.constant 0 : index
    %c0_6 = arith.constant 0 : index
    %17 = vector.load %arg2[%c0_5, %c0_6] : memref<1x8xf32, #tpu.memory_space<vmem>>, vector<1x8xf32>
    %18 = vector.broadcast %17 : vector<1x8xf32> to vector<128x8xf32>
    %19 = arith.mulf %16, %18 : vector<128x8xf32>
    %c0_7 = arith.constant 0 : index
    %c0_8 = arith.constant 0 : index
    %20 = vector.load %arg3[%c0_7, %c0_8] : memref<1x8xf32, #tpu.memory_space<vmem>>, vector<1x8xf32>
    %21 = vector.broadcast %20 : vector<1x8xf32> to vector<128x8xf32>
    %22 = arith.addf %19, %21 : vector<128x8xf32>
    %23 = arith.truncf %22 : vector<128x8xf32> to vector<128x8xbf16>
    %c0_9 = arith.constant 0 : index
    %c0_10 = arith.constant 0 : index
    %24 = vector.load %arg4[%c0_9, %c0_10] : memref<8x16xbf16, #tpu.memory_space<vmem>>, vector<8x16xbf16>
    %cst_11 = arith.constant dense<0.000000e+00> : vector<128x16xf32>
    %25 = tpu.matmul %23, %24, %cst_11 {dimension_numbers = #tpu.dot_dimension_numbers<[1], [0], [0], [1], [0, 0, 1, 1], [], []>} : vector<128x8xbf16>, vector<8x16xbf16>, vector<128x16xf32> -> vector<128x16xf32>
    %c0_12 = arith.constant 0 : index
    %c0_13 = arith.constant 0 : index
    %26 = vector.load %arg5[%c0_12, %c0_13] : memref<1x16xf32, #tpu.memory_space<vmem>>, vector<1x16xf32>
    %27 = vector.broadcast %26 : vector<1x16xf32> to vector<128x16xf32>
    %28 = arith.addf %25, %27 : vector<128x16xf32>
    %29 = arith.mulf %28, %28 : vector<128x16xf32>
    %30 = arith.mulf %28, %29 : vector<128x16xf32>
    %cst_14 = arith.constant 4.471500e-02 : f32
    %31 = vector.broadcast %cst_14 : f32 to vector<128x16xf32>
    %32 = arith.mulf %31, %30 : vector<128x16xf32>
    %33 = arith.addf %28, %32 : vector<128x16xf32>
    %cst_15 = arith.constant 0.797884583 : f32
    %34 = vector.broadcast %cst_15 : f32 to vector<128x16xf32>
    %35 = arith.mulf %34, %33 : vector<128x16xf32>
    %36 = math.tanh %35 : vector<128x16xf32>
    %cst_16 = arith.constant 1.000000e+00 : f32
    %37 = vector.broadcast %cst_16 : f32 to vector<128x16xf32>
    %38 = arith.addf %37, %36 : vector<128x16xf32>
    %cst_17 = arith.constant 5.000000e-01 : f32
    %39 = vector.broadcast %cst_17 : f32 to vector<128x16xf32>
    %40 = arith.mulf %39, %38 : vector<128x16xf32>
    %41 = arith.mulf %28, %40 : vector<128x16xf32>
    %42 = arith.truncf %41 : vector<128x16xf32> to vector<128x16xbf16>
    %c0_18 = arith.constant 0 : index
    %c0_19 = arith.constant 0 : index
    %43 = vector.load %arg6[%c0_18, %c0_19] : memref<16x8xbf16, #tpu.memory_space<vmem>>, vector<16x8xbf16>
    %cst_20 = arith.constant dense<0.000000e+00> : vector<128x8xf32>
    %44 = tpu.matmul %42, %43, %cst_20 {dimension_numbers = #tpu.dot_dimension_numbers<[1], [0], [0], [1], [0, 0, 1, 1], [], []>} : vector<128x16xbf16>, vector<16x8xbf16>, vector<128x8xf32> -> vector<128x8xf32>
    %45 = arith.addf %0, %44 : vector<128x8xf32>
    %c0_21 = arith.constant 0 : index
    %c0_22 = arith.constant 0 : index
    %46 = vector.load %arg7[%c0_21, %c0_22] : memref<1x8xf32, #tpu.memory_space<vmem>>, vector<1x8xf32>
    %47 = vector.broadcast %46 : vector<1x8xf32> to vector<128x8xf32>
    %48 = arith.addf %45, %47 : vector<128x8xf32>
    %c0_23 = arith.constant 0 : index
    %c0_24 = arith.constant 0 : index
    %49 = vector.load %arg8[%c0_23, %c0_24] : memref<128x8xf32, #tpu.memory_space<vmem>>, vector<128x8xf32>
    tpu.vector_store %arg8[%c0_23, %c0_24], %48 {strides = array<i32>} : memref<128x8xf32, #tpu.memory_space<vmem>>, vector<128x8xf32>,
    return
  }
  func.func @transform_0(%arg0: i32) -> (i32, i32) {
    %c0_i32 = arith.constant 0 : i32
    %c0_i32_0 = arith.constant 0 : i32
    return %arg0, %c0_i32 : i32, i32
  }
  func.func @transform_1(%arg0: i32) -> (i32, i32) {
    %c0_i32 = arith.constant 0 : i32
    %c0_i32_0 = arith.constant 0 : i32
    %c0_i32_1 = arith.constant 0 : i32
    return %c0_i32, %c0_i32_0 : i32, i32
  }
  func.func @transform_2(%arg0: i32) -> (i32, i32) {
    %c0_i32 = arith.constant 0 : i32
    %c0_i32_0 = arith.constant 0 : i32
    %c0_i32_1 = arith.constant 0 : i32
    return %c0_i32, %c0_i32_0 : i32, i32
  }
  func.func @transform_3(%arg0: i32) -> (i32, i32) {
    %c0_i32 = arith.constant 0 : i32
    %c0_i32_0 = arith.constant 0 : i32
    %c0_i32_1 = arith.constant 0 : i32
    return %c0_i32, %c0_i32_0 : i32, i32
  }
  func.func @transform_4(%arg0: i32) -> (i32, i32) {
    %c0_i32 = arith.constant 0 : i32
    %c0_i32_0 = arith.constant 0 : i32
    %c0_i32_1 = arith.constant 0 : i32
    return %c0_i32, %c0_i32_0 : i32, i32
  }
  func.func @transform_5(%arg0: i32) -> (i32, i32) {
    %c0_i32 = arith.constant 0 : i32
    %c0_i32_0 = arith.constant 0 : i32
    %c0_i32_1 = arith.constant 0 : i32
    return %c0_i32, %c0_i32_0 : i32, i32
  }
  func.func @transform_6(%arg0: i32) -> (i32, i32) {
    %c0_i32 = arith.constant 0 : i32
    %c0_i32_0 = arith.constant 0 : i32
    %c0_i32_1 = arith.constant 0 : i32
    return %c0_i32, %c0_i32_0 : i32, i32
  }
  func.func @transform_7(%arg0: i32) -> (i32, i32) {
    %c0_i32 = arith.constant 0 : i32
    %c0_i32_0 = arith.constant 0 : i32
    return %arg0, %c0_i32 : i32, i32
  }
}

module attributes {stable_mosaic.version = 11 : i64} {
  func.func @_linear_ln_kernel(%arg0: i32, %arg1: memref<128x16xf32, #tpu.memory_space<vmem>>, %arg2: memref<16x8xbf16, #tpu.memory_space<vmem>>, %arg3: memref<1x8xf32, #tpu.memory_space<vmem>>, %arg4: memref<1x8xf32, #tpu.memory_space<vmem>>, %arg5: memref<1x8xf32, #tpu.memory_space<vmem>>, %arg6: memref<128x8xf32, #tpu.memory_space<vmem>>) attributes {dimension_semantics = [#tpu.dimension_semantics<parallel>], iteration_bounds = array<i64: 1>, scalar_prefetch = 0 : i64, scratch_operands = 0 : i64, tpu.core_type = #tpu.core_type<tc>, window_params = [{transform_indices = @transform_0, window_bounds = array<i64: 128, 16>}, {pipeline_mode = #tpu.pipeline_mode<synchronous>, transform_indices = @transform_1, window_bounds = array<i64: 16, 8>}, {pipeline_mode = #tpu.pipeline_mode<synchronous>, transform_indices = @transform_2, window_bounds = array<i64: 1, 8>}, {pipeline_mode = #tpu.pipeline_mode<synchronous>, transform_indices = @transform_3, window_bounds = array<i64: 1, 8>}, {pipeline_mode = #tpu.pipeline_mode<synchronous>, transform_indices = @transform_4, window_bounds = array<i64: 1, 8>}, {transform_indices = @transform_5, window_bounds = array<i64: 128, 8>}]} {
    %c0 = arith.constant 0 : index
    %c0_0 = arith.constant 0 : index
    %0 = vector.load %arg1[%c0, %c0_0] : memref<128x16xf32, #tpu.memory_space<vmem>>, vector<128x16xf32>
    %1 = arith.truncf %0 : vector<128x16xf32> to vector<128x16xbf16>
    %c0_1 = arith.constant 0 : index
    %c0_2 = arith.constant 0 : index
    %2 = vector.load %arg2[%c0_1, %c0_2] : memref<16x8xbf16, #tpu.memory_space<vmem>>, vector<16x8xbf16>
    %cst = arith.constant dense<0.000000e+00> : vector<128x8xf32>
    %3 = tpu.matmul %1, %2, %cst {dimension_numbers = #tpu.dot_dimension_numbers<[1], [0], [0], [1], [0, 0, 1, 1], [], []>} : vector<128x16xbf16>, vector<16x8xbf16>, vector<128x8xf32> -> vector<128x8xf32>
    %c0_3 = arith.constant 0 : index
    %c0_4 = arith.constant 0 : index
    %4 = vector.load %arg3[%c0_3, %c0_4] : memref<1x8xf32, #tpu.memory_space<vmem>>, vector<1x8xf32>
    %5 = vector.broadcast %4 : vector<1x8xf32> to vector<128x8xf32>
    %6 = arith.addf %3, %5 : vector<128x8xf32>
    %cst_5 = arith.constant dense<0.000000e+00> : vector<128xf32>
    %7 = vector.multi_reduction <add>, %6, %cst_5 [1] : vector<128x8xf32> to vector<128xf32>
    %8 = vector.shape_cast %7 : vector<128xf32> to vector<128x1xf32>
    %cst_6 = arith.constant 1.250000e-01 : f32
    %9 = vector.broadcast %cst_6 : f32 to vector<128x1xf32>
    %10 = arith.mulf %8, %9 : vector<128x1xf32>
    %11 = vector.broadcast %10 : vector<128x1xf32> to vector<128x8xf32>
    %12 = arith.subf %6, %11 : vector<128x8xf32>
    %13 = arith.mulf %12, %12 : vector<128x8xf32>
    %cst_7 = arith.constant dense<0.000000e+00> : vector<128xf32>
    %14 = vector.multi_reduction <add>, %13, %cst_7 [1] : vector<128x8xf32> to vector<128xf32>
    %15 = vector.shape_cast %14 : vector<128xf32> to vector<128x1xf32>
    %cst_8 = arith.constant 1.250000e-01 : f32
    %16 = vector.broadcast %cst_8 : f32 to vector<128x1xf32>
    %17 = arith.mulf %15, %16 : vector<128x1xf32>
    %cst_9 = arith.constant 9.99999974E-6 : f32
    %18 = vector.broadcast %cst_9 : f32 to vector<128x1xf32>
    %19 = arith.addf %17, %18 : vector<128x1xf32>
    %20 = math.rsqrt %19 : vector<128x1xf32>
    %21 = vector.broadcast %20 : vector<128x1xf32> to vector<128x8xf32>
    %22 = arith.mulf %12, %21 : vector<128x8xf32>
    %c0_10 = arith.constant 0 : index
    %c0_11 = arith.constant 0 : index
    %23 = vector.load %arg4[%c0_10, %c0_11] : memref<1x8xf32, #tpu.memory_space<vmem>>, vector<1x8xf32>
    %24 = vector.broadcast %23 : vector<1x8xf32> to vector<128x8xf32>
    %25 = arith.mulf %22, %24 : vector<128x8xf32>
    %c0_12 = arith.constant 0 : index
    %c0_13 = arith.constant 0 : index
    %26 = vector.load %arg5[%c0_12, %c0_13] : memref<1x8xf32, #tpu.memory_space<vmem>>, vector<1x8xf32>
    %27 = vector.broadcast %26 : vector<1x8xf32> to vector<128x8xf32>
    %28 = arith.addf %25, %27 : vector<128x8xf32>
    %c0_14 = arith.constant 0 : index
    %c0_15 = arith.constant 0 : index
    %29 = vector.load %arg6[%c0_14, %c0_15] : memref<128x8xf32, #tpu.memory_space<vmem>>, vector<128x8xf32>
    tpu.vector_store %arg6[%c0_14, %c0_15], %28 {strides = array<i32>} : memref<128x8xf32, #tpu.memory_space<vmem>>, vector<128x8xf32>,
    return
  }
  func.func @transform_0(%arg0: i32) -> (i32, i32) {
    %c0_i32 = arith.constant 0 : i32
    %c0_i32_0 = arith.constant 0 : i32
    return %arg0, %c0_i32 : i32, i32
  }
  func.func @transform_1(%arg0: i32) -> (i32, i32) {
    %c0_i32 = arith.constant 0 : i32
    %c0_i32_0 = arith.constant 0 : i32
    %c0_i32_1 = arith.constant 0 : i32
    return %c0_i32, %c0_i32_0 : i32, i32
  }
  func.func @transform_2(%arg0: i32) -> (i32, i32) {
    %c0_i32 = arith.constant 0 : i32
    %c0_i32_0 = arith.constant 0 : i32
    %c0_i32_1 = arith.constant 0 : i32
    return %c0_i32, %c0_i32_0 : i32, i32
  }
  func.func @transform_3(%arg0: i32) -> (i32, i32) {
    %c0_i32 = arith.constant 0 : i32
    %c0_i32_0 = arith.constant 0 : i32
    %c0_i32_1 = arith.constant 0 : i32
    return %c0_i32, %c0_i32_0 : i32, i32
  }
  func.func @transform_4(%arg0: i32) -> (i32, i32) {
    %c0_i32 = arith.constant 0 : i32
    %c0_i32_0 = arith.constant 0 : i32
    %c0_i32_1 = arith.constant 0 : i32
    return %c0_i32, %c0_i32_0 : i32, i32
  }
  func.func @transform_5(%arg0: i32) -> (i32, i32) {
    %c0_i32 = arith.constant 0 : i32
    %c0_i32_0 = arith.constant 0 : i32
    return %arg0, %c0_i32 : i32, i32
  }
}

module attributes {stable_mosaic.version = 11 : i64} {
  func.func @_linear_ln_kernel(%arg0: i32, %arg1: memref<32x32xf32, #tpu.memory_space<vmem>>, %arg2: memref<32x16xbf16, #tpu.memory_space<vmem>>, %arg3: memref<1x16xf32, #tpu.memory_space<vmem>>, %arg4: memref<1x16xf32, #tpu.memory_space<vmem>>, %arg5: memref<1x16xf32, #tpu.memory_space<vmem>>, %arg6: memref<32x16xf32, #tpu.memory_space<vmem>>) attributes {dimension_semantics = [#tpu.dimension_semantics<parallel>], iteration_bounds = array<i64: 1>, scalar_prefetch = 0 : i64, scratch_operands = 0 : i64, tpu.core_type = #tpu.core_type<tc>, window_params = [{transform_indices = @transform_0, window_bounds = array<i64: 32, 32>}, {pipeline_mode = #tpu.pipeline_mode<synchronous>, transform_indices = @transform_1, window_bounds = array<i64: 32, 16>}, {pipeline_mode = #tpu.pipeline_mode<synchronous>, transform_indices = @transform_2, window_bounds = array<i64: 1, 16>}, {pipeline_mode = #tpu.pipeline_mode<synchronous>, transform_indices = @transform_3, window_bounds = array<i64: 1, 16>}, {pipeline_mode = #tpu.pipeline_mode<synchronous>, transform_indices = @transform_4, window_bounds = array<i64: 1, 16>}, {transform_indices = @transform_5, window_bounds = array<i64: 32, 16>}]} {
    %c0 = arith.constant 0 : index
    %c0_0 = arith.constant 0 : index
    %0 = vector.load %arg1[%c0, %c0_0] : memref<32x32xf32, #tpu.memory_space<vmem>>, vector<32x32xf32>
    %1 = arith.truncf %0 : vector<32x32xf32> to vector<32x32xbf16>
    %c0_1 = arith.constant 0 : index
    %c0_2 = arith.constant 0 : index
    %2 = vector.load %arg2[%c0_1, %c0_2] : memref<32x16xbf16, #tpu.memory_space<vmem>>, vector<32x16xbf16>
    %cst = arith.constant dense<0.000000e+00> : vector<32x16xf32>
    %3 = tpu.matmul %1, %2, %cst {dimension_numbers = #tpu.dot_dimension_numbers<[1], [0], [0], [1], [0, 0, 1, 1], [], []>} : vector<32x32xbf16>, vector<32x16xbf16>, vector<32x16xf32> -> vector<32x16xf32>
    %c0_3 = arith.constant 0 : index
    %c0_4 = arith.constant 0 : index
    %4 = vector.load %arg3[%c0_3, %c0_4] : memref<1x16xf32, #tpu.memory_space<vmem>>, vector<1x16xf32>
    %5 = vector.broadcast %4 : vector<1x16xf32> to vector<32x16xf32>
    %6 = arith.addf %3, %5 : vector<32x16xf32>
    %cst_5 = arith.constant dense<0.000000e+00> : vector<32xf32>
    %7 = vector.multi_reduction <add>, %6, %cst_5 [1] : vector<32x16xf32> to vector<32xf32>
    %8 = vector.shape_cast %7 : vector<32xf32> to vector<32x1xf32>
    %cst_6 = arith.constant 6.250000e-02 : f32
    %9 = vector.broadcast %cst_6 : f32 to vector<32x1xf32>
    %10 = arith.mulf %8, %9 : vector<32x1xf32>
    %11 = vector.broadcast %10 : vector<32x1xf32> to vector<32x16xf32>
    %12 = arith.subf %6, %11 : vector<32x16xf32>
    %13 = arith.mulf %12, %12 : vector<32x16xf32>
    %cst_7 = arith.constant dense<0.000000e+00> : vector<32xf32>
    %14 = vector.multi_reduction <add>, %13, %cst_7 [1] : vector<32x16xf32> to vector<32xf32>
    %15 = vector.shape_cast %14 : vector<32xf32> to vector<32x1xf32>
    %cst_8 = arith.constant 6.250000e-02 : f32
    %16 = vector.broadcast %cst_8 : f32 to vector<32x1xf32>
    %17 = arith.mulf %15, %16 : vector<32x1xf32>
    %cst_9 = arith.constant 9.99999974E-6 : f32
    %18 = vector.broadcast %cst_9 : f32 to vector<32x1xf32>
    %19 = arith.addf %17, %18 : vector<32x1xf32>
    %20 = math.rsqrt %19 : vector<32x1xf32>
    %21 = vector.broadcast %20 : vector<32x1xf32> to vector<32x16xf32>
    %22 = arith.mulf %12, %21 : vector<32x16xf32>
    %c0_10 = arith.constant 0 : index
    %c0_11 = arith.constant 0 : index
    %23 = vector.load %arg4[%c0_10, %c0_11] : memref<1x16xf32, #tpu.memory_space<vmem>>, vector<1x16xf32>
    %24 = vector.broadcast %23 : vector<1x16xf32> to vector<32x16xf32>
    %25 = arith.mulf %22, %24 : vector<32x16xf32>
    %c0_12 = arith.constant 0 : index
    %c0_13 = arith.constant 0 : index
    %26 = vector.load %arg5[%c0_12, %c0_13] : memref<1x16xf32, #tpu.memory_space<vmem>>, vector<1x16xf32>
    %27 = vector.broadcast %26 : vector<1x16xf32> to vector<32x16xf32>
    %28 = arith.addf %25, %27 : vector<32x16xf32>
    %c0_14 = arith.constant 0 : index
    %c0_15 = arith.constant 0 : index
    %29 = vector.load %arg6[%c0_14, %c0_15] : memref<32x16xf32, #tpu.memory_space<vmem>>, vector<32x16xf32>
    tpu.vector_store %arg6[%c0_14, %c0_15], %28 {strides = array<i32>} : memref<32x16xf32, #tpu.memory_space<vmem>>, vector<32x16xf32>,
    return
  }
  func.func @transform_0(%arg0: i32) -> (i32, i32) {
    %c0_i32 = arith.constant 0 : i32
    %c0_i32_0 = arith.constant 0 : i32
    return %arg0, %c0_i32 : i32, i32
  }
  func.func @transform_1(%arg0: i32) -> (i32, i32) {
    %c0_i32 = arith.constant 0 : i32
    %c0_i32_0 = arith.constant 0 : i32
    %c0_i32_1 = arith.constant 0 : i32
    return %c0_i32, %c0_i32_0 : i32, i32
  }
  func.func @transform_2(%arg0: i32) -> (i32, i32) {
    %c0_i32 = arith.constant 0 : i32
    %c0_i32_0 = arith.constant 0 : i32
    %c0_i32_1 = arith.constant 0 : i32
    return %c0_i32, %c0_i32_0 : i32, i32
  }
  func.func @transform_3(%arg0: i32) -> (i32, i32) {
    %c0_i32 = arith.constant 0 : i32
    %c0_i32_0 = arith.constant 0 : i32
    %c0_i32_1 = arith.constant 0 : i32
    return %c0_i32, %c0_i32_0 : i32, i32
  }
  func.func @transform_4(%arg0: i32) -> (i32, i32) {
    %c0_i32 = arith.constant 0 : i32
    %c0_i32_0 = arith.constant 0 : i32
    %c0_i32_1 = arith.constant 0 : i32
    return %c0_i32, %c0_i32_0 : i32, i32
  }
  func.func @transform_5(%arg0: i32) -> (i32, i32) {
    %c0_i32 = arith.constant 0 : i32
    %c0_i32_0 = arith.constant 0 : i32
    return %arg0, %c0_i32 : i32, i32
  }
}

module attributes {stable_mosaic.version = 11 : i64} {
  func.func @_stage_mlp_kernel(%arg0: i32, %arg1: memref<32x16xf32, #tpu.memory_space<vmem>>, %arg2: memref<1x16xf32, #tpu.memory_space<vmem>>, %arg3: memref<1x16xf32, #tpu.memory_space<vmem>>, %arg4: memref<16x32xbf16, #tpu.memory_space<vmem>>, %arg5: memref<1x32xf32, #tpu.memory_space<vmem>>, %arg6: memref<32x16xbf16, #tpu.memory_space<vmem>>, %arg7: memref<1x16xf32, #tpu.memory_space<vmem>>, %arg8: memref<32x16xf32, #tpu.memory_space<vmem>>) attributes {dimension_semantics = [#tpu.dimension_semantics<parallel>], iteration_bounds = array<i64: 1>, scalar_prefetch = 0 : i64, scratch_operands = 0 : i64, tpu.core_type = #tpu.core_type<tc>, window_params = [{transform_indices = @transform_0, window_bounds = array<i64: 32, 16>}, {pipeline_mode = #tpu.pipeline_mode<synchronous>, transform_indices = @transform_1, window_bounds = array<i64: 1, 16>}, {pipeline_mode = #tpu.pipeline_mode<synchronous>, transform_indices = @transform_2, window_bounds = array<i64: 1, 16>}, {pipeline_mode = #tpu.pipeline_mode<synchronous>, transform_indices = @transform_3, window_bounds = array<i64: 16, 32>}, {pipeline_mode = #tpu.pipeline_mode<synchronous>, transform_indices = @transform_4, window_bounds = array<i64: 1, 32>}, {pipeline_mode = #tpu.pipeline_mode<synchronous>, transform_indices = @transform_5, window_bounds = array<i64: 32, 16>}, {pipeline_mode = #tpu.pipeline_mode<synchronous>, transform_indices = @transform_6, window_bounds = array<i64: 1, 16>}, {transform_indices = @transform_7, window_bounds = array<i64: 32, 16>}]} {
    %c0 = arith.constant 0 : index
    %c0_0 = arith.constant 0 : index
    %0 = vector.load %arg1[%c0, %c0_0] : memref<32x16xf32, #tpu.memory_space<vmem>>, vector<32x16xf32>
    %cst = arith.constant dense<0.000000e+00> : vector<32xf32>
    %1 = vector.multi_reduction <add>, %0, %cst [1] : vector<32x16xf32> to vector<32xf32>
    %2 = vector.shape_cast %1 : vector<32xf32> to vector<32x1xf32>
    %cst_1 = arith.constant 6.250000e-02 : f32
    %3 = vector.broadcast %cst_1 : f32 to vector<32x1xf32>
    %4 = arith.mulf %2, %3 : vector<32x1xf32>
    %5 = vector.broadcast %4 : vector<32x1xf32> to vector<32x16xf32>
    %6 = arith.subf %0, %5 : vector<32x16xf32>
    %7 = arith.mulf %6, %6 : vector<32x16xf32>
    %cst_2 = arith.constant dense<0.000000e+00> : vector<32xf32>
    %8 = vector.multi_reduction <add>, %7, %cst_2 [1] : vector<32x16xf32> to vector<32xf32>
    %9 = vector.shape_cast %8 : vector<32xf32> to vector<32x1xf32>
    %cst_3 = arith.constant 6.250000e-02 : f32
    %10 = vector.broadcast %cst_3 : f32 to vector<32x1xf32>
    %11 = arith.mulf %9, %10 : vector<32x1xf32>
    %cst_4 = arith.constant 9.99999974E-6 : f32
    %12 = vector.broadcast %cst_4 : f32 to vector<32x1xf32>
    %13 = arith.addf %11, %12 : vector<32x1xf32>
    %14 = math.rsqrt %13 : vector<32x1xf32>
    %15 = vector.broadcast %14 : vector<32x1xf32> to vector<32x16xf32>
    %16 = arith.mulf %6, %15 : vector<32x16xf32>
    %c0_5 = arith.constant 0 : index
    %c0_6 = arith.constant 0 : index
    %17 = vector.load %arg2[%c0_5, %c0_6] : memref<1x16xf32, #tpu.memory_space<vmem>>, vector<1x16xf32>
    %18 = vector.broadcast %17 : vector<1x16xf32> to vector<32x16xf32>
    %19 = arith.mulf %16, %18 : vector<32x16xf32>
    %c0_7 = arith.constant 0 : index
    %c0_8 = arith.constant 0 : index
    %20 = vector.load %arg3[%c0_7, %c0_8] : memref<1x16xf32, #tpu.memory_space<vmem>>, vector<1x16xf32>
    %21 = vector.broadcast %20 : vector<1x16xf32> to vector<32x16xf32>
    %22 = arith.addf %19, %21 : vector<32x16xf32>
    %23 = arith.truncf %22 : vector<32x16xf32> to vector<32x16xbf16>
    %c0_9 = arith.constant 0 : index
    %c0_10 = arith.constant 0 : index
    %24 = vector.load %arg4[%c0_9, %c0_10] : memref<16x32xbf16, #tpu.memory_space<vmem>>, vector<16x32xbf16>
    %cst_11 = arith.constant dense<0.000000e+00> : vector<32x32xf32>
    %25 = tpu.matmul %23, %24, %cst_11 {dimension_numbers = #tpu.dot_dimension_numbers<[1], [0], [0], [1], [0, 0, 1, 1], [], []>} : vector<32x16xbf16>, vector<16x32xbf16>, vector<32x32xf32> -> vector<32x32xf32>
    %c0_12 = arith.constant 0 : index
    %c0_13 = arith.constant 0 : index
    %26 = vector.load %arg5[%c0_12, %c0_13] : memref<1x32xf32, #tpu.memory_space<vmem>>, vector<1x32xf32>
    %27 = vector.broadcast %26 : vector<1x32xf32> to vector<32x32xf32>
    %28 = arith.addf %25, %27 : vector<32x32xf32>
    %29 = arith.mulf %28, %28 : vector<32x32xf32>
    %30 = arith.mulf %28, %29 : vector<32x32xf32>
    %cst_14 = arith.constant 4.471500e-02 : f32
    %31 = vector.broadcast %cst_14 : f32 to vector<32x32xf32>
    %32 = arith.mulf %31, %30 : vector<32x32xf32>
    %33 = arith.addf %28, %32 : vector<32x32xf32>
    %cst_15 = arith.constant 0.797884583 : f32
    %34 = vector.broadcast %cst_15 : f32 to vector<32x32xf32>
    %35 = arith.mulf %34, %33 : vector<32x32xf32>
    %36 = math.tanh %35 : vector<32x32xf32>
    %cst_16 = arith.constant 1.000000e+00 : f32
    %37 = vector.broadcast %cst_16 : f32 to vector<32x32xf32>
    %38 = arith.addf %37, %36 : vector<32x32xf32>
    %cst_17 = arith.constant 5.000000e-01 : f32
    %39 = vector.broadcast %cst_17 : f32 to vector<32x32xf32>
    %40 = arith.mulf %39, %38 : vector<32x32xf32>
    %41 = arith.mulf %28, %40 : vector<32x32xf32>
    %42 = arith.truncf %41 : vector<32x32xf32> to vector<32x32xbf16>
    %c0_18 = arith.constant 0 : index
    %c0_19 = arith.constant 0 : index
    %43 = vector.load %arg6[%c0_18, %c0_19] : memref<32x16xbf16, #tpu.memory_space<vmem>>, vector<32x16xbf16>
    %cst_20 = arith.constant dense<0.000000e+00> : vector<32x16xf32>
    %44 = tpu.matmul %42, %43, %cst_20 {dimension_numbers = #tpu.dot_dimension_numbers<[1], [0], [0], [1], [0, 0, 1, 1], [], []>} : vector<32x32xbf16>, vector<32x16xbf16>, vector<32x16xf32> -> vector<32x16xf32>
    %45 = arith.addf %0, %44 : vector<32x16xf32>
    %c0_21 = arith.constant 0 : index
    %c0_22 = arith.constant 0 : index
    %46 = vector.load %arg7[%c0_21, %c0_22] : memref<1x16xf32, #tpu.memory_space<vmem>>, vector<1x16xf32>
    %47 = vector.broadcast %46 : vector<1x16xf32> to vector<32x16xf32>
    %48 = arith.addf %45, %47 : vector<32x16xf32>
    %c0_23 = arith.constant 0 : index
    %c0_24 = arith.constant 0 : index
    %49 = vector.load %arg8[%c0_23, %c0_24] : memref<32x16xf32, #tpu.memory_space<vmem>>, vector<32x16xf32>
    tpu.vector_store %arg8[%c0_23, %c0_24], %48 {strides = array<i32>} : memref<32x16xf32, #tpu.memory_space<vmem>>, vector<32x16xf32>,
    return
  }
  func.func @transform_0(%arg0: i32) -> (i32, i32) {
    %c0_i32 = arith.constant 0 : i32
    %c0_i32_0 = arith.constant 0 : i32
    return %arg0, %c0_i32 : i32, i32
  }
  func.func @transform_1(%arg0: i32) -> (i32, i32) {
    %c0_i32 = arith.constant 0 : i32
    %c0_i32_0 = arith.constant 0 : i32
    %c0_i32_1 = arith.constant 0 : i32
    return %c0_i32, %c0_i32_0 : i32, i32
  }
  func.func @transform_2(%arg0: i32) -> (i32, i32) {
    %c0_i32 = arith.constant 0 : i32
    %c0_i32_0 = arith.constant 0 : i32
    %c0_i32_1 = arith.constant 0 : i32
    return %c0_i32, %c0_i32_0 : i32, i32
  }
  func.func @transform_3(%arg0: i32) -> (i32, i32) {
    %c0_i32 = arith.constant 0 : i32
    %c0_i32_0 = arith.constant 0 : i32
    %c0_i32_1 = arith.constant 0 : i32
    return %c0_i32, %c0_i32_0 : i32, i32
  }
  func.func @transform_4(%arg0: i32) -> (i32, i32) {
    %c0_i32 = arith.constant 0 : i32
    %c0_i32_0 = arith.constant 0 : i32
    %c0_i32_1 = arith.constant 0 : i32
    return %c0_i32, %c0_i32_0 : i32, i32
  }
  func.func @transform_5(%arg0: i32) -> (i32, i32) {
    %c0_i32 = arith.constant 0 : i32
    %c0_i32_0 = arith.constant 0 : i32
    %c0_i32_1 = arith.constant 0 : i32
    return %c0_i32, %c0_i32_0 : i32, i32
  }
  func.func @transform_6(%arg0: i32) -> (i32, i32) {
    %c0_i32 = arith.constant 0 : i32
    %c0_i32_0 = arith.constant 0 : i32
    %c0_i32_1 = arith.constant 0 : i32
    return %c0_i32, %c0_i32_0 : i32, i32
  }
  func.func @transform_7(%arg0: i32) -> (i32, i32) {
    %c0_i32 = arith.constant 0 : i32
    %c0_i32_0 = arith.constant 0 : i32
    return %arg0, %c0_i32 : i32, i32
  }
}

module attributes {stable_mosaic.version = 11 : i64} {
  func.func @_ln_kernel(%arg0: i32, %arg1: memref<8x32xf32, #tpu.memory_space<vmem>>, %arg2: memref<1x32xf32, #tpu.memory_space<vmem>>, %arg3: memref<1x32xf32, #tpu.memory_space<vmem>>, %arg4: memref<8x32xf32, #tpu.memory_space<vmem>>) attributes {dimension_semantics = [#tpu.dimension_semantics<parallel>], iteration_bounds = array<i64: 1>, scalar_prefetch = 0 : i64, scratch_operands = 0 : i64, tpu.core_type = #tpu.core_type<tc>, window_params = [{transform_indices = @transform_0, window_bounds = array<i64: 8, 32>}, {pipeline_mode = #tpu.pipeline_mode<synchronous>, transform_indices = @transform_1, window_bounds = array<i64: 1, 32>}, {pipeline_mode = #tpu.pipeline_mode<synchronous>, transform_indices = @transform_2, window_bounds = array<i64: 1, 32>}, {transform_indices = @transform_3, window_bounds = array<i64: 8, 32>}]} {
    %c0 = arith.constant 0 : index
    %c0_0 = arith.constant 0 : index
    %0 = vector.load %arg1[%c0, %c0_0] : memref<8x32xf32, #tpu.memory_space<vmem>>, vector<8x32xf32>
    %cst = arith.constant dense<0.000000e+00> : vector<8xf32>
    %1 = vector.multi_reduction <add>, %0, %cst [1] : vector<8x32xf32> to vector<8xf32>
    %2 = vector.shape_cast %1 : vector<8xf32> to vector<8x1xf32>
    %cst_1 = arith.constant 3.125000e-02 : f32
    %3 = vector.broadcast %cst_1 : f32 to vector<8x1xf32>
    %4 = arith.mulf %2, %3 : vector<8x1xf32>
    %5 = vector.broadcast %4 : vector<8x1xf32> to vector<8x32xf32>
    %6 = arith.subf %0, %5 : vector<8x32xf32>
    %7 = arith.mulf %6, %6 : vector<8x32xf32>
    %cst_2 = arith.constant dense<0.000000e+00> : vector<8xf32>
    %8 = vector.multi_reduction <add>, %7, %cst_2 [1] : vector<8x32xf32> to vector<8xf32>
    %9 = vector.shape_cast %8 : vector<8xf32> to vector<8x1xf32>
    %cst_3 = arith.constant 3.125000e-02 : f32
    %10 = vector.broadcast %cst_3 : f32 to vector<8x1xf32>
    %11 = arith.mulf %9, %10 : vector<8x1xf32>
    %cst_4 = arith.constant 9.99999974E-6 : f32
    %12 = vector.broadcast %cst_4 : f32 to vector<8x1xf32>
    %13 = arith.addf %11, %12 : vector<8x1xf32>
    %14 = math.rsqrt %13 : vector<8x1xf32>
    %15 = vector.broadcast %14 : vector<8x1xf32> to vector<8x32xf32>
    %16 = arith.mulf %6, %15 : vector<8x32xf32>
    %c0_5 = arith.constant 0 : index
    %c0_6 = arith.constant 0 : index
    %17 = vector.load %arg2[%c0_5, %c0_6] : memref<1x32xf32, #tpu.memory_space<vmem>>, vector<1x32xf32>
    %18 = vector.broadcast %17 : vector<1x32xf32> to vector<8x32xf32>
    %19 = arith.mulf %16, %18 : vector<8x32xf32>
    %c0_7 = arith.constant 0 : index
    %c0_8 = arith.constant 0 : index
    %20 = vector.load %arg3[%c0_7, %c0_8] : memref<1x32xf32, #tpu.memory_space<vmem>>, vector<1x32xf32>
    %21 = vector.broadcast %20 : vector<1x32xf32> to vector<8x32xf32>
    %22 = arith.addf %19, %21 : vector<8x32xf32>
    %c0_9 = arith.constant 0 : index
    %c0_10 = arith.constant 0 : index
    %23 = vector.load %arg4[%c0_9, %c0_10] : memref<8x32xf32, #tpu.memory_space<vmem>>, vector<8x32xf32>
    tpu.vector_store %arg4[%c0_9, %c0_10], %22 {strides = array<i32>} : memref<8x32xf32, #tpu.memory_space<vmem>>, vector<8x32xf32>,
    return
  }
  func.func @transform_0(%arg0: i32) -> (i32, i32) {
    %c0_i32 = arith.constant 0 : i32
    %c0_i32_0 = arith.constant 0 : i32
    return %arg0, %c0_i32 : i32, i32
  }
  func.func @transform_1(%arg0: i32) -> (i32, i32) {
    %c0_i32 = arith.constant 0 : i32
    %c0_i32_0 = arith.constant 0 : i32
    %c0_i32_1 = arith.constant 0 : i32
    return %c0_i32, %c0_i32_0 : i32, i32
  }
  func.func @transform_2(%arg0: i32) -> (i32, i32) {
    %c0_i32 = arith.constant 0 : i32
    %c0_i32_0 = arith.constant 0 : i32
    %c0_i32_1 = arith.constant 0 : i32
    return %c0_i32, %c0_i32_0 : i32, i32
  }
  func.func @transform_3(%arg0: i32) -> (i32, i32) {
    %c0_i32 = arith.constant 0 : i32
    %c0_i32_0 = arith.constant 0 : i32
    return %arg0, %c0_i32 : i32, i32
  }
}

module attributes {stable_mosaic.version = 11 : i64} {
  func.func @_linear_ln_kernel(%arg0: i32, %arg1: memref<8x64xf32, #tpu.memory_space<vmem>>, %arg2: memref<64x32xbf16, #tpu.memory_space<vmem>>, %arg3: memref<1x32xf32, #tpu.memory_space<vmem>>, %arg4: memref<1x32xf32, #tpu.memory_space<vmem>>, %arg5: memref<1x32xf32, #tpu.memory_space<vmem>>, %arg6: memref<8x32xf32, #tpu.memory_space<vmem>>) attributes {dimension_semantics = [#tpu.dimension_semantics<parallel>], iteration_bounds = array<i64: 1>, scalar_prefetch = 0 : i64, scratch_operands = 0 : i64, tpu.core_type = #tpu.core_type<tc>, window_params = [{transform_indices = @transform_0, window_bounds = array<i64: 8, 64>}, {pipeline_mode = #tpu.pipeline_mode<synchronous>, transform_indices = @transform_1, window_bounds = array<i64: 64, 32>}, {pipeline_mode = #tpu.pipeline_mode<synchronous>, transform_indices = @transform_2, window_bounds = array<i64: 1, 32>}, {pipeline_mode = #tpu.pipeline_mode<synchronous>, transform_indices = @transform_3, window_bounds = array<i64: 1, 32>}, {pipeline_mode = #tpu.pipeline_mode<synchronous>, transform_indices = @transform_4, window_bounds = array<i64: 1, 32>}, {transform_indices = @transform_5, window_bounds = array<i64: 8, 32>}]} {
    %c0 = arith.constant 0 : index
    %c0_0 = arith.constant 0 : index
    %0 = vector.load %arg1[%c0, %c0_0] : memref<8x64xf32, #tpu.memory_space<vmem>>, vector<8x64xf32>
    %1 = arith.truncf %0 : vector<8x64xf32> to vector<8x64xbf16>
    %c0_1 = arith.constant 0 : index
    %c0_2 = arith.constant 0 : index
    %2 = vector.load %arg2[%c0_1, %c0_2] : memref<64x32xbf16, #tpu.memory_space<vmem>>, vector<64x32xbf16>
    %cst = arith.constant dense<0.000000e+00> : vector<8x32xf32>
    %3 = tpu.matmul %1, %2, %cst {dimension_numbers = #tpu.dot_dimension_numbers<[1], [0], [0], [1], [0, 0, 1, 1], [], []>} : vector<8x64xbf16>, vector<64x32xbf16>, vector<8x32xf32> -> vector<8x32xf32>
    %c0_3 = arith.constant 0 : index
    %c0_4 = arith.constant 0 : index
    %4 = vector.load %arg3[%c0_3, %c0_4] : memref<1x32xf32, #tpu.memory_space<vmem>>, vector<1x32xf32>
    %5 = vector.broadcast %4 : vector<1x32xf32> to vector<8x32xf32>
    %6 = arith.addf %3, %5 : vector<8x32xf32>
    %cst_5 = arith.constant dense<0.000000e+00> : vector<8xf32>
    %7 = vector.multi_reduction <add>, %6, %cst_5 [1] : vector<8x32xf32> to vector<8xf32>
    %8 = vector.shape_cast %7 : vector<8xf32> to vector<8x1xf32>
    %cst_6 = arith.constant 3.125000e-02 : f32
    %9 = vector.broadcast %cst_6 : f32 to vector<8x1xf32>
    %10 = arith.mulf %8, %9 : vector<8x1xf32>
    %11 = vector.broadcast %10 : vector<8x1xf32> to vector<8x32xf32>
    %12 = arith.subf %6, %11 : vector<8x32xf32>
    %13 = arith.mulf %12, %12 : vector<8x32xf32>
    %cst_7 = arith.constant dense<0.000000e+00> : vector<8xf32>
    %14 = vector.multi_reduction <add>, %13, %cst_7 [1] : vector<8x32xf32> to vector<8xf32>
    %15 = vector.shape_cast %14 : vector<8xf32> to vector<8x1xf32>
    %cst_8 = arith.constant 3.125000e-02 : f32
    %16 = vector.broadcast %cst_8 : f32 to vector<8x1xf32>
    %17 = arith.mulf %15, %16 : vector<8x1xf32>
    %cst_9 = arith.constant 9.99999974E-6 : f32
    %18 = vector.broadcast %cst_9 : f32 to vector<8x1xf32>
    %19 = arith.addf %17, %18 : vector<8x1xf32>
    %20 = math.rsqrt %19 : vector<8x1xf32>
    %21 = vector.broadcast %20 : vector<8x1xf32> to vector<8x32xf32>
    %22 = arith.mulf %12, %21 : vector<8x32xf32>
    %c0_10 = arith.constant 0 : index
    %c0_11 = arith.constant 0 : index
    %23 = vector.load %arg4[%c0_10, %c0_11] : memref<1x32xf32, #tpu.memory_space<vmem>>, vector<1x32xf32>
    %24 = vector.broadcast %23 : vector<1x32xf32> to vector<8x32xf32>
    %25 = arith.mulf %22, %24 : vector<8x32xf32>
    %c0_12 = arith.constant 0 : index
    %c0_13 = arith.constant 0 : index
    %26 = vector.load %arg5[%c0_12, %c0_13] : memref<1x32xf32, #tpu.memory_space<vmem>>, vector<1x32xf32>
    %27 = vector.broadcast %26 : vector<1x32xf32> to vector<8x32xf32>
    %28 = arith.addf %25, %27 : vector<8x32xf32>
    %c0_14 = arith.constant 0 : index
    %c0_15 = arith.constant 0 : index
    %29 = vector.load %arg6[%c0_14, %c0_15] : memref<8x32xf32, #tpu.memory_space<vmem>>, vector<8x32xf32>
    tpu.vector_store %arg6[%c0_14, %c0_15], %28 {strides = array<i32>} : memref<8x32xf32, #tpu.memory_space<vmem>>, vector<8x32xf32>,
    return
  }
  func.func @transform_0(%arg0: i32) -> (i32, i32) {
    %c0_i32 = arith.constant 0 : i32
    %c0_i32_0 = arith.constant 0 : i32
    return %arg0, %c0_i32 : i32, i32
  }
  func.func @transform_1(%arg0: i32) -> (i32, i32) {
    %c0_i32 = arith.constant 0 : i32
    %c0_i32_0 = arith.constant 0 : i32
    %c0_i32_1 = arith.constant 0 : i32
    return %c0_i32, %c0_i32_0 : i32, i32
  }
  func.func @transform_2(%arg0: i32) -> (i32, i32) {
    %c0_i32 = arith.constant 0 : i32
    %c0_i32_0 = arith.constant 0 : i32
    %c0_i32_1 = arith.constant 0 : i32
    return %c0_i32, %c0_i32_0 : i32, i32
  }
  func.func @transform_3(%arg0: i32) -> (i32, i32) {
    %c0_i32 = arith.constant 0 : i32
    %c0_i32_0 = arith.constant 0 : i32
    %c0_i32_1 = arith.constant 0 : i32
    return %c0_i32, %c0_i32_0 : i32, i32
  }
  func.func @transform_4(%arg0: i32) -> (i32, i32) {
    %c0_i32 = arith.constant 0 : i32
    %c0_i32_0 = arith.constant 0 : i32
    %c0_i32_1 = arith.constant 0 : i32
    return %c0_i32, %c0_i32_0 : i32, i32
  }
  func.func @transform_5(%arg0: i32) -> (i32, i32) {
    %c0_i32 = arith.constant 0 : i32
    %c0_i32_0 = arith.constant 0 : i32
    return %arg0, %c0_i32 : i32, i32
  }
}

module attributes {stable_mosaic.version = 11 : i64} {
  func.func @_matmul_kernel(%arg0: i32, %arg1: i32, %arg2: i32, %arg3: memref<8x32xf32, #tpu.memory_space<vmem>>, %arg4: memref<32x1xbf16, #tpu.memory_space<vmem>>, %arg5: memref<1x1xf32, #tpu.memory_space<vmem>>, %arg6: memref<8x1xf32, #tpu.memory_space<vmem>>, %arg7: memref<8x1xf32, #tpu.memory_space<vmem>>) attributes {dimension_semantics = [#tpu.dimension_semantics<parallel>, #tpu.dimension_semantics<parallel>, #tpu.dimension_semantics<arbitrary>], iteration_bounds = array<i64: 1, 1, 1>, scalar_prefetch = 0 : i64, scratch_operands = 1 : i64, tpu.core_type = #tpu.core_type<tc>, window_params = [{transform_indices = @transform_0, window_bounds = array<i64: 8, 32>}, {transform_indices = @transform_1, window_bounds = array<i64: 32, 1>}, {transform_indices = @transform_2, window_bounds = array<i64: 1, 1>}, {transform_indices = @transform_3, window_bounds = array<i64: 8, 1>}]} {
    %c0_i32 = arith.constant 0 : i32
    %0 = arith.cmpi eq, %arg2, %c0_i32 : i32
    %1 = arith.extui %0 : i1 to i32
    %c0_i32_0 = arith.constant 0 : i32
    %2 = arith.cmpi ne, %1, %c0_i32_0 : i32
    scf.if %2 {
      %cst_10 = arith.constant 0.000000e+00 : f32
      %13 = vector.broadcast %cst_10 : f32 to vector<8x1xf32>
      %c0_11 = arith.constant 0 : index
      %c0_12 = arith.constant 0 : index
      %14 = vector.load %arg7[%c0_11, %c0_12] : memref<8x1xf32, #tpu.memory_space<vmem>>, vector<8x1xf32>
      tpu.vector_store %arg7[%c0_11, %c0_12], %13 {strides = array<i32>} : memref<8x1xf32, #tpu.memory_space<vmem>>, vector<8x1xf32>,
    } else {
    }
    %c0 = arith.constant 0 : index
    %c0_1 = arith.constant 0 : index
    %3 = vector.load %arg7[%c0, %c0_1] : memref<8x1xf32, #tpu.memory_space<vmem>>, vector<8x1xf32>
    %c0_2 = arith.constant 0 : index
    %c0_3 = arith.constant 0 : index
    %4 = vector.load %arg3[%c0_2, %c0_3] : memref<8x32xf32, #tpu.memory_space<vmem>>, vector<8x32xf32>
    %5 = arith.truncf %4 : vector<8x32xf32> to vector<8x32xbf16>
    %c0_4 = arith.constant 0 : index
    %c0_5 = arith.constant 0 : index
    %6 = vector.load %arg4[%c0_4, %c0_5] : memref<32x1xbf16, #tpu.memory_space<vmem>>, vector<32x1xbf16>
    %cst = arith.constant dense<0.000000e+00> : vector<8x1xf32>
    %7 = tpu.matmul %5, %6, %cst {dimension_numbers = #tpu.dot_dimension_numbers<[1], [0], [0], [1], [0, 0, 1, 1], [], []>} : vector<8x32xbf16>, vector<32x1xbf16>, vector<8x1xf32> -> vector<8x1xf32>
    %8 = arith.addf %3, %7 : vector<8x1xf32>
    %c0_6 = arith.constant 0 : index
    %c0_7 = arith.constant 0 : index
    %9 = vector.load %arg7[%c0_6, %c0_7] : memref<8x1xf32, #tpu.memory_space<vmem>>, vector<8x1xf32>
    tpu.vector_store %arg7[%c0_6, %c0_7], %8 {strides = array<i32>} : memref<8x1xf32, #tpu.memory_space<vmem>>, vector<8x1xf32>,
    %c0_i32_8 = arith.constant 0 : i32
    %10 = arith.cmpi eq, %arg2, %c0_i32_8 : i32
    %11 = arith.extui %10 : i1 to i32
    %c0_i32_9 = arith.constant 0 : i32
    %12 = arith.cmpi ne, %11, %c0_i32_9 : i32
    scf.if %12 {
      %c0_10 = arith.constant 0 : index
      %c0_11 = arith.constant 0 : index
      %13 = vector.load %arg7[%c0_10, %c0_11] : memref<8x1xf32, #tpu.memory_space<vmem>>, vector<8x1xf32>
      %c0_12 = arith.constant 0 : index
      %c0_13 = arith.constant 0 : index
      %14 = vector.load %arg5[%c0_12, %c0_13] : memref<1x1xf32, #tpu.memory_space<vmem>>, vector<1x1xf32>
      %15 = vector.broadcast %14 : vector<1x1xf32> to vector<8x1xf32>
      %16 = arith.addf %13, %15 : vector<8x1xf32>
      %c0_14 = arith.constant 0 : index
      %c0_15 = arith.constant 0 : index
      %17 = vector.load %arg6[%c0_14, %c0_15] : memref<8x1xf32, #tpu.memory_space<vmem>>, vector<8x1xf32>
      tpu.vector_store %arg6[%c0_14, %c0_15], %16 {strides = array<i32>} : memref<8x1xf32, #tpu.memory_space<vmem>>, vector<8x1xf32>,
    } else {
    }
    return
  }
  func.func @transform_0(%arg0: i32, %arg1: i32, %arg2: i32) -> (i32, i32) {
    %c0_i32 = arith.constant 0 : i32
    return %arg0, %arg2 : i32, i32
  }
  func.func @transform_1(%arg0: i32, %arg1: i32, %arg2: i32) -> (i32, i32) {
    %c0_i32 = arith.constant 0 : i32
    return %arg2, %arg1 : i32, i32
  }
  func.func @transform_2(%arg0: i32, %arg1: i32, %arg2: i32) -> (i32, i32) {
    %c0_i32 = arith.constant 0 : i32
    %c0_i32_0 = arith.constant 0 : i32
    return %c0_i32, %arg1 : i32, i32
  }
  func.func @transform_3(%arg0: i32, %arg1: i32, %arg2: i32) -> (i32, i32) {
    %c0_i32 = arith.constant 0 : i32
    return %arg0, %arg1 : i32, i32
  }
}

module attributes {stable_mosaic.version = 11 : i64} {
  func.func @_stage_mlp_kernel(%arg0: i32, %arg1: memref<8x32xf32, #tpu.memory_space<vmem>>, %arg2: memref<1x32xf32, #tpu.memory_space<vmem>>, %arg3: memref<1x32xf32, #tpu.memory_space<vmem>>, %arg4: memref<32x64xbf16, #tpu.memory_space<vmem>>, %arg5: memref<1x64xf32, #tpu.memory_space<vmem>>, %arg6: memref<64x32xbf16, #tpu.memory_space<vmem>>, %arg7: memref<1x32xf32, #tpu.memory_space<vmem>>, %arg8: memref<8x32xf32, #tpu.memory_space<vmem>>) attributes {dimension_semantics = [#tpu.dimension_semantics<parallel>], iteration_bounds = array<i64: 1>, scalar_prefetch = 0 : i64, scratch_operands = 0 : i64, tpu.core_type = #tpu.core_type<tc>, window_params = [{transform_indices = @transform_0, window_bounds = array<i64: 8, 32>}, {pipeline_mode = #tpu.pipeline_mode<synchronous>, transform_indices = @transform_1, window_bounds = array<i64: 1, 32>}, {pipeline_mode = #tpu.pipeline_mode<synchronous>, transform_indices = @transform_2, window_bounds = array<i64: 1, 32>}, {pipeline_mode = #tpu.pipeline_mode<synchronous>, transform_indices = @transform_3, window_bounds = array<i64: 32, 64>}, {pipeline_mode = #tpu.pipeline_mode<synchronous>, transform_indices = @transform_4, window_bounds = array<i64: 1, 64>}, {pipeline_mode = #tpu.pipeline_mode<synchronous>, transform_indices = @transform_5, window_bounds = array<i64: 64, 32>}, {pipeline_mode = #tpu.pipeline_mode<synchronous>, transform_indices = @transform_6, window_bounds = array<i64: 1, 32>}, {transform_indices = @transform_7, window_bounds = array<i64: 8, 32>}]} {
    %c0 = arith.constant 0 : index
    %c0_0 = arith.constant 0 : index
    %0 = vector.load %arg1[%c0, %c0_0] : memref<8x32xf32, #tpu.memory_space<vmem>>, vector<8x32xf32>
    %cst = arith.constant dense<0.000000e+00> : vector<8xf32>
    %1 = vector.multi_reduction <add>, %0, %cst [1] : vector<8x32xf32> to vector<8xf32>
    %2 = vector.shape_cast %1 : vector<8xf32> to vector<8x1xf32>
    %cst_1 = arith.constant 3.125000e-02 : f32
    %3 = vector.broadcast %cst_1 : f32 to vector<8x1xf32>
    %4 = arith.mulf %2, %3 : vector<8x1xf32>
    %5 = vector.broadcast %4 : vector<8x1xf32> to vector<8x32xf32>
    %6 = arith.subf %0, %5 : vector<8x32xf32>
    %7 = arith.mulf %6, %6 : vector<8x32xf32>
    %cst_2 = arith.constant dense<0.000000e+00> : vector<8xf32>
    %8 = vector.multi_reduction <add>, %7, %cst_2 [1] : vector<8x32xf32> to vector<8xf32>
    %9 = vector.shape_cast %8 : vector<8xf32> to vector<8x1xf32>
    %cst_3 = arith.constant 3.125000e-02 : f32
    %10 = vector.broadcast %cst_3 : f32 to vector<8x1xf32>
    %11 = arith.mulf %9, %10 : vector<8x1xf32>
    %cst_4 = arith.constant 9.99999974E-6 : f32
    %12 = vector.broadcast %cst_4 : f32 to vector<8x1xf32>
    %13 = arith.addf %11, %12 : vector<8x1xf32>
    %14 = math.rsqrt %13 : vector<8x1xf32>
    %15 = vector.broadcast %14 : vector<8x1xf32> to vector<8x32xf32>
    %16 = arith.mulf %6, %15 : vector<8x32xf32>
    %c0_5 = arith.constant 0 : index
    %c0_6 = arith.constant 0 : index
    %17 = vector.load %arg2[%c0_5, %c0_6] : memref<1x32xf32, #tpu.memory_space<vmem>>, vector<1x32xf32>
    %18 = vector.broadcast %17 : vector<1x32xf32> to vector<8x32xf32>
    %19 = arith.mulf %16, %18 : vector<8x32xf32>
    %c0_7 = arith.constant 0 : index
    %c0_8 = arith.constant 0 : index
    %20 = vector.load %arg3[%c0_7, %c0_8] : memref<1x32xf32, #tpu.memory_space<vmem>>, vector<1x32xf32>
    %21 = vector.broadcast %20 : vector<1x32xf32> to vector<8x32xf32>
    %22 = arith.addf %19, %21 : vector<8x32xf32>
    %23 = arith.truncf %22 : vector<8x32xf32> to vector<8x32xbf16>
    %c0_9 = arith.constant 0 : index
    %c0_10 = arith.constant 0 : index
    %24 = vector.load %arg4[%c0_9, %c0_10] : memref<32x64xbf16, #tpu.memory_space<vmem>>, vector<32x64xbf16>
    %cst_11 = arith.constant dense<0.000000e+00> : vector<8x64xf32>
    %25 = tpu.matmul %23, %24, %cst_11 {dimension_numbers = #tpu.dot_dimension_numbers<[1], [0], [0], [1], [0, 0, 1, 1], [], []>} : vector<8x32xbf16>, vector<32x64xbf16>, vector<8x64xf32> -> vector<8x64xf32>
    %c0_12 = arith.constant 0 : index
    %c0_13 = arith.constant 0 : index
    %26 = vector.load %arg5[%c0_12, %c0_13] : memref<1x64xf32, #tpu.memory_space<vmem>>, vector<1x64xf32>
    %27 = vector.broadcast %26 : vector<1x64xf32> to vector<8x64xf32>
    %28 = arith.addf %25, %27 : vector<8x64xf32>
    %29 = arith.mulf %28, %28 : vector<8x64xf32>
    %30 = arith.mulf %28, %29 : vector<8x64xf32>
    %cst_14 = arith.constant 4.471500e-02 : f32
    %31 = vector.broadcast %cst_14 : f32 to vector<8x64xf32>
    %32 = arith.mulf %31, %30 : vector<8x64xf32>
    %33 = arith.addf %28, %32 : vector<8x64xf32>
    %cst_15 = arith.constant 0.797884583 : f32
    %34 = vector.broadcast %cst_15 : f32 to vector<8x64xf32>
    %35 = arith.mulf %34, %33 : vector<8x64xf32>
    %36 = math.tanh %35 : vector<8x64xf32>
    %cst_16 = arith.constant 1.000000e+00 : f32
    %37 = vector.broadcast %cst_16 : f32 to vector<8x64xf32>
    %38 = arith.addf %37, %36 : vector<8x64xf32>
    %cst_17 = arith.constant 5.000000e-01 : f32
    %39 = vector.broadcast %cst_17 : f32 to vector<8x64xf32>
    %40 = arith.mulf %39, %38 : vector<8x64xf32>
    %41 = arith.mulf %28, %40 : vector<8x64xf32>
    %42 = arith.truncf %41 : vector<8x64xf32> to vector<8x64xbf16>
    %c0_18 = arith.constant 0 : index
    %c0_19 = arith.constant 0 : index
    %43 = vector.load %arg6[%c0_18, %c0_19] : memref<64x32xbf16, #tpu.memory_space<vmem>>, vector<64x32xbf16>
    %cst_20 = arith.constant dense<0.000000e+00> : vector<8x32xf32>
    %44 = tpu.matmul %42, %43, %cst_20 {dimension_numbers = #tpu.dot_dimension_numbers<[1], [0], [0], [1], [0, 0, 1, 1], [], []>} : vector<8x64xbf16>, vector<64x32xbf16>, vector<8x32xf32> -> vector<8x32xf32>
    %45 = arith.addf %0, %44 : vector<8x32xf32>
    %c0_21 = arith.constant 0 : index
    %c0_22 = arith.constant 0 : index
    %46 = vector.load %arg7[%c0_21, %c0_22] : memref<1x32xf32, #tpu.memory_space<vmem>>, vector<1x32xf32>
    %47 = vector.broadcast %46 : vector<1x32xf32> to vector<8x32xf32>
    %48 = arith.addf %45, %47 : vector<8x32xf32>
    %c0_23 = arith.constant 0 : index
    %c0_24 = arith.constant 0 : index
    %49 = vector.load %arg8[%c0_23, %c0_24] : memref<8x32xf32, #tpu.memory_space<vmem>>, vector<8x32xf32>
    tpu.vector_store %arg8[%c0_23, %c0_24], %48 {strides = array<i32>} : memref<8x32xf32, #tpu.memory_space<vmem>>, vector<8x32xf32>,
    return
  }
  func.func @transform_0(%arg0: i32) -> (i32, i32) {
    %c0_i32 = arith.constant 0 : i32
    %c0_i32_0 = arith.constant 0 : i32
    return %arg0, %c0_i32 : i32, i32
  }
  func.func @transform_1(%arg0: i32) -> (i32, i32) {
    %c0_i32 = arith.constant 0 : i32
    %c0_i32_0 = arith.constant 0 : i32
    %c0_i32_1 = arith.constant 0 : i32
    return %c0_i32, %c0_i32_0 : i32, i32
  }
  func.func @transform_2(%arg0: i32) -> (i32, i32) {
    %c0_i32 = arith.constant 0 : i32
    %c0_i32_0 = arith.constant 0 : i32
    %c0_i32_1 = arith.constant 0 : i32
    return %c0_i32, %c0_i32_0 : i32, i32
  }
  func.func @transform_3(%arg0: i32) -> (i32, i32) {
    %c0_i32 = arith.constant 0 : i32
    %c0_i32_0 = arith.constant 0 : i32
    %c0_i32_1 = arith.constant 0 : i32
    return %c0_i32, %c0_i32_0 : i32, i32
  }
  func.func @transform_4(%arg0: i32) -> (i32, i32) {
    %c0_i32 = arith.constant 0 : i32
    %c0_i32_0 = arith.constant 0 : i32
    %c0_i32_1 = arith.constant 0 : i32
    return %c0_i32, %c0_i32_0 : i32, i32
  }
  func.func @transform_5(%arg0: i32) -> (i32, i32) {
    %c0_i32 = arith.constant 0 : i32
    %c0_i32_0 = arith.constant 0 : i32
    %c0_i32_1 = arith.constant 0 : i32
    return %c0_i32, %c0_i32_0 : i32, i32
  }
  func.func @transform_6(%arg0: i32) -> (i32, i32) {
    %c0_i32 = arith.constant 0 : i32
    %c0_i32_0 = arith.constant 0 : i32
    %c0_i32_1 = arith.constant 0 : i32
    return %c0_i32, %c0_i32_0 : i32, i32
  }
  func.func @transform_7(%arg0: i32) -> (i32, i32) {
    %c0_i32 = arith.constant 0 : i32
    %c0_i32_0 = arith.constant 0 : i32
    return %arg0, %c0_i32 : i32, i32
  }
}

module attributes {stable_mosaic.version = 11 : i64} {
  func.func @_matmul_kernel(%arg0: i32, %arg1: i32, %arg2: i32, %arg3: memref<2x4xf32, #tpu.memory_space<vmem>>, %arg4: memref<4x256xbf16, #tpu.memory_space<vmem>>, %arg5: memref<1x256xf32, #tpu.memory_space<vmem>>, %arg6: memref<2x256xf32, #tpu.memory_space<vmem>>, %arg7: memref<2x256xf32, #tpu.memory_space<vmem>>) attributes {dimension_semantics = [#tpu.dimension_semantics<parallel>, #tpu.dimension_semantics<parallel>, #tpu.dimension_semantics<arbitrary>], iteration_bounds = array<i64: 1, 25, 1>, scalar_prefetch = 0 : i64, scratch_operands = 1 : i64, tpu.core_type = #tpu.core_type<tc>, window_params = [{transform_indices = @transform_0, window_bounds = array<i64: 2, 4>}, {transform_indices = @transform_1, window_bounds = array<i64: 4, 256>}, {transform_indices = @transform_2, window_bounds = array<i64: 1, 256>}, {transform_indices = @transform_3, window_bounds = array<i64: 2, 256>}]} {
    %c0_i32 = arith.constant 0 : i32
    %0 = arith.cmpi eq, %arg2, %c0_i32 : i32
    %1 = arith.extui %0 : i1 to i32
    %c0_i32_0 = arith.constant 0 : i32
    %2 = arith.cmpi ne, %1, %c0_i32_0 : i32
    scf.if %2 {
      %cst_10 = arith.constant 0.000000e+00 : f32
      %13 = vector.broadcast %cst_10 : f32 to vector<2x256xf32>
      %c0_11 = arith.constant 0 : index
      %c0_12 = arith.constant 0 : index
      %14 = vector.load %arg7[%c0_11, %c0_12] : memref<2x256xf32, #tpu.memory_space<vmem>>, vector<2x256xf32>
      tpu.vector_store %arg7[%c0_11, %c0_12], %13 {strides = array<i32>} : memref<2x256xf32, #tpu.memory_space<vmem>>, vector<2x256xf32>,
    } else {
    }
    %c0 = arith.constant 0 : index
    %c0_1 = arith.constant 0 : index
    %3 = vector.load %arg7[%c0, %c0_1] : memref<2x256xf32, #tpu.memory_space<vmem>>, vector<2x256xf32>
    %c0_2 = arith.constant 0 : index
    %c0_3 = arith.constant 0 : index
    %4 = vector.load %arg3[%c0_2, %c0_3] : memref<2x4xf32, #tpu.memory_space<vmem>>, vector<2x4xf32>
    %5 = arith.truncf %4 : vector<2x4xf32> to vector<2x4xbf16>
    %c0_4 = arith.constant 0 : index
    %c0_5 = arith.constant 0 : index
    %6 = vector.load %arg4[%c0_4, %c0_5] : memref<4x256xbf16, #tpu.memory_space<vmem>>, vector<4x256xbf16>
    %cst = arith.constant dense<0.000000e+00> : vector<2x256xf32>
    %7 = tpu.matmul %5, %6, %cst {dimension_numbers = #tpu.dot_dimension_numbers<[1], [0], [0], [1], [0, 0, 1, 1], [], []>} : vector<2x4xbf16>, vector<4x256xbf16>, vector<2x256xf32> -> vector<2x256xf32>
    %8 = arith.addf %3, %7 : vector<2x256xf32>
    %c0_6 = arith.constant 0 : index
    %c0_7 = arith.constant 0 : index
    %9 = vector.load %arg7[%c0_6, %c0_7] : memref<2x256xf32, #tpu.memory_space<vmem>>, vector<2x256xf32>
    tpu.vector_store %arg7[%c0_6, %c0_7], %8 {strides = array<i32>} : memref<2x256xf32, #tpu.memory_space<vmem>>, vector<2x256xf32>,
    %c0_i32_8 = arith.constant 0 : i32
    %10 = arith.cmpi eq, %arg2, %c0_i32_8 : i32
    %11 = arith.extui %10 : i1 to i32
    %c0_i32_9 = arith.constant 0 : i32
    %12 = arith.cmpi ne, %11, %c0_i32_9 : i32
    scf.if %12 {
      %c0_10 = arith.constant 0 : index
      %c0_11 = arith.constant 0 : index
      %13 = vector.load %arg7[%c0_10, %c0_11] : memref<2x256xf32, #tpu.memory_space<vmem>>, vector<2x256xf32>
      %c0_12 = arith.constant 0 : index
      %c0_13 = arith.constant 0 : index
      %14 = vector.load %arg5[%c0_12, %c0_13] : memref<1x256xf32, #tpu.memory_space<vmem>>, vector<1x256xf32>
      %15 = vector.broadcast %14 : vector<1x256xf32> to vector<2x256xf32>
      %16 = arith.addf %13, %15 : vector<2x256xf32>
      %c0_14 = arith.constant 0 : index
      %c0_15 = arith.constant 0 : index
      %17 = vector.load %arg6[%c0_14, %c0_15] : memref<2x256xf32, #tpu.memory_space<vmem>>, vector<2x256xf32>
      tpu.vector_store %arg6[%c0_14, %c0_15], %16 {strides = array<i32>} : memref<2x256xf32, #tpu.memory_space<vmem>>, vector<2x256xf32>,
    } else {
    }
    return
  }
  func.func @transform_0(%arg0: i32, %arg1: i32, %arg2: i32) -> (i32, i32) {
    %c0_i32 = arith.constant 0 : i32
    return %arg0, %arg2 : i32, i32
  }
  func.func @transform_1(%arg0: i32, %arg1: i32, %arg2: i32) -> (i32, i32) {
    %c0_i32 = arith.constant 0 : i32
    return %arg2, %arg1 : i32, i32
  }
  func.func @transform_2(%arg0: i32, %arg1: i32, %arg2: i32) -> (i32, i32) {
    %c0_i32 = arith.constant 0 : i32
    %c0_i32_0 = arith.constant 0 : i32
    return %c0_i32, %arg1 : i32, i32
  }
  func.func @transform_3(%arg0: i32, %arg1: i32, %arg2: i32) -> (i32, i32) {
    %c0_i32 = arith.constant 0 : i32
    return %arg0, %arg1 : i32, i32
  }
}

module attributes {stable_mosaic.version = 11 : i64} {
  func.func @_bn_apply_kernel(%arg0: i32, %arg1: memref<160x80xf32, #tpu.memory_space<vmem>>, %arg2: memref<1x80xf32, #tpu.memory_space<vmem>>, %arg3: memref<1x80xf32, #tpu.memory_space<vmem>>, %arg4: memref<160x80xf32, #tpu.memory_space<vmem>>) attributes {dimension_semantics = [#tpu.dimension_semantics<parallel>], iteration_bounds = array<i64: 1>, scalar_prefetch = 0 : i64, scratch_operands = 0 : i64, tpu.core_type = #tpu.core_type<tc>, window_params = [{transform_indices = @transform_0, window_bounds = array<i64: 160, 80>}, {pipeline_mode = #tpu.pipeline_mode<synchronous>, transform_indices = @transform_1, window_bounds = array<i64: 1, 80>}, {pipeline_mode = #tpu.pipeline_mode<synchronous>, transform_indices = @transform_2, window_bounds = array<i64: 1, 80>}, {transform_indices = @transform_3, window_bounds = array<i64: 160, 80>}]} {
    %c0 = arith.constant 0 : index
    %c0_0 = arith.constant 0 : index
    %0 = vector.load %arg1[%c0, %c0_0] : memref<160x80xf32, #tpu.memory_space<vmem>>, vector<160x80xf32>
    %c0_1 = arith.constant 0 : index
    %c0_2 = arith.constant 0 : index
    %1 = vector.load %arg2[%c0_1, %c0_2] : memref<1x80xf32, #tpu.memory_space<vmem>>, vector<1x80xf32>
    %2 = vector.broadcast %1 : vector<1x80xf32> to vector<160x80xf32>
    %3 = arith.mulf %0, %2 : vector<160x80xf32>
    %c0_3 = arith.constant 0 : index
    %c0_4 = arith.constant 0 : index
    %4 = vector.load %arg3[%c0_3, %c0_4] : memref<1x80xf32, #tpu.memory_space<vmem>>, vector<1x80xf32>
    %5 = vector.broadcast %4 : vector<1x80xf32> to vector<160x80xf32>
    %6 = arith.addf %3, %5 : vector<160x80xf32>
    %c0_5 = arith.constant 0 : index
    %c0_6 = arith.constant 0 : index
    %7 = vector.load %arg4[%c0_5, %c0_6] : memref<160x80xf32, #tpu.memory_space<vmem>>, vector<160x80xf32>
    tpu.vector_store %arg4[%c0_5, %c0_6], %6 {strides = array<i32>} : memref<160x80xf32, #tpu.memory_space<vmem>>, vector<160x80xf32>,
    return
  }
  func.func @transform_0(%arg0: i32) -> (i32, i32) {
    %c0_i32 = arith.constant 0 : i32
    %c0_i32_0 = arith.constant 0 : i32
    return %arg0, %c0_i32 : i32, i32
  }
  func.func @transform_1(%arg0: i32) -> (i32, i32) {
    %c0_i32 = arith.constant 0 : i32
    %c0_i32_0 = arith.constant 0 : i32
    %c0_i32_1 = arith.constant 0 : i32
    return %c0_i32, %c0_i32_0 : i32, i32
  }
  func.func @transform_2(%arg0: i32) -> (i32, i32) {
    %c0_i32 = arith.constant 0 : i32
    %c0_i32_0 = arith.constant 0 : i32
    %c0_i32_1 = arith.constant 0 : i32
    return %c0_i32, %c0_i32_0 : i32, i32
  }
  func.func @transform_3(%arg0: i32) -> (i32, i32) {
    %c0_i32 = arith.constant 0 : i32
    %c0_i32_0 = arith.constant 0 : i32
    return %arg0, %c0_i32 : i32, i32
  }
}

module attributes {stable_mosaic.version = 11 : i64} {
  func.func @_bn_stats_kernel(%arg0: i32, %arg1: memref<160x80xf32, #tpu.memory_space<vmem>>, %arg2: memref<1x80xf32, #tpu.memory_space<vmem>>, %arg3: memref<1x80xf32, #tpu.memory_space<vmem>>) attributes {dimension_semantics = [#tpu.dimension_semantics<arbitrary>], iteration_bounds = array<i64: 1>, scalar_prefetch = 0 : i64, scratch_operands = 0 : i64, tpu.core_type = #tpu.core_type<tc>, window_params = [{transform_indices = @transform_0, window_bounds = array<i64: 160, 80>}, {pipeline_mode = #tpu.pipeline_mode<synchronous>, transform_indices = @transform_1, window_bounds = array<i64: 1, 80>}, {pipeline_mode = #tpu.pipeline_mode<synchronous>, transform_indices = @transform_2, window_bounds = array<i64: 1, 80>}]} {
    %c0_i32 = arith.constant 0 : i32
    %0 = arith.cmpi eq, %arg0, %c0_i32 : i32
    %1 = arith.extui %0 : i1 to i32
    %c0_i32_0 = arith.constant 0 : i32
    %2 = arith.cmpi ne, %1, %c0_i32_0 : i32
    scf.if %2 {
      %cst_11 = arith.constant 0.000000e+00 : f32
      %15 = vector.broadcast %cst_11 : f32 to vector<1x80xf32>
      %c0_12 = arith.constant 0 : index
      %c0_13 = arith.constant 0 : index
      %16 = vector.load %arg2[%c0_12, %c0_13] : memref<1x80xf32, #tpu.memory_space<vmem>>, vector<1x80xf32>
      tpu.vector_store %arg2[%c0_12, %c0_13], %15 {strides = array<i32>} : memref<1x80xf32, #tpu.memory_space<vmem>>, vector<1x80xf32>,
      %cst_14 = arith.constant 0.000000e+00 : f32
      %17 = vector.broadcast %cst_14 : f32 to vector<1x80xf32>
      %c0_15 = arith.constant 0 : index
      %c0_16 = arith.constant 0 : index
      %18 = vector.load %arg3[%c0_15, %c0_16] : memref<1x80xf32, #tpu.memory_space<vmem>>, vector<1x80xf32>
      tpu.vector_store %arg3[%c0_15, %c0_16], %17 {strides = array<i32>} : memref<1x80xf32, #tpu.memory_space<vmem>>, vector<1x80xf32>,
    } else {
    }
    %c0 = arith.constant 0 : index
    %c0_1 = arith.constant 0 : index
    %3 = vector.load %arg1[%c0, %c0_1] : memref<160x80xf32, #tpu.memory_space<vmem>>, vector<160x80xf32>
    %c0_2 = arith.constant 0 : index
    %c0_3 = arith.constant 0 : index
    %4 = vector.load %arg2[%c0_2, %c0_3] : memref<1x80xf32, #tpu.memory_space<vmem>>, vector<1x80xf32>
    %cst = arith.constant dense<0.000000e+00> : vector<80xf32>
    %5 = vector.multi_reduction <add>, %3, %cst [0] : vector<160x80xf32> to vector<80xf32>
    %6 = vector.shape_cast %5 : vector<80xf32> to vector<1x80xf32>
    %7 = arith.addf %4, %6 : vector<1x80xf32>
    %c0_4 = arith.constant 0 : index
    %c0_5 = arith.constant 0 : index
    %8 = vector.load %arg2[%c0_4, %c0_5] : memref<1x80xf32, #tpu.memory_space<vmem>>, vector<1x80xf32>
    tpu.vector_store %arg2[%c0_4, %c0_5], %7 {strides = array<i32>} : memref<1x80xf32, #tpu.memory_space<vmem>>, vector<1x80xf32>,
    %c0_6 = arith.constant 0 : index
    %c0_7 = arith.constant 0 : index
    %9 = vector.load %arg3[%c0_6, %c0_7] : memref<1x80xf32, #tpu.memory_space<vmem>>, vector<1x80xf32>
    %10 = arith.mulf %3, %3 : vector<160x80xf32>
    %cst_8 = arith.constant dense<0.000000e+00> : vector<80xf32>
    %11 = vector.multi_reduction <add>, %10, %cst_8 [0] : vector<160x80xf32> to vector<80xf32>
    %12 = vector.shape_cast %11 : vector<80xf32> to vector<1x80xf32>
    %13 = arith.addf %9, %12 : vector<1x80xf32>
    %c0_9 = arith.constant 0 : index
    %c0_10 = arith.constant 0 : index
    %14 = vector.load %arg3[%c0_9, %c0_10] : memref<1x80xf32, #tpu.memory_space<vmem>>, vector<1x80xf32>
    tpu.vector_store %arg3[%c0_9, %c0_10], %13 {strides = array<i32>} : memref<1x80xf32, #tpu.memory_space<vmem>>, vector<1x80xf32>,
    return
  }
  func.func @transform_0(%arg0: i32) -> (i32, i32) {
    %c0_i32 = arith.constant 0 : i32
    %c0_i32_0 = arith.constant 0 : i32
    return %arg0, %c0_i32 : i32, i32
  }
  func.func @transform_1(%arg0: i32) -> (i32, i32) {
    %c0_i32 = arith.constant 0 : i32
    %c0_i32_0 = arith.constant 0 : i32
    %c0_i32_1 = arith.constant 0 : i32
    return %c0_i32, %c0_i32_0 : i32, i32
  }
  func.func @transform_2(%arg0: i32) -> (i32, i32) {
    %c0_i32 = arith.constant 0 : i32
    %c0_i32_0 = arith.constant 0 : i32
    %c0_i32_1 = arith.constant 0 : i32
    return %c0_i32, %c0_i32_0 : i32, i32
  }
}

</mosaic_0001>

<bundles_post_ra>
// kernel: pixel_swin_t_forward.13
= control target key start
LH: loop header
LB: loop body
LE: loop exit
PB: predicated region body
PF: predicated region fallthrough
CT: control target
= control target key end

     0   :  { %s1310_s18 = smov 0   ;;  %s1922_s0 = inlined_call_operand.vmem [shape: f32[512,48], index: 0, kind: input, shape index: {}]   ;;  %s1923_s1 = inlined_call_operand.vmem [shape: bf16[48,4], index: 1, kind: input, shape index: {}]   ;;  %s1924_s2 = inlined_call_operand.vmem [shape: f32[1,4], index: 2, kind: input, shape index: {}]   ;;  %s1925_s3 = inlined_call_operand.vmem [shape: f32[1,4], index: 3, kind: input, shape index: {}]   ;;  %s1926_s4 = inlined_call_operand.vmem [shape: f32[1,4], index: 4, kind: input, shape index: {}]   ;;  %s1927_s5 = inlined_call_operand.vmem [shape: f32[512,4], index: 5, kind: output, shape index: {}]  }
   0x1 LB: > { %s1101_s19 = sadd.s32 4294967295, %s1278_s18   ;;  %p1105_p0 = scmp.ge.s32.totalorder %s1278_s18, 1  ;;  %s1278_s18 = sphi %s1310_s18, %s15_s18  }
   0x2   : > { %p188_p1 = scmp.lt.s32.totalorder %s1278_s18, 3 }
   0x4   : > { %p189_p2 = pnand %p1105_p0, %p188_p1 }
   0x5   : > { %v1205_v0 = vld [vmem:[%s1923_s1] sm:$0xff] (!%p189_p2)   ;;  %s1106_s22 = sshll.u32 (!%p189_p2), %s1101_s19, 5  ;;  %v1206_v1 = vld [vmem:[%s1923_s1 + $0x8] sm:$0xff] (!%p189_p2)   ;;  %v1207_v2 = vld [vmem:[%s1923_s1 + $0x10] sm:$0xff] (!%p189_p2)   ;;  %vm308_vm0 = vcmask (!%p189_p2), 392192   ;;  %vm518_vm1 = vcmask (!%p189_p2), 31744  }
   0x6   : > { %192 = sbr.rel (%p189_p2) target bundleno = 613 (0x265), region = 40  ;;  %p217_p3 = scmp.lt.s32.totalorder (!%p189_p2), %s1106_s22, 63  ;;  %1153 = vmatprep.subr.bf16.mxu0 (!%p189_p2), %v1205_v0  ;;  %1191 = vmatprep.subr.bf16.mxu1 (!%p189_p2), %v1205_v0  ;;  %v1388_v51 = vld [vmem:[%s1924_s2] ss:$0 sm:$0xff] (!%p189_p2) }
   0x7   : > { %1154 = vmatpush3.bf16.msra.mxu0 (!%p189_p2), %v1205_v0  ;;  %1194 = vmatpush3.bf16.msra.mxu1 (!%p189_p2), %v1205_v0 }
   0x8   : > { %1155 = vmatprep.subr.bf16.mxu0 (!%p189_p2), %v1206_v1  ;;  %1192 = vmatprep.subr.bf16.mxu1 (!%p189_p2), %v1206_v1 }
   0xb   : > { %1156 = vmatpush3.bf16.msra.mxu0 (!%p189_p2), %v1206_v1  ;;  %1195 = vmatpush3.bf16.msra.mxu1 (!%p189_p2), %v1206_v1 }
   0xc   : > { %1157 = vmatprep.subr.bf16.mxu0 (!%p189_p2), %v1207_v2  ;;  %1193 = vmatprep.subr.bf16.mxu1 (!%p189_p2), %v1207_v2 }
   0xd   : > { %s1929_s22 = smov (!%p217_p3, %s1106_s22), 63 }
   0xe   : > { %s1107_s27 = sshll.u32 %s1929_s22, 3 }
   0xf   : > { %s1335_s30 = scalar_lea.vmem %s1922_s0, %s1107_s27  ;;  %1158 = vmatpush3.bf16.msra.mxu0 %v1207_v2  ;;  %1196 = vmatpush3.bf16.msra.mxu1 %v1207_v2  ;;  %s1759_s14 = scalar_lea.vmem %s1927_s5, %s1107_s27 }
  0x10   : > { %v229_v3 = vld [vmem:[%s1335_s30] sm:$0xff]  ;;  %v230_v4 = vld [vmem:[%s1335_s30 + $0x8] sm:$0xff]  ;;  %v231_v8 = vld [vmem:[%s1335_s30 + $0x10] sm:$0xff] }
  0x11   : > { %v245_v5 = vld [vmem:[%s1335_s30 + $0x80] sm:$0xff]  ;;  %v261_v6 = vpack.c.bf16 %v230_v4, %v229_v3  ;;  %v246_v7 = vld [vmem:[%s1335_s30 + $0x88] sm:$0xff]  ;;  %v232_v9 = vld [vmem:[%s1335_s30 + $0x18] sm:$0xff] }
  0x12   : > { %v269_v10 = vpack.c.bf16 %v246_v7, %v245_v5  ;;  %v247_v11 = vld [vmem:[%s1335_s30 + $0x90] sm:$0xff]  ;;  %v248_v12 = vld [vmem:[%s1335_s30 + $0x98] sm:$0xff]  ;;  %v233_v13 = vld [vmem:[%s1335_s30 + $0x20] sm:$0xff]  ;;  %v262_v14 = vpack.c.bf16 %v232_v9, %v231_v8 }
  0x13   : > { %1159 = vmatprep.mubr.msk.bf16.mxu0 %vm308_vm0, %v261_v6  ;;  %v270_v15 = vpack.c.bf16 %v248_v12, %v247_v11  ;;  %v234_v16 = vld [vmem:[%s1335_s30 + $0x28] sm:$0xff]  ;;  %v249_v18 = vld [vmem:[%s1335_s30 + $0xa0] sm:$0xff]  ;;  %v235_v21 = vld [vmem:[%s1335_s30 + $0x30] sm:$0xff] }
  0x14   : > { %v263_v17 = vpack.c.bf16 %v234_v16, %v233_v13  ;;  %v250_v19 = vld [vmem:[%s1335_s30 + $0xa8] sm:$0xff]  ;;  %1175 = vmatprep.mubr.msk.bf16.mxu1 %vm308_vm0, %v269_v10  ;;  %1160 = vmatmul.mubr.msk.bf16.vlgmr.msra.gmra.mrb[0].mxu0 %vm308_vm0, %v262_v14  ;;  %v236_v22 = vld [vmem:[%s1335_s30 + $0x38] sm:$0xff]  ;;  %v251_v23 = vld [vmem:[%s1335_s30 + $0xb0] sm:$0xff] }
  0x15   : > { %v271_v20 = vpack.c.bf16 %v250_v19, %v249_v18  ;;  %1176 = vmatmul.mubr.msk.bf16.vlgmr.msra.gmra.mrb[0].mxu1 %vm308_vm0, %v270_v15  ;;  %v252_v24 = vld [vmem:[%s1335_s30 + $0xb8] sm:$0xff]  ;;  %v237_v25 = vld [vmem:[%s1335_s30 + $0x40] sm:$0xff]  ;;  %v238_v26 = vld [vmem:[%s1335_s30 + $0x48] sm:$0xff]  ;;  %v264_v29 = vpack.c.bf16 %v236_v22, %v235_v21 }
  0x16   : > { %1163 = vmatprep.mubr.msk.bf16.mxu0 %vm308_vm0, %v263_v17  ;;  %v253_v27 = vld [vmem:[%s1335_s30 + $0xc0] sm:$0xff]  ;;  %v254_v28 = vld [vmem:[%s1335_s30 + $0xc8] sm:$0xff]  ;;  %v272_v30 = vpack.c.bf16 %v252_v24, %v251_v23  ;;  %v265_v31 = vpack.c.bf16 %v238_v26, %v237_v25  ;;  %v239_v33 = vld [vmem:[%s1335_s30 + $0x50] sm:$0xff] }
  0x17   : > { %1179 = vmatprep.mubr.msk.bf16.mxu1 %vm308_vm0, %v271_v20  ;;  %v273_v32 = vpack.c.bf16 %v254_v28, %v253_v27  ;;  %v240_v34 = vld [vmem:[%s1335_s30 + $0x58] sm:$0xff]  ;;  %v255_v35 = vld [vmem:[%s1335_s30 + $0xd0] sm:$0xff]  ;;  %v241_v37 = vld [vmem:[%s1335_s30 + $0x60] sm:$0xff] }
  0x18   : > { %v256_v36 = vld [vmem:[%s1335_s30 + $0xd8] sm:$0xff]  ;;  %v242_v38 = vld [vmem:[%s1335_s30 + $0x68] sm:$0xff]  ;;  %v257_v39 = vld [vmem:[%s1335_s30 + $0xe0] sm:$0xff]  ;;  %v266_v41 = vpack.c.bf16 %v240_v34, %v239_v33 }
  0x19   : > { %v258_v40 = vld [vmem:[%s1335_s30 + $0xe8] sm:$0xff]  ;;  %v274_v42 = vpack.c.bf16 %v256_v36, %v255_v35  ;;  %v267_v43 = vpack.c.bf16 %v242_v38, %v241_v37  ;;  %v243_v45 = vld [vmem:[%s1335_s30 + $0x70] sm:$0xff]  ;;  %v244_v46 = vld [vmem:[%s1335_s30 + $0x78] sm:$0xff] }
  0x1a   : > { %v275_v44 = vpack.c.bf16 %v258_v40, %v257_v39  ;;  %v259_v47 = vld [vmem:[%s1335_s30 + $0xf0] sm:$0xff]  ;;  %v260_v48 = vld [vmem:[%s1335_s30 + $0xf8] sm:$0xff]  ;;  %v268_v49 = vpack.c.bf16 %v244_v46, %v243_v45 }
  0x1b   : > { %v276_v50 = vpack.c.bf16 %v260_v48, %v259_v47 }
  0x1c   : > { %1164 = vmatmul.mubr.msk.bf16.gmra.mrb[4].mxu0 %vm308_vm0, %v264_v29 }
  0x1d   : > { %1180 = vmatmul.mubr.msk.bf16.gmra.mrb[4].mxu1 %vm308_vm0, %v272_v30  ;;  %1167 = vmatprep.mubr.msk.bf16.mxu0 %vm308_vm0, %v265_v31 }
  0x1e   : > { %1183 = vmatprep.mubr.msk.bf16.mxu1 %vm308_vm0, %v273_v32 }
  0x24   : > { %1168 = vmatmul.mubr.msk.bf16.gmra.mrb[8].mxu0 %vm308_vm0, %v266_v41 }
  0x25   : > { %1184 = vmatmul.mubr.msk.bf16.gmra.mrb[8].mxu1 %vm308_vm0, %v274_v42  ;;  %1171 = vmatprep.mubr.msk.bf16.mxu0 %vm308_vm0, %v267_v43 }
  0x26   : > { %1187 = vmatprep.mubr.msk.bf16.mxu1 %vm308_vm0, %v275_v44 }
  0x2c   : > { %1172 = vmatmul.mubr.msk.bf16.gmra.mrb[12].mxu0 %vm308_vm0, %v268_v49 }
  0x2d   : > { %1188 = vmatmul.mubr.msk.bf16.gmra.mrb[12].mxu1 %vm308_vm0, %v276_v50 }
  0xe7   : > { %v1161_v52 = vpop.f32.mrb[0].mxu0 }
  0xe8   : > { %v1177_v53 = vpop.f32.mrb[0].mxu1  ;;  %v1391_v54 = vadd.f32 %v1161_v52, %v1388_v51  ;;  %v391_v56 = vpop.f32.mrb[1].mxu0 }
  0xe9   : > { %v1394_v55 = vadd.f32 %v1177_v53, %v1388_v51  ;;  %v455_v57 = vpop.f32.mrb[1].mxu1  ;;  %v1162_v58 = vpop.f32.mrb[2].mxu0  ;;  %v1397_v60 = vadd.f32 %v1388_v51, %v391_v56 }
  0xea   : > { %v1178_v59 = vpop.f32.mrb[2].mxu1  ;;  %v1400_v61 = vadd.f32 %v1162_v58, %v1388_v51  ;;  %v394_v62 = vpop.f32.mrb[3].mxu0  ;;  %v525_v1 = vsel %vm518_vm1, %v1391_v54, 0.0  ;;  %v1407_v2 = vadd.f32 %v1388_v51, %v455_v57 }
  0xeb   : > { %v458_v63 = vpop.f32.mrb[3].mxu1  ;;  %v573_v0 = vsel %vm518_vm1, %v1394_v55, 0.0  ;;  %526 = vadd.xlane.f32.xlu1 %v525_v1  ;;  %v1410_v3 = vadd.f32 %v1178_v59, %v1388_v51  ;;  %v519_v5 = vsel %vm518_vm1, %v1397_v60, 0.0  ;;  %v1417_v12 = vadd.f32 %v1388_v51, %v394_v62 }
  0xec   : > { %574 = vadd.xlane.f32.xlu0 %v573_v0  ;;  %v528_v4 = vsel %vm518_vm1, %v1400_v61, 0.0  ;;  %v1420_v13 = vadd.f32 %v1388_v51, %v458_v63  ;;  %v567_v15 = vsel %vm518_vm1, %v1407_v2, 0.0 }
  0xed   : > { %v576_v14 = vsel %vm518_vm1, %v1410_v3, 0.0  ;;  %v522_v21 = vsel %vm518_vm1, %v1417_v12, 0.0 }
  0xee   : > { %v570_v20 = vsel %vm518_vm1, %v1420_v13, 0.0 }
  0xef   : > { %529 = vadd.xlane.f32.xlu1 %v528_v4  ;;  %v1165_v6 = vpop.f32.mrb[4].mxu0 }
  0xf0   : > { %520 = vadd.xlane.f32.xlu0 %v519_v5  ;;  %v1181_v7 = vpop.f32.mrb[4].mxu1  ;;  %v407_v8 = vpop.f32.mrb[5].mxu0  ;;  %v1427_v18 = vadd.f32 %v1165_v6, %v1388_v51 }
  0xf1   : > { %v471_v9 = vpop.f32.mrb[5].mxu1  ;;  %v1166_v10 = vpop.f32.mrb[6].mxu0  ;;  %v1437_v24 = vadd.f32 %v1181_v7, %v1388_v51  ;;  %v1451_v36 = vadd.f32 %v1388_v51, %v407_v8 }
  0xf2   : > { %v1182_v11 = vpop.f32.mrb[6].mxu1  ;;  %v410_v16 = vpop.f32.mrb[7].mxu0  ;;  %v1430_v19 = vadd.f32 %v1166_v10, %v1388_v51  ;;  %v537_v27 = vsel %vm518_vm1, %v1427_v18, 0.0  ;;  %v1457_v44 = vadd.f32 %v1388_v51, %v471_v9 }
  0xf3   : > { %v474_v17 = vpop.f32.mrb[7].mxu1  ;;  %577 = vadd.xlane.f32.xlu1 %v576_v14  ;;  %v1440_v25 = vadd.f32 %v1182_v11, %v1388_v51  ;;  %v585_v35 = vsel %vm518_vm1, %v1437_v24, 0.0  ;;  %v1454_v37 = vadd.f32 %v1388_v51, %v410_v16  ;;  %v531_v47 = vsel %vm518_vm1, %v1451_v36, 0.0 }
  0xf4   : > { %568 = vadd.xlane.f32.xlu0 %v567_v15  ;;  %v540_v26 = vsel %vm518_vm1, %v1430_v19, 0.0  ;;  %v1460_v45 = vadd.f32 %v1388_v51, %v474_v17  ;;  %v579_v56 = vsel %vm518_vm1, %v1457_v44, 0.0 }
  0xf5   : > { %v588_v34 = vsel %vm518_vm1, %v1440_v25, 0.0  ;;  %v534_v46 = vsel %vm518_vm1, %v1454_v37, 0.0 }
  0xf6   : > { %v582_v53 = vsel %vm518_vm1, %v1460_v45, 0.0 }
  0xf7   : > { %571 = vadd.xlane.f32.xlu1 %v570_v20  ;;  %v1169_v22 = vpop.f32.mrb[8].mxu0 }
  0xf8   : > { %523 = vadd.xlane.f32.xlu0 %v522_v21  ;;  %v1185_v23 = vpop.f32.mrb[8].mxu1  ;;  %v423_v28 = vpop.f32.mrb[9].mxu0  ;;  %v1467_v50 = vadd.f32 %v1169_v22, %v1388_v51 }
  0xf9   : > { %v487_v29 = vpop.f32.mrb[9].mxu1  ;;  %v1170_v30 = vpop.f32.mrb[10].mxu0  ;;  %v1477_v57 = vadd.f32 %v1185_v23, %v1388_v51  ;;  %v1491_v1 = vadd.f32 %v1388_v51, %v423_v28 }
  0xfa   : > { %v1186_v31 = vpop.f32.mrb[10].mxu1  ;;  %v426_v32 = vpop.f32.mrb[11].mxu0  ;;  %v1470_v52 = vadd.f32 %v1170_v30, %v1388_v51  ;;  %v549_v62 = vsel %vm518_vm1, %v1467_v50, 0.0  ;;  %v1497_v5 = vadd.f32 %v1388_v51, %v487_v29 }
  0xfb   : > { %v490_v33 = vpop.f32.mrb[11].mxu1  ;;  %541 = vadd.xlane.f32.xlu1 %v540_v26  ;;  %v1480_v58 = vadd.f32 %v1186_v31, %v1388_v51  ;;  %v597_v0 = vsel %vm518_vm1, %v1477_v57, 0.0  ;;  %v1494_v4 = vadd.f32 %v1388_v51, %v426_v32  ;;  %v543_v8 = vsel %vm518_vm1, %v1491_v1, 0.0 }
  0xfc   : > { %538 = vadd.xlane.f32.xlu0 %v537_v27  ;;  %v552_v59 = vsel %vm518_vm1, %v1470_v52, 0.0  ;;  %v1500_v6 = vadd.f32 %v1388_v51, %v490_v33  ;;  %v591_v14 = vsel %vm518_vm1, %v1497_v5, 0.0 }
  0xfd   : > { %v600_v63 = vsel %vm518_vm1, %v1480_v58, 0.0  ;;  %v546_v7 = vsel %vm518_vm1, %v1494_v4, 0.0 }
  0xfe   : > { %v594_v11 = vsel %vm518_vm1, %v1500_v6, 0.0 }
  0xff   : > { %589 = vadd.xlane.f32.xlu1 %v588_v34  ;;  %v1173_v38 = vpop.f32.mrb[12].mxu0 }
 0x100   : > { %586 = vadd.xlane.f32.xlu0 %v585_v35  ;;  %v1189_v39 = vpop.f32.mrb[12].mxu1  ;;  %v439_v40 = vpop.f32.mrb[13].mxu0  ;;  %v1507_v9 = vadd.f32 %v1173_v38, %v1388_v51 }
 0x101   : > { %v503_v41 = vpop.f32.mrb[13].mxu1  ;;  %v1174_v42 = vpop.f32.mrb[14].mxu0  ;;  %v1521_v17 = vadd.f32 %v1388_v51, %v439_v40  ;;  %v1541_v29 = vadd.f32 %v1189_v39, %v1388_v51 }
 0x102   : > { %v1190_v43 = vpop.f32.mrb[14].mxu1  ;;  %v442_v48 = vpop.f32.mrb[15].mxu0  ;;  %v1510_v10 = vadd.f32 %v1174_v42, %v1388_v51  ;;  %v561_v16 = vsel %vm518_vm1, %v1507_v9, 0.0  ;;  %v1527_v21 = vadd.f32 %v1388_v51, %v503_v41 }
 0x103   : > { %v506_v49 = vpop.f32.mrb[15].mxu1  ;;  %535 = vadd.xlane.f32.xlu1 %v534_v46  ;;  %v1524_v20 = vadd.f32 %v1388_v51, %v442_v48  ;;  %v555_v26 = vsel %vm518_vm1, %v1521_v17, 0.0  ;;  %v1544_v30 = vadd.f32 %v1190_v43, %v1388_v51  ;;  %v609_v32 = vsel %vm518_vm1, %v1541_v29, 0.0 }
 0x104   : > { %532 = vadd.xlane.f32.xlu0 %v531_v47  ;;  %v564_v15 = vsel %vm518_vm1, %v1510_v10, 0.0  ;;  %v1530_v22 = vadd.f32 %v1388_v51, %v506_v49  ;;  %v603_v28 = vsel %vm518_vm1, %v1527_v21, 0.0 }
 0x105   : > { %v558_v23 = vsel %vm518_vm1, %v1524_v20, 0.0  ;;  %v612_v31 = vsel %vm518_vm1, %v1544_v30, 0.0 }
 0x106   : > { %v606_v27 = vsel %vm518_vm1, %v1530_v22, 0.0 }
 0x107   : > { %583 = vadd.xlane.f32.xlu1 %v582_v53 }
 0x108   : > { %580 = vadd.xlane.f32.xlu0 %v579_v56 }
 0x10b   : > { %553 = vadd.xlane.f32.xlu1 %v552_v59 }
 0x10c   : > { %550 = vadd.xlane.f32.xlu0 %v549_v62 }
 0x10f   : > { %601 = vadd.xlane.f32.xlu1 %v600_v63 }
 0x110   : > { %598 = vadd.xlane.f32.xlu0 %v597_v0 }
 0x113   : > { %547 = vadd.xlane.f32.xlu1 %v546_v7 }
 0x114   : > { %544 = vadd.xlane.f32.xlu0 %v543_v8 }
 0x117   : > { %595 = vadd.xlane.f32.xlu1 %v594_v11 }
 0x118   : > { %592 = vadd.xlane.f32.xlu0 %v591_v14 }
 0x11b   : > { %565 = vadd.xlane.f32.xlu1 %v564_v15 }
 0x11c   : > { %562 = vadd.xlane.f32.xlu0 %v561_v16 }
 0x11f   : > { %559 = vadd.xlane.f32.xlu1 %v558_v23 }
 0x120   : > { %556 = vadd.xlane.f32.xlu0 %v555_v26 }
 0x123   : > { %607 = vadd.xlane.f32.xlu1 %v606_v27 }
 0x124   : > { %604 = vadd.xlane.f32.xlu0 %v603_v28 }
 0x127   : > { %613 = vadd.xlane.f32.xlu1 %v612_v31 }
 0x128   : > { %610 = vadd.xlane.f32.xlu0 %v609_v32 }
 0x178   : > { %v527_v34 = vpop.xlane.xlu1 %526 }
 0x179   : > { %v575_v33 = vpop.xlane.xlu0 %574  ;;  %v617_v38 = vmul.f32 0.25, %v527_v34 }
 0x17a   : > { %v633_v35 = vmul.f32 0.25, %v575_v33 }
 0x17b   : > { %v1554_v51 = vsub.f32 %v1391_v54, %v617_v38 }
 0x17c   : > { %v1551_v39 = vsub.f32 %v1394_v55, %v633_v35  ;;  %v530_v40 = vpop.xlane.xlu1 %529 }
 0x17d   : > { %v521_v41 = vpop.xlane.xlu0 %520  ;;  %v618_v42 = vmul.f32 0.25, %v530_v40  ;;  %v681_v46 = vmul.f32 %v1554_v51, %v1554_v51 }
 0x17e   : > { %v615_v43 = vmul.f32 0.25, %v521_v41  ;;  %v697_v55 = vmul.f32 %v1551_v39, %v1551_v39 }
 0x17f   : > { %v1559_v47 = vsub.f32 %v1400_v61, %v618_v42  ;;  %v717_v49 = vsel %vm518_vm1, %v681_v46, 0.0 }
 0x180   : > { %v1562_v48 = vsub.f32 %v1397_v60, %v615_v43  ;;  %v578_v54 = vpop.xlane.xlu1 %577  ;;  %718 = vadd.xlane.f32.xlu0 %v717_v49  ;;  %v765_v7 = vsel %vm518_vm1, %v697_v55, 0.0 }
 0x181   : > { %v569_v53 = vpop.xlane.xlu0 %568  ;;  %v634_v56 = vmul.f32 0.25, %v578_v54  ;;  %v682_v62 = vmul.f32 %v1559_v47, %v1559_v47 }
 0x182   : > { %v631_v59 = vmul.f32 0.25, %v569_v53  ;;  %v679_v61 = vmul.f32 %v1562_v48, %v1562_v48 }
 0x183   : > { %v1572_v63 = vsub.f32 %v1410_v3, %v634_v56  ;;  %v720_v0 = vsel %vm518_vm1, %v682_v62, 0.0 }
 0x184   : > { %v1575_v60 = vsub.f32 %v1407_v2, %v631_v59  ;;  %v572_v8 = vpop.xlane.xlu1 %571  ;;  %721 = vadd.xlane.f32.xlu1 %v720_v0  ;;  %766 = vadd.xlane.f32.xlu0 %v765_v7  ;;  %v711_v23 = vsel %vm518_vm1, %v679_v61, 0.0 }
 0x185   : > { %v524_v11 = vpop.xlane.xlu0 %523  ;;  %v632_v14 = vmul.f32 0.25, %v572_v8  ;;  %v698_v16 = vmul.f32 %v1572_v63, %v1572_v63 }
 0x186   : > { %v616_v15 = vmul.f32 0.25, %v524_v11  ;;  %v695_v27 = vmul.f32 %v1575_v60, %v1575_v60 }
 0x187   : > { %v1583_v3 = vsub.f32 %v1420_v13, %v632_v14  ;;  %v768_v26 = vsel %vm518_vm1, %v698_v16, 0.0 }
 0x188   : > { %v1586_v2 = vsub.f32 %v1417_v12, %v616_v15  ;;  %v542_v28 = vpop.xlane.xlu1 %541  ;;  %769 = vadd.xlane.f32.xlu1 %v768_v26  ;;  %712 = vadd.xlane.f32.xlu0 %v711_v23  ;;  %v759_v38 = vsel %vm518_vm1, %v695_v27, 0.0 }
 0x189   : > { %v539_v31 = vpop.xlane.xlu0 %538  ;;  %v622_v32 = vmul.f32 0.25, %v542_v28  ;;  %v696_v13 = vmul.f32 %v1583_v3, %v1583_v3 }
 0x18a   : > { %v621_v33 = vmul.f32 0.25, %v539_v31  ;;  %v680_v34 = vmul.f32 %v1586_v2, %v1586_v2 }
 0x18b   : > { %v1596_v12 = vsub.f32 %v1430_v19, %v622_v32  ;;  %v762_v55 = vsel %vm518_vm1, %v696_v13, 0.0 }
 0x18c   : > { %v1599_v35 = vsub.f32 %v1427_v18, %v621_v33  ;;  %v714_v40 = vsel %vm518_vm1, %v680_v34, 0.0  ;;  %v590_v41 = vpop.xlane.xlu1 %589  ;;  %760 = vadd.xlane.f32.xlu0 %v759_v38 }
 0x18d   : > { %715 = vadd.xlane.f32.xlu1 %v714_v40  ;;  %v587_v42 = vpop.xlane.xlu0 %586  ;;  %v638_v43 = vmul.f32 0.25, %v590_v41  ;;  %v686_v53 = vmul.f32 %v1596_v12, %v1596_v12 }
 0x18e   : > { %v637_v46 = vmul.f32 0.25, %v587_v42  ;;  %v685_v49 = vmul.f32 %v1599_v35, %v1599_v35 }
 0x18f   : > { %v1607_v19 = vsub.f32 %v1440_v25, %v638_v43  ;;  %v732_v8 = vsel %vm518_vm1, %v686_v53, 0.0 }
 0x190   : > { %v1610_v18 = vsub.f32 %v1437_v24, %v637_v46  ;;  %v729_v54 = vsel %vm518_vm1, %v685_v49, 0.0  ;;  %v536_v56 = vpop.xlane.xlu1 %535 }
 0x191   : > { %763 = vadd.xlane.f32.xlu1 %v762_v55  ;;  %730 = vadd.xlane.f32.xlu0 %v729_v54  ;;  %v533_v59 = vpop.xlane.xlu0 %532  ;;  %v620_v62 = vmul.f32 0.25, %v536_v56  ;;  %v702_v25 = vmul.f32 %v1607_v19, %v1607_v19 }
 0x192   : > { %v619_v61 = vmul.f32 0.25, %v533_v59  ;;  %v701_v0 = vmul.f32 %v1610_v18, %v1610_v18 }
 0x193   : > { %v1620_v24 = vsub.f32 %v1454_v37, %v620_v62  ;;  %v780_v27 = vsel %vm518_vm1, %v702_v25, 0.0 }
 0x194   : > { %v1623_v7 = vsub.f32 %v1451_v36, %v619_v61  ;;  %v777_v11 = vsel %vm518_vm1, %v701_v0, 0.0  ;;  %v584_v14 = vpop.xlane.xlu1 %583 }
 0x195   : > { %733 = vadd.xlane.f32.xlu1 %v732_v8  ;;  %778 = vadd.xlane.f32.xlu0 %v777_v11  ;;  %v581_v15 = vpop.xlane.xlu0 %580  ;;  %v636_v16 = vmul.f32 0.25, %v584_v14  ;;  %v684_v31 = vmul.f32 %v1620_v24, %v1620_v24 }
 0x196   : > { %v635_v23 = vmul.f32 0.25, %v581_v15  ;;  %v683_v26 = vmul.f32 %v1623_v7, %v1623_v7 }
 0x197   : > { %v1631_v37 = vsub.f32 %v1460_v45, %v636_v16  ;;  %v726_v41 = vsel %vm518_vm1, %v684_v31, 0.0 }
 0x198   : > { %v1634_v36 = vsub.f32 %v1457_v44, %v635_v23  ;;  %v723_v28 = vsel %vm518_vm1, %v683_v26, 0.0  ;;  %v554_v32 = vpop.xlane.xlu1 %553 }
 0x199   : > { %781 = vadd.xlane.f32.xlu1 %v780_v27  ;;  %724 = vadd.xlane.f32.xlu0 %v723_v28  ;;  %v551_v33 = vpop.xlane.xlu0 %550  ;;  %v626_v34 = vmul.f32 0.25, %v554_v32  ;;  %v700_v45 = vmul.f32 %v1631_v37, %v1631_v37 }
 0x19a   : > { %v625_v13 = vmul.f32 0.25, %v551_v33  ;;  %v699_v38 = vmul.f32 %v1634_v36, %v1634_v36 }
 0x19b   : > { %v1644_v44 = vsub.f32 %v1470_v52, %v626_v34  ;;  %v774_v53 = vsel %vm518_vm1, %v700_v45, 0.0 }
 0x19c   : > { %v1647_v40 = vsub.f32 %v1467_v50, %v625_v13  ;;  %v771_v42 = vsel %vm518_vm1, %v699_v38, 0.0  ;;  %v602_v43 = vpop.xlane.xlu1 %601 }
 0x19d   : > { %727 = vadd.xlane.f32.xlu1 %v726_v41  ;;  %772 = vadd.xlane.f32.xlu0 %v771_v42  ;;  %v599_v46 = vpop.xlane.xlu0 %598  ;;  %v642_v49 = vmul.f32 0.25, %v602_v43  ;;  %v690_v59 = vmul.f32 %v1644_v44, %v1644_v44 }
 0x19e   : > { %v641_v55 = vmul.f32 0.25, %v599_v46  ;;  %v689_v54 = vmul.f32 %v1647_v40, %v1647_v40 }
 0x19f   : > { %v1655_v52 = vsub.f32 %v1480_v58, %v642_v49  ;;  %v744_v14 = vsel %vm518_vm1, %v690_v59, 0.0 }
 0x1a0   : > { %v1658_v50 = vsub.f32 %v1477_v57, %v641_v55  ;;  %v741_v56 = vsel %vm518_vm1, %v689_v54, 0.0  ;;  %v548_v62 = vpop.xlane.xlu1 %547 }
 0x1a1   : > { %775 = vadd.xlane.f32.xlu1 %v774_v53  ;;  %742 = vadd.xlane.f32.xlu0 %v741_v56  ;;  %v545_v61 = vpop.xlane.xlu0 %544  ;;  %v624_v0 = vmul.f32 0.25, %v548_v62  ;;  %v706_v58 = vmul.f32 %v1655_v52, %v1655_v52 }
 0x1a2   : > { %v623_v25 = vmul.f32 0.25, %v545_v61  ;;  %v705_v8 = vmul.f32 %v1658_v50, %v1658_v50 }
 0x1a3   : > { %v1668_v57 = vsub.f32 %v1494_v4, %v624_v0  ;;  %v792_v31 = vsel %vm518_vm1, %v706_v58, 0.0 }
 0x1a4   : > { %v1671_v11 = vsub.f32 %v1491_v1, %v623_v25  ;;  %v789_v15 = vsel %vm518_vm1, %v705_v8, 0.0  ;;  %v596_v16 = vpop.xlane.xlu1 %595 }
 0x1a5   : > { %745 = vadd.xlane.f32.xlu1 %v744_v14  ;;  %790 = vadd.xlane.f32.xlu0 %v789_v15  ;;  %v593_v23 = vpop.xlane.xlu0 %592  ;;  %v640_v26 = vmul.f32 0.25, %v596_v16  ;;  %v688_v33 = vmul.f32 %v1668_v57, %v1668_v57 }
 0x1a6   : > { %v639_v27 = vmul.f32 0.25, %v593_v23  ;;  %v687_v28 = vmul.f32 %v1671_v11, %v1671_v11 }
 0x1a7   : > { %v1679_v4 = vsub.f32 %v1500_v6, %v640_v26  ;;  %v738_v43 = vsel %vm518_vm1, %v688_v33, 0.0 }
 0x1a8   : > { %v1682_v1 = vsub.f32 %v1497_v5, %v639_v27  ;;  %v735_v32 = vsel %vm518_vm1, %v687_v28, 0.0  ;;  %v566_v34 = vpop.xlane.xlu1 %565 }
 0x1a9   : > { %793 = vadd.xlane.f32.xlu1 %v792_v31  ;;  %736 = vadd.xlane.f32.xlu0 %v735_v32  ;;  %v563_v13 = vpop.xlane.xlu0 %562  ;;  %v630_v38 = vmul.f32 0.25, %v566_v34  ;;  %v704_v6 = vmul.f32 %v1679_v4, %v1679_v4 }
 0x1aa   : > { %v629_v45 = vmul.f32 0.25, %v563_v13  ;;  %v703_v41 = vmul.f32 %v1682_v1, %v1682_v1 }
 0x1ab   : > { %v1692_v5 = vsub.f32 %v1510_v10, %v630_v38  ;;  %v786_v59 = vsel %vm518_vm1, %v704_v6, 0.0 }
 0x1ac   : > { %v1695_v42 = vsub.f32 %v1507_v9, %v629_v45  ;;  %v783_v46 = vsel %vm518_vm1, %v703_v41, 0.0  ;;  %v560_v49 = vpop.xlane.xlu1 %559 }
 0x1ad   : > { %739 = vadd.xlane.f32.xlu1 %v738_v43  ;;  %784 = vadd.xlane.f32.xlu0 %v783_v46  ;;  %v557_v55 = vpop.xlane.xlu0 %556  ;;  %v628_v54 = vmul.f32 0.25, %v560_v49  ;;  %v694_v61 = vmul.f32 %v1692_v5, %v1692_v5 }
 0x1ae   : > { %v627_v53 = vmul.f32 0.25, %v557_v55  ;;  %v693_v56 = vmul.f32 %v1695_v42, %v1695_v42 }
 0x1af   : > { %v1703_v10 = vsub.f32 %v1524_v20, %v628_v54  ;;  %v756_v16 = vsel %vm518_vm1, %v694_v61, 0.0 }
 0x1b0   : > { %v1706_v9 = vsub.f32 %v1521_v17, %v627_v53  ;;  %v753_v62 = vsel %vm518_vm1, %v693_v56, 0.0  ;;  %v608_v0 = vpop.xlane.xlu1 %607 }
 0x1b1   : > { %787 = vadd.xlane.f32.xlu1 %v786_v59  ;;  %754 = vadd.xlane.f32.xlu0 %v753_v62  ;;  %v605_v25 = vpop.xlane.xlu0 %604  ;;  %v644_v8 = vmul.f32 0.25, %v608_v0  ;;  %v692_v20 = vmul.f32 %v1703_v10, %v1703_v10 }
 0x1b2   : > { %v643_v58 = vmul.f32 0.25, %v605_v25  ;;  %v691_v14 = vmul.f32 %v1706_v9, %v1706_v9 }
 0x1b3   : > { %v1716_v17 = vsub.f32 %v1530_v22, %v644_v8  ;;  %v750_v33 = vsel %vm518_vm1, %v692_v20, 0.0 }
 0x1b4   : > { %v1719_v15 = vsub.f32 %v1527_v21, %v643_v58  ;;  %v747_v23 = vsel %vm518_vm1, %v691_v14, 0.0  ;;  %v614_v26 = vpop.xlane.xlu1 %613 }
 0x1b5   : > { %757 = vadd.xlane.f32.xlu1 %v756_v16  ;;  %748 = vadd.xlane.f32.xlu0 %v747_v23  ;;  %v611_v27 = vpop.xlane.xlu0 %610  ;;  %v646_v28 = vmul.f32 0.25, %v614_v26  ;;  %v708_v13 = vmul.f32 %v1716_v17, %v1716_v17 }
 0x1b6   : > { %v645_v31 = vmul.f32 0.25, %v611_v27  ;;  %v707_v32 = vmul.f32 %v1719_v15, %v1719_v15  ;;  %v1745_v27 = vld [vmem:[%s1925_s3] ss:$0 sm:$0xff] }
 0x1b7   : > { %v1727_v22 = vsub.f32 %v1544_v30, %v646_v28  ;;  %v798_v45 = vsel %vm518_vm1, %v708_v13, 0.0  ;;  %v1751_v13 = vld [vmem:[%s1926_s4] ss:$0 sm:$0xff] }
 0x1b8   : > { %v1730_v21 = vsub.f32 %v1541_v29, %v645_v31  ;;  %v795_v34 = vsel %vm518_vm1, %v707_v32, 0.0 }
 0x1b9   : > { %751 = vadd.xlane.f32.xlu1 %v750_v33  ;;  %796 = vadd.xlane.f32.xlu0 %v795_v34  ;;  %v710_v30 = vmul.f32 %v1727_v22, %v1727_v22 }
 0x1ba   : > { %v709_v38 = vmul.f32 %v1730_v21, %v1730_v21 }
 0x1bb   : > { %v804_v29 = vsel %vm518_vm1, %v710_v30, 0.0 }
 0x1bc   : > { %v801_v41 = vsel %vm518_vm1, %v709_v38, 0.0 }
 0x1bd   : > { %799 = vadd.xlane.f32.xlu1 %v798_v45  ;;  %802 = vadd.xlane.f32.xlu0 %v801_v41 }
 0x1c1   : > { %805 = vadd.xlane.f32.xlu1 %v804_v29 }
 0x20d   : > { %v719_v6 = vpop.xlane.xlu0 %718 }
 0x20e   : > { %v809_v43 = vmul.f32 0.25, %v719_v6 }
 0x210   : > { %v841_v46 = vadd.f32 1e-05, %v809_v43 }
 0x211   : > { %v722_v49 = vpop.xlane.xlu1 %721  ;;  %v767_v55 = vpop.xlane.xlu0 %766 }
 0x212   : > { %1208 = vrsqrt.f32 %v841_v46  ;;  %v810_v54 = vmul.f32 0.25, %v722_v49  ;;  %v825_v53 = vmul.f32 0.25, %v767_v55 }
 0x214   : > { %v842_v56 = vadd.f32 1e-05, %v810_v54  ;;  %v857_v59 = vadd.f32 1e-05, %v825_v53 }
 0x215   : > { %v770_v62 = vpop.xlane.xlu1 %769  ;;  %v713_v61 = vpop.xlane.xlu0 %712 }
 0x216   : > { %1210 = vrsqrt.f32 %v842_v56  ;;  %v826_v0 = vmul.f32 0.25, %v770_v62  ;;  %v807_v25 = vmul.f32 0.25, %v713_v61 }
 0x217   : > { %1212 = vrsqrt.f32 %v857_v59 }
 0x218   : > { %v858_v8 = vadd.f32 1e-05, %v826_v0  ;;  %v839_v58 = vadd.f32 1e-05, %v807_v25 }
 0x219   : > { %v761_v20 = vpop.xlane.xlu0 %760 }
 0x21a   : > { %v716_v14 = vpop.xlane.xlu1 %715  ;;  %1214 = vrsqrt.f32 %v858_v8  ;;  %v823_v23 = vmul.f32 0.25, %v761_v20 }
 0x21b   : > { %v808_v16 = vmul.f32 0.25, %v716_v14  ;;  %1216 = vrsqrt.f32 %v839_v58 }
 0x21c   : > { %v1209_v26 = vpop.eup %1208  ;;  %v855_v31 = vadd.f32 1e-05, %v823_v23 }
 0x21d   : > { %v840_v28 = vadd.f32 1e-05, %v808_v16  ;;  %v905_v32 = vmul.f32 %v1209_v26, %v1554_v51 }
 0x21e   : > { %v764_v33 = vpop.xlane.xlu1 %763  ;;  %v731_v34 = vpop.xlane.xlu0 %730 }
 0x21f   : > { %1218 = vrsqrt.f32 %v840_v28  ;;  %v824_v38 = vmul.f32 0.25, %v764_v33  ;;  %v813_v45 = vmul.f32 0.25, %v731_v34  ;;  %v944_v41 = vmul.f32 %v1745_v27, %v905_v32 }
 0x220   : > { %1220 = vrsqrt.f32 %v855_v31  ;;  %v1211_v30 = vpop.eup %1210 }
 0x221   : > { %v856_v51 = vadd.f32 1e-05, %v824_v38  ;;  %v845_v29 = vadd.f32 1e-05, %v813_v45  ;;  %v1213_v6 = vpop.eup %1212  ;;  %v983_v43 = vadd.f32 %v1751_v13, %v944_v41  ;;  %v906_v46 = vmul.f32 %v1211_v30, %v1559_v47 }
 0x222   : > { %v734_v49 = vpop.xlane.xlu1 %733  ;;  %v779_v55 = vpop.xlane.xlu0 %778  ;;  %v921_v54 = vmul.f32 %v1213_v6, %v1551_v39 }
 0x223   : > { %1222 = vrsqrt.f32 %v856_v51  ;;  %v814_v53 = vmul.f32 0.25, %v734_v49  ;;  %v829_v56 = vmul.f32 0.25, %v779_v55  ;;  %1015 = vst.msk [vmem:[%s1759_s14 + $0x10] sm:$0xff] %vm518_vm1, %v983_v43  ;;  %v945_v59 = vmul.f32 %v1745_v27, %v906_v46 }
 0x224   : > { %1224 = vrsqrt.f32 %v845_v29  ;;  %v1215_v62 = vpop.eup %1214  ;;  %v960_v61 = vmul.f32 %v1745_v27, %v921_v54 }
 0x225   : > { %v846_v0 = vadd.f32 1e-05, %v814_v53  ;;  %v861_v25 = vadd.f32 1e-05, %v829_v56  ;;  %v1217_v47 = vpop.eup %1216  ;;  %v984_v8 = vadd.f32 %v1751_v13, %v945_v59  ;;  %v922_v39 = vmul.f32 %v1215_v62, %v1572_v63 }
 0x226   : > { %v782_v58 = vpop.xlane.xlu1 %781  ;;  %v725_v14 = vpop.xlane.xlu0 %724  ;;  %v999_v20 = vadd.f32 %v1751_v13, %v960_v61  ;;  %v903_v16 = vmul.f32 %v1217_v47, %v1562_v48 }
 0x227   : > { %1226 = vrsqrt.f32 %v846_v0  ;;  %v830_v23 = vmul.f32 0.25, %v782_v58  ;;  %1016 = vst.msk [vmem:[%s1759_s14 + $0x18] sm:$0xff] %vm518_vm1, %v984_v8  ;;  %v961_v26 = vmul.f32 %v1745_v27, %v922_v39  ;;  %v811_v28 = vmul.f32 0.25, %v725_v14 }
 0x228   : > { %1228 = vrsqrt.f32 %v861_v25  ;;  %1031 = vst.msk [vmem:[%s1759_s14 + $0x90] sm:$0xff] %vm518_vm1, %v999_v20  ;;  %v942_v63 = vmul.f32 %v1745_v27, %v903_v16 }
 0x229   : > { %v1219_v31 = vpop.eup %1218  ;;  %v862_v32 = vadd.f32 1e-05, %v830_v23  ;;  %v1000_v34 = vadd.f32 %v1751_v13, %v961_v26  ;;  %v843_v38 = vadd.f32 1e-05, %v811_v28 }
 0x22a   : > { %v1221_v33 = vpop.eup %1220  ;;  %v904_v48 = vmul.f32 %v1219_v31, %v1586_v2  ;;  %v728_v45 = vpop.xlane.xlu1 %727  ;;  %v981_v30 = vadd.f32 %v1751_v13, %v942_v63 }
 0x22b   : > { %v773_v41 = vpop.xlane.xlu0 %772  ;;  %v919_v51 = vmul.f32 %v1221_v33, %v1575_v60  ;;  %1230 = vrsqrt.f32 %v862_v32  ;;  %v812_v29 = vmul.f32 0.25, %v728_v45  ;;  %1032 = vst.msk [vmem:[%s1759_s14 + $0x98] sm:$0xff] %vm518_vm1, %v1000_v34 }
 0x22c   : > { %v943_v6 = vmul.f32 %v1745_v27, %v904_v48  ;;  %1232 = vrsqrt.f32 %v843_v38  ;;  %v827_v43 = vmul.f32 0.25, %v773_v41  ;;  %1013 = vst.msk [vmem:[%s1759_s14] sm:$0xff] %vm518_vm1, %v981_v30 }
 0x22d   : > { %v1223_v46 = vpop.eup %1222  ;;  %v958_v2 = vmul.f32 %v1745_v27, %v919_v51  ;;  %v844_v49 = vadd.f32 1e-05, %v812_v29 }
 0x22e   : > { %v1225_v55 = vpop.eup %1224  ;;  %v982_v54 = vadd.f32 %v1751_v13, %v943_v6  ;;  %v920_v60 = vmul.f32 %v1223_v46, %v1583_v3  ;;  %v859_v53 = vadd.f32 1e-05, %v827_v43  ;;  %v776_v56 = vpop.xlane.xlu1 %775 }
 0x22f   : > { %v743_v59 = vpop.xlane.xlu0 %742  ;;  %v997_v62 = vadd.f32 %v1751_v13, %v958_v2  ;;  %v909_v61 = vmul.f32 %v1225_v55, %v1599_v35  ;;  %1234 = vrsqrt.f32 %v844_v49  ;;  %v828_v0 = vmul.f32 0.25, %v776_v56 }
 0x230   : > { %1014 = vst.msk [vmem:[%s1759_s14 + $0x8] sm:$0xff] %vm518_vm1, %v982_v54  ;;  %v959_v25 = vmul.f32 %v1745_v27, %v920_v60  ;;  %1236 = vrsqrt.f32 %v859_v53  ;;  %v817_v47 = vmul.f32 0.25, %v743_v59 }
 0x231   : > { %v1227_v8 = vpop.eup %1226  ;;  %1029 = vst.msk [vmem:[%s1759_s14 + $0x80] sm:$0xff] %vm518_vm1, %v997_v62  ;;  %v948_v3 = vmul.f32 %v1745_v27, %v909_v61  ;;  %v860_v39 = vadd.f32 1e-05, %v828_v0 }
 0x232   : > { %v1229_v58 = vpop.eup %1228  ;;  %v998_v14 = vadd.f32 %v1751_v13, %v959_v25  ;;  %v910_v35 = vmul.f32 %v1227_v8, %v1596_v12  ;;  %v849_v20 = vadd.f32 1e-05, %v817_v47  ;;  %v746_v16 = vpop.xlane.xlu1 %745 }
 0x233   : > { %v791_v23 = vpop.xlane.xlu0 %790  ;;  %v987_v26 = vadd.f32 %v1751_v13, %v948_v3  ;;  %v925_v28 = vmul.f32 %v1229_v58, %v1610_v18  ;;  %1238 = vrsqrt.f32 %v860_v39  ;;  %v818_v31 = vmul.f32 0.25, %v746_v16 }
 0x234   : > { %1030 = vst.msk [vmem:[%s1759_s14 + $0x88] sm:$0xff] %vm518_vm1, %v998_v14  ;;  %v949_v63 = vmul.f32 %v1745_v27, %v910_v35  ;;  %1240 = vrsqrt.f32 %v849_v20  ;;  %v833_v32 = vmul.f32 0.25, %v791_v23 }
 0x235   : > { %v1231_v33 = vpop.eup %1230  ;;  %1019 = vst.msk [vmem:[%s1759_s14 + $0x30] sm:$0xff] %vm518_vm1, %v987_v26  ;;  %v964_v12 = vmul.f32 %v1745_v27, %v925_v28  ;;  %v850_v34 = vadd.f32 1e-05, %v818_v31 }
 0x236   : > { %v1233_v48 = vpop.eup %1232  ;;  %v988_v38 = vadd.f32 %v1751_v13, %v949_v63  ;;  %v926_v18 = vmul.f32 %v1231_v33, %v1607_v19  ;;  %v865_v45 = vadd.f32 1e-05, %v833_v32  ;;  %v794_v41 = vpop.xlane.xlu1 %793 }
 0x237   : > { %v737_v30 = vpop.xlane.xlu0 %736  ;;  %v1003_v51 = vadd.f32 %v1751_v13, %v964_v12  ;;  %v907_v29 = vmul.f32 %v1233_v48, %v1623_v7  ;;  %1242 = vrsqrt.f32 %v850_v34  ;;  %v834_v6 = vmul.f32 0.25, %v794_v41 }
 0x238   : > { %1020 = vst.msk [vmem:[%s1759_s14 + $0x38] sm:$0xff] %vm518_vm1, %v988_v38  ;;  %v965_v43 = vmul.f32 %v1745_v27, %v926_v18  ;;  %1244 = vrsqrt.f32 %v865_v45  ;;  %v815_v46 = vmul.f32 0.25, %v737_v30 }
 0x239   : > { %v1235_v2 = vpop.eup %1234  ;;  %1035 = vst.msk [vmem:[%s1759_s14 + $0xb0] sm:$0xff] %vm518_vm1, %v1003_v51  ;;  %v946_v19 = vmul.f32 %v1745_v27, %v907_v29  ;;  %v866_v49 = vadd.f32 1e-05, %v834_v6 }
 0x23a   : > { %v1237_v55 = vpop.eup %1236  ;;  %v1004_v54 = vadd.f32 %v1751_v13, %v965_v43  ;;  %v908_v7 = vmul.f32 %v1235_v2, %v1620_v24  ;;  %v847_v60 = vadd.f32 1e-05, %v815_v46  ;;  %v740_v53 = vpop.xlane.xlu1 %739 }
 0x23b   : > { %v785_v56 = vpop.xlane.xlu0 %784  ;;  %v985_v59 = vadd.f32 %v1751_v13, %v946_v19  ;;  %v923_v62 = vmul.f32 %v1237_v55, %v1634_v36  ;;  %1246 = vrsqrt.f32 %v866_v49  ;;  %v816_v61 = vmul.f32 0.25, %v740_v53 }
 0x23c   : > { %1036 = vst.msk [vmem:[%s1759_s14 + $0xb8] sm:$0xff] %vm518_vm1, %v1004_v54  ;;  %v947_v0 = vmul.f32 %v1745_v27, %v908_v7  ;;  %1248 = vrsqrt.f32 %v847_v60  ;;  %v831_v25 = vmul.f32 0.25, %v785_v56 }
 0x23d   : > { %v1239_v47 = vpop.eup %1238  ;;  %1017 = vst.msk [vmem:[%s1759_s14 + $0x20] sm:$0xff] %vm518_vm1, %v985_v59  ;;  %v962_v24 = vmul.f32 %v1745_v27, %v923_v62  ;;  %v848_v8 = vadd.f32 1e-05, %v816_v61 }
 0x23e   : > { %v1241_v3 = vpop.eup %1240  ;;  %v986_v39 = vadd.f32 %v1751_v13, %v947_v0  ;;  %v924_v36 = vmul.f32 %v1239_v47, %v1631_v37  ;;  %v863_v58 = vadd.f32 1e-05, %v831_v25  ;;  %v788_v14 = vpop.xlane.xlu1 %787 }
 0x23f   : > { %v755_v35 = vpop.xlane.xlu0 %754  ;;  %v1001_v20 = vadd.f32 %v1751_v13, %v962_v24  ;;  %v913_v16 = vmul.f32 %v1241_v3, %v1647_v40  ;;  %1250 = vrsqrt.f32 %v848_v8  ;;  %v832_v23 = vmul.f32 0.25, %v788_v14 }
 0x240   : > { %1018 = vst.msk [vmem:[%s1759_s14 + $0x28] sm:$0xff] %vm518_vm1, %v986_v39  ;;  %v963_v26 = vmul.f32 %v1745_v27, %v924_v36  ;;  %1252 = vrsqrt.f32 %v863_v58  ;;  %v821_v28 = vmul.f32 0.25, %v755_v35 }
 0x241   : > { %v1243_v31 = vpop.eup %1242  ;;  %1033 = vst.msk [vmem:[%s1759_s14 + $0xa0] sm:$0xff] %vm518_vm1, %v1001_v20  ;;  %v952_v37 = vmul.f32 %v1745_v27, %v913_v16  ;;  %v864_v63 = vadd.f32 1e-05, %v832_v23 }
 0x242   : > { %v1245_v32 = vpop.eup %1244  ;;  %v1002_v33 = vadd.f32 %v1751_v13, %v963_v26  ;;  %v914_v40 = vmul.f32 %v1243_v31, %v1644_v44  ;;  %v853_v12 = vadd.f32 1e-05, %v821_v28  ;;  %v758_v34 = vpop.xlane.xlu1 %757 }
 0x243   : > { %v749_v48 = vpop.xlane.xlu0 %748  ;;  %v991_v38 = vadd.f32 %v1751_v13, %v952_v37  ;;  %v929_v18 = vmul.f32 %v1245_v32, %v1658_v50  ;;  %1254 = vrsqrt.f32 %v864_v63  ;;  %v822_v45 = vmul.f32 0.25, %v758_v34 }
 0x244   : > { %1034 = vst.msk [vmem:[%s1759_s14 + $0xa8] sm:$0xff] %vm518_vm1, %v1002_v33  ;;  %v953_v41 = vmul.f32 %v1745_v27, %v914_v40  ;;  %1256 = vrsqrt.f32 %v853_v12  ;;  %v819_v30 = vmul.f32 0.25, %v749_v48 }
 0x245   : > { %v1247_v51 = vpop.eup %1246  ;;  %1023 = vst.msk [vmem:[%s1759_s14 + $0x50] sm:$0xff] %vm518_vm1, %v991_v38  ;;  %v968_v44 = vmul.f32 %v1745_v27, %v929_v18  ;;  %v854_v29 = vadd.f32 1e-05, %v822_v45 }
 0x246   : > { %v1249_v6 = vpop.eup %1248  ;;  %v992_v43 = vadd.f32 %v1751_v13, %v953_v41  ;;  %v930_v50 = vmul.f32 %v1247_v51, %v1655_v52  ;;  %v851_v46 = vadd.f32 1e-05, %v819_v30  ;;  %v752_v2 = vpop.xlane.xlu1 %751 }
 0x247   : > { %v797_v19 = vpop.xlane.xlu0 %796  ;;  %v1007_v49 = vadd.f32 %v1751_v13, %v968_v44  ;;  %v911_v55 = vmul.f32 %v1249_v6, %v1671_v11  ;;  %1258 = vrsqrt.f32 %v854_v29  ;;  %v820_v54 = vmul.f32 0.25, %v752_v2 }
 0x248   : > { %1024 = vst.msk [vmem:[%s1759_s14 + $0x58] sm:$0xff] %vm518_vm1, %v992_v43  ;;  %v969_v7 = vmul.f32 %v1745_v27, %v930_v50  ;;  %1260 = vrsqrt.f32 %v851_v46  ;;  %v835_v60 = vmul.f32 0.25, %v797_v19 }
 0x249   : > { %v1251_v53 = vpop.eup %1250  ;;  %1039 = vst.msk [vmem:[%s1759_s14 + $0xd0] sm:$0xff] %vm518_vm1, %v1007_v49  ;;  %v950_v52 = vmul.f32 %v1745_v27, %v911_v55  ;;  %v852_v56 = vadd.f32 1e-05, %v820_v54 }
 0x24a   : > { %v1253_v59 = vpop.eup %1252  ;;  %v1008_v62 = vadd.f32 %v1751_v13, %v969_v7  ;;  %v912_v11 = vmul.f32 %v1251_v53, %v1668_v57  ;;  %v867_v61 = vadd.f32 1e-05, %v835_v60  ;;  %v800_v0 = vpop.xlane.xlu1 %799 }
 0x24b   : > { %v803_v25 = vpop.xlane.xlu0 %802  ;;  %v989_v47 = vadd.f32 %v1751_v13, %v950_v52  ;;  %v927_v24 = vmul.f32 %v1253_v59, %v1682_v1  ;;  %1262 = vrsqrt.f32 %v852_v56  ;;  %v836_v8 = vmul.f32 0.25, %v800_v0 }
 0x24c   : > { %1040 = vst.msk [vmem:[%s1759_s14 + $0xd8] sm:$0xff] %vm518_vm1, %v1008_v62  ;;  %v951_v3 = vmul.f32 %v1745_v27, %v912_v11  ;;  %1264 = vrsqrt.f32 %v867_v61  ;;  %v837_v39 = vmul.f32 0.25, %v803_v25 }
 0x24d   : > { %v1255_v36 = vpop.eup %1254  ;;  %1021 = vst.msk [vmem:[%s1759_s14 + $0x40] sm:$0xff] %vm518_vm1, %v989_v47  ;;  %v966_v57 = vmul.f32 %v1745_v27, %v927_v24  ;;  %v868_v58 = vadd.f32 1e-05, %v836_v8 }
 0x24e   : > { %v1257_v14 = vpop.eup %1256  ;;  %v990_v35 = vadd.f32 %v1751_v13, %v951_v3  ;;  %v928_v1 = vmul.f32 %v1255_v36, %v1679_v4  ;;  %v869_v20 = vadd.f32 1e-05, %v837_v39  ;;  %v806_v16 = vpop.xlane.xlu1 %805 }
 0x24f   : > { %v1005_v23 = vadd.f32 %v1751_v13, %v966_v57  ;;  %v917_v26 = vmul.f32 %v1257_v14, %v1695_v42  ;;  %1266 = vrsqrt.f32 %v868_v58  ;;  %v838_v28 = vmul.f32 0.25, %v806_v16 }
 0x250   : > { %1022 = vst.msk [vmem:[%s1759_s14 + $0x48] sm:$0xff] %vm518_vm1, %v990_v35  ;;  %v967_v31 = vmul.f32 %v1745_v27, %v928_v1  ;;  %1268 = vrsqrt.f32 %v869_v20 }
 0x251   : > { %v1259_v37 = vpop.eup %1258  ;;  %1037 = vst.msk [vmem:[%s1759_s14 + $0xc0] sm:$0xff] %vm518_vm1, %v1005_v23  ;;  %v956_v4 = vmul.f32 %v1745_v27, %v917_v26  ;;  %v870_v63 = vadd.f32 1e-05, %v838_v28 }
 0x252   : > { %v1261_v32 = vpop.eup %1260  ;;  %v1006_v33 = vadd.f32 %v1751_v13, %v967_v31  ;;  %v918_v42 = vmul.f32 %v1259_v37, %v1692_v5 }
 0x253   : > { %v995_v40 = vadd.f32 %v1751_v13, %v956_v4  ;;  %v915_v12 = vmul.f32 %v1261_v32, %v1706_v9  ;;  %1270 = vrsqrt.f32 %v870_v63 }
 0x254   : > { %1038 = vst.msk [vmem:[%s1759_s14 + $0xc8] sm:$0xff] %vm518_vm1, %v1006_v33  ;;  %v957_v34 = vmul.f32 %v1745_v27, %v918_v42 }
 0x255   : > { %v1263_v48 = vpop.eup %1262  ;;  %1027 = vst.msk [vmem:[%s1759_s14 + $0x70] sm:$0xff] %vm518_vm1, %v995_v40  ;;  %v954_v38 = vmul.f32 %v1745_v27, %v915_v12 }
 0x256   : > { %v1265_v18 = vpop.eup %1264  ;;  %v996_v45 = vadd.f32 %v1751_v13, %v957_v34  ;;  %v916_v5 = vmul.f32 %v1263_v48, %v1703_v10 }
 0x257   : > { %v993_v41 = vadd.f32 %v1751_v13, %v954_v38  ;;  %v931_v9 = vmul.f32 %v1265_v18, %v1719_v15 }
 0x258   : > { %1028 = vst.msk [vmem:[%s1759_s14 + $0x78] sm:$0xff] %vm518_vm1, %v996_v45  ;;  %v955_v30 = vmul.f32 %v1745_v27, %v916_v5 }
 0x259   : > { %v1267_v51 = vpop.eup %1266  ;;  %1025 = vst.msk [vmem:[%s1759_s14 + $0x60] sm:$0xff] %vm518_vm1, %v993_v41  ;;  %v970_v44 = vmul.f32 %v1745_v27, %v931_v9 }
 0x25a   : > { %v1269_v29 = vpop.eup %1268  ;;  %v994_v6 = vadd.f32 %v1751_v13, %v955_v30  ;;  %v932_v10 = vmul.f32 %v1267_v51, %v1716_v17 }
 0x25b   : > { %v1009_v43 = vadd.f32 %v1751_v13, %v970_v44  ;;  %v933_v15 = vmul.f32 %v1269_v29, %v1730_v21 }
 0x25c   : > { %1026 = vst.msk [vmem:[%s1759_s14 + $0x68] sm:$0xff] %vm518_vm1, %v994_v6  ;;  %v971_v50 = vmul.f32 %v1745_v27, %v932_v10 }
 0x25d   : > { %v1271_v46 = vpop.eup %1270  ;;  %1041 = vst.msk [vmem:[%s1759_s14 + $0xe0] sm:$0xff] %vm518_vm1, %v1009_v43  ;;  %v972_v2 = vmul.f32 %v1745_v27, %v933_v15 }
 0x25e   : > { %v1010_v19 = vadd.f32 %v1751_v13, %v971_v50  ;;  %v934_v49 = vmul.f32 %v1271_v46, %v1727_v22 }
 0x25f   : > { %v1011_v55 = vadd.f32 %v1751_v13, %v972_v2 }
 0x260   : > { %1042 = vst.msk [vmem:[%s1759_s14 + $0xe8] sm:$0xff] %vm518_vm1, %v1010_v19  ;;  %v973_v17 = vmul.f32 %v1745_v27, %v934_v49 }
 0x261   : > { %1043 = vst.msk [vmem:[%s1759_s14 + $0xf0] sm:$0xff] %vm518_vm1, %v1011_v55 }
 0x262   : > { %v1012_v21 = vadd.f32 %v1751_v13, %v973_v17 }
 0x264   : > { %1044 = vst.msk [vmem:[%s1759_s14 + $0xf8] sm:$0xff] %vm518_vm1, %v1012_v21 }
 0x265 PF: > { %s15_s18 = sadd.s32 1, %s1278_s18  }
 0x266   : > { %p12_p4 = scmp.ge.s32.totalorder %s15_s18, 4  }
 0x268   :  { %14 = sbr.rel (!%p12_p4) target bundleno = 1 (0x1), region = 70 }

// kernel: pixel_swin_t_forward.14
= control target key start
LH: loop header
LB: loop body
LE: loop exit
PB: predicated region body
PF: predicated region fallthrough
CT: control target
= control target key end

     0   :  { %s2092_s24 = smov 0   ;;  %s3070_s0 = inlined_call_operand.vmem [shape: f32[512,4], index: 0, kind: input, shape index: {}]   ;;  %s3071_s1 = inlined_call_operand.vmem [shape: f32[1,4], index: 1, kind: input, shape index: {}]   ;;  %s3072_s2 = inlined_call_operand.vmem [shape: f32[1,4], index: 2, kind: input, shape index: {}]   ;;  %s3073_s3 = inlined_call_operand.vmem [shape: bf16[4,8], index: 3, kind: input, shape index: {}]   ;;  %s3074_s4 = inlined_call_operand.vmem [shape: f32[1,8], index: 4, kind: input, shape index: {}]   ;;  %s3075_s5 = inlined_call_operand.vmem [shape: bf16[8,4], index: 5, kind: input, shape index: {}]   ;;  %s3076_s6 = inlined_call_operand.vmem [shape: f32[1,4], index: 6, kind: input, shape index: {}]   ;;  %s3077_s7 = inlined_call_operand.vmem [shape: f32[512,4], index: 7, kind: output, shape index: {}]  }
   0x1 LB: > { %s1725_s25 = sadd.s32 4294967295, %s2050_s24   ;;  %p1729_p0 = scmp.ge.s32.totalorder %s2050_s24, 1  ;;  %s2050_s24 = sphi %s2092_s24, %s17_s24  }
   0x2   : > { %p238_p1 = scmp.lt.s32.totalorder %s2050_s24, 3 }
   0x4   : > { %p239_p2 = pnand %p1729_p0, %p238_p1 }
   0x5   : > { %s1730_s26 = sshll.u32 (!%p239_p2), %s1725_s25, 5  ;;  %vm315_vm0 = vcmask (!%p239_p2), 31744   ;;  %vm882_vm1 = vcmask (!%p239_p2), 1041408   ;;  %vm1401_vm2 = vcmask (!%p239_p2), 1043456   ;;  %vm1352_vm3 = vcmask (!%p239_p2), 64512  }
   0x6   : > { %242 = sbr.rel (%p239_p2) target bundleno = 882 (0x372), region = 48  ;;  %p271_p3 = scmp.lt.s32.totalorder (!%p239_p2), %s1730_s26, 63 }
   0xd   : > { %s3079_s26 = smov (!%p271_p3, %s1730_s26), 63 }
   0xe   : > { %s1731_s27 = sshll.u32 %s3079_s26, 3 }
   0xf   : > { %s2108_s30 = scalar_lea.vmem %s3070_s0, %s1731_s27  ;;  %s2938_s22 = scalar_lea.vmem %s3077_s7, %s1731_s27 }
  0x10   : > { %v2111_v0 = vld [vmem:[%s2108_s30] sm:$0xff]  ;;  %v2114_v1 = vld [vmem:[%s2108_s30 + $0x10] sm:$0xff]  ;;  %v2117_v2 = vld [vmem:[%s2108_s30 + $0x8] sm:$0xff] }
  0x11   : > { %v316_v3 = vsel %vm315_vm0, %v2111_v0, 0.0  ;;  %v322_v4 = vsel %vm315_vm0, %v2114_v1, 0.0  ;;  %v2124_v5 = vld [vmem:[%s2108_s30 + $0x18] sm:$0xff]  ;;  %v319_v6 = vsel %vm315_vm0, %v2117_v2, 0.0  ;;  %v2131_v8 = vld [vmem:[%s2108_s30 + $0x20] sm:$0xff]  ;;  %v2134_v9 = vld [vmem:[%s2108_s30 + $0x28] sm:$0xff] }
  0x12   : > { %317 = vadd.xlane.f32.xlu0 %v316_v3  ;;  %323 = vadd.xlane.f32.xlu1 %v322_v4  ;;  %v325_v7 = vsel %vm315_vm0, %v2124_v5, 0.0  ;;  %v328_v10 = vsel %vm315_vm0, %v2131_v8, 0.0  ;;  %v331_v11 = vsel %vm315_vm0, %v2134_v9, 0.0  ;;  %v2141_v12 = vld [vmem:[%s2108_s30 + $0x30] sm:$0xff]  ;;  %v2144_v13 = vld [vmem:[%s2108_s30 + $0x38] sm:$0xff]  ;;  %v2151_v16 = vld [vmem:[%s2108_s30 + $0x40] sm:$0xff] }
  0x13   : > { %v334_v14 = vsel %vm315_vm0, %v2141_v12, 0.0  ;;  %v337_v15 = vsel %vm315_vm0, %v2144_v13, 0.0  ;;  %v2154_v17 = vld [vmem:[%s2108_s30 + $0x48] sm:$0xff]  ;;  %v340_v18 = vsel %vm315_vm0, %v2151_v16, 0.0  ;;  %v2161_v20 = vld [vmem:[%s2108_s30 + $0x50] sm:$0xff]  ;;  %v2164_v21 = vld [vmem:[%s2108_s30 + $0x58] sm:$0xff] }
  0x14   : > { %v343_v19 = vsel %vm315_vm0, %v2154_v17, 0.0  ;;  %v346_v22 = vsel %vm315_vm0, %v2161_v20, 0.0  ;;  %v349_v23 = vsel %vm315_vm0, %v2164_v21, 0.0  ;;  %v2171_v24 = vld [vmem:[%s2108_s30 + $0x60] sm:$0xff]  ;;  %v2174_v25 = vld [vmem:[%s2108_s30 + $0x68] sm:$0xff]  ;;  %v2181_v28 = vld [vmem:[%s2108_s30 + $0x70] sm:$0xff] }
  0x15   : > { %v352_v26 = vsel %vm315_vm0, %v2171_v24, 0.0  ;;  %v355_v27 = vsel %vm315_vm0, %v2174_v25, 0.0  ;;  %v2184_v29 = vld [vmem:[%s2108_s30 + $0x78] sm:$0xff]  ;;  %v358_v30 = vsel %vm315_vm0, %v2181_v28, 0.0  ;;  %v2191_v32 = vld [vmem:[%s2108_s30 + $0x80] sm:$0xff]  ;;  %v2194_v33 = vld [vmem:[%s2108_s30 + $0x88] sm:$0xff] }
  0x16   : > { %320 = vadd.xlane.f32.xlu0 %v319_v6  ;;  %326 = vadd.xlane.f32.xlu1 %v325_v7  ;;  %v361_v31 = vsel %vm315_vm0, %v2184_v29, 0.0  ;;  %v364_v34 = vsel %vm315_vm0, %v2191_v32, 0.0  ;;  %v367_v35 = vsel %vm315_vm0, %v2194_v33, 0.0  ;;  %v2201_v36 = vld [vmem:[%s2108_s30 + $0x90] sm:$0xff]  ;;  %v2204_v37 = vld [vmem:[%s2108_s30 + $0x98] sm:$0xff]  ;;  %v2211_v40 = vld [vmem:[%s2108_s30 + $0xa0] sm:$0xff] }
  0x17   : > { %v370_v38 = vsel %vm315_vm0, %v2201_v36, 0.0  ;;  %v373_v39 = vsel %vm315_vm0, %v2204_v37, 0.0  ;;  %v2214_v41 = vld [vmem:[%s2108_s30 + $0xa8] sm:$0xff]  ;;  %v376_v42 = vsel %vm315_vm0, %v2211_v40, 0.0  ;;  %v2221_v44 = vld [vmem:[%s2108_s30 + $0xb0] sm:$0xff]  ;;  %v2224_v45 = vld [vmem:[%s2108_s30 + $0xb8] sm:$0xff] }
  0x18   : > { %v379_v43 = vsel %vm315_vm0, %v2214_v41, 0.0  ;;  %v382_v46 = vsel %vm315_vm0, %v2221_v44, 0.0  ;;  %v385_v47 = vsel %vm315_vm0, %v2224_v45, 0.0  ;;  %v2231_v48 = vld [vmem:[%s2108_s30 + $0xc0] sm:$0xff]  ;;  %v2234_v49 = vld [vmem:[%s2108_s30 + $0xc8] sm:$0xff]  ;;  %v2241_v52 = vld [vmem:[%s2108_s30 + $0xd0] sm:$0xff] }
  0x19   : > { %v388_v50 = vsel %vm315_vm0, %v2231_v48, 0.0  ;;  %v391_v51 = vsel %vm315_vm0, %v2234_v49, 0.0  ;;  %v2244_v53 = vld [vmem:[%s2108_s30 + $0xd8] sm:$0xff]  ;;  %v394_v54 = vsel %vm315_vm0, %v2241_v52, 0.0  ;;  %v2251_v56 = vld [vmem:[%s2108_s30 + $0xe0] sm:$0xff]  ;;  %v2254_v57 = vld [vmem:[%s2108_s30 + $0xe8] sm:$0xff] }
  0x1a   : > { %329 = vadd.xlane.f32.xlu0 %v328_v10  ;;  %332 = vadd.xlane.f32.xlu1 %v331_v11  ;;  %v397_v55 = vsel %vm315_vm0, %v2244_v53, 0.0  ;;  %v400_v58 = vsel %vm315_vm0, %v2251_v56, 0.0  ;;  %v403_v59 = vsel %vm315_vm0, %v2254_v57, 0.0  ;;  %v2261_v60 = vld [vmem:[%s2108_s30 + $0xf0] sm:$0xff]  ;;  %v2264_v61 = vld [vmem:[%s2108_s30 + $0xf8] sm:$0xff] }
  0x1b   : > { %v406_v62 = vsel %vm315_vm0, %v2261_v60, 0.0  ;;  %v409_v63 = vsel %vm315_vm0, %v2264_v61, 0.0 }
  0x1e   : > { %335 = vadd.xlane.f32.xlu0 %v334_v14  ;;  %338 = vadd.xlane.f32.xlu1 %v337_v15 }
  0x22   : > { %341 = vadd.xlane.f32.xlu0 %v340_v18  ;;  %344 = vadd.xlane.f32.xlu1 %v343_v19 }
  0x26   : > { %347 = vadd.xlane.f32.xlu0 %v346_v22  ;;  %350 = vadd.xlane.f32.xlu1 %v349_v23 }
  0x2a   : > { %353 = vadd.xlane.f32.xlu0 %v352_v26  ;;  %356 = vadd.xlane.f32.xlu1 %v355_v27 }
  0x2e   : > { %359 = vadd.xlane.f32.xlu0 %v358_v30  ;;  %362 = vadd.xlane.f32.xlu1 %v361_v31 }
  0x32   : > { %365 = vadd.xlane.f32.xlu0 %v364_v34  ;;  %368 = vadd.xlane.f32.xlu1 %v367_v35 }
  0x36   : > { %371 = vadd.xlane.f32.xlu0 %v370_v38  ;;  %374 = vadd.xlane.f32.xlu1 %v373_v39 }
  0x3a   : > { %377 = vadd.xlane.f32.xlu0 %v376_v42  ;;  %380 = vadd.xlane.f32.xlu1 %v379_v43 }
  0x3e   : > { %383 = vadd.xlane.f32.xlu0 %v382_v46  ;;  %386 = vadd.xlane.f32.xlu1 %v385_v47 }
  0x42   : > { %389 = vadd.xlane.f32.xlu0 %v388_v50  ;;  %392 = vadd.xlane.f32.xlu1 %v391_v51 }
  0x46   : > { %395 = vadd.xlane.f32.xlu0 %v394_v54  ;;  %398 = vadd.xlane.f32.xlu1 %v397_v55 }
  0x4a   : > { %401 = vadd.xlane.f32.xlu0 %v400_v58  ;;  %404 = vadd.xlane.f32.xlu1 %v403_v59 }
  0x4e   : > { %407 = vadd.xlane.f32.xlu0 %v406_v62  ;;  %410 = vadd.xlane.f32.xlu1 %v409_v63 }
  0x9f   : > { %v318_v3 = vpop.xlane.xlu0 %317  ;;  %v324_v4 = vpop.xlane.xlu1 %323 }
  0xa0   : > { %v412_v6 = vmul.f32 0.25, %v318_v3  ;;  %v414_v7 = vmul.f32 0.25, %v324_v4 }
  0xa2   : > { %v2271_v10 = vsub.f32 %v2111_v0, %v412_v6  ;;  %v2274_v11 = vsub.f32 %v2114_v1, %v414_v7 }
  0xa3   : > { %v321_v14 = vpop.xlane.xlu0 %320  ;;  %v327_v15 = vpop.xlane.xlu1 %326 }
  0xa4   : > { %v413_v18 = vmul.f32 0.25, %v321_v14  ;;  %v415_v19 = vmul.f32 0.25, %v327_v15  ;;  %v476_v22 = vmul.f32 %v2271_v10, %v2271_v10  ;;  %v478_v23 = vmul.f32 %v2274_v11, %v2274_v11 }
  0xa6   : > { %v2281_v26 = vsub.f32 %v2117_v2, %v413_v18  ;;  %v2284_v27 = vsub.f32 %v2124_v5, %v415_v19  ;;  %v508_v0 = vsel %vm315_vm0, %v476_v22, 0.0  ;;  %v514_v31 = vsel %vm315_vm0, %v478_v23, 0.0 }
  0xa7   : > { %509 = vadd.xlane.f32.xlu0 %v508_v0  ;;  %v330_v1 = vpop.xlane.xlu0 %329  ;;  %v333_v30 = vpop.xlane.xlu1 %332 }
  0xa8   : > { %v416_v34 = vmul.f32 0.25, %v330_v1  ;;  %v417_v35 = vmul.f32 0.25, %v333_v30  ;;  %v477_v38 = vmul.f32 %v2281_v26, %v2281_v26  ;;  %v479_v39 = vmul.f32 %v2284_v27, %v2284_v27 }
  0xaa   : > { %v2293_v2 = vsub.f32 %v2131_v8, %v416_v34  ;;  %v2296_v5 = vsub.f32 %v2134_v9, %v417_v35  ;;  %v511_v42 = vsel %vm315_vm0, %v477_v38, 0.0  ;;  %v517_v47 = vsel %vm315_vm0, %v479_v39, 0.0 }
  0xab   : > { %515 = vadd.xlane.f32.xlu0 %v514_v31  ;;  %512 = vadd.xlane.f32.xlu1 %v511_v42  ;;  %v336_v43 = vpop.xlane.xlu0 %335  ;;  %v339_v46 = vpop.xlane.xlu1 %338 }
  0xac   : > { %v418_v50 = vmul.f32 0.25, %v336_v43  ;;  %v419_v51 = vmul.f32 0.25, %v339_v46  ;;  %v480_v54 = vmul.f32 %v2293_v2, %v2293_v2  ;;  %v481_v8 = vmul.f32 %v2296_v5, %v2296_v5 }
  0xae   : > { %v2305_v55 = vsub.f32 %v2141_v12, %v418_v50  ;;  %v2308_v9 = vsub.f32 %v2144_v13, %v419_v51  ;;  %v520_v58 = vsel %vm315_vm0, %v480_v54, 0.0  ;;  %v523_v63 = vsel %vm315_vm0, %v481_v8, 0.0 }
  0xaf   : > { %518 = vadd.xlane.f32.xlu1 %v517_v47  ;;  %521 = vadd.xlane.f32.xlu0 %v520_v58  ;;  %v342_v59 = vpop.xlane.xlu0 %341  ;;  %v345_v62 = vpop.xlane.xlu1 %344 }
  0xb0   : > { %v420_v3 = vmul.f32 0.25, %v342_v59  ;;  %v421_v4 = vmul.f32 0.25, %v345_v62  ;;  %v482_v6 = vmul.f32 %v2305_v55, %v2305_v55  ;;  %v483_v12 = vmul.f32 %v2308_v9, %v2308_v9 }
  0xb2   : > { %v2317_v7 = vsub.f32 %v2151_v16, %v420_v3  ;;  %v2320_v13 = vsub.f32 %v2154_v17, %v421_v4  ;;  %v526_v14 = vsel %vm315_vm0, %v482_v6, 0.0  ;;  %v529_v19 = vsel %vm315_vm0, %v483_v12, 0.0 }
  0xb3   : > { %524 = vadd.xlane.f32.xlu1 %v523_v63  ;;  %527 = vadd.xlane.f32.xlu0 %v526_v14  ;;  %v348_v15 = vpop.xlane.xlu0 %347  ;;  %v351_v18 = vpop.xlane.xlu1 %350 }
  0xb4   : > { %v422_v22 = vmul.f32 0.25, %v348_v15  ;;  %v423_v23 = vmul.f32 0.25, %v351_v18  ;;  %v484_v0 = vmul.f32 %v2317_v7, %v2317_v7  ;;  %v485_v16 = vmul.f32 %v2320_v13, %v2320_v13 }
  0xb6   : > { %v2329_v1 = vsub.f32 %v2161_v20, %v422_v22  ;;  %v2332_v17 = vsub.f32 %v2164_v21, %v423_v23  ;;  %v532_v30 = vsel %vm315_vm0, %v484_v0, 0.0  ;;  %v535_v35 = vsel %vm315_vm0, %v485_v16, 0.0 }
  0xb7   : > { %530 = vadd.xlane.f32.xlu1 %v529_v19  ;;  %533 = vadd.xlane.f32.xlu0 %v532_v30  ;;  %v354_v31 = vpop.xlane.xlu0 %353  ;;  %v357_v34 = vpop.xlane.xlu1 %356 }
  0xb8   : > { %v424_v38 = vmul.f32 0.25, %v354_v31  ;;  %v425_v39 = vmul.f32 0.25, %v357_v34  ;;  %v486_v42 = vmul.f32 %v2329_v1, %v2329_v1  ;;  %v487_v20 = vmul.f32 %v2332_v17, %v2332_v17 }
  0xba   : > { %v2341_v43 = vsub.f32 %v2171_v24, %v424_v38  ;;  %v2344_v21 = vsub.f32 %v2174_v25, %v425_v39  ;;  %v538_v46 = vsel %vm315_vm0, %v486_v42, 0.0  ;;  %v541_v51 = vsel %vm315_vm0, %v487_v20, 0.0 }
  0xbb   : > { %536 = vadd.xlane.f32.xlu1 %v535_v35  ;;  %539 = vadd.xlane.f32.xlu0 %v538_v46  ;;  %v360_v47 = vpop.xlane.xlu0 %359  ;;  %v363_v50 = vpop.xlane.xlu1 %362 }
  0xbc   : > { %v426_v54 = vmul.f32 0.25, %v360_v47  ;;  %v427_v8 = vmul.f32 0.25, %v363_v50  ;;  %v488_v58 = vmul.f32 %v2341_v43, %v2341_v43  ;;  %v489_v24 = vmul.f32 %v2344_v21, %v2344_v21 }
  0xbe   : > { %v2353_v59 = vsub.f32 %v2181_v28, %v426_v54  ;;  %v2356_v25 = vsub.f32 %v2184_v29, %v427_v8  ;;  %v544_v62 = vsel %vm315_vm0, %v488_v58, 0.0  ;;  %v547_v4 = vsel %vm315_vm0, %v489_v24, 0.0 }
  0xbf   : > { %542 = vadd.xlane.f32.xlu1 %v541_v51  ;;  %545 = vadd.xlane.f32.xlu0 %v544_v62  ;;  %v366_v63 = vpop.xlane.xlu0 %365  ;;  %v369_v3 = vpop.xlane.xlu1 %368 }
  0xc0   : > { %v428_v6 = vmul.f32 0.25, %v366_v63  ;;  %v429_v12 = vmul.f32 0.25, %v369_v3  ;;  %v490_v14 = vmul.f32 %v2353_v59, %v2353_v59  ;;  %v491_v28 = vmul.f32 %v2356_v25, %v2356_v25 }
  0xc2   : > { %v2365_v15 = vsub.f32 %v2191_v32, %v428_v6  ;;  %v2368_v29 = vsub.f32 %v2194_v33, %v429_v12  ;;  %v550_v18 = vsel %vm315_vm0, %v490_v14, 0.0  ;;  %v553_v23 = vsel %vm315_vm0, %v491_v28, 0.0 }
  0xc3   : > { %548 = vadd.xlane.f32.xlu1 %v547_v4  ;;  %551 = vadd.xlane.f32.xlu0 %v550_v18  ;;  %v372_v19 = vpop.xlane.xlu0 %371  ;;  %v375_v22 = vpop.xlane.xlu1 %374 }
  0xc4   : > { %v430_v0 = vmul.f32 0.25, %v372_v19  ;;  %v431_v16 = vmul.f32 0.25, %v375_v22  ;;  %v492_v30 = vmul.f32 %v2365_v15, %v2365_v15  ;;  %v493_v32 = vmul.f32 %v2368_v29, %v2368_v29 }
  0xc6   : > { %v2377_v31 = vsub.f32 %v2201_v36, %v430_v0  ;;  %v2380_v33 = vsub.f32 %v2204_v37, %v431_v16  ;;  %v556_v34 = vsel %vm315_vm0, %v492_v30, 0.0  ;;  %v559_v39 = vsel %vm315_vm0, %v493_v32, 0.0 }
  0xc7   : > { %554 = vadd.xlane.f32.xlu1 %v553_v23  ;;  %557 = vadd.xlane.f32.xlu0 %v556_v34  ;;  %v378_v35 = vpop.xlane.xlu0 %377  ;;  %v381_v38 = vpop.xlane.xlu1 %380 }
  0xc8   : > { %v432_v42 = vmul.f32 0.25, %v378_v35  ;;  %v433_v20 = vmul.f32 0.25, %v381_v38  ;;  %v494_v46 = vmul.f32 %v2377_v31, %v2377_v31  ;;  %v495_v36 = vmul.f32 %v2380_v33, %v2380_v33 }
  0xca   : > { %v2389_v47 = vsub.f32 %v2211_v40, %v432_v42  ;;  %v2392_v37 = vsub.f32 %v2214_v41, %v433_v20  ;;  %v562_v50 = vsel %vm315_vm0, %v494_v46, 0.0  ;;  %v565_v8 = vsel %vm315_vm0, %v495_v36, 0.0 }
  0xcb   : > { %560 = vadd.xlane.f32.xlu1 %v559_v39  ;;  %563 = vadd.xlane.f32.xlu0 %v562_v50  ;;  %v384_v51 = vpop.xlane.xlu0 %383  ;;  %v387_v54 = vpop.xlane.xlu1 %386 }
  0xcc   : > { %v434_v58 = vmul.f32 0.25, %v384_v51  ;;  %v435_v24 = vmul.f32 0.25, %v387_v54  ;;  %v496_v62 = vmul.f32 %v2389_v47, %v2389_v47  ;;  %v497_v40 = vmul.f32 %v2392_v37, %v2392_v37 }
  0xce   : > { %v2401_v63 = vsub.f32 %v2221_v44, %v434_v58  ;;  %v2404_v41 = vsub.f32 %v2224_v45, %v435_v24  ;;  %v568_v3 = vsel %vm315_vm0, %v496_v62, 0.0  ;;  %v571_v12 = vsel %vm315_vm0, %v497_v40, 0.0  ;;  %v826_v45 = vld [vmem:[%s3073_s3] sm:$0x3] }
  0xcf   : > { %566 = vadd.xlane.f32.xlu1 %v565_v8  ;;  %569 = vadd.xlane.f32.xlu0 %v568_v3  ;;  %v390_v4 = vpop.xlane.xlu0 %389  ;;  %v393_v6 = vpop.xlane.xlu1 %392  ;;  %v884_v32 = vsel %vm882_vm1, %v826_v45, 0 }
  0xd0   : > { %v436_v14 = vmul.f32 0.25, %v390_v4  ;;  %v437_v28 = vmul.f32 0.25, %v393_v6  ;;  %v498_v18 = vmul.f32 %v2401_v63, %v2401_v63  ;;  %v499_v44 = vmul.f32 %v2404_v41, %v2404_v41  ;;  %1874 = vmatprep.subr.msk.bf16.mxu0 %vm882_vm1, %v826_v45 }
  0xd1   : > { %1807 = vmatpush3.bf16.msra.mxu0 %v884_v32 }
  0xd2   : > { %v2416_v19 = vsub.f32 %v2231_v48, %v436_v14  ;;  %v2419_v22 = vsub.f32 %v2234_v49, %v437_v28  ;;  %v574_v23 = vsel %vm315_vm0, %v498_v18, 0.0  ;;  %v577_v30 = vsel %vm315_vm0, %v499_v44, 0.0 }
  0xd3   : > { %572 = vadd.xlane.f32.xlu1 %v571_v12  ;;  %575 = vadd.xlane.f32.xlu0 %v574_v23  ;;  %v396_v0 = vpop.xlane.xlu0 %395  ;;  %v399_v16 = vpop.xlane.xlu1 %398 }
  0xd4   : > { %v438_v34 = vmul.f32 0.25, %v396_v0  ;;  %v439_v35 = vmul.f32 0.25, %v399_v16  ;;  %v500_v38 = vmul.f32 %v2416_v19, %v2416_v19  ;;  %v501_v48 = vmul.f32 %v2419_v22, %v2419_v22 }
  0xd6   : > { %v2428_v49 = vsub.f32 %v2241_v52, %v438_v34  ;;  %v2431_v39 = vsub.f32 %v2244_v53, %v439_v35  ;;  %v580_v42 = vsel %vm315_vm0, %v500_v38, 0.0  ;;  %v583_v36 = vsel %vm315_vm0, %v501_v48, 0.0 }
  0xd7   : > { %578 = vadd.xlane.f32.xlu1 %v577_v30  ;;  %581 = vadd.xlane.f32.xlu0 %v580_v42  ;;  %v402_v20 = vpop.xlane.xlu0 %401  ;;  %v405_v46 = vpop.xlane.xlu1 %404 }
  0xd8   : > { %v440_v50 = vmul.f32 0.25, %v402_v20  ;;  %v441_v51 = vmul.f32 0.25, %v405_v46  ;;  %v502_v54 = vmul.f32 %v2428_v49, %v2428_v49  ;;  %v503_v52 = vmul.f32 %v2431_v39, %v2431_v39 }
  0xda   : > { %v2440_v8 = vsub.f32 %v2251_v56, %v440_v50  ;;  %v2443_v53 = vsub.f32 %v2254_v57, %v441_v51  ;;  %v586_v58 = vsel %vm315_vm0, %v502_v54, 0.0  ;;  %v589_v40 = vsel %vm315_vm0, %v503_v52, 0.0 }
  0xdb   : > { %584 = vadd.xlane.f32.xlu1 %v583_v36  ;;  %587 = vadd.xlane.f32.xlu0 %v586_v58  ;;  %v408_v24 = vpop.xlane.xlu0 %407  ;;  %v411_v62 = vpop.xlane.xlu1 %410 }
  0xdc   : > { %v442_v3 = vmul.f32 0.25, %v408_v24  ;;  %v443_v4 = vmul.f32 0.25, %v411_v62  ;;  %v504_v6 = vmul.f32 %v2440_v8, %v2440_v8  ;;  %v505_v56 = vmul.f32 %v2443_v53, %v2443_v53 }
  0xde   : > { %v2452_v12 = vsub.f32 %v2261_v60, %v442_v3  ;;  %v2455_v57 = vsub.f32 %v2264_v61, %v443_v4  ;;  %v592_v14 = vsel %vm315_vm0, %v504_v6, 0.0  ;;  %v595_v28 = vsel %vm315_vm0, %v505_v56, 0.0 }
  0xdf   : > { %590 = vadd.xlane.f32.xlu1 %v589_v40  ;;  %593 = vadd.xlane.f32.xlu0 %v592_v14 }
  0xe0   : > { %v506_v18 = vmul.f32 %v2452_v12, %v2452_v12  ;;  %v507_v44 = vmul.f32 %v2455_v57, %v2455_v57 }
  0xe2   : > { %v598_v45 = vsel %vm315_vm0, %v506_v18, 0.0  ;;  %v601_v60 = vsel %vm315_vm0, %v507_v44, 0.0 }
  0xe3   : > { %596 = vadd.xlane.f32.xlu1 %v595_v28  ;;  %599 = vadd.xlane.f32.xlu0 %v598_v45  ;;  %v2469_v28 = vld [vmem:[%s3071_s1] ss:$0 sm:$0xff] }
  0xe7   : > { %602 = vadd.xlane.f32.xlu1 %v601_v60 }
 0x134   : > { %v510_v61 = vpop.xlane.xlu0 %509 }
 0x135   : > { %v604_v23 = vmul.f32 0.25, %v510_v61 }
 0x137   : > { %v636_v0 = vadd.f32 1e-05, %v604_v23 }
 0x138   : > { %v513_v16 = vpop.xlane.xlu1 %512  ;;  %v516_v30 = vpop.xlane.xlu0 %515 }
 0x139   : > { %1884 = vrsqrt.f32 %v636_v0  ;;  %v605_v32 = vmul.f32 0.25, %v513_v16  ;;  %v606_v34 = vmul.f32 0.25, %v516_v30 }
 0x13b   : > { %v637_v35 = vadd.f32 1e-05, %v605_v32  ;;  %v638_v38 = vadd.f32 1e-05, %v606_v34  ;;  %v2477_v34 = vld [vmem:[%s3072_s2] ss:$0 sm:$0xff] }
 0x13c   : > { %v519_v48 = vpop.xlane.xlu1 %518  ;;  %v522_v42 = vpop.xlane.xlu0 %521 }
 0x13d   : > { %1886 = vrsqrt.f32 %v637_v35  ;;  %v607_v20 = vmul.f32 0.25, %v519_v48  ;;  %v608_v46 = vmul.f32 0.25, %v522_v42 }
 0x13e   : > { %1888 = vrsqrt.f32 %v638_v38 }
 0x13f   : > { %v639_v36 = vadd.f32 1e-05, %v607_v20  ;;  %v640_v50 = vadd.f32 1e-05, %v608_v46 }
 0x140   : > { %v525_v51 = vpop.xlane.xlu1 %524  ;;  %v528_v54 = vpop.xlane.xlu0 %527 }
 0x141   : > { %1890 = vrsqrt.f32 %v639_v36  ;;  %v609_v52 = vmul.f32 0.25, %v525_v51  ;;  %v610_v58 = vmul.f32 0.25, %v528_v54 }
 0x142   : > { %1892 = vrsqrt.f32 %v640_v50 }
 0x143   : > { %v1885_v24 = vpop.eup %1884  ;;  %v641_v62 = vadd.f32 1e-05, %v609_v52  ;;  %v642_v40 = vadd.f32 1e-05, %v610_v58 }
 0x144   : > { %v531_v3 = vpop.xlane.xlu1 %530  ;;  %v534_v4 = vpop.xlane.xlu0 %533  ;;  %v700_v6 = vmul.f32 %v1885_v24, %v2271_v10 }
 0x145   : > { %1894 = vrsqrt.f32 %v641_v62  ;;  %v611_v56 = vmul.f32 0.25, %v531_v3  ;;  %v612_v14 = vmul.f32 0.25, %v534_v4 }
 0x146   : > { %1896 = vrsqrt.f32 %v642_v40  ;;  %v739_v16 = vmul.f32 %v2469_v28, %v700_v6 }
 0x147   : > { %v1887_v18 = vpop.eup %1886  ;;  %v643_v44 = vadd.f32 1e-05, %v611_v56  ;;  %v644_v45 = vadd.f32 1e-05, %v612_v14 }
 0x148   : > { %v1889_v60 = vpop.eup %1888  ;;  %v537_v61 = vpop.xlane.xlu1 %536  ;;  %v701_v0 = vmul.f32 %v1887_v18, %v2281_v26 }
 0x149   : > { %v540_v23 = vpop.xlane.xlu0 %539  ;;  %v702_v10 = vmul.f32 %v1889_v60, %v2274_v11  ;;  %1898 = vrsqrt.f32 %v643_v44  ;;  %v613_v30 = vmul.f32 0.25, %v537_v61  ;;  %v778_v11 = vadd.f32 %v2477_v34, %v739_v16 }
 0x14a   : > { %v614_v32 = vmul.f32 0.25, %v540_v23  ;;  %1900 = vrsqrt.f32 %v644_v45  ;;  %v740_v35 = vmul.f32 %v2469_v28, %v701_v0 }
 0x14b   : > { %v1891_v38 = vpop.eup %1890  ;;  %v645_v48 = vadd.f32 1e-05, %v613_v30  ;;  %v741_v51 = vmul.f32 %v2469_v28, %v702_v10 }
 0x14c   : > { %v646_v42 = vadd.f32 1e-05, %v614_v32  ;;  %v1893_v20 = vpop.eup %1892  ;;  %v703_v26 = vmul.f32 %v1891_v38, %v2284_v27  ;;  %v543_v46 = vpop.xlane.xlu1 %542  ;;  %v779_v50 = vadd.f32 %v2477_v34, %v740_v35 }
 0x14d   : > { %v546_v36 = vpop.xlane.xlu0 %545  ;;  %v704_v54 = vmul.f32 %v1893_v20, %v2293_v2  ;;  %1902 = vrsqrt.f32 %v645_v48  ;;  %v615_v52 = vmul.f32 0.25, %v543_v46  ;;  %v780_v18 = vadd.f32 %v2477_v34, %v741_v51 }
 0x14e   : > { %v616_v58 = vmul.f32 0.25, %v546_v36  ;;  %1904 = vrsqrt.f32 %v646_v42  ;;  %v810_v24 = vpack.c.bf16 %v779_v50, %v778_v11  ;;  %v742_v62 = vmul.f32 %v2469_v28, %v703_v26 }
 0x14f   : > { %v1895_v40 = vpop.eup %1894  ;;  %v647_v3 = vadd.f32 1e-05, %v615_v52  ;;  %v743_v44 = vmul.f32 %v2469_v28, %v704_v54 }
 0x150   : > { %v648_v27 = vadd.f32 1e-05, %v616_v58  ;;  %v1897_v4 = vpop.eup %1896  ;;  %v705_v6 = vmul.f32 %v1895_v40, %v2296_v5  ;;  %v549_v56 = vpop.xlane.xlu1 %548  ;;  %1808 = vmatprep.mubr.msk.bf16.mxu0 %vm315_vm0, %v810_v24  ;;  %v781_v2 = vadd.f32 %v2477_v34, %v742_v62 }
 0x151   : > { %v552_v14 = vpop.xlane.xlu0 %551  ;;  %v706_v45 = vmul.f32 %v1897_v4, %v2305_v55  ;;  %1906 = vrsqrt.f32 %v647_v3  ;;  %v617_v60 = vmul.f32 0.25, %v549_v56  ;;  %v782_v48 = vadd.f32 %v2477_v34, %v743_v44 }
 0x152   : > { %v618_v61 = vmul.f32 0.25, %v552_v14  ;;  %1908 = vrsqrt.f32 %v648_v27  ;;  %v811_v23 = vpack.c.bf16 %v781_v2, %v780_v18  ;;  %v744_v0 = vmul.f32 %v2469_v28, %v705_v6 }
 0x153   : > { %v1899_v5 = vpop.eup %1898  ;;  %v649_v16 = vadd.f32 1e-05, %v617_v60  ;;  %v745_v42 = vmul.f32 %v2469_v28, %v706_v45 }
 0x154   : > { %v650_v10 = vadd.f32 1e-05, %v618_v61  ;;  %v1901_v30 = vpop.eup %1900  ;;  %v707_v32 = vmul.f32 %v1899_v5, %v2308_v9  ;;  %v555_v35 = vpop.xlane.xlu1 %554  ;;  %1809 = vmatmul.mubr.msk.bf16.vlgmr.msra.gmra.mrb[0].mxu0 %vm315_vm0, %v811_v23  ;;  %v783_v55 = vadd.f32 %v2477_v34, %v744_v0 }
 0x155   : > { %v558_v38 = vpop.xlane.xlu0 %557  ;;  %v708_v20 = vmul.f32 %v1901_v30, %v2317_v7  ;;  %1910 = vrsqrt.f32 %v649_v16  ;;  %v619_v26 = vmul.f32 0.25, %v555_v35  ;;  %v784_v62 = vadd.f32 %v2477_v34, %v745_v42 }
 0x156   : > { %v620_v46 = vmul.f32 0.25, %v558_v38  ;;  %1912 = vrsqrt.f32 %v650_v10  ;;  %v812_v36 = vpack.c.bf16 %v783_v55, %v782_v48  ;;  %v746_v11 = vmul.f32 %v2469_v28, %v707_v32 }
 0x157   : > { %v1903_v9 = vpop.eup %1902  ;;  %v651_v50 = vadd.f32 1e-05, %v619_v26  ;;  %v747_v40 = vmul.f32 %v2469_v28, %v708_v20 }
 0x158   : > { %v652_v51 = vadd.f32 1e-05, %v620_v46  ;;  %v1905_v54 = vpop.eup %1904  ;;  %v709_v52 = vmul.f32 %v1903_v9, %v2320_v13  ;;  %v561_v58 = vpop.xlane.xlu1 %560  ;;  %1812 = vmatprep.mubr.msk.bf16.mxu0 %vm315_vm0, %v812_v36  ;;  %v785_v7 = vadd.f32 %v2477_v34, %v746_v11 }
 0x159   : > { %v564_v24 = vpop.xlane.xlu0 %563  ;;  %v710_v3 = vmul.f32 %v1905_v54, %v2329_v1  ;;  %1914 = vrsqrt.f32 %v651_v50  ;;  %v621_v27 = vmul.f32 0.25, %v561_v58  ;;  %v786_v61 = vadd.f32 %v2477_v34, %v747_v40 }
 0x15a   : > { %v622_v4 = vmul.f32 0.25, %v564_v24  ;;  %1916 = vrsqrt.f32 %v652_v51  ;;  %v813_v6 = vpack.c.bf16 %v785_v7, %v784_v62  ;;  %v748_v56 = vmul.f32 %v2469_v28, %v709_v52 }
 0x15b   : > { %v1907_v13 = vpop.eup %1906  ;;  %v653_v14 = vadd.f32 1e-05, %v621_v27  ;;  %v749_v23 = vmul.f32 %v2469_v28, %v710_v3 }
 0x15c   : > { %v654_v18 = vadd.f32 1e-05, %v622_v4  ;;  %v1909_v2 = vpop.eup %1908  ;;  %v711_v44 = vmul.f32 %v1907_v13, %v2332_v17  ;;  %v567_v45 = vpop.xlane.xlu1 %566  ;;  %1813 = vmatmul.mubr.msk.bf16.gmra.mrb[4].mxu0 %vm315_vm0, %v813_v6  ;;  %v787_v1 = vadd.f32 %v2477_v34, %v748_v56 }
 0x15d   : > { %v570_v60 = vpop.xlane.xlu0 %569  ;;  %v712_v0 = vmul.f32 %v1909_v2, %v2341_v43  ;;  %1918 = vrsqrt.f32 %v653_v14  ;;  %v623_v5 = vmul.f32 0.25, %v567_v45  ;;  %v788_v20 = vadd.f32 %v2477_v34, %v749_v23 }
 0x15e   : > { %v624_v16 = vmul.f32 0.25, %v570_v60  ;;  %1920 = vrsqrt.f32 %v654_v18  ;;  %v814_v10 = vpack.c.bf16 %v787_v1, %v786_v61  ;;  %v750_v30 = vmul.f32 %v2469_v28, %v711_v44 }
 0x15f   : > { %v1911_v17 = vpop.eup %1910  ;;  %v655_v32 = vadd.f32 1e-05, %v623_v5  ;;  %v751_v26 = vmul.f32 %v2469_v28, %v712_v0 }
 0x160   : > { %v656_v35 = vadd.f32 1e-05, %v624_v16  ;;  %v1913_v38 = vpop.eup %1912  ;;  %v713_v48 = vmul.f32 %v1911_v17, %v2344_v21  ;;  %v573_v55 = vpop.xlane.xlu1 %572  ;;  %1816 = vmatprep.mubr.msk.bf16.mxu0 %vm315_vm0, %v814_v10  ;;  %v789_v43 = vadd.f32 %v2477_v34, %v750_v30 }
 0x161   : > { %v576_v42 = vpop.xlane.xlu0 %575  ;;  %v714_v46 = vmul.f32 %v1913_v38, %v2353_v59  ;;  %1922 = vrsqrt.f32 %v655_v32  ;;  %v625_v36 = vmul.f32 0.25, %v573_v55  ;;  %v790_v7 = vadd.f32 %v2477_v34, %v751_v26 }
 0x162   : > { %v626_v11 = vmul.f32 0.25, %v576_v42  ;;  %1924 = vrsqrt.f32 %v656_v35  ;;  %v815_v9 = vpack.c.bf16 %v789_v43, %v788_v20  ;;  %v752_v50 = vmul.f32 %v2469_v28, %v713_v48 }
 0x163   : > { %v1915_v21 = vpop.eup %1914  ;;  %v657_v51 = vadd.f32 1e-05, %v625_v36  ;;  %v753_v40 = vmul.f32 %v2469_v28, %v714_v46 }
 0x164   : > { %v658_v54 = vadd.f32 1e-05, %v626_v11  ;;  %v1917_v52 = vpop.eup %1916  ;;  %v715_v58 = vmul.f32 %v1915_v21, %v2356_v25  ;;  %v579_v24 = vpop.xlane.xlu1 %578  ;;  %1817 = vmatmul.mubr.msk.bf16.gmra.mrb[8].mxu0 %vm315_vm0, %v815_v9  ;;  %v791_v59 = vadd.f32 %v2477_v34, %v752_v50 }
 0x165   : > { %v582_v62 = vpop.xlane.xlu0 %581  ;;  %v716_v3 = vmul.f32 %v1917_v52, %v2365_v15  ;;  %1926 = vrsqrt.f32 %v657_v51  ;;  %v627_v27 = vmul.f32 0.25, %v579_v24  ;;  %v792_v60 = vadd.f32 %v2477_v34, %v753_v40 }
 0x166   : > { %v628_v4 = vmul.f32 0.25, %v582_v62  ;;  %1928 = vrsqrt.f32 %v658_v54  ;;  %v816_v6 = vpack.c.bf16 %v791_v59, %v790_v7  ;;  %v754_v56 = vmul.f32 %v2469_v28, %v715_v58 }
 0x167   : > { %v1919_v25 = vpop.eup %1918  ;;  %v659_v13 = vadd.f32 1e-05, %v627_v27  ;;  %v755_v61 = vmul.f32 %v2469_v28, %v716_v3 }
 0x168   : > { %v660_v14 = vadd.f32 1e-05, %v628_v4  ;;  %v1921_v18 = vpop.eup %1920  ;;  %v717_v2 = vmul.f32 %v1919_v25, %v2368_v29  ;;  %v585_v44 = vpop.xlane.xlu1 %584  ;;  %1820 = vmatprep.mubr.msk.bf16.mxu0 %vm315_vm0, %v816_v6  ;;  %v793_v15 = vadd.f32 %v2477_v34, %v754_v56 }
 0x169   : > { %v588_v45 = vpop.xlane.xlu0 %587  ;;  %v718_v1 = vmul.f32 %v1921_v18, %v2377_v31  ;;  %1930 = vrsqrt.f32 %v659_v13  ;;  %v629_v23 = vmul.f32 0.25, %v585_v44  ;;  %v794_v48 = vadd.f32 %v2477_v34, %v755_v61 }
 0x16a   : > { %v630_v0 = vmul.f32 0.25, %v588_v45  ;;  %1932 = vrsqrt.f32 %v660_v14  ;;  %v817_v5 = vpack.c.bf16 %v793_v15, %v792_v60  ;;  %v756_v16 = vmul.f32 %v2469_v28, %v717_v2 }
 0x16b   : > { %v1923_v29 = vpop.eup %1922  ;;  %v661_v10 = vadd.f32 1e-05, %v629_v23  ;;  %v757_v55 = vmul.f32 %v2469_v28, %v718_v1 }
 0x16c   : > { %v662_v30 = vadd.f32 1e-05, %v630_v0  ;;  %v1925_v17 = vpop.eup %1924  ;;  %v719_v32 = vmul.f32 %v1923_v29, %v2380_v33  ;;  %v591_v35 = vpop.xlane.xlu1 %590  ;;  %1821 = vmatmul.mubr.msk.bf16.gmra.mrb[12].mxu0 %vm315_vm0, %v817_v5  ;;  %v795_v31 = vadd.f32 %v2477_v34, %v756_v16 }
 0x16d   : > { %v594_v38 = vpop.xlane.xlu0 %593  ;;  %v720_v42 = vmul.f32 %v1925_v17, %v2389_v47  ;;  %1934 = vrsqrt.f32 %v661_v10  ;;  %v631_v20 = vmul.f32 0.25, %v591_v35  ;;  %v796_v54 = vadd.f32 %v2477_v34, %v757_v55 }
 0x16e   : > { %v632_v43 = vmul.f32 0.25, %v594_v38  ;;  %1936 = vrsqrt.f32 %v662_v30  ;;  %v818_v26 = vpack.c.bf16 %v795_v31, %v794_v48  ;;  %v758_v46 = vmul.f32 %v2469_v28, %v719_v32 }
 0x16f   : > { %v1927_v33 = vpop.eup %1926  ;;  %v663_v36 = vadd.f32 1e-05, %v631_v20  ;;  %v759_v52 = vmul.f32 %v2469_v28, %v720_v42 }
 0x170   : > { %v664_v11 = vadd.f32 1e-05, %v632_v43  ;;  %v1929_v9 = vpop.eup %1928  ;;  %v721_v50 = vmul.f32 %v1927_v33, %v2392_v37  ;;  %v597_v21 = vpop.xlane.xlu1 %596  ;;  %1824 = vmatprep.mubr.msk.bf16.mxu0 %vm315_vm0, %v818_v26  ;;  %v797_v47 = vadd.f32 %v2477_v34, %v758_v46 }
 0x171   : > { %v600_v51 = vpop.xlane.xlu0 %599  ;;  %v722_v58 = vmul.f32 %v1929_v9, %v2401_v63  ;;  %1938 = vrsqrt.f32 %v663_v36  ;;  %v633_v24 = vmul.f32 0.25, %v597_v21  ;;  %v798_v56 = vadd.f32 %v2477_v34, %v759_v52 }
 0x172   : > { %v634_v62 = vmul.f32 0.25, %v600_v51  ;;  %1940 = vrsqrt.f32 %v664_v11  ;;  %v819_v7 = vpack.c.bf16 %v797_v47, %v796_v54  ;;  %v760_v59 = vmul.f32 %v2469_v28, %v721_v50 }
 0x173   : > { %v1931_v37 = vpop.eup %1930  ;;  %v665_v40 = vadd.f32 1e-05, %v633_v24  ;;  %v761_v25 = vmul.f32 %v2469_v28, %v722_v58 }
 0x174   : > { %v666_v3 = vadd.f32 1e-05, %v634_v62  ;;  %v1933_v27 = vpop.eup %1932  ;;  %v723_v4 = vmul.f32 %v1931_v37, %v2404_v41  ;;  %v603_v6 = vpop.xlane.xlu1 %602  ;;  %1825 = vmatmul.mubr.msk.bf16.gmra.mrb[16].mxu0 %vm315_vm0, %v819_v7  ;;  %v799_v63 = vadd.f32 %v2477_v34, %v760_v59 }
 0x175   : > { %v724_v13 = vmul.f32 %v1933_v27, %v2416_v19  ;;  %1942 = vrsqrt.f32 %v665_v40  ;;  %v635_v14 = vmul.f32 0.25, %v603_v6  ;;  %v800_v15 = vadd.f32 %v2477_v34, %v761_v25 }
 0x176   : > { %1944 = vrsqrt.f32 %v666_v3  ;;  %v820_v18 = vpack.c.bf16 %v799_v63, %v798_v56  ;;  %v762_v2 = vmul.f32 %v2469_v28, %v723_v4 }
 0x177   : > { %v1935_v44 = vpop.eup %1934  ;;  %v667_v45 = vadd.f32 1e-05, %v635_v14  ;;  %v763_v1 = vmul.f32 %v2469_v28, %v724_v13 }
 0x178   : > { %v1937_v41 = vpop.eup %1936  ;;  %v725_v60 = vmul.f32 %v1935_v44, %v2419_v22  ;;  %1828 = vmatprep.mubr.msk.bf16.mxu0 %vm315_vm0, %v820_v18  ;;  %v801_v61 = vadd.f32 %v2477_v34, %v762_v2 }
 0x179   : > { %v726_v19 = vmul.f32 %v1937_v41, %v2428_v49  ;;  %1946 = vrsqrt.f32 %v667_v45  ;;  %v802_v22 = vadd.f32 %v2477_v34, %v763_v1 }
 0x17a   : > { %v821_v23 = vpack.c.bf16 %v801_v61, %v800_v15  ;;  %v764_v0 = vmul.f32 %v2469_v28, %v725_v60 }
 0x17b   : > { %v1939_v5 = vpop.eup %1938  ;;  %v765_v30 = vmul.f32 %v2469_v28, %v726_v19 }
 0x17c   : > { %v1941_v16 = vpop.eup %1940  ;;  %v727_v29 = vmul.f32 %v1939_v5, %v2431_v39  ;;  %1829 = vmatmul.mubr.msk.bf16.gmra.mrb[20].mxu0 %vm315_vm0, %v821_v23  ;;  %v803_v10 = vadd.f32 %v2477_v34, %v764_v0 }
 0x17d   : > { %v728_v17 = vmul.f32 %v1941_v16, %v2440_v8  ;;  %v804_v39 = vadd.f32 %v2477_v34, %v765_v30 }
 0x17e   : > { %v822_v32 = vpack.c.bf16 %v803_v10, %v802_v22  ;;  %v766_v49 = vmul.f32 %v2469_v28, %v727_v29 }
 0x17f   : > { %v1943_v35 = vpop.eup %1942  ;;  %v767_v55 = vmul.f32 %v2469_v28, %v728_v17 }
 0x180   : > { %v1945_v38 = vpop.eup %1944  ;;  %v729_v48 = vmul.f32 %v1943_v35, %v2443_v53  ;;  %1832 = vmatprep.mubr.msk.bf16.mxu0 %vm315_vm0, %v822_v32  ;;  %v805_v31 = vadd.f32 %v2477_v34, %v766_v49 }
 0x181   : > { %v730_v42 = vmul.f32 %v1945_v38, %v2452_v12  ;;  %v806_v53 = vadd.f32 %v2477_v34, %v767_v55 }
 0x182   : > { %v823_v20 = vpack.c.bf16 %v805_v31, %v804_v39  ;;  %v768_v8 = vmul.f32 %v2469_v28, %v729_v48 }
 0x183   : > { %v1947_v43 = vpop.eup %1946  ;;  %v769_v33 = vmul.f32 %v2469_v28, %v730_v42 }
 0x184   : > { %v731_v26 = vmul.f32 %v1947_v43, %v2455_v57  ;;  %1833 = vmatmul.mubr.msk.bf16.gmra.mrb[24].mxu0 %vm315_vm0, %v823_v20  ;;  %v807_v46 = vadd.f32 %v2477_v34, %v768_v8  ;;  %v1351_v57 = vld [vmem:[%s3075_s5] sm:$0xf] }
 0x185   : > { %v808_v12 = vadd.f32 %v2477_v34, %v769_v33  ;;  %1875 = vmatprep.subr.msk.bf16.mxu1 %vm1401_vm2, %v1351_v57  ;;  %v1403_v21 = vsel %vm1401_vm2, %v1351_v57, 0 }
 0x186   : > { %v824_v36 = vpack.c.bf16 %v807_v46, %v806_v53  ;;  %v770_v11 = vmul.f32 %v2469_v28, %v731_v26  ;;  %1841 = vmatpush3.bf16.msra.mxu1 %v1403_v21  ;;  %v2593_v28 = vld [vmem:[%s3074_s4] ss:$0 sm:$0xff] }
 0x188   : > { %1836 = vmatprep.mubr.msk.bf16.mxu0 %vm315_vm0, %v824_v36  ;;  %v809_v9 = vadd.f32 %v2477_v34, %v770_v11 }
 0x18a   : > { %v825_v50 = vpack.c.bf16 %v809_v9, %v808_v12 }
 0x18c   : > { %1837 = vmatmul.mubr.msk.bf16.gmra.mrb[28].mxu0 %vm315_vm0, %v825_v50 }
 0x227   : > { %v1810_v51 = vpop.f32.mrb[0].mxu0 }
 0x228   : > { %v2596_v54 = vadd.f32 %v1810_v51, %v2593_v28  ;;  %v920_v34 = vpop.f32.mrb[1].mxu0 }
 0x229   : > { %v2599_v47 = vadd.f32 %v2593_v28, %v920_v34  ;;  %v1811_v52 = vpop.f32.mrb[2].mxu0 }
 0x22a   : > { %v1049_v58 = vmul.f32 %v2596_v54, %v2596_v54  ;;  %v2604_v24 = vadd.f32 %v1811_v52, %v2593_v28  ;;  %v923_v62 = vpop.f32.mrb[3].mxu0 }
 0x22b   : > { %v1047_v7 = vmul.f32 %v2599_v47, %v2599_v47  ;;  %v2609_v59 = vadd.f32 %v2593_v28, %v923_v62 }
 0x22c   : > { %v1081_v37 = vmul.f32 %v1049_v58, %v2596_v54  ;;  %v1050_v40 = vmul.f32 %v2604_v24, %v2604_v24 }
 0x22d   : > { %v1079_v3 = vmul.f32 %v1047_v7, %v2599_v47  ;;  %v1048_v27 = vmul.f32 %v2609_v59, %v2609_v59 }
 0x22e   : > { %v1113_v4 = vmul.f32 0.044715, %v1081_v37  ;;  %v1082_v6 = vmul.f32 %v1050_v40, %v2604_v24 }
 0x22f   : > { %v1111_v56 = vmul.f32 0.044715, %v1079_v3  ;;  %v1080_v63 = vmul.f32 %v1048_v27, %v2609_v59  ;;  %v1814_v25 = vpop.f32.mrb[4].mxu0 }
 0x230   : > { %v1145_v13 = vadd.f32 %v1113_v4, %v2596_v54  ;;  %v1114_v14 = vmul.f32 0.044715, %v1082_v6  ;;  %v2621_v18 = vadd.f32 %v1814_v25, %v2593_v28  ;;  %v936_v2 = vpop.f32.mrb[5].mxu0 }
 0x231   : > { %v1143_v44 = vadd.f32 %v1111_v56, %v2599_v47  ;;  %v1112_v45 = vmul.f32 0.044715, %v1080_v63  ;;  %v2625_v41 = vadd.f32 %v2593_v28, %v936_v2  ;;  %v1815_v60 = vpop.f32.mrb[6].mxu0 }
 0x232   : > { %v1177_v15 = vmul.f32 0.7978846, %v1145_v13  ;;  %v1146_v61 = vadd.f32 %v1114_v14, %v2604_v24  ;;  %v1053_v1 = vmul.f32 %v2621_v18, %v2621_v18  ;;  %v2631_v19 = vadd.f32 %v1815_v60, %v2593_v28  ;;  %v939_v23 = vpop.f32.mrb[7].mxu0 }
 0x233   : > { %v1175_v0 = vmul.f32 0.7978846, %v1143_v44  ;;  %v1144_v5 = vadd.f32 %v1112_v45, %v2609_v59  ;;  %v1051_v16 = vmul.f32 %v2625_v41, %v2625_v41  ;;  %v2637_v29 = vadd.f32 %v2593_v28, %v939_v23 }
 0x234   : > { %1948 = vtanh.f32 %v1177_v15  ;;  %v1178_v22 = vmul.f32 0.7978846, %v1146_v61  ;;  %v1085_v10 = vmul.f32 %v1053_v1, %v2621_v18  ;;  %v1054_v30 = vmul.f32 %v2631_v19, %v2631_v19 }
 0x235   : > { %v1176_v17 = vmul.f32 0.7978846, %v1144_v5  ;;  %v1083_v32 = vmul.f32 %v1051_v16, %v2625_v41  ;;  %v1052_v49 = vmul.f32 %v2637_v29, %v2637_v29  ;;  %1950 = vtanh.f32 %v1175_v0 }
 0x236   : > { %1952 = vtanh.f32 %v1178_v22  ;;  %v1117_v35 = vmul.f32 0.044715, %v1085_v10  ;;  %v1086_v38 = vmul.f32 %v1054_v30, %v2631_v19 }
 0x237   : > { %v1115_v48 = vmul.f32 0.044715, %v1083_v32  ;;  %v1084_v39 = vmul.f32 %v1052_v49, %v2637_v29  ;;  %v1818_v31 = vpop.f32.mrb[8].mxu0  ;;  %1954 = vtanh.f32 %v1176_v17 }
 0x238   : > { %v1149_v55 = vadd.f32 %v1117_v35, %v2621_v18  ;;  %v1118_v42 = vmul.f32 0.044715, %v1086_v38  ;;  %v2649_v20 = vadd.f32 %v1818_v31, %v2593_v28  ;;  %v952_v8 = vpop.f32.mrb[9].mxu0 }
 0x239   : > { %v1147_v43 = vadd.f32 %v1115_v48, %v2625_v41  ;;  %v1116_v26 = vmul.f32 0.044715, %v1084_v39  ;;  %v2653_v53 = vadd.f32 %v2593_v28, %v952_v8  ;;  %v1819_v46 = vpop.f32.mrb[10].mxu0 }
 0x23a   : > { %v1181_v33 = vmul.f32 0.7978846, %v1149_v55  ;;  %v1150_v36 = vadd.f32 %v1118_v42, %v2631_v19  ;;  %v1057_v11 = vmul.f32 %v2649_v20, %v2649_v20  ;;  %v2659_v12 = vadd.f32 %v1819_v46, %v2593_v28  ;;  %v955_v9 = vpop.f32.mrb[11].mxu0 }
 0x23b   : > { %v1179_v50 = vmul.f32 0.7978846, %v1147_v43  ;;  %v1148_v57 = vadd.f32 %v1116_v26, %v2637_v29  ;;  %v1055_v21 = vmul.f32 %v2653_v53, %v2653_v53  ;;  %v2665_v51 = vadd.f32 %v2593_v28, %v955_v9 }
 0x23c   : > { %1956 = vtanh.f32 %v1181_v33  ;;  %v1182_v34 = vmul.f32 0.7978846, %v1150_v36  ;;  %v1089_v52 = vmul.f32 %v1057_v11, %v2649_v20  ;;  %v1058_v58 = vmul.f32 %v2659_v12, %v2659_v12 }
 0x23d   : > { %1958 = vtanh.f32 %v1179_v50  ;;  %v1180_v62 = vmul.f32 0.7978846, %v1148_v57  ;;  %v1087_v7 = vmul.f32 %v1055_v21, %v2653_v53  ;;  %v1056_v37 = vmul.f32 %v2665_v51, %v2665_v51 }
 0x23e   : > { %v1949_v40 = vpop.eup %1948  ;;  %1960 = vtanh.f32 %v1182_v34  ;;  %v1121_v3 = vmul.f32 0.044715, %v1089_v52  ;;  %v1090_v27 = vmul.f32 %v1058_v58, %v2659_v12 }
 0x23f   : > { %v1951_v4 = vpop.eup %1950  ;;  %v1241_v6 = vadd.f32 1.0, %v1949_v40  ;;  %1962 = vtanh.f32 %v1180_v62  ;;  %v1119_v56 = vmul.f32 0.044715, %v1087_v7  ;;  %v1088_v63 = vmul.f32 %v1056_v37, %v2665_v51  ;;  %v1822_v25 = vpop.f32.mrb[12].mxu0 }
 0x240   : > { %v1953_v13 = vpop.eup %1952  ;;  %v1153_v14 = vadd.f32 %v1121_v3, %v2649_v20  ;;  %v1122_v2 = vmul.f32 0.044715, %v1090_v27  ;;  %v2677_v44 = vadd.f32 %v1822_v25, %v2593_v28  ;;  %v968_v45 = vpop.f32.mrb[13].mxu0  ;;  %v2679_v60 = vadd.f32 1.0, %v1951_v4 }
 0x241   : > { %v1273_v15 = vmul.f32 0.5, %v1241_v6  ;;  %v1242_v61 = vadd.f32 1.0, %v1953_v13  ;;  %v1151_v1 = vadd.f32 %v1119_v56, %v2653_v53  ;;  %v1120_v23 = vmul.f32 0.044715, %v1088_v63  ;;  %v1823_v0 = vpop.f32.mrb[14].mxu0  ;;  %v1955_v17 = vpop.eup %1954 }
 0x242   : > { %v1185_v5 = vmul.f32 0.7978846, %v1153_v14  ;;  %v1154_v16 = vadd.f32 %v1122_v2, %v2659_v12  ;;  %v1061_v22 = vmul.f32 %v2677_v44, %v2677_v44  ;;  %v2686_v10 = vadd.f32 %v2593_v28, %v968_v45  ;;  %v971_v30 = vpop.f32.mrb[15].mxu0 }
 0x243   : > { %v2689_v32 = vmul.f32 %v1273_v15, %v2596_v54  ;;  %v1274_v49 = vmul.f32 0.5, %v1242_v61  ;;  %v1183_v35 = vmul.f32 0.7978846, %v1151_v1  ;;  %v1152_v38 = vadd.f32 %v1120_v23, %v2665_v51 }
 0x244   : > { %1964 = vtanh.f32 %v1185_v5  ;;  %v1186_v48 = vmul.f32 0.7978846, %v1154_v16  ;;  %v1093_v39 = vmul.f32 %v1061_v22, %v2677_v44  ;;  %v1059_v31 = vmul.f32 %v2686_v10, %v2686_v10 }
 0x245   : > { %v2696_v55 = vmul.f32 %v1274_v49, %v2604_v24  ;;  %1966 = vtanh.f32 %v1183_v35  ;;  %v1184_v42 = vmul.f32 0.7978846, %v1152_v38  ;;  %v2699_v8 = vadd.f32 %v1823_v0, %v2593_v28 }
 0x246   : > { %v1957_v54 = vpop.eup %1956  ;;  %1968 = vtanh.f32 %v1186_v48  ;;  %v1125_v43 = vmul.f32 0.044715, %v1093_v39  ;;  %v1091_v26 = vmul.f32 %v1059_v31, %v2686_v10  ;;  %v2703_v46 = vadd.f32 %v2593_v28, %v971_v30 }
 0x247   : > { %v1959_v33 = vpop.eup %1958  ;;  %v1245_v36 = vadd.f32 1.0, %v1957_v54  ;;  %1970 = vtanh.f32 %v1184_v42  ;;  %v1062_v24 = vmul.f32 %v2699_v8, %v2699_v8  ;;  %v1826_v11 = vpop.f32.mrb[16].mxu0  ;;  %v2707_v9 = vadd.f32 1.0, %v1955_v17 }
 0x248   : > { %v1961_v50 = vpop.eup %1960  ;;  %v1243_v57 = vadd.f32 1.0, %v1959_v33  ;;  %v1157_v21 = vadd.f32 %v1125_v43, %v2677_v44  ;;  %v1123_v34 = vmul.f32 0.044715, %v1091_v26  ;;  %v1060_v52 = vmul.f32 %v2703_v46, %v2703_v46  ;;  %v984_v58 = vpop.f32.mrb[17].mxu0 }
 0x249   : > { %v1963_v62 = vpop.eup %1962  ;;  %v1277_v7 = vmul.f32 0.5, %v1245_v36  ;;  %v1246_v37 = vadd.f32 1.0, %v1961_v50  ;;  %v1094_v40 = vmul.f32 %v1062_v24, %v2699_v8  ;;  %v2714_v3 = vadd.f32 %v1826_v11, %v2593_v28  ;;  %v1827_v27 = vpop.f32.mrb[18].mxu0 }
 0x24a   : > { %v1275_v4 = vmul.f32 0.5, %v1243_v57  ;;  %v1244_v6 = vadd.f32 1.0, %v1963_v62  ;;  %v1189_v56 = vmul.f32 0.7978846, %v1157_v21  ;;  %v1155_v63 = vadd.f32 %v1123_v34, %v2686_v10  ;;  %v987_v25 = vpop.f32.mrb[19].mxu0 }
 0x24b   : > { %v2718_v13 = vmul.f32 %v1277_v7, %v2621_v18  ;;  %v1278_v14 = vmul.f32 0.5, %v1246_v37  ;;  %v1126_v2 = vmul.f32 0.044715, %v1094_v40  ;;  %v1092_v45 = vmul.f32 %v1060_v52, %v2703_v46 }
 0x24c   : > { %v2722_v15 = vmul.f32 %v1275_v4, %v2625_v41  ;;  %v1276_v61 = vmul.f32 0.5, %v1244_v6  ;;  %1972 = vtanh.f32 %v1189_v56  ;;  %v1187_v1 = vmul.f32 0.7978846, %v1155_v63 }
 0x24d   : > { %v2725_v23 = vmul.f32 %v1278_v14, %v2631_v19  ;;  %v1158_v0 = vadd.f32 %v1126_v2, %v2699_v8  ;;  %v1124_v5 = vmul.f32 0.044715, %v1092_v45  ;;  %v1065_v18 = vmul.f32 %v2714_v3, %v2714_v3 }
 0x24e   : > { %v1965_v16 = vpop.eup %1964  ;;  %v2731_v22 = vmul.f32 %v1276_v61, %v2637_v29  ;;  %1974 = vtanh.f32 %v1187_v1  ;;  %v2734_v41 = vadd.f32 %v2593_v28, %v984_v58  ;;  %v2737_v30 = vadd.f32 %v1827_v27, %v2593_v28 }
 0x24f   : > { %v1967_v17 = vpop.eup %1966  ;;  %v1249_v19 = vadd.f32 1.0, %v1965_v16  ;;  %v1190_v49 = vmul.f32 0.7978846, %v1158_v0  ;;  %v1156_v35 = vadd.f32 %v1124_v5, %v2703_v46  ;;  %v1097_v38 = vmul.f32 %v1065_v18, %v2714_v3  ;;  %v1830_v48 = vpop.f32.mrb[20].mxu0 }
 0x250   : > { %v1969_v39 = vpop.eup %1968  ;;  %v1247_v31 = vadd.f32 1.0, %v1967_v17  ;;  %v1063_v29 = vmul.f32 %v2734_v41, %v2734_v41  ;;  %v1066_v42 = vmul.f32 %v2737_v30, %v2737_v30  ;;  %v2746_v54 = vadd.f32 %v2593_v28, %v987_v25  ;;  %v1000_v43 = vpop.f32.mrb[21].mxu0 }
 0x251   : > { %v1971_v26 = vpop.eup %1970  ;;  %v1281_v33 = vmul.f32 0.5, %v1249_v19  ;;  %v1250_v36 = vadd.f32 1.0, %v1969_v39  ;;  %1976 = vtanh.f32 %v1190_v49  ;;  %v1188_v24 = vmul.f32 0.7978846, %v1156_v35  ;;  %v1831_v11 = vpop.f32.mrb[22].mxu0 }
 0x252   : > { %v1279_v50 = vmul.f32 0.5, %v1247_v31  ;;  %v1248_v57 = vadd.f32 1.0, %v1971_v26  ;;  %v1129_v21 = vmul.f32 0.044715, %v1097_v38  ;;  %v1095_v34 = vmul.f32 %v1063_v29, %v2734_v41  ;;  %v1003_v52 = vpop.f32.mrb[23].mxu0 }
 0x253   : > { %v2750_v58 = vmul.f32 %v1281_v33, %v2649_v20  ;;  %v1282_v62 = vmul.f32 0.5, %v1250_v36  ;;  %1978 = vtanh.f32 %v1188_v24  ;;  %v1098_v7 = vmul.f32 %v1066_v42, %v2737_v30 }
 0x254   : > { %v2754_v37 = vmul.f32 %v1279_v50, %v2653_v53  ;;  %v1280_v40 = vmul.f32 0.5, %v1248_v57  ;;  %v1161_v27 = vadd.f32 %v1129_v21, %v2714_v3  ;;  %v1127_v4 = vmul.f32 0.044715, %v1095_v34 }
 0x255   : > { %v2758_v6 = vmul.f32 %v1282_v62, %v2659_v12  ;;  %v1130_v56 = vmul.f32 0.044715, %v1098_v7  ;;  %v1064_v63 = vmul.f32 %v2746_v54, %v2746_v54  ;;  %v1271_v20 = vmul.f32 0.5, %v2679_v60 }
 0x256   : > { %v1973_v25 = vpop.eup %1972  ;;  %v2764_v14 = vmul.f32 %v1280_v40, %v2665_v51  ;;  %v1193_v2 = vmul.f32 0.7978846, %v1161_v27  ;;  %v1159_v53 = vadd.f32 %v1127_v4, %v2734_v41  ;;  %v1272_v45 = vmul.f32 0.5, %v2707_v9 }
 0x257   : > { %v1253_v61 = vadd.f32 1.0, %v1973_v25  ;;  %v1162_v1 = vadd.f32 %v1130_v56, %v2737_v30  ;;  %v1096_v12 = vmul.f32 %v1064_v63, %v2746_v54  ;;  %v1303_v0 = vmul.f32 %v1271_v20, %v2599_v47  ;;  %v1834_v5 = vpop.f32.mrb[24].mxu0 }
 0x258   : > { %v1975_v18 = vpop.eup %1974  ;;  %1980 = vtanh.f32 %v1193_v2  ;;  %v1191_v60 = vmul.f32 0.7978846, %v1159_v53  ;;  %v1304_v16 = vmul.f32 %v1272_v45, %v2609_v59  ;;  %v1336_v51 = vpack.c.bf16 %v2696_v55, %v2689_v32  ;;  %v1016_v17 = vpop.f32.mrb[25].mxu0 }
 0x259   : > { %v1285_v19 = vmul.f32 0.5, %v1253_v61  ;;  %v1251_v49 = vadd.f32 1.0, %v1975_v18  ;;  %v1194_v9 = vmul.f32 0.7978846, %v1162_v1  ;;  %v1128_v35 = vmul.f32 0.044715, %v1096_v12 }
 0x25a   : > { %1982 = vtanh.f32 %v1191_v60  ;;  %v1335_v38 = vpack.c.bf16 %v1304_v16, %v1303_v0  ;;  %v2775_v39 = vadd.f32 %v1830_v48, %v2593_v28  ;;  %v2778_v47 = vadd.f32 %v2593_v28, %v1000_v43  ;;  %v1835_v31 = vpop.f32.mrb[26].mxu0 }
 0x25b   : > { %v1977_v29 = vpop.eup %1976  ;;  %v2781_v59 = vmul.f32 %v1285_v19, %v2677_v44  ;;  %v1283_v42 = vmul.f32 0.5, %v1251_v49  ;;  %1984 = vtanh.f32 %v1194_v9  ;;  %v1160_v32 = vadd.f32 %v1128_v35, %v2746_v54  ;;  %v2784_v55 = vpop.f32.mrb[27].mxu0 }
 0x25c   : > { %v1254_v26 = vadd.f32 1.0, %v1977_v29  ;;  %1842 = vmatprep.mubr.msk.bf16.mxu1 %vm1352_vm3, %v1335_v38  ;;  %v1069_v48 = vmul.f32 %v2775_v39, %v2775_v39  ;;  %v1067_v43 = vmul.f32 %v2778_v47, %v2778_v47  ;;  %v2792_v33 = vadd.f32 %v1831_v11, %v2593_v28 }
 0x25d   : > { %v1979_v44 = vpop.eup %1978  ;;  %v2795_v36 = vmul.f32 %v1283_v42, %v2686_v10  ;;  %v1192_v24 = vmul.f32 0.7978846, %v1160_v32  ;;  %1843 = vmatmul.mubr.msk.bf16.vlgmr.msra.gmra.mrb[0].mxu1 %vm1352_vm3, %v1336_v51  ;;  %v2799_v50 = vadd.f32 %v2593_v28, %v1003_v52  ;;  %v1337_v57 = vpack.c.bf16 %v2731_v22, %v2722_v15 }
 0x25e   : > { %v1286_v21 = vmul.f32 0.5, %v1254_v26  ;;  %v1252_v34 = vadd.f32 1.0, %v1979_v44  ;;  %v1101_v62 = vmul.f32 %v1069_v48, %v2775_v39  ;;  %v1099_v11 = vmul.f32 %v1067_v43, %v2778_v47 }
 0x25f   : > { %1986 = vtanh.f32 %v1192_v24  ;;  %v1070_v10 = vmul.f32 %v2792_v33, %v2792_v33  ;;  %v1068_v7 = vmul.f32 %v2799_v50, %v2799_v50  ;;  %1846 = vmatprep.mubr.msk.bf16.mxu1 %vm1352_vm3, %v1337_v57  ;;  %v1338_v52 = vpack.c.bf16 %v2725_v23, %v2718_v13  ;;  %v1838_v40 = vpop.f32.mrb[28].mxu0 }
 0x260   : > { %v2813_v15 = vmul.f32 %v1286_v21, %v2699_v8  ;;  %v1284_v22 = vmul.f32 0.5, %v1252_v34  ;;  %v1133_v27 = vmul.f32 0.044715, %v1101_v62  ;;  %v1131_v4 = vmul.f32 0.044715, %v1099_v11  ;;  %v1032_v56 = vpop.f32.mrb[29].mxu0 }
 0x261   : > { %v1102_v63 = vmul.f32 %v1070_v10, %v2792_v33  ;;  %v1100_v20 = vmul.f32 %v1068_v7, %v2799_v50  ;;  %v2818_v25 = vadd.f32 %v1834_v5, %v2593_v28  ;;  %v2821_v2 = vadd.f32 %v2593_v28, %v1016_v17  ;;  %v1839_v53 = vpop.f32.mrb[30].mxu0 }
 0x262   : > { %v1981_v13 = vpop.eup %1980  ;;  %v2824_v23 = vmul.f32 %v1284_v22, %v2703_v46  ;;  %v1165_v8 = vadd.f32 %v1133_v27, %v2775_v39  ;;  %v1163_v45 = vadd.f32 %v1131_v4, %v2778_v47  ;;  %v2829_v61 = vadd.f32 %v1835_v31, %v2593_v28  ;;  %v1035_v1 = vpop.f32.mrb[31].mxu0 }
 0x263   : > { %v1257_v12 = vadd.f32 1.0, %v1981_v13  ;;  %v1134_v0 = vmul.f32 0.044715, %v1102_v63  ;;  %v1132_v5 = vmul.f32 0.044715, %v1100_v20  ;;  %v1073_v18 = vmul.f32 %v2818_v25, %v2818_v25 }
 0x264   : > { %v1983_v60 = vpop.eup %1982  ;;  %v1197_v16 = vmul.f32 0.7978846, %v1165_v8  ;;  %v1195_v51 = vmul.f32 0.7978846, %v1163_v45  ;;  %v1071_v46 = vmul.f32 %v2821_v2, %v2821_v2  ;;  %v1074_v17 = vmul.f32 %v2829_v61, %v2829_v61 }
 0x265   : > { %v1985_v19 = vpop.eup %1984  ;;  %v1289_v49 = vmul.f32 0.5, %v1257_v12  ;;  %v1255_v9 = vadd.f32 1.0, %v1983_v60  ;;  %v1166_v35 = vadd.f32 %v1134_v0, %v2792_v33  ;;  %v1164_v38 = vadd.f32 %v1132_v5, %v2799_v50  ;;  %1847 = vmatmul.mubr.msk.bf16.gmra.mrb[4].mxu1 %vm1352_vm3, %v1338_v52 }
 0x266   : > { %v1258_v31 = vadd.f32 1.0, %v1985_v19  ;;  %1988 = vtanh.f32 %v1197_v16  ;;  %v1105_v29 = vmul.f32 %v1073_v18, %v2818_v25  ;;  %v1103_v42 = vmul.f32 %v1071_v46, %v2821_v2 }
 0x267   : > { %v2843_v32 = vmul.f32 %v1289_v49, %v2714_v3  ;;  %v1287_v26 = vmul.f32 0.5, %v1255_v9  ;;  %1990 = vtanh.f32 %v1195_v51  ;;  %v1198_v48 = vmul.f32 0.7978846, %v1166_v35 }
 0x268   : > { %v1290_v43 = vmul.f32 0.5, %v1258_v31  ;;  %v1196_v44 = vmul.f32 0.7978846, %v1164_v38  ;;  %v1137_v24 = vmul.f32 0.044715, %v1105_v29  ;;  %v1106_v57 = vmul.f32 %v1074_v17, %v2829_v61 }
 0x269   : > { %v1987_v21 = vpop.eup %1986  ;;  %v2847_v34 = vmul.f32 %v1287_v26, %v2734_v41  ;;  %1992 = vtanh.f32 %v1198_v48  ;;  %v1135_v62 = vmul.f32 0.044715, %v1103_v42  ;;  %v2851_v11 = vadd.f32 %v2593_v28, %v2784_v55 }
 0x26a   : > { %v2854_v3 = vmul.f32 %v1290_v43, %v2737_v30  ;;  %v1256_v10 = vadd.f32 1.0, %v1987_v21  ;;  %1994 = vtanh.f32 %v1196_v44  ;;  %v1169_v7 = vadd.f32 %v1137_v24, %v2818_v25 }
 0x26b   : > { %v1167_v52 = vadd.f32 %v1135_v62, %v2821_v2  ;;  %v1138_v22 = vmul.f32 0.044715, %v1106_v57  ;;  %v1072_v41 = vmul.f32 %v2851_v11, %v2851_v11  ;;  %v1339_v27 = vpack.c.bf16 %v2764_v14, %v2754_v37 }
 0x26c   : > { %v1288_v4 = vmul.f32 0.5, %v1256_v10  ;;  %v1201_v63 = vmul.f32 0.7978846, %v1169_v7  ;;  %v1340_v55 = vpack.c.bf16 %v2758_v6, %v2750_v58  ;;  %v2865_v30 = vadd.f32 %v1838_v40, %v2593_v28 }
 0x26d   : > { %v1199_v20 = vmul.f32 0.7978846, %v1167_v52  ;;  %v1170_v13 = vadd.f32 %v1138_v22, %v2829_v61  ;;  %v1104_v8 = vmul.f32 %v1072_v41, %v2851_v11  ;;  %1850 = vmatprep.mubr.msk.bf16.mxu1 %vm1352_vm3, %v1339_v27  ;;  %v2871_v45 = vadd.f32 %v2593_v28, %v1032_v56 }
 0x26e   : > { %v1320_v37 = vmul.f32 %v1288_v4, %v2746_v54  ;;  %1996 = vtanh.f32 %v1201_v63  ;;  %1851 = vmatmul.mubr.msk.bf16.gmra.mrb[8].mxu1 %vm1352_vm3, %v1340_v55  ;;  %v1077_v58 = vmul.f32 %v2865_v30, %v2865_v30  ;;  %v2878_v6 = vadd.f32 %v1839_v53, %v2593_v28 }
 0x26f   : > { %1998 = vtanh.f32 %v1199_v20  ;;  %v1202_v14 = vmul.f32 0.7978846, %v1170_v13  ;;  %v1136_v40 = vmul.f32 0.044715, %v1104_v8  ;;  %v1075_v12 = vmul.f32 %v2871_v45, %v2871_v45 }
 0x270   : > { %v1989_v0 = vpop.eup %1988  ;;  %v1109_v56 = vmul.f32 %v1077_v58, %v2865_v30  ;;  %v1078_v54 = vmul.f32 %v2878_v6, %v2878_v6  ;;  %v2886_v5 = vadd.f32 %v2593_v28, %v1035_v1  ;;  %v1341_v18 = vpack.c.bf16 %v2824_v23, %v2795_v36 }
 0x271   : > { %v1991_v53 = vpop.eup %1990  ;;  %v1261_v60 = vadd.f32 1.0, %v1989_v0  ;;  %2000 = vtanh.f32 %v1202_v14  ;;  %v1168_v16 = vadd.f32 %v1136_v40, %v2851_v11  ;;  %v1107_v51 = vmul.f32 %v1075_v12, %v2871_v45 }
 0x272   : > { %v1259_v46 = vadd.f32 1.0, %v1991_v53  ;;  %v1141_v17 = vmul.f32 0.044715, %v1109_v56  ;;  %v1110_v19 = vmul.f32 %v1078_v54, %v2878_v6  ;;  %v1076_v49 = vmul.f32 %v2886_v5, %v2886_v5  ;;  %1854 = vmatprep.mubr.msk.bf16.mxu1 %vm1352_vm3, %v1341_v18 }
 0x273   : > { %v1993_v28 = vpop.eup %1992  ;;  %v1293_v1 = vmul.f32 0.5, %v1261_v60  ;;  %v1200_v9 = vmul.f32 0.7978846, %v1168_v16  ;;  %v1139_v36 = vmul.f32 0.044715, %v1107_v51  ;;  %v1342_v23 = vpack.c.bf16 %v2813_v15, %v2781_v59 }
 0x274   : > { %v1995_v35 = vpop.eup %1994  ;;  %v1291_v38 = vmul.f32 0.5, %v1259_v46  ;;  %v1262_v31 = vadd.f32 1.0, %v1993_v28  ;;  %v1173_v29 = vadd.f32 %v1141_v17, %v2865_v30  ;;  %v1142_v42 = vmul.f32 0.044715, %v1110_v19 }
 0x275   : > { %v1325_v26 = vmul.f32 %v1293_v1, %v2775_v39  ;;  %v1260_v48 = vadd.f32 1.0, %v1995_v35  ;;  %2002 = vtanh.f32 %v1200_v9  ;;  %v1171_v43 = vadd.f32 %v1139_v36, %v2871_v45 }
 0x276   : > { %v1323_v44 = vmul.f32 %v1291_v38, %v2778_v47  ;;  %v1294_v24 = vmul.f32 0.5, %v1262_v31  ;;  %v1205_v57 = vmul.f32 0.7978846, %v1173_v29  ;;  %v1174_v21 = vadd.f32 %v1142_v42, %v2878_v6  ;;  %1855 = vmatmul.mubr.msk.bf16.gmra.mrb[12].mxu1 %vm1352_vm3, %v1342_v23  ;;  %v2012_v38 = vld [vmem:[%s2108_s30 + $0x10] sm:$0xff] }
 0x277   : > { %v1292_v59 = vmul.f32 0.5, %v1260_v48  ;;  %v1203_v15 = vmul.f32 0.7978846, %v1171_v43  ;;  %v1108_v62 = vmul.f32 %v1076_v49, %v2886_v5  ;;  %v1343_v10 = vpack.c.bf16 %v1320_v37, %v2847_v34  ;;  %v2014_v48 = vld [vmem:[%s2108_s30 + $0x18] sm:$0xff] }
 0x278   : > { %v1997_v7 = vpop.eup %1996  ;;  %v1326_v39 = vmul.f32 %v1294_v24, %v2792_v33  ;;  %2004 = vtanh.f32 %v1205_v57  ;;  %v1206_v52 = vmul.f32 0.7978846, %v1174_v21  ;;  %v1344_v47 = vpack.c.bf16 %v2854_v3, %v2843_v32  ;;  %v2015_v57 = vld [vmem:[%s2108_s30 + $0x8] sm:$0xff] }
 0x279   : > { %v1999_v22 = vpop.eup %1998  ;;  %v1324_v41 = vmul.f32 %v1292_v59, %v2799_v50  ;;  %v1265_v27 = vadd.f32 1.0, %v1997_v7  ;;  %2006 = vtanh.f32 %v1203_v15  ;;  %v1140_v4 = vmul.f32 0.044715, %v1108_v62  ;;  %1858 = vmatprep.mubr.msk.bf16.mxu1 %vm1352_vm3, %v1343_v10  ;;  %v2016_v10 = vld [vmem:[%s2108_s30 + $0x30] sm:$0xff] }
 0x27a   : > { %2008 = vtanh.f32 %v1206_v52  ;;  %v1346_v63 = vpack.c.bf16 %v1326_v39, %v1325_v26  ;;  %v1263_v13 = vadd.f32 1.0, %v1999_v22  ;;  %v2017_v52 = vld [vmem:[%s2108_s30 + $0x20] sm:$0xff] }
 0x27b   : > { %v2001_v55 = vpop.eup %2000  ;;  %v1172_v34 = vadd.f32 %v1140_v4, %v2886_v5  ;;  %v1345_v20 = vpack.c.bf16 %v1324_v41, %v1323_v44  ;;  %v1297_v33 = vmul.f32 0.5, %v1265_v27  ;;  %v2018_v27 = vld [vmem:[%s2108_s30 + $0x38] sm:$0xff] }
 0x27c   : > { %v1266_v8 = vadd.f32 1.0, %v2001_v55  ;;  %v1295_v3 = vmul.f32 0.5, %v1263_v13 }
 0x27d   : > { %v1204_v37 = vmul.f32 0.7978846, %v1172_v34  ;;  %v1329_v50 = vmul.f32 %v1297_v33, %v2818_v25  ;;  %v2019_v34 = vld [vmem:[%s2108_s30 + $0x28] sm:$0xff] }
 0x27e   : > { %v1298_v58 = vmul.f32 0.5, %v1266_v8  ;;  %1859 = vmatmul.mubr.msk.bf16.gmra.mrb[16].mxu1 %vm1352_vm3, %v1344_v47  ;;  %v1327_v60 = vmul.f32 %v1295_v3, %v2821_v2 }
 0x27f   : > { %v2003_v32 = vpop.eup %2002  ;;  %2010 = vtanh.f32 %v1204_v37  ;;  %1862 = vmatprep.mubr.msk.bf16.mxu1 %vm1352_vm3, %v1345_v20  ;;  %v2020_v37 = vld [vmem:[%s2108_s30 + $0x50] sm:$0xff] }
 0x280   : > { %v1330_v14 = vmul.f32 %v1298_v58, %v2829_v61  ;;  %v1264_v40 = vadd.f32 1.0, %v2003_v32 }
 0x282   : > { %v2005_v12 = vpop.eup %2004  ;;  %v1296_v0 = vmul.f32 0.5, %v1264_v40  ;;  %v1348_v56 = vpack.c.bf16 %v1330_v14, %v1329_v50  ;;  %v2021_v50 = vld [vmem:[%s2108_s30 + $0x40] sm:$0xff] }
 0x283   : > { %v2007_v54 = vpop.eup %2006  ;;  %v1269_v18 = vadd.f32 1.0, %v2005_v12  ;;  %v2022_v12 = vld [vmem:[%s2108_s30 + $0x58] sm:$0xff] }
 0x284   : > { %v2009_v53 = vpop.eup %2008  ;;  %v1328_v16 = vmul.f32 %v1296_v0, %v2851_v11  ;;  %v1267_v17 = vadd.f32 1.0, %v2007_v54 }
 0x285   : > { %v1301_v51 = vmul.f32 0.5, %v1269_v18  ;;  %v1270_v46 = vadd.f32 1.0, %v2009_v53  ;;  %v2023_v18 = vld [vmem:[%s2108_s30 + $0x48] sm:$0xff] }
 0x286   : > { %1863 = vmatmul.mubr.msk.bf16.gmra.mrb[20].mxu1 %vm1352_vm3, %v1346_v63  ;;  %v1347_v25 = vpack.c.bf16 %v1328_v16, %v1327_v60  ;;  %v1299_v1 = vmul.f32 0.5, %v1267_v17 }
 0x287   : > { %v1302_v19 = vmul.f32 0.5, %v1270_v46  ;;  %v1333_v49 = vmul.f32 %v1301_v51, %v2865_v30  ;;  %v2024_v46 = vld [vmem:[%s2108_s30 + $0x70] sm:$0xff] }
 0x288   : > { %1866 = vmatprep.mubr.msk.bf16.mxu1 %vm1352_vm3, %v1347_v25  ;;  %v1331_v36 = vmul.f32 %v1299_v1, %v2871_v45  ;;  %v2026_v1 = vld [vmem:[%s2108_s30 + $0x78] sm:$0xff] }
 0x289   : > { %v2011_v61 = vpop.eup %2010  ;;  %v1334_v28 = vmul.f32 %v1302_v19, %v2878_v6  ;;  %v2930_v6 = vld [vmem:[%s3076_s6] ss:$0 sm:$0xff] }
 0x28a   : > { %v1268_v2 = vadd.f32 1.0, %v2011_v61  ;;  %v2025_v19 = vld [vmem:[%s2108_s30 + $0x60] sm:$0xff] }
 0x28b   : > { %v1350_v11 = vpack.c.bf16 %v1334_v28, %v1333_v49 }
 0x28c   : > { %v1300_v9 = vmul.f32 0.5, %v1268_v2 }
 0x28e   : > { %v1332_v23 = vmul.f32 %v1300_v9, %v2886_v5  ;;  %1867 = vmatmul.mubr.msk.bf16.gmra.mrb[24].mxu1 %vm1352_vm3, %v1348_v56  ;;  %v2013_v5 = vld [vmem:[%s2108_s30] sm:$0xff] }
 0x290   : > { %v1349_v35 = vpack.c.bf16 %v1332_v23, %v1331_v36  ;;  %v2027_v36 = vld [vmem:[%s2108_s30 + $0x68] sm:$0xff] }
 0x292   : > { %1870 = vmatprep.mubr.msk.bf16.mxu1 %vm1352_vm3, %v1349_v35 }
 0x296   : > { %1871 = vmatmul.mubr.msk.bf16.gmra.mrb[28].mxu1 %vm1352_vm3, %v1350_v11 }
 0x330   : > { %v1844_v30 = vpop.f32.mrb[0].mxu1 }
 0x331   : > { %v1568_v31 = vadd.f32 %v2012_v38, %v1844_v30  ;;  %v1439_v45 = vpop.f32.mrb[1].mxu1 }
 0x332   : > { %v1566_v29 = vadd.f32 %v2013_v5, %v1439_v45  ;;  %v1845_v42 = vpop.f32.mrb[2].mxu1 }
 0x333   : > { %v1607_v26 = vadd.f32 %v2930_v6, %v1568_v31  ;;  %v1569_v43 = vadd.f32 %v2014_v48, %v1845_v42  ;;  %v1442_v44 = vpop.f32.mrb[3].mxu1  ;;  %v2028_v31 = vld [vmem:[%s2108_s30 + $0x90] sm:$0xff] }
 0x334   : > { %v1605_v24 = vadd.f32 %v2930_v6, %v1566_v29  ;;  %v1567_v21 = vadd.f32 %v2015_v57, %v1442_v44  ;;  %v2029_v29 = vld [vmem:[%s2108_s30 + $0x80] sm:$0xff] }
 0x335   : > { %1639 = vst.msk [vmem:[%s2938_s22 + $0x10] sm:$0xff] %vm315_vm0, %v1607_v26  ;;  %v1608_v59 = vadd.f32 %v2930_v6, %v1569_v43  ;;  %v2030_v43 = vld [vmem:[%s2108_s30 + $0x98] sm:$0xff] }
 0x336   : > { %1637 = vst.msk [vmem:[%s2938_s22] sm:$0xff] %vm315_vm0, %v1605_v24  ;;  %v1606_v15 = vadd.f32 %v2930_v6, %v1567_v21  ;;  %v2031_v21 = vld [vmem:[%s2108_s30 + $0x88] sm:$0xff] }
 0x337   : > { %1640 = vst.msk [vmem:[%s2938_s22 + $0x18] sm:$0xff] %vm315_vm0, %v1608_v59 }
 0x338   : > { %1638 = vst.msk [vmem:[%s2938_s22 + $0x8] sm:$0xff] %vm315_vm0, %v1606_v15  ;;  %v1848_v62 = vpop.f32.mrb[4].mxu1 }
 0x339   : > { %v1572_v7 = vadd.f32 %v2016_v10, %v1848_v62  ;;  %v1455_v39 = vpop.f32.mrb[5].mxu1 }
 0x33a   : > { %v1570_v47 = vadd.f32 %v2017_v52, %v1455_v39  ;;  %v1849_v22 = vpop.f32.mrb[6].mxu1 }
 0x33b   : > { %v1611_v41 = vadd.f32 %v2930_v6, %v1572_v7  ;;  %v1573_v4 = vadd.f32 %v2018_v27, %v1849_v22  ;;  %v1458_v63 = vpop.f32.mrb[7].mxu1  ;;  %v2032_v7 = vld [vmem:[%s2108_s30 + $0xb0] sm:$0xff] }
 0x33c   : > { %v1609_v55 = vadd.f32 %v2930_v6, %v1570_v47  ;;  %v1571_v20 = vadd.f32 %v2019_v34, %v1458_v63  ;;  %v2033_v47 = vld [vmem:[%s2108_s30 + $0xa0] sm:$0xff] }
 0x33d   : > { %1643 = vst.msk [vmem:[%s2938_s22 + $0x30] sm:$0xff] %vm315_vm0, %v1611_v41  ;;  %v1612_v33 = vadd.f32 %v2930_v6, %v1573_v4  ;;  %v2034_v4 = vld [vmem:[%s2108_s30 + $0xb8] sm:$0xff] }
 0x33e   : > { %1641 = vst.msk [vmem:[%s2938_s22 + $0x20] sm:$0xff] %vm315_vm0, %v1609_v55  ;;  %v1610_v13 = vadd.f32 %v2930_v6, %v1571_v20  ;;  %v2035_v20 = vld [vmem:[%s2108_s30 + $0xa8] sm:$0xff] }
 0x33f   : > { %1644 = vst.msk [vmem:[%s2938_s22 + $0x38] sm:$0xff] %vm315_vm0, %v1612_v33 }
 0x340   : > { %1642 = vst.msk [vmem:[%s2938_s22 + $0x28] sm:$0xff] %vm315_vm0, %v1610_v13 }
 0x341   : > { %v1852_v8 = vpop.f32.mrb[8].mxu1 }
 0x342   : > { %v1576_v58 = vadd.f32 %v2020_v37, %v1852_v8  ;;  %v1471_v32 = vpop.f32.mrb[9].mxu1 }
 0x343   : > { %v1574_v3 = vadd.f32 %v2021_v50, %v1471_v32  ;;  %v1853_v14 = vpop.f32.mrb[10].mxu1 }
 0x344   : > { %v1615_v40 = vadd.f32 %v2930_v6, %v1576_v58  ;;  %v1577_v0 = vadd.f32 %v2022_v12, %v1853_v14  ;;  %v1474_v56 = vpop.f32.mrb[11].mxu1  ;;  %v2036_v58 = vld [vmem:[%s2108_s30 + $0xd0] sm:$0xff] }
 0x345   : > { %v1613_v54 = vadd.f32 %v2930_v6, %v1574_v3  ;;  %v1575_v53 = vadd.f32 %v2023_v18, %v1474_v56  ;;  %v2037_v3 = vld [vmem:[%s2108_s30 + $0xc0] sm:$0xff] }
 0x346   : > { %1647 = vst.msk [vmem:[%s2938_s22 + $0x50] sm:$0xff] %vm315_vm0, %v1615_v40  ;;  %v1616_v60 = vadd.f32 %v2930_v6, %v1577_v0  ;;  %v2038_v0 = vld [vmem:[%s2108_s30 + $0xd8] sm:$0xff] }
 0x347   : > { %1645 = vst.msk [vmem:[%s2938_s22 + $0x40] sm:$0xff] %vm315_vm0, %v1613_v54  ;;  %v1614_v16 = vadd.f32 %v2930_v6, %v1575_v53  ;;  %v2039_v53 = vld [vmem:[%s2108_s30 + $0xc8] sm:$0xff] }
 0x348   : > { %1648 = vst.msk [vmem:[%s2938_s22 + $0x58] sm:$0xff] %vm315_vm0, %v1616_v60 }
 0x349   : > { %1646 = vst.msk [vmem:[%s2938_s22 + $0x48] sm:$0xff] %vm315_vm0, %v1614_v16  ;;  %v1856_v51 = vpop.f32.mrb[12].mxu1 }
 0x34a   : > { %v1580_v17 = vadd.f32 %v2024_v46, %v1856_v51  ;;  %v1487_v25 = vpop.f32.mrb[13].mxu1 }
 0x34b   : > { %v1578_v61 = vadd.f32 %v2025_v19, %v1487_v25  ;;  %v1857_v49 = vpop.f32.mrb[14].mxu1 }
 0x34c   : > { %v1619_v28 = vadd.f32 %v2930_v6, %v1580_v17  ;;  %v1581_v2 = vadd.f32 %v2026_v1, %v1857_v49  ;;  %v1490_v11 = vpop.f32.mrb[15].mxu1  ;;  %v2040_v17 = vld [vmem:[%s2108_s30 + $0xf0] sm:$0xff] }
 0x34d   : > { %v1617_v9 = vadd.f32 %v2930_v6, %v1578_v61  ;;  %v1579_v23 = vadd.f32 %v2027_v36, %v1490_v11  ;;  %v2041_v61 = vld [vmem:[%s2108_s30 + $0xe0] sm:$0xff] }
 0x34e   : > { %1651 = vst.msk [vmem:[%s2938_s22 + $0x70] sm:$0xff] %vm315_vm0, %v1619_v28  ;;  %v1620_v35 = vadd.f32 %v2930_v6, %v1581_v2  ;;  %v2042_v2 = vld [vmem:[%s2108_s30 + $0xf8] sm:$0xff] }
 0x34f   : > { %1649 = vst.msk [vmem:[%s2938_s22 + $0x60] sm:$0xff] %vm315_vm0, %v1617_v9  ;;  %v1618_v30 = vadd.f32 %v2930_v6, %v1579_v23  ;;  %v2043_v23 = vld [vmem:[%s2108_s30 + $0xe8] sm:$0xff] }
 0x350   : > { %1652 = vst.msk [vmem:[%s2938_s22 + $0x78] sm:$0xff] %vm315_vm0, %v1620_v35 }
 0x351   : > { %1650 = vst.msk [vmem:[%s2938_s22 + $0x68] sm:$0xff] %vm315_vm0, %v1618_v30  ;;  %v1860_v38 = vpop.f32.mrb[16].mxu1 }
 0x352   : > { %v1584_v45 = vadd.f32 %v2028_v31, %v1860_v38  ;;  %v1503_v5 = vpop.f32.mrb[17].mxu1 }
 0x353   : > { %v1582_v42 = vadd.f32 %v2029_v29, %v1503_v5  ;;  %v1861_v26 = vpop.f32.mrb[18].mxu1 }
 0x354   : > { %v1623_v48 = vadd.f32 %v2930_v6, %v1584_v45  ;;  %v1585_v44 = vadd.f32 %v2030_v43, %v1861_v26  ;;  %v1506_v24 = vpop.f32.mrb[19].mxu1 }
 0x355   : > { %v1621_v57 = vadd.f32 %v2930_v6, %v1582_v42  ;;  %v1583_v59 = vadd.f32 %v2031_v21, %v1506_v24 }
 0x356   : > { %1655 = vst.msk [vmem:[%s2938_s22 + $0x90] sm:$0xff] %vm315_vm0, %v1623_v48  ;;  %v1624_v15 = vadd.f32 %v2930_v6, %v1585_v44 }
 0x357   : > { %1653 = vst.msk [vmem:[%s2938_s22 + $0x80] sm:$0xff] %vm315_vm0, %v1621_v57  ;;  %v1622_v62 = vadd.f32 %v2930_v6, %v1583_v59 }
 0x358   : > { %1656 = vst.msk [vmem:[%s2938_s22 + $0x98] sm:$0xff] %vm315_vm0, %v1624_v15 }
 0x359   : > { %1654 = vst.msk [vmem:[%s2938_s22 + $0x88] sm:$0xff] %vm315_vm0, %v1622_v62  ;;  %v1864_v10 = vpop.f32.mrb[20].mxu1 }
 0x35a   : > { %v1588_v39 = vadd.f32 %v2032_v7, %v1864_v10  ;;  %v1519_v52 = vpop.f32.mrb[21].mxu1 }
 0x35b   : > { %v1586_v22 = vadd.f32 %v2033_v47, %v1519_v52  ;;  %v1865_v41 = vpop.f32.mrb[22].mxu1 }
 0x35c   : > { %v1627_v27 = vadd.f32 %v2930_v6, %v1588_v39  ;;  %v1589_v63 = vadd.f32 %v2034_v4, %v1865_v41  ;;  %v1522_v55 = vpop.f32.mrb[23].mxu1 }
 0x35d   : > { %v1625_v34 = vadd.f32 %v2930_v6, %v1586_v22  ;;  %v1587_v33 = vadd.f32 %v2035_v20, %v1522_v55 }
 0x35e   : > { %1659 = vst.msk [vmem:[%s2938_s22 + $0xb0] sm:$0xff] %vm315_vm0, %v1627_v27  ;;  %v1628_v13 = vadd.f32 %v2930_v6, %v1589_v63 }
 0x35f   : > { %1657 = vst.msk [vmem:[%s2938_s22 + $0xa0] sm:$0xff] %vm315_vm0, %v1625_v34  ;;  %v1626_v8 = vadd.f32 %v2930_v6, %v1587_v33 }
 0x360   : > { %1660 = vst.msk [vmem:[%s2938_s22 + $0xb8] sm:$0xff] %vm315_vm0, %v1628_v13 }
 0x361   : > { %1658 = vst.msk [vmem:[%s2938_s22 + $0xa8] sm:$0xff] %vm315_vm0, %v1626_v8  ;;  %v1868_v37 = vpop.f32.mrb[24].mxu1 }
 0x362   : > { %v1592_v32 = vadd.f32 %v2036_v58, %v1868_v37  ;;  %v1535_v50 = vpop.f32.mrb[25].mxu1 }
 0x363   : > { %v1590_v14 = vadd.f32 %v2037_v3, %v1535_v50  ;;  %v1869_v40 = vpop.f32.mrb[26].mxu1 }
 0x364   : > { %v1631_v12 = vadd.f32 %v2930_v6, %v1592_v32  ;;  %v1593_v56 = vadd.f32 %v2038_v0, %v1869_v40  ;;  %v1538_v54 = vpop.f32.mrb[27].mxu1 }
 0x365   : > { %v1629_v18 = vadd.f32 %v2930_v6, %v1590_v14  ;;  %v1591_v60 = vadd.f32 %v2039_v53, %v1538_v54 }
 0x366   : > { %1663 = vst.msk [vmem:[%s2938_s22 + $0xd0] sm:$0xff] %vm315_vm0, %v1631_v12  ;;  %v1632_v16 = vadd.f32 %v2930_v6, %v1593_v56 }
 0x367   : > { %1661 = vst.msk [vmem:[%s2938_s22 + $0xc0] sm:$0xff] %vm315_vm0, %v1629_v18  ;;  %v1630_v51 = vadd.f32 %v2930_v6, %v1591_v60 }
 0x368   : > { %1664 = vst.msk [vmem:[%s2938_s22 + $0xd8] sm:$0xff] %vm315_vm0, %v1632_v16 }
 0x369   : > { %1662 = vst.msk [vmem:[%s2938_s22 + $0xc8] sm:$0xff] %vm315_vm0, %v1630_v51  ;;  %v1872_v46 = vpop.f32.mrb[28].mxu1 }
 0x36a   : > { %v1596_v25 = vadd.f32 %v2040_v17, %v1872_v46  ;;  %v1551_v19 = vpop.f32.mrb[29].mxu1 }
 0x36b   : > { %v1594_v49 = vadd.f32 %v2041_v61, %v1551_v19  ;;  %v1873_v28 = vpop.f32.mrb[30].mxu1 }
 0x36c   : > { %v1635_v1 = vadd.f32 %v2930_v6, %v1596_v25  ;;  %v1597_v11 = vadd.f32 %v2042_v2, %v1873_v28  ;;  %v1554_v9 = vpop.f32.mrb[31].mxu1 }
 0x36d   : > { %v1633_v36 = vadd.f32 %v2930_v6, %v1594_v49  ;;  %v1595_v35 = vadd.f32 %v2043_v23, %v1554_v9 }
 0x36e   : > { %1667 = vst.msk [vmem:[%s2938_s22 + $0xf0] sm:$0xff] %vm315_vm0, %v1635_v1  ;;  %v1636_v30 = vadd.f32 %v2930_v6, %v1597_v11 }
 0x36f   : > { %1665 = vst.msk [vmem:[%s2938_s22 + $0xe0] sm:$0xff] %vm315_vm0, %v1633_v36  ;;  %v1634_v38 = vadd.f32 %v2930_v6, %v1595_v35 }
 0x370   : > { %1668 = vst.msk [vmem:[%s2938_s22 + $0xf8] sm:$0xff] %vm315_vm0, %v1636_v30 }
 0x371   : > { %1666 = vst.msk [vmem:[%s2938_s22 + $0xe8] sm:$0xff] %vm315_vm0, %v1634_v38 }
 0x372 PF: > { %s17_s24 = sadd.s32 1, %s2050_s24  }
 0x373   : > { %p14_p4 = scmp.ge.s32.totalorder %s17_s24, 4  }
 0x375   :  { %16 = sbr.rel (!%p14_p4) target bundleno = 1 (0x1), region = 78 }

// kernel: pixel_swin_t_forward.16
= control target key start
LH: loop header
LB: loop body
LE: loop exit
PB: predicated region body
PF: predicated region fallthrough
CT: control target
= control target key end

     0   :  { %vm43_vm0 = vcmask 64512   ;;  %vm338_vm1 = vcmask 1043456   ;;  %vm599_vm2 = vcmask 130048   ;;  %s1510_s0 = inlined_call_operand.vmem [shape: f32[128,8], index: 0, kind: input, shape index: {}]   ;;  %s1511_s3 = inlined_call_operand.vmem [shape: bf16[8,16], index: 3, kind: input, shape index: {}]   ;;  %s1512_s1 = inlined_call_operand.vmem [shape: f32[1,8], index: 1, kind: input, shape index: {}]   ;;  %s1513_s2 = inlined_call_operand.vmem [shape: f32[1,8], index: 2, kind: input, shape index: {}]   ;;  %s1514_s5 = inlined_call_operand.vmem [shape: bf16[16,8], index: 5, kind: input, shape index: {}]   ;;  %s1515_s4 = inlined_call_operand.vmem [shape: f32[1,16], index: 4, kind: input, shape index: {}]   ;;  %s1516_s6 = inlined_call_operand.vmem [shape: f32[1,8], index: 6, kind: input, shape index: {}]   ;;  %s1517_s7 = inlined_call_operand.vmem [shape: f32[128,8], index: 7, kind: output, shape index: {}]  }
   0x1   :  { %v27_v0 = vld [vmem:[%s1510_s0] sm:$0xff]  ;;  %v29_v1 = vld [vmem:[%s1510_s0 + $0x10] sm:$0xff]  ;;  %v28_v2 = vld [vmem:[%s1510_s0 + $0x8] sm:$0xff] }
   0x2   :  { %v44_v3 = vsel %vm43_vm0, %v27_v0, 0.0  ;;  %v50_v4 = vsel %vm43_vm0, %v29_v1, 0.0  ;;  %v30_v5 = vld [vmem:[%s1510_s0 + $0x18] sm:$0xff]  ;;  %v47_v6 = vsel %vm43_vm0, %v28_v2, 0.0  ;;  %v31_v8 = vld [vmem:[%s1510_s0 + $0x20] sm:$0xff]  ;;  %v32_v9 = vld [vmem:[%s1510_s0 + $0x28] sm:$0xff] }
   0x3   :  { %45 = vadd.xlane.f32.xlu0 %v44_v3  ;;  %51 = vadd.xlane.f32.xlu1 %v50_v4  ;;  %v53_v7 = vsel %vm43_vm0, %v30_v5, 0.0  ;;  %v56_v10 = vsel %vm43_vm0, %v31_v8, 0.0  ;;  %v59_v11 = vsel %vm43_vm0, %v32_v9, 0.0  ;;  %v1004_v12 = vld [vmem:[%s1510_s0 + $0x30] sm:$0xff]  ;;  %v1009_v13 = vld [vmem:[%s1510_s0 + $0x38] sm:$0xff]  ;;  %v1018_v16 = vld [vmem:[%s1510_s0 + $0x40] sm:$0xff] }
   0x4   :  { %v62_v14 = vsel %vm43_vm0, %v1004_v12, 0.0  ;;  %v65_v15 = vsel %vm43_vm0, %v1009_v13, 0.0  ;;  %v1023_v17 = vld [vmem:[%s1510_s0 + $0x48] sm:$0xff]  ;;  %v68_v18 = vsel %vm43_vm0, %v1018_v16, 0.0  ;;  %v1032_v20 = vld [vmem:[%s1510_s0 + $0x50] sm:$0xff]  ;;  %v1037_v21 = vld [vmem:[%s1510_s0 + $0x58] sm:$0xff] }
   0x5   :  { %v71_v19 = vsel %vm43_vm0, %v1023_v17, 0.0  ;;  %v74_v22 = vsel %vm43_vm0, %v1032_v20, 0.0  ;;  %v77_v23 = vsel %vm43_vm0, %v1037_v21, 0.0  ;;  %v1046_v24 = vld [vmem:[%s1510_s0 + $0x60] sm:$0xff]  ;;  %v1051_v25 = vld [vmem:[%s1510_s0 + $0x68] sm:$0xff]  ;;  %v1060_v28 = vld [vmem:[%s1510_s0 + $0x70] sm:$0xff] }
   0x6   :  { %v80_v26 = vsel %vm43_vm0, %v1046_v24, 0.0  ;;  %v83_v27 = vsel %vm43_vm0, %v1051_v25, 0.0  ;;  %v1065_v29 = vld [vmem:[%s1510_s0 + $0x78] sm:$0xff]  ;;  %v86_v30 = vsel %vm43_vm0, %v1060_v28, 0.0 }
   0x7   :  { %48 = vadd.xlane.f32.xlu0 %v47_v6  ;;  %54 = vadd.xlane.f32.xlu1 %v53_v7  ;;  %v89_v31 = vsel %vm43_vm0, %v1065_v29, 0.0 }
   0xb   :  { %57 = vadd.xlane.f32.xlu0 %v56_v10  ;;  %60 = vadd.xlane.f32.xlu1 %v59_v11 }
   0xf   :  { %63 = vadd.xlane.f32.xlu0 %v62_v14  ;;  %66 = vadd.xlane.f32.xlu1 %v65_v15 }
  0x13   :  { %69 = vadd.xlane.f32.xlu0 %v68_v18  ;;  %72 = vadd.xlane.f32.xlu1 %v71_v19 }
  0x17   :  { %75 = vadd.xlane.f32.xlu0 %v74_v22  ;;  %78 = vadd.xlane.f32.xlu1 %v77_v23 }
  0x1b   :  { %81 = vadd.xlane.f32.xlu0 %v80_v26  ;;  %84 = vadd.xlane.f32.xlu1 %v83_v27 }
  0x1f   :  { %87 = vadd.xlane.f32.xlu0 %v86_v30  ;;  %90 = vadd.xlane.f32.xlu1 %v89_v31 }
  0x90   :  { %v46_v32 = vpop.xlane.xlu0 %45  ;;  %v52_v33 = vpop.xlane.xlu1 %51 }
  0x91   :  { %v92_v34 = vmul.f32 0.125, %v46_v32  ;;  %v94_v35 = vmul.f32 0.125, %v52_v33 }
  0x93   :  { %v1071_v36 = vsub.f32 %v27_v0, %v92_v34  ;;  %v1073_v37 = vsub.f32 %v29_v1, %v94_v35 }
  0x94   :  { %v49_v38 = vpop.xlane.xlu0 %48  ;;  %v55_v39 = vpop.xlane.xlu1 %54 }
  0x95   :  { %v93_v40 = vmul.f32 0.125, %v49_v38  ;;  %v95_v41 = vmul.f32 0.125, %v55_v39  ;;  %v124_v42 = vmul.f32 %v1071_v36, %v1071_v36  ;;  %v126_v43 = vmul.f32 %v1073_v37, %v1073_v37 }
  0x97   :  { %v1079_v44 = vsub.f32 %v28_v2, %v93_v40  ;;  %v1081_v45 = vsub.f32 %v30_v5, %v95_v41  ;;  %v140_v46 = vsel %vm43_vm0, %v124_v42, 0.0  ;;  %v146_v49 = vsel %vm43_vm0, %v126_v43, 0.0 }
  0x98   :  { %141 = vadd.xlane.f32.xlu0 %v140_v46  ;;  %v58_v47 = vpop.xlane.xlu0 %57  ;;  %v61_v48 = vpop.xlane.xlu1 %60 }
  0x99   :  { %v96_v50 = vmul.f32 0.125, %v58_v47  ;;  %v97_v51 = vmul.f32 0.125, %v61_v48  ;;  %v125_v52 = vmul.f32 %v1079_v44, %v1079_v44  ;;  %v127_v53 = vmul.f32 %v1081_v45, %v1081_v45 }
  0x9b   :  { %v1089_v54 = vsub.f32 %v31_v8, %v96_v50  ;;  %v1091_v55 = vsub.f32 %v32_v9, %v97_v51  ;;  %v143_v56 = vsel %vm43_vm0, %v125_v52, 0.0  ;;  %v149_v59 = vsel %vm43_vm0, %v127_v53, 0.0 }
  0x9c   :  { %147 = vadd.xlane.f32.xlu0 %v146_v49  ;;  %144 = vadd.xlane.f32.xlu1 %v143_v56  ;;  %v64_v57 = vpop.xlane.xlu0 %63  ;;  %v67_v58 = vpop.xlane.xlu1 %66 }
  0x9d   :  { %v98_v60 = vmul.f32 0.125, %v64_v57  ;;  %v99_v61 = vmul.f32 0.125, %v67_v58  ;;  %v128_v62 = vmul.f32 %v1089_v54, %v1089_v54  ;;  %v129_v63 = vmul.f32 %v1091_v55, %v1091_v55 }
  0x9f   :  { %v1100_v0 = vsub.f32 %v1004_v12, %v98_v60  ;;  %v1103_v1 = vsub.f32 %v1009_v13, %v99_v61  ;;  %v152_v2 = vsel %vm43_vm0, %v128_v62, 0.0  ;;  %v155_v5 = vsel %vm43_vm0, %v129_v63, 0.0 }
  0xa0   :  { %150 = vadd.xlane.f32.xlu1 %v149_v59  ;;  %153 = vadd.xlane.f32.xlu0 %v152_v2  ;;  %v70_v3 = vpop.xlane.xlu0 %69  ;;  %v73_v4 = vpop.xlane.xlu1 %72 }
  0xa1   :  { %v100_v6 = vmul.f32 0.125, %v70_v3  ;;  %v101_v7 = vmul.f32 0.125, %v73_v4  ;;  %v130_v8 = vmul.f32 %v1100_v0, %v1100_v0  ;;  %v131_v9 = vmul.f32 %v1103_v1, %v1103_v1 }
  0xa3   :  { %v1112_v10 = vsub.f32 %v1018_v16, %v100_v6  ;;  %v1115_v11 = vsub.f32 %v1023_v17, %v101_v7  ;;  %v158_v12 = vsel %vm43_vm0, %v130_v8, 0.0  ;;  %v161_v15 = vsel %vm43_vm0, %v131_v9, 0.0 }
  0xa4   :  { %156 = vadd.xlane.f32.xlu1 %v155_v5  ;;  %159 = vadd.xlane.f32.xlu0 %v158_v12  ;;  %v76_v13 = vpop.xlane.xlu0 %75  ;;  %v79_v14 = vpop.xlane.xlu1 %78 }
  0xa5   :  { %v102_v18 = vmul.f32 0.125, %v76_v13  ;;  %v103_v19 = vmul.f32 0.125, %v79_v14  ;;  %v132_v22 = vmul.f32 %v1112_v10, %v1112_v10  ;;  %v133_v16 = vmul.f32 %v1115_v11, %v1115_v11 }
  0xa7   :  { %v1124_v23 = vsub.f32 %v1032_v20, %v102_v18  ;;  %v1127_v17 = vsub.f32 %v1037_v21, %v103_v19  ;;  %v164_v26 = vsel %vm43_vm0, %v132_v22, 0.0  ;;  %v167_v31 = vsel %vm43_vm0, %v133_v16, 0.0 }
  0xa8   :  { %162 = vadd.xlane.f32.xlu1 %v161_v15  ;;  %165 = vadd.xlane.f32.xlu0 %v164_v26  ;;  %v82_v27 = vpop.xlane.xlu0 %81  ;;  %v85_v30 = vpop.xlane.xlu1 %84 }
  0xa9   :  { %v104_v32 = vmul.f32 0.125, %v82_v27  ;;  %v105_v33 = vmul.f32 0.125, %v85_v30  ;;  %v134_v34 = vmul.f32 %v1124_v23, %v1124_v23  ;;  %v135_v20 = vmul.f32 %v1127_v17, %v1127_v17 }
  0xab   :  { %v1136_v35 = vsub.f32 %v1046_v24, %v104_v32  ;;  %v1139_v21 = vsub.f32 %v1051_v25, %v105_v33  ;;  %v170_v38 = vsel %vm43_vm0, %v134_v34, 0.0  ;;  %v173_v41 = vsel %vm43_vm0, %v135_v20, 0.0 }
  0xac   :  { %168 = vadd.xlane.f32.xlu1 %v167_v31  ;;  %171 = vadd.xlane.f32.xlu0 %v170_v38  ;;  %v88_v39 = vpop.xlane.xlu0 %87  ;;  %v91_v40 = vpop.xlane.xlu1 %90  ;;  %v1168_v31 = vld [vmem:[%s1512_s1] ss:$0 sm:$0xff] }
  0xad   :  { %v106_v42 = vmul.f32 0.125, %v88_v39  ;;  %v107_v43 = vmul.f32 0.125, %v91_v40  ;;  %v136_v46 = vmul.f32 %v1136_v35, %v1136_v35  ;;  %v137_v24 = vmul.f32 %v1139_v21, %v1139_v21 }
  0xaf   :  { %v1148_v47 = vsub.f32 %v1060_v28, %v106_v42  ;;  %v1151_v25 = vsub.f32 %v1065_v29, %v107_v43  ;;  %v176_v48 = vsel %vm43_vm0, %v136_v46, 0.0  ;;  %v179_v49 = vsel %vm43_vm0, %v137_v24, 0.0  ;;  %v306_v29 = vld [vmem:[%s1511_s3] sm:$0xf] }
  0xb0   :  { %174 = vadd.xlane.f32.xlu1 %v173_v41  ;;  %177 = vadd.xlane.f32.xlu0 %v176_v48  ;;  %v340_v53 = vsel %vm338_vm1, %v306_v29, 0  ;;  %v1176_v46 = vld [vmem:[%s1513_s2] ss:$0 sm:$0xff] }
  0xb1   :  { %v138_v50 = vmul.f32 %v1148_v47, %v1148_v47  ;;  %v139_v51 = vmul.f32 %v1151_v25, %v1151_v25  ;;  %855 = vmatprep.subr.msk.bf16.mxu0 %vm338_vm1, %v306_v29 }
  0xb2   :  { %820 = vmatpush3.bf16.msra.mxu0 %v340_v53 }
  0xb3   :  { %v182_v52 = vsel %vm43_vm0, %v138_v50, 0.0  ;;  %v185_v28 = vsel %vm43_vm0, %v139_v51, 0.0 }
  0xb4   :  { %180 = vadd.xlane.f32.xlu1 %v179_v49  ;;  %183 = vadd.xlane.f32.xlu0 %v182_v52 }
  0xb8   :  { %186 = vadd.xlane.f32.xlu1 %v185_v28 }
 0x125   :  { %v142_v56 = vpop.xlane.xlu0 %141 }
 0x126   :  { %v188_v57 = vmul.f32 0.125, %v142_v56 }
 0x128   :  { %v204_v58 = vadd.f32 1e-05, %v188_v57 }
 0x129   :  { %v145_v59 = vpop.xlane.xlu1 %144  ;;  %v148_v60 = vpop.xlane.xlu0 %147 }
 0x12a   :  { %857 = vrsqrt.f32 %v204_v58  ;;  %v189_v61 = vmul.f32 0.125, %v145_v59  ;;  %v190_v62 = vmul.f32 0.125, %v148_v60 }
 0x12c   :  { %v205_v63 = vadd.f32 1e-05, %v189_v61  ;;  %v206_v2 = vadd.f32 1e-05, %v190_v62 }
 0x12d   :  { %v151_v3 = vpop.xlane.xlu1 %150  ;;  %v154_v4 = vpop.xlane.xlu0 %153 }
 0x12e   :  { %859 = vrsqrt.f32 %v205_v63  ;;  %v191_v5 = vmul.f32 0.125, %v151_v3  ;;  %v192_v6 = vmul.f32 0.125, %v154_v4 }
 0x12f   :  { %861 = vrsqrt.f32 %v206_v2 }
 0x130   :  { %v207_v7 = vadd.f32 1e-05, %v191_v5  ;;  %v208_v8 = vadd.f32 1e-05, %v192_v6 }
 0x131   :  { %v157_v9 = vpop.xlane.xlu1 %156  ;;  %v160_v12 = vpop.xlane.xlu0 %159 }
 0x132   :  { %863 = vrsqrt.f32 %v207_v7  ;;  %v193_v13 = vmul.f32 0.125, %v157_v9  ;;  %v194_v14 = vmul.f32 0.125, %v160_v12 }
 0x133   :  { %865 = vrsqrt.f32 %v208_v8 }
 0x134   :  { %v858_v15 = vpop.eup %857  ;;  %v209_v18 = vadd.f32 1e-05, %v193_v13  ;;  %v210_v19 = vadd.f32 1e-05, %v194_v14 }
 0x135   :  { %v163_v22 = vpop.xlane.xlu1 %162  ;;  %v166_v16 = vpop.xlane.xlu0 %165  ;;  %v236_v26 = vmul.f32 %v858_v15, %v1071_v36 }
 0x136   :  { %867 = vrsqrt.f32 %v209_v18  ;;  %v195_v27 = vmul.f32 0.125, %v163_v22  ;;  %v196_v30 = vmul.f32 0.125, %v166_v16 }
 0x137   :  { %869 = vrsqrt.f32 %v210_v19  ;;  %v259_v41 = vmul.f32 %v1168_v31, %v236_v26 }
 0x138   :  { %v860_v32 = vpop.eup %859  ;;  %v211_v33 = vadd.f32 1e-05, %v195_v27  ;;  %v212_v34 = vadd.f32 1e-05, %v196_v30 }
 0x139   :  { %v862_v20 = vpop.eup %861  ;;  %v169_v38 = vpop.xlane.xlu1 %168  ;;  %v237_v40 = vmul.f32 %v860_v32, %v1079_v44 }
 0x13a   :  { %v172_v39 = vpop.xlane.xlu0 %171  ;;  %v238_v36 = vmul.f32 %v862_v20, %v1073_v37  ;;  %871 = vrsqrt.f32 %v211_v33  ;;  %v197_v42 = vmul.f32 0.125, %v169_v38  ;;  %v282_v37 = vadd.f32 %v1176_v46, %v259_v41 }
 0x13b   :  { %v198_v43 = vmul.f32 0.125, %v172_v39  ;;  %873 = vrsqrt.f32 %v212_v34  ;;  %v260_v24 = vmul.f32 %v1168_v31, %v237_v40 }
 0x13c   :  { %v864_v48 = vpop.eup %863  ;;  %v213_v49 = vadd.f32 1e-05, %v197_v42  ;;  %v261_v53 = vmul.f32 %v1168_v31, %v238_v36 }
 0x13d   :  { %v214_v50 = vadd.f32 1e-05, %v198_v43  ;;  %v866_v51 = vpop.eup %865  ;;  %v239_v44 = vmul.f32 %v864_v48, %v1081_v45  ;;  %v175_v52 = vpop.xlane.xlu1 %174  ;;  %v283_v29 = vadd.f32 %v1176_v46, %v260_v24 }
 0x13e   :  { %v178_v28 = vpop.xlane.xlu0 %177  ;;  %v240_v56 = vmul.f32 %v866_v51, %v1089_v54  ;;  %875 = vrsqrt.f32 %v213_v49  ;;  %v199_v57 = vmul.f32 0.125, %v175_v52  ;;  %v284_v5 = vadd.f32 %v1176_v46, %v261_v53 }
 0x13f   :  { %v200_v58 = vmul.f32 0.125, %v178_v28  ;;  %877 = vrsqrt.f32 %v214_v50  ;;  %v298_v59 = vpack.c.bf16 %v283_v29, %v282_v37  ;;  %v262_v60 = vmul.f32 %v1168_v31, %v239_v44 }
 0x140   :  { %v868_v61 = vpop.eup %867  ;;  %v215_v62 = vadd.f32 1e-05, %v199_v57  ;;  %v263_v6 = vmul.f32 %v1168_v31, %v240_v56 }
 0x141   :  { %v216_v45 = vadd.f32 1e-05, %v200_v58  ;;  %v870_v63 = vpop.eup %869  ;;  %v241_v2 = vmul.f32 %v868_v61, %v1091_v55  ;;  %v181_v3 = vpop.xlane.xlu1 %180  ;;  %821 = vmatprep.mubr.msk.bf16.mxu0 %vm43_vm0, %v298_v59  ;;  %v285_v54 = vadd.f32 %v1176_v46, %v262_v60 }
 0x142   :  { %v184_v4 = vpop.xlane.xlu0 %183  ;;  %v242_v7 = vmul.f32 %v870_v63, %v1100_v0  ;;  %879 = vrsqrt.f32 %v215_v62  ;;  %v201_v8 = vmul.f32 0.125, %v181_v3  ;;  %v286_v16 = vadd.f32 %v1176_v46, %v263_v6  ;;  %v1236_v3 = vld [vmem:[%s1515_s4] ss:$0 sm:$0xff] }
 0x143   :  { %v202_v9 = vmul.f32 0.125, %v184_v4  ;;  %881 = vrsqrt.f32 %v216_v45  ;;  %v299_v12 = vpack.c.bf16 %v285_v54, %v284_v5  ;;  %v264_v13 = vmul.f32 %v1168_v31, %v241_v2 }
 0x144   :  { %v872_v55 = vpop.eup %871  ;;  %v217_v14 = vadd.f32 1e-05, %v201_v8  ;;  %v265_v26 = vmul.f32 %v1168_v31, %v242_v7 }
 0x145   :  { %v218_v15 = vadd.f32 1e-05, %v202_v9  ;;  %v874_v18 = vpop.eup %873  ;;  %v243_v19 = vmul.f32 %v872_v55, %v1103_v1  ;;  %v187_v22 = vpop.xlane.xlu1 %186  ;;  %822 = vmatmul.mubr.msk.bf16.vlgmr.msra.gmra.mrb[0].mxu0 %vm43_vm0, %v299_v12  ;;  %v287_v0 = vadd.f32 %v1176_v46, %v264_v13 }
 0x146   :  { %v244_v27 = vmul.f32 %v874_v18, %v1112_v10  ;;  %883 = vrsqrt.f32 %v217_v14  ;;  %v203_v30 = vmul.f32 0.125, %v187_v22  ;;  %v288_v39 = vadd.f32 %v1176_v46, %v265_v26 }
 0x147   :  { %885 = vrsqrt.f32 %v218_v15  ;;  %v300_v32 = vpack.c.bf16 %v287_v0, %v286_v16  ;;  %v266_v33 = vmul.f32 %v1168_v31, %v243_v19 }
 0x148   :  { %v876_v34 = vpop.eup %875  ;;  %v219_v20 = vadd.f32 1e-05, %v203_v30  ;;  %v267_v41 = vmul.f32 %v1168_v31, %v244_v27 }
 0x149   :  { %v878_v1 = vpop.eup %877  ;;  %v245_v38 = vmul.f32 %v876_v34, %v1115_v11  ;;  %825 = vmatprep.mubr.msk.bf16.mxu0 %vm43_vm0, %v300_v32  ;;  %v289_v40 = vadd.f32 %v1176_v46, %v266_v33 }
 0x14a   :  { %v246_v10 = vmul.f32 %v878_v1, %v1124_v23  ;;  %887 = vrsqrt.f32 %v219_v20  ;;  %v290_v11 = vadd.f32 %v1176_v46, %v267_v41 }
 0x14b   :  { %v301_v36 = vpack.c.bf16 %v289_v40, %v288_v39  ;;  %v268_v42 = vmul.f32 %v1168_v31, %v245_v38 }
 0x14c   :  { %v880_v43 = vpop.eup %879  ;;  %v269_v50 = vmul.f32 %v1168_v31, %v246_v10 }
 0x14d   :  { %v882_v24 = vpop.eup %881  ;;  %v247_v48 = vmul.f32 %v880_v43, %v1127_v17  ;;  %826 = vmatmul.mubr.msk.bf16.gmra.mrb[4].mxu0 %vm43_vm0, %v301_v36  ;;  %v291_v49 = vadd.f32 %v1176_v46, %v268_v42 }
 0x14e   :  { %v248_v51 = vmul.f32 %v882_v24, %v1136_v35  ;;  %v292_v17 = vadd.f32 %v1176_v46, %v269_v50 }
 0x14f   :  { %v302_v44 = vpack.c.bf16 %v291_v49, %v290_v11  ;;  %v270_v23 = vmul.f32 %v1168_v31, %v247_v48 }
 0x150   :  { %v884_v52 = vpop.eup %883  ;;  %v271_v53 = vmul.f32 %v1168_v31, %v248_v51 }
 0x151   :  { %v886_v28 = vpop.eup %885  ;;  %v249_v37 = vmul.f32 %v884_v52, %v1139_v21  ;;  %829 = vmatprep.mubr.msk.bf16.mxu0 %vm43_vm0, %v302_v44  ;;  %v293_v29 = vadd.f32 %v1176_v46, %v270_v23 }
 0x152   :  { %v250_v56 = vmul.f32 %v886_v28, %v1148_v47  ;;  %v294_v21 = vadd.f32 %v1176_v46, %v271_v53 }
 0x153   :  { %v303_v57 = vpack.c.bf16 %v293_v29, %v292_v17  ;;  %v272_v35 = vmul.f32 %v1168_v31, %v249_v37 }
 0x154   :  { %v888_v58 = vpop.eup %887  ;;  %v273_v61 = vmul.f32 %v1168_v31, %v250_v56 }
 0x155   :  { %v251_v59 = vmul.f32 %v888_v58, %v1151_v25  ;;  %830 = vmatmul.mubr.msk.bf16.gmra.mrb[8].mxu0 %vm43_vm0, %v303_v57  ;;  %v295_v60 = vadd.f32 %v1176_v46, %v272_v35  ;;  %v856_v25 = vld [vmem:[%s1514_s5] sm:$0xff]  }
 0x156   :  { %v296_v47 = vadd.f32 %v1176_v46, %v273_v61  ;;  %837 = vmatprep.subr.bf16.mxu1 %v856_v25 }
 0x157   :  { %v304_v62 = vpack.c.bf16 %v295_v60, %v294_v21  ;;  %v274_v45 = vmul.f32 %v1168_v31, %v251_v59  ;;  %838 = vmatpush3.bf16.msra.mxu1 %v856_v25 }
 0x159   :  { %833 = vmatprep.mubr.msk.bf16.mxu0 %vm43_vm0, %v304_v62  ;;  %v297_v63 = vadd.f32 %v1176_v46, %v274_v45 }
 0x15b   :  { %v305_v2 = vpack.c.bf16 %v297_v63, %v296_v47 }
 0x15d   :  { %834 = vmatmul.mubr.msk.bf16.gmra.mrb[12].mxu0 %vm43_vm0, %v305_v2 }
 0x218   :  { %v823_v31 = vpop.f32.mrb[0].mxu0 }
 0x219   :  { %v1239_v4 = vadd.f32 %v823_v31, %v1236_v3  ;;  %v376_v5 = vpop.f32.mrb[1].mxu0 }
 0x21a   :  { %v1242_v46 = vadd.f32 %v1236_v3, %v376_v5  ;;  %v824_v54 = vpop.f32.mrb[2].mxu0 }
 0x21b   :  { %v441_v6 = vmul.f32 %v1239_v4, %v1239_v4  ;;  %v1247_v7 = vadd.f32 %v824_v54, %v1236_v3  ;;  %v379_v8 = vpop.f32.mrb[3].mxu0 }
 0x21c   :  { %v439_v9 = vmul.f32 %v1242_v46, %v1242_v46  ;;  %v1252_v12 = vadd.f32 %v1236_v3, %v379_v8 }
 0x21d   :  { %v457_v13 = vmul.f32 %v441_v6, %v1239_v4  ;;  %v442_v55 = vmul.f32 %v1247_v7, %v1247_v7 }
 0x21e   :  { %v455_v14 = vmul.f32 %v439_v9, %v1242_v46  ;;  %v440_v15 = vmul.f32 %v1252_v12, %v1252_v12 }
 0x21f   :  { %v473_v18 = vmul.f32 0.044715, %v457_v13  ;;  %v458_v19 = vmul.f32 %v442_v55, %v1247_v7 }
 0x220   :  { %v471_v22 = vmul.f32 0.044715, %v455_v14  ;;  %v456_v16 = vmul.f32 %v440_v15, %v1252_v12  ;;  %v827_v0 = vpop.f32.mrb[4].mxu0 }
 0x221   :  { %v489_v26 = vadd.f32 %v473_v18, %v1239_v4  ;;  %v474_v27 = vmul.f32 0.044715, %v458_v19  ;;  %v1264_v30 = vadd.f32 %v827_v0, %v1236_v3  ;;  %v392_v32 = vpop.f32.mrb[5].mxu0 }
 0x222   :  { %v487_v33 = vadd.f32 %v471_v22, %v1242_v46  ;;  %v472_v34 = vmul.f32 0.044715, %v456_v16  ;;  %v1268_v20 = vadd.f32 %v1236_v3, %v392_v32  ;;  %v828_v1 = vpop.f32.mrb[6].mxu0 }
 0x223   :  { %v505_v38 = vmul.f32 0.7978846, %v489_v26  ;;  %v490_v39 = vadd.f32 %v474_v27, %v1247_v7  ;;  %v445_v40 = vmul.f32 %v1264_v30, %v1264_v30  ;;  %v1274_v41 = vadd.f32 %v828_v1, %v1236_v3  ;;  %v395_v10 = vpop.f32.mrb[7].mxu0 }
 0x224   :  { %v503_v36 = vmul.f32 0.7978846, %v487_v33  ;;  %v488_v42 = vadd.f32 %v472_v34, %v1252_v12  ;;  %v443_v43 = vmul.f32 %v1268_v20, %v1268_v20  ;;  %v1280_v24 = vadd.f32 %v1236_v3, %v395_v10 }
 0x225   :  { %889 = vtanh.f32 %v505_v38  ;;  %v506_v48 = vmul.f32 0.7978846, %v490_v39  ;;  %v461_v11 = vmul.f32 %v445_v40, %v1264_v30  ;;  %v446_v49 = vmul.f32 %v1274_v41, %v1274_v41 }
 0x226   :  { %v504_v50 = vmul.f32 0.7978846, %v488_v42  ;;  %v459_v51 = vmul.f32 %v443_v43, %v1268_v20  ;;  %v444_v44 = vmul.f32 %v1280_v24, %v1280_v24  ;;  %891 = vtanh.f32 %v503_v36 }
 0x227   :  { %893 = vtanh.f32 %v506_v48  ;;  %v477_v23 = vmul.f32 0.044715, %v461_v11  ;;  %v462_v52 = vmul.f32 %v446_v49, %v1274_v41 }
 0x228   :  { %v475_v28 = vmul.f32 0.044715, %v459_v51  ;;  %v460_v37 = vmul.f32 %v444_v44, %v1280_v24  ;;  %v831_v17 = vpop.f32.mrb[8].mxu0  ;;  %895 = vtanh.f32 %v504_v50 }
 0x229   :  { %v493_v29 = vadd.f32 %v477_v23, %v1264_v30  ;;  %v478_v53 = vmul.f32 0.044715, %v462_v52  ;;  %v1292_v56 = vadd.f32 %v831_v17, %v1236_v3  ;;  %v408_v57 = vpop.f32.mrb[9].mxu0 }
 0x22a   :  { %v491_v35 = vadd.f32 %v475_v28, %v1268_v20  ;;  %v476_v58 = vmul.f32 0.044715, %v460_v37  ;;  %v1296_v59 = vadd.f32 %v1236_v3, %v408_v57  ;;  %v832_v21 = vpop.f32.mrb[10].mxu0 }
 0x22b   :  { %v509_v60 = vmul.f32 0.7978846, %v493_v29  ;;  %v494_v61 = vadd.f32 %v478_v53, %v1274_v41  ;;  %v449_v62 = vmul.f32 %v1292_v56, %v1292_v56  ;;  %v1302_v45 = vadd.f32 %v832_v21, %v1236_v3  ;;  %v411_v47 = vpop.f32.mrb[11].mxu0 }
 0x22c   :  { %v507_v63 = vmul.f32 0.7978846, %v491_v35  ;;  %v492_v2 = vadd.f32 %v476_v58, %v1280_v24  ;;  %v447_v25 = vmul.f32 %v1296_v59, %v1296_v59  ;;  %v1308_v31 = vadd.f32 %v1236_v3, %v411_v47 }
 0x22d   :  { %897 = vtanh.f32 %v509_v60  ;;  %v510_v5 = vmul.f32 0.7978846, %v494_v61  ;;  %v465_v54 = vmul.f32 %v449_v62, %v1292_v56  ;;  %v450_v6 = vmul.f32 %v1302_v45, %v1302_v45 }
 0x22e   :  { %899 = vtanh.f32 %v507_v63  ;;  %v508_v8 = vmul.f32 0.7978846, %v492_v2  ;;  %v463_v9 = vmul.f32 %v447_v25, %v1296_v59  ;;  %v448_v13 = vmul.f32 %v1308_v31, %v1308_v31 }
 0x22f   :  { %v890_v55 = vpop.eup %889  ;;  %901 = vtanh.f32 %v510_v5  ;;  %v481_v14 = vmul.f32 0.044715, %v465_v54  ;;  %v466_v15 = vmul.f32 %v450_v6, %v1302_v45 }
 0x230   :  { %v892_v18 = vpop.eup %891  ;;  %v537_v19 = vadd.f32 1.0, %v890_v55  ;;  %903 = vtanh.f32 %v508_v8  ;;  %v479_v22 = vmul.f32 0.044715, %v463_v9  ;;  %v464_v16 = vmul.f32 %v448_v13, %v1308_v31  ;;  %v835_v0 = vpop.f32.mrb[12].mxu0 }
 0x231   :  { %v894_v26 = vpop.eup %893  ;;  %v497_v27 = vadd.f32 %v481_v14, %v1292_v56  ;;  %v482_v32 = vmul.f32 0.044715, %v466_v15  ;;  %v1320_v33 = vadd.f32 %v835_v0, %v1236_v3  ;;  %v424_v34 = vpop.f32.mrb[13].mxu0  ;;  %v535_v23 = vadd.f32 1.0, %v892_v18 }
 0x232   :  { %v553_v1 = vmul.f32 0.5, %v537_v19  ;;  %v538_v38 = vadd.f32 1.0, %v894_v26  ;;  %v495_v39 = vadd.f32 %v479_v22, %v1296_v59  ;;  %v480_v40 = vmul.f32 0.044715, %v464_v16  ;;  %v836_v10 = vpop.f32.mrb[14].mxu0  ;;  %v896_v49 = vpop.eup %895 }
 0x233   :  { %v513_v36 = vmul.f32 0.7978846, %v497_v27  ;;  %v498_v42 = vadd.f32 %v482_v32, %v1302_v45  ;;  %v453_v43 = vmul.f32 %v1320_v33, %v1320_v33  ;;  %v1327_v48 = vadd.f32 %v1236_v3, %v424_v34  ;;  %v427_v11 = vpop.f32.mrb[15].mxu0 }
 0x234   :  { %v554_v50 = vmul.f32 0.5, %v538_v38  ;;  %v511_v51 = vmul.f32 0.7978846, %v495_v39  ;;  %v496_v44 = vadd.f32 %v480_v40, %v1308_v31  ;;  %v1334_v17 = vmul.f32 %v553_v1, %v1239_v4 }
 0x235   :  { %905 = vtanh.f32 %v513_v36  ;;  %v514_v52 = vmul.f32 0.7978846, %v498_v42  ;;  %v469_v28 = vmul.f32 %v453_v43, %v1320_v33  ;;  %v451_v37 = vmul.f32 %v1327_v48, %v1327_v48 }
 0x236   :  { %907 = vtanh.f32 %v511_v51  ;;  %v512_v29 = vmul.f32 0.7978846, %v496_v44  ;;  %v1337_v53 = vadd.f32 %v836_v10, %v1236_v3  ;;  %v1341_v21 = vadd.f32 %v1236_v3, %v427_v11 }
 0x237   :  { %v898_v57 = vpop.eup %897  ;;  %909 = vtanh.f32 %v514_v52  ;;  %v485_v35 = vmul.f32 0.044715, %v469_v28  ;;  %v467_v58 = vmul.f32 %v451_v37, %v1327_v48  ;;  %v570_v61 = vmul.f32 %v554_v50, %v1247_v7 }
 0x238   :  { %v900_v60 = vpop.eup %899  ;;  %v541_v62 = vadd.f32 1.0, %v898_v57  ;;  %911 = vtanh.f32 %v512_v29  ;;  %v454_v4 = vmul.f32 %v1337_v53, %v1337_v53  ;;  %v452_v5 = vmul.f32 %v1341_v21, %v1341_v21 }
 0x239   :  { %v902_v47 = vpop.eup %901  ;;  %v539_v63 = vadd.f32 1.0, %v900_v60  ;;  %v501_v2 = vadd.f32 %v485_v35, %v1320_v33  ;;  %v483_v25 = vmul.f32 0.044715, %v467_v58  ;;  %v536_v9 = vadd.f32 1.0, %v896_v49 }
 0x23a   :  { %v904_v54 = vpop.eup %903  ;;  %v557_v6 = vmul.f32 0.5, %v541_v62  ;;  %v542_v3 = vadd.f32 1.0, %v902_v47  ;;  %v470_v8 = vmul.f32 %v454_v4, %v1337_v53  ;;  %v468_v19 = vmul.f32 %v452_v5, %v1341_v21 }
 0x23b   :  { %v555_v7 = vmul.f32 0.5, %v539_v63  ;;  %v540_v13 = vadd.f32 1.0, %v904_v54  ;;  %v517_v55 = vmul.f32 0.7978846, %v501_v2  ;;  %v499_v14 = vadd.f32 %v483_v25, %v1327_v48 }
 0x23c   :  { %v558_v15 = vmul.f32 0.5, %v542_v3  ;;  %v486_v18 = vmul.f32 0.044715, %v470_v8  ;;  %v551_v22 = vmul.f32 0.5, %v535_v23  ;;  %v573_v16 = vmul.f32 %v557_v6, %v1264_v30 }
 0x23d   :  { %v556_v0 = vmul.f32 0.5, %v540_v13  ;;  %913 = vtanh.f32 %v517_v55  ;;  %v515_v26 = vmul.f32 0.7978846, %v499_v14  ;;  %v484_v34 = vmul.f32 0.044715, %v468_v19  ;;  %v922_v14 = vld [vmem:[%s1510_s0] sm:$0xff] }
 0x23e   :  { %v574_v27 = vmul.f32 %v558_v15, %v1274_v41  ;;  %v502_v32 = vadd.f32 %v486_v18, %v1337_v53  ;;  %v552_v1 = vmul.f32 0.5, %v536_v9  ;;  %v571_v39 = vmul.f32 %v555_v7, %v1268_v20 }
 0x23f   :  { %v906_v38 = vpop.eup %905  ;;  %v572_v40 = vmul.f32 %v556_v0, %v1280_v24  ;;  %915 = vtanh.f32 %v515_v26  ;;  %v584_v10 = vpack.c.bf16 %v570_v61, %v1334_v17  ;;  %v500_v43 = vadd.f32 %v484_v34, %v1341_v21 }
 0x240   :  { %v908_v36 = vpop.eup %907  ;;  %v545_v42 = vadd.f32 1.0, %v906_v38  ;;  %v518_v30 = vmul.f32 0.7978846, %v502_v32  ;;  %v568_v11 = vmul.f32 %v552_v1, %v1252_v12  ;;  %v567_v50 = vmul.f32 %v551_v22, %v1242_v46  ;;  %v923_v22 = vld [vmem:[%s1510_s0 + $0x18] sm:$0xff] }
 0x241   :  { %v910_v41 = vpop.eup %909  ;;  %v543_v49 = vadd.f32 1.0, %v908_v36  ;;  %v585_v51 = vpack.c.bf16 %v572_v40, %v571_v39  ;;  %v586_v44 = vpack.c.bf16 %v574_v27, %v573_v16  ;;  %v516_v24 = vmul.f32 0.7978846, %v500_v43  ;;  %v924_v27 = vld [vmem:[%s1510_s0 + $0x8] sm:$0xff]  ;;  %v925_v39 = vld [vmem:[%s1510_s0 + $0x30] sm:$0xff]  ;;  %v926_v36 = vld [vmem:[%s1510_s0 + $0x20] sm:$0xff] }
 0x242   :  { %v912_v23 = vpop.eup %911  ;;  %v561_v20 = vmul.f32 0.5, %v545_v42  ;;  %v546_v52 = vadd.f32 1.0, %v910_v41  ;;  %917 = vtanh.f32 %v518_v30  ;;  %v583_v17 = vpack.c.bf16 %v568_v11, %v567_v50  ;;  %v927_v11 = vld [vmem:[%s1510_s0 + $0x38] sm:$0xff] }
 0x243   :  { %v559_v28 = vmul.f32 0.5, %v543_v49  ;;  %v544_v37 = vadd.f32 1.0, %v912_v23  ;;  %919 = vtanh.f32 %v516_v24  ;;  %v929_v24 = vld [vmem:[%s1510_s0 + $0x50] sm:$0xff] }
 0x244   :  { %v562_v29 = vmul.f32 0.5, %v546_v52  ;;  %839 = vmatprep.mubr.msk.bf16.mxu1 %vm599_vm2, %v583_v17  ;;  %v577_v12 = vmul.f32 %v561_v20, %v1292_v56  ;;  %v930_v17 = vld [vmem:[%s1510_s0 + $0x40] sm:$0xff] }
 0x245   :  { %v560_v57 = vmul.f32 0.5, %v544_v37  ;;  %840 = vmatmul.mubr.msk.bf16.vlgmr.msra.gmra.mrb[0].mxu1 %vm599_vm2, %v584_v10  ;;  %v575_v58 = vmul.f32 %v559_v28, %v1296_v59 }
 0x246   :  { %v578_v35 = vmul.f32 %v562_v29, %v1302_v45  ;;  %843 = vmatprep.mubr.msk.bf16.mxu1 %vm599_vm2, %v585_v51  ;;  %v928_v51 = vld [vmem:[%s1510_s0 + $0x28] sm:$0xff] }
 0x247   :  { %v914_v46 = vpop.eup %913  ;;  %v576_v60 = vmul.f32 %v560_v57, %v1308_v31 }
 0x248   :  { %v588_v61 = vpack.c.bf16 %v578_v35, %v577_v12  ;;  %v549_v4 = vadd.f32 1.0, %v914_v46  ;;  %v931_v35 = vld [vmem:[%s1510_s0 + $0x58] sm:$0xff] }
 0x249   :  { %v916_v62 = vpop.eup %915  ;;  %v587_v47 = vpack.c.bf16 %v576_v60, %v575_v58 }
 0x24a   :  { %v547_v63 = vadd.f32 1.0, %v916_v62  ;;  %v565_v25 = vmul.f32 0.5, %v549_v4 }
 0x24c   :  { %v918_v2 = vpop.eup %917  ;;  %v563_v45 = vmul.f32 0.5, %v547_v63  ;;  %v581_v59 = vmul.f32 %v565_v25, %v1320_v33  ;;  %v1380_v33 = vld [vmem:[%s1516_s6] ss:$0 sm:$0xff] }
 0x24d   :  { %v550_v5 = vadd.f32 1.0, %v918_v2  ;;  %v920_v56 = vpop.eup %919  ;;  %844 = vmatmul.mubr.msk.bf16.gmra.mrb[4].mxu1 %vm599_vm2, %v586_v44  ;;  %v933_v2 = vld [vmem:[%s1510_s0 + $0x70] sm:$0xff] }
 0x24e   :  { %v548_v6 = vadd.f32 1.0, %v920_v56  ;;  %847 = vmatprep.mubr.msk.bf16.mxu1 %vm599_vm2, %v587_v47  ;;  %v579_v8 = vmul.f32 %v563_v45, %v1327_v48  ;;  %v921_v48 = vld [vmem:[%s1510_s0 + $0x10] sm:$0xff]  ;;  %v934_v56 = vld [vmem:[%s1510_s0 + $0x60] sm:$0xff] }
 0x24f   :  { %v566_v54 = vmul.f32 0.5, %v550_v5 }
 0x250   :  { %v564_v3 = vmul.f32 0.5, %v548_v6 }
 0x251   :  { %v582_v31 = vmul.f32 %v566_v54, %v1337_v53 }
 0x252   :  { %v580_v9 = vmul.f32 %v564_v3, %v1341_v21 }
 0x253   :  { %v590_v7 = vpack.c.bf16 %v582_v31, %v581_v59  ;;  %v935_v59 = vld [vmem:[%s1510_s0 + $0x78] sm:$0xff] }
 0x254   :  { %v589_v13 = vpack.c.bf16 %v580_v9, %v579_v8  ;;  %v936_v9 = vld [vmem:[%s1510_s0 + $0x68] sm:$0xff] }
 0x255   :  { %848 = vmatmul.mubr.msk.bf16.gmra.mrb[8].mxu1 %vm599_vm2, %v588_v61  ;;  %v932_v61 = vld [vmem:[%s1510_s0 + $0x48] sm:$0xff] }
 0x256   :  { %851 = vmatprep.mubr.msk.bf16.mxu1 %vm599_vm2, %v589_v13 }
 0x25d   :  { %852 = vmatmul.mubr.msk.bf16.gmra.mrb[12].mxu1 %vm599_vm2, %v590_v7 }
 0x318   :  { %v841_v55 = vpop.f32.mrb[0].mxu1 }
 0x319   :  { %v723_v53 = vadd.f32 %v921_v48, %v841_v55  ;;  %v658_v21 = vpop.f32.mrb[1].mxu1 }
 0x31a   :  { %v721_v15 = vadd.f32 %v922_v14, %v658_v21  ;;  %v842_v18 = vpop.f32.mrb[2].mxu1 }
 0x31b   :  { %v746_v19 = vadd.f32 %v1380_v33, %v723_v53  ;;  %v724_v16 = vadd.f32 %v923_v22, %v842_v18  ;;  %v661_v0 = vpop.f32.mrb[3].mxu1 }
 0x31c   :  { %v744_v26 = vadd.f32 %v1380_v33, %v721_v15  ;;  %v722_v32 = vadd.f32 %v924_v27, %v661_v0 }
 0x31d   :  { %762 = vst.msk [vmem:[%s1517_s7 + $0x10] sm:$0xff] %vm43_vm0, %v746_v19  ;;  %v747_v34 = vadd.f32 %v1380_v33, %v724_v16 }
 0x31e   :  { %760 = vst.msk [vmem:[%s1517_s7] sm:$0xff] %vm43_vm0, %v744_v26  ;;  %v745_v1 = vadd.f32 %v1380_v33, %v722_v32 }
 0x31f   :  { %763 = vst.msk [vmem:[%s1517_s7 + $0x18] sm:$0xff] %vm43_vm0, %v747_v34 }
 0x320   :  { %761 = vst.msk [vmem:[%s1517_s7 + $0x8] sm:$0xff] %vm43_vm0, %v745_v1  ;;  %v845_v38 = vpop.f32.mrb[4].mxu1 }
 0x321   :  { %v727_v40 = vadd.f32 %v925_v39, %v845_v38  ;;  %v674_v10 = vpop.f32.mrb[5].mxu1 }
 0x322   :  { %v725_v42 = vadd.f32 %v926_v36, %v674_v10  ;;  %v846_v30 = vpop.f32.mrb[6].mxu1 }
 0x323   :  { %v750_v43 = vadd.f32 %v1380_v33, %v727_v40  ;;  %v728_v41 = vadd.f32 %v927_v11, %v846_v30  ;;  %v677_v49 = vpop.f32.mrb[7].mxu1 }
 0x324   :  { %v748_v50 = vadd.f32 %v1380_v33, %v725_v42  ;;  %v726_v44 = vadd.f32 %v928_v51, %v677_v49 }
 0x325   :  { %766 = vst.msk [vmem:[%s1517_s7 + $0x30] sm:$0xff] %vm43_vm0, %v750_v43  ;;  %v751_v23 = vadd.f32 %v1380_v33, %v728_v41 }
 0x326   :  { %764 = vst.msk [vmem:[%s1517_s7 + $0x20] sm:$0xff] %vm43_vm0, %v748_v50  ;;  %v749_v20 = vadd.f32 %v1380_v33, %v726_v44 }
 0x327   :  { %767 = vst.msk [vmem:[%s1517_s7 + $0x38] sm:$0xff] %vm43_vm0, %v751_v23 }
 0x328   :  { %765 = vst.msk [vmem:[%s1517_s7 + $0x28] sm:$0xff] %vm43_vm0, %v749_v20  ;;  %v849_v52 = vpop.f32.mrb[8].mxu1 }
 0x329   :  { %v731_v28 = vadd.f32 %v929_v24, %v849_v52  ;;  %v690_v37 = vpop.f32.mrb[9].mxu1 }
 0x32a   :  { %v729_v29 = vadd.f32 %v930_v17, %v690_v37  ;;  %v850_v57 = vpop.f32.mrb[10].mxu1 }
 0x32b   :  { %v754_v12 = vadd.f32 %v1380_v33, %v731_v28  ;;  %v732_v46 = vadd.f32 %v931_v35, %v850_v57  ;;  %v693_v58 = vpop.f32.mrb[11].mxu1 }
 0x32c   :  { %v752_v60 = vadd.f32 %v1380_v33, %v729_v29  ;;  %v730_v62 = vadd.f32 %v932_v61, %v693_v58 }
 0x32d   :  { %770 = vst.msk [vmem:[%s1517_s7 + $0x50] sm:$0xff] %vm43_vm0, %v754_v12  ;;  %v755_v4 = vadd.f32 %v1380_v33, %v732_v46 }
 0x32e   :  { %768 = vst.msk [vmem:[%s1517_s7 + $0x40] sm:$0xff] %vm43_vm0, %v752_v60  ;;  %v753_v47 = vadd.f32 %v1380_v33, %v730_v62 }
 0x32f   :  { %771 = vst.msk [vmem:[%s1517_s7 + $0x58] sm:$0xff] %vm43_vm0, %v755_v4 }
 0x330   :  { %769 = vst.msk [vmem:[%s1517_s7 + $0x48] sm:$0xff] %vm43_vm0, %v753_v47  ;;  %v853_v63 = vpop.f32.mrb[12].mxu1 }
 0x331   :  { %v735_v25 = vadd.f32 %v933_v2, %v853_v63  ;;  %v706_v5 = vpop.f32.mrb[13].mxu1 }
 0x332   :  { %v733_v45 = vadd.f32 %v934_v56, %v706_v5  ;;  %v854_v54 = vpop.f32.mrb[14].mxu1 }
 0x333   :  { %v758_v6 = vadd.f32 %v1380_v33, %v735_v25  ;;  %v736_v31 = vadd.f32 %v935_v59, %v854_v54  ;;  %v709_v3 = vpop.f32.mrb[15].mxu1 }
 0x334   :  { %v756_v8 = vadd.f32 %v1380_v33, %v733_v45  ;;  %v734_v7 = vadd.f32 %v936_v9, %v709_v3 }
 0x335   :  { %774 = vst.msk [vmem:[%s1517_s7 + $0x70] sm:$0xff] %vm43_vm0, %v758_v6  ;;  %v759_v13 = vadd.f32 %v1380_v33, %v736_v31 }
 0x336   :  { %772 = vst.msk [vmem:[%s1517_s7 + $0x60] sm:$0xff] %vm43_vm0, %v756_v8  ;;  %v757_v55 = vadd.f32 %v1380_v33, %v734_v7 }
 0x337   :  { %775 = vst.msk [vmem:[%s1517_s7 + $0x78] sm:$0xff] %vm43_vm0, %v759_v13 }
 0x338   :  { %773 = vst.msk [vmem:[%s1517_s7 + $0x68] sm:$0xff] %vm43_vm0, %v757_v55 }

// kernel: pixel_swin_t_forward.17
= control target key start
LH: loop header
LB: loop body
LE: loop exit
PB: predicated region body
PF: predicated region fallthrough
CT: control target
= control target key end

     0   :  { %vm50_vm0 = vcmask 261120   ;;  %vm106_vm1 = vcmask 130048   ;;  %s299_s1 = inlined_call_operand.vmem [shape: bf16[32,16], index: 1, kind: input, shape index: {}]   ;;  %s300_s0 = inlined_call_operand.vmem [shape: f32[32,32], index: 0, kind: input, shape index: {}]   ;;  %s301_s2 = inlined_call_operand.vmem [shape: f32[1,16], index: 2, kind: input, shape index: {}]   ;;  %s302_s3 = inlined_call_operand.vmem [shape: f32[1,16], index: 3, kind: input, shape index: {}]   ;;  %s303_s4 = inlined_call_operand.vmem [shape: f32[1,16], index: 4, kind: input, shape index: {}]   ;;  %s304_s5 = inlined_call_operand.vmem [shape: f32[32,16], index: 5, kind: output, shape index: {}]  }
   0x1   :  { %v208_v0 = vld [vmem:[%s299_s1] sm:$0xff]   ;;  %v209_v1 = vld [vmem:[%s299_s1 + $0x8] sm:$0xff]   ;;  %v23_v5 = vld [vmem:[%s300_s0 + $0x10] sm:$0xff] }
   0x2   :  { %200 = vmatprep.subr.bf16.mxu0 %v208_v0  ;;  %v21_v2 = vld [vmem:[%s300_s0] sm:$0xff]  ;;  %v22_v3 = vld [vmem:[%s300_s0 + $0x8] sm:$0xff]  ;;  %v24_v6 = vld [vmem:[%s300_s0 + $0x18] sm:$0xff] }
   0x3   :  { %201 = vmatpush3.bf16.msra.mxu0 %v208_v0  ;;  %v25_v4 = vpack.c.bf16 %v22_v3, %v21_v2  ;;  %v26_v7 = vpack.c.bf16 %v24_v6, %v23_v5  ;;  %v189_v8 = vld [vmem:[%s301_s2] ss:$0 sm:$0xff] }
   0x4   :  { %202 = vmatprep.subr.bf16.mxu0 %v209_v1  ;;  %v194_v54 = vld [vmem:[%s302_s3] ss:$0 sm:$0xff] }
   0x5   :  { %204 = vmatprep.mubr.msk.bf16.mxu0 %vm50_vm0, %v25_v4  ;;  %v195_v56 = vld [vmem:[%s303_s4] ss:$0 sm:$0xff] }
   0x7   :  { %203 = vmatpush3.bf16.msra.mxu0 %v209_v1 }
   0xa   :  { %205 = vmatmul.mubr.msk.bf16.vlgmr.msra.gmra.mrb[0].mxu0 %vm50_vm0, %v26_v7 }
  0xdd   :  { %v206_v9 = vpop.f32.mrb[0].mxu0 }
  0xde   :  { %v100_v10 = vadd.f32 %v206_v9, %v189_v8  ;;  %v91_v11 = vpop.f32.mrb[1].mxu0 }
  0xdf   :  { %v92_v12 = vadd.f32 %v189_v8, %v91_v11  ;;  %v207_v13 = vpop.f32.mrb[2].mxu0 }
  0xe0   :  { %v103_v14 = vadd.f32 %v207_v13, %v189_v8  ;;  %v94_v15 = vpop.f32.mrb[3].mxu0  ;;  %v113_v16 = vsel %vm106_vm1, %v100_v10, 0.0 }
  0xe1   :  { %v95_v17 = vadd.f32 %v189_v8, %v94_v15  ;;  %114 = vadd.xlane.f32.xlu1 %v113_v16  ;;  %v107_v18 = vsel %vm106_vm1, %v92_v12, 0.0 }
  0xe2   :  { %108 = vadd.xlane.f32.xlu0 %v107_v18  ;;  %v116_v19 = vsel %vm106_vm1, %v103_v14, 0.0 }
  0xe3   :  { %v110_v20 = vsel %vm106_vm1, %v95_v17, 0.0 }
  0xe5   :  { %117 = vadd.xlane.f32.xlu1 %v116_v19 }
  0xe6   :  { %111 = vadd.xlane.f32.xlu0 %v110_v20 }
 0x16e   :  { %v115_v21 = vpop.xlane.xlu1 %114 }
 0x16f   :  { %v121_v22 = vmul.f32 0.0625, %v115_v21  ;;  %v109_v23 = vpop.xlane.xlu0 %108 }
 0x170   :  { %v119_v24 = vmul.f32 0.0625, %v109_v23 }
 0x171   :  { %v125_v25 = vsub.f32 %v100_v10, %v121_v22 }
 0x172   :  { %v123_v26 = vsub.f32 %v92_v12, %v119_v24  ;;  %v118_v27 = vpop.xlane.xlu1 %117 }
 0x173   :  { %v122_v28 = vmul.f32 0.0625, %v118_v27  ;;  %v112_v29 = vpop.xlane.xlu0 %111  ;;  %v129_v35 = vmul.f32 %v125_v25, %v125_v25 }
 0x174   :  { %v120_v30 = vmul.f32 0.0625, %v112_v29  ;;  %v127_v31 = vmul.f32 %v123_v26, %v123_v26 }
 0x175   :  { %v126_v32 = vsub.f32 %v103_v14, %v122_v28  ;;  %v137_v37 = vsel %vm106_vm1, %v129_v35, 0.0 }
 0x176   :  { %v124_v33 = vsub.f32 %v95_v17, %v120_v30  ;;  %v131_v34 = vsel %vm106_vm1, %v127_v31, 0.0 }
 0x177   :  { %132 = vadd.xlane.f32.xlu0 %v131_v34  ;;  %v130_v39 = vmul.f32 %v126_v32, %v126_v32 }
 0x178   :  { %v128_v36 = vmul.f32 %v124_v33, %v124_v33 }
 0x179   :  { %v140_v40 = vsel %vm106_vm1, %v130_v39, 0.0 }
 0x17a   :  { %v134_v38 = vsel %vm106_vm1, %v128_v36, 0.0 }
 0x17b   :  { %138 = vadd.xlane.f32.xlu0 %v137_v37  ;;  %135 = vadd.xlane.f32.xlu1 %v134_v38 }
 0x17f   :  { %141 = vadd.xlane.f32.xlu1 %v140_v40 }
 0x204   :  { %v133_v41 = vpop.xlane.xlu0 %132 }
 0x205   :  { %v143_v42 = vmul.f32 0.0625, %v133_v41 }
 0x207   :  { %v147_v43 = vadd.f32 1e-05, %v143_v42 }
 0x208   :  { %v136_v44 = vpop.xlane.xlu1 %135  ;;  %v139_v45 = vpop.xlane.xlu0 %138 }
 0x209   :  { %210 = vrsqrt.f32 %v147_v43  ;;  %v144_v46 = vmul.f32 0.0625, %v136_v44  ;;  %v145_v47 = vmul.f32 0.0625, %v139_v45 }
 0x20b   :  { %v148_v48 = vadd.f32 1e-05, %v144_v46  ;;  %v149_v49 = vadd.f32 1e-05, %v145_v47 }
 0x20c   :  { %v142_v50 = vpop.xlane.xlu1 %141 }
 0x20d   :  { %212 = vrsqrt.f32 %v148_v48  ;;  %v146_v51 = vmul.f32 0.0625, %v142_v50 }
 0x20e   :  { %214 = vrsqrt.f32 %v149_v49 }
 0x20f   :  { %v150_v52 = vadd.f32 1e-05, %v146_v51 }
 0x211   :  { %216 = vrsqrt.f32 %v150_v52 }
 0x213   :  { %v211_v53 = vpop.eup %210 }
 0x214   :  { %v155_v55 = vmul.f32 %v211_v53, %v123_v26 }
 0x216   :  { %v166_v57 = vmul.f32 %v194_v54, %v155_v55 }
 0x217   :  { %v213_v58 = vpop.eup %212 }
 0x218   :  { %v215_v59 = vpop.eup %214  ;;  %v177_v60 = vadd.f32 %v195_v56, %v166_v57  ;;  %v156_v61 = vmul.f32 %v213_v58, %v124_v33 }
 0x219   :  { %v157_v62 = vmul.f32 %v215_v59, %v125_v25 }
 0x21a   :  { %181 = vst.msk [vmem:[%s304_s5] sm:$0xff] %vm106_vm1, %v177_v60  ;;  %v167_v63 = vmul.f32 %v194_v54, %v156_v61 }
 0x21b   :  { %v217_v0 = vpop.eup %216  ;;  %v168_v1 = vmul.f32 %v194_v54, %v157_v62 }
 0x21c   :  { %v178_v2 = vadd.f32 %v195_v56, %v167_v63  ;;  %v158_v3 = vmul.f32 %v217_v0, %v126_v32 }
 0x21d   :  { %v179_v4 = vadd.f32 %v195_v56, %v168_v1 }
 0x21e   :  { %182 = vst.msk [vmem:[%s304_s5 + $0x8] sm:$0xff] %vm106_vm1, %v178_v2  ;;  %v169_v5 = vmul.f32 %v194_v54, %v158_v3 }
 0x21f   :  { %183 = vst.msk [vmem:[%s304_s5 + $0x10] sm:$0xff] %vm106_vm1, %v179_v4 }
 0x220   :  { %v180_v6 = vadd.f32 %v195_v56, %v169_v5 }
 0x222   :  { %184 = vst.msk [vmem:[%s304_s5 + $0x18] sm:$0xff] %vm106_vm1, %v180_v6 }

// kernel: pixel_swin_t_forward.15
= control target key start
LH: loop header
LB: loop body
LE: loop exit
PB: predicated region body
PF: predicated region fallthrough
CT: control target
= control target key end

     0   :  { %vm60_vm0 = vcmask 130048   ;;  %vm182_vm1 = vcmask 64512   ;;  %s905_s1 = inlined_call_operand.vmem [shape: bf16[16,8], index: 1, kind: input, shape index: {}]   ;;  %s906_s0 = inlined_call_operand.vmem [shape: f32[128,16], index: 0, kind: input, shape index: {}]   ;;  %s907_s2 = inlined_call_operand.vmem [shape: f32[1,8], index: 2, kind: input, shape index: {}]   ;;  %s908_s3 = inlined_call_operand.vmem [shape: f32[1,8], index: 3, kind: input, shape index: {}]   ;;  %s909_s4 = inlined_call_operand.vmem [shape: f32[1,8], index: 4, kind: input, shape index: {}]   ;;  %s910_s5 = inlined_call_operand.vmem [shape: f32[128,8], index: 5, kind: output, shape index: {}]  }
   0x1   :  { %v498_v0 = vld [vmem:[%s905_s1] sm:$0xff]   ;;  %v22_v2 = vld [vmem:[%s906_s0 + $0x8] sm:$0xff]  ;;  %v23_v6 = vld [vmem:[%s906_s0 + $0x10] sm:$0xff] }
   0x2   :  { %v21_v1 = vld [vmem:[%s906_s0] sm:$0xff]  ;;  %478 = vmatprep.subr.bf16.mxu0 %v498_v0  ;;  %496 = vmatprep.subr.bf16.mxu1 %v498_v0  ;;  %v30_v5 = vld [vmem:[%s906_s0 + $0x48] sm:$0xff]  ;;  %v24_v7 = vld [vmem:[%s906_s0 + $0x18] sm:$0xff] }
   0x3   :  { %v29_v3 = vld [vmem:[%s906_s0 + $0x40] sm:$0xff]  ;;  %v37_v4 = vpack.c.bf16 %v22_v2, %v21_v1  ;;  %479 = vmatpush3.bf16.msra.mxu0 %v498_v0  ;;  %497 = vmatpush3.bf16.msra.mxu1 %v498_v0  ;;  %v38_v9 = vpack.c.bf16 %v24_v7, %v23_v6  ;;  %v31_v10 = vld [vmem:[%s906_s0 + $0x50] sm:$0xff]  ;;  %v32_v11 = vld [vmem:[%s906_s0 + $0x58] sm:$0xff] }
   0x4   :  { %v41_v8 = vpack.c.bf16 %v30_v5, %v29_v3  ;;  %v25_v12 = vld [vmem:[%s906_s0 + $0x20] sm:$0xff]  ;;  %v42_v13 = vpack.c.bf16 %v32_v11, %v31_v10  ;;  %v26_v14 = vld [vmem:[%s906_s0 + $0x28] sm:$0xff]  ;;  %v27_v18 = vld [vmem:[%s906_s0 + $0x30] sm:$0xff] }
   0x5   :  { %480 = vmatprep.mubr.msk.bf16.mxu0 %vm60_vm0, %v37_v4  ;;  %v39_v15 = vpack.c.bf16 %v26_v14, %v25_v12  ;;  %v33_v16 = vld [vmem:[%s906_s0 + $0x60] sm:$0xff]  ;;  %v34_v17 = vld [vmem:[%s906_s0 + $0x68] sm:$0xff]  ;;  %v28_v20 = vld [vmem:[%s906_s0 + $0x38] sm:$0xff] }
   0x6   :  { %488 = vmatprep.mubr.msk.bf16.mxu1 %vm60_vm0, %v41_v8  ;;  %481 = vmatmul.mubr.msk.bf16.vlgmr.msra.gmra.mrb[0].mxu0 %vm60_vm0, %v38_v9  ;;  %v43_v19 = vpack.c.bf16 %v34_v17, %v33_v16  ;;  %v35_v21 = vld [vmem:[%s906_s0 + $0x70] sm:$0xff]  ;;  %v36_v22 = vld [vmem:[%s906_s0 + $0x78] sm:$0xff]  ;;  %v40_v23 = vpack.c.bf16 %v28_v20, %v27_v18  ;;  %v457_v25 = vld [vmem:[%s907_s2] ss:$0 sm:$0xff] }
   0x7   :  { %489 = vmatmul.mubr.msk.bf16.vlgmr.msra.gmra.mrb[0].mxu1 %vm60_vm0, %v42_v13  ;;  %484 = vmatprep.mubr.msk.bf16.mxu0 %vm60_vm0, %v39_v15  ;;  %v44_v24 = vpack.c.bf16 %v36_v22, %v35_v21 }
   0x8   :  { %492 = vmatprep.mubr.msk.bf16.mxu1 %vm60_vm0, %v43_v19 }
   0xe   :  { %485 = vmatmul.mubr.msk.bf16.gmra.mrb[4].mxu0 %vm60_vm0, %v40_v23 }
   0xf   :  { %493 = vmatmul.mubr.msk.bf16.gmra.mrb[4].mxu1 %vm60_vm0, %v44_v24 }
  0xd9   :  { %v482_v26 = vpop.f32.mrb[0].mxu0 }
  0xda   :  { %v490_v27 = vpop.f32.mrb[0].mxu1  ;;  %v623_v28 = vadd.f32 %v482_v26, %v457_v25  ;;  %v119_v30 = vpop.f32.mrb[1].mxu0 }
  0xdb   :  { %v625_v29 = vadd.f32 %v490_v27, %v457_v25  ;;  %v151_v31 = vpop.f32.mrb[1].mxu1  ;;  %v483_v32 = vpop.f32.mrb[2].mxu0  ;;  %v627_v34 = vadd.f32 %v457_v25, %v119_v30 }
  0xdc   :  { %v491_v33 = vpop.f32.mrb[2].mxu1  ;;  %v629_v35 = vadd.f32 %v483_v32, %v457_v25  ;;  %v122_v36 = vpop.f32.mrb[3].mxu0  ;;  %v189_v39 = vsel %vm182_vm1, %v623_v28, 0.0  ;;  %v635_v40 = vadd.f32 %v457_v25, %v151_v31 }
  0xdd   :  { %v154_v37 = vpop.f32.mrb[3].mxu1  ;;  %v213_v38 = vsel %vm182_vm1, %v625_v29, 0.0  ;;  %190 = vadd.xlane.f32.xlu1 %v189_v39  ;;  %v637_v41 = vadd.f32 %v491_v33, %v457_v25  ;;  %v183_v43 = vsel %vm182_vm1, %v627_v34, 0.0  ;;  %v643_v50 = vadd.f32 %v457_v25, %v122_v36 }
  0xde   :  { %214 = vadd.xlane.f32.xlu0 %v213_v38  ;;  %v192_v42 = vsel %vm182_vm1, %v629_v35, 0.0  ;;  %v645_v51 = vadd.f32 %v457_v25, %v154_v37  ;;  %v207_v53 = vsel %vm182_vm1, %v635_v40, 0.0 }
  0xdf   :  { %v216_v52 = vsel %vm182_vm1, %v637_v41, 0.0  ;;  %v186_v59 = vsel %vm182_vm1, %v643_v50, 0.0 }
  0xe0   :  { %v210_v58 = vsel %vm182_vm1, %v645_v51, 0.0 }
  0xe1   :  { %193 = vadd.xlane.f32.xlu1 %v192_v42  ;;  %v486_v44 = vpop.f32.mrb[4].mxu0 }
  0xe2   :  { %184 = vadd.xlane.f32.xlu0 %v183_v43  ;;  %v494_v45 = vpop.f32.mrb[4].mxu1  ;;  %v135_v46 = vpop.f32.mrb[5].mxu0  ;;  %v651_v56 = vadd.f32 %v486_v44, %v457_v25 }
  0xe3   :  { %v167_v47 = vpop.f32.mrb[5].mxu1  ;;  %v487_v48 = vpop.f32.mrb[6].mxu0  ;;  %v663_v62 = vadd.f32 %v457_v25, %v135_v46  ;;  %v679_v6 = vadd.f32 %v494_v45, %v457_v25 }
  0xe4   :  { %v495_v49 = vpop.f32.mrb[6].mxu1  ;;  %v138_v54 = vpop.f32.mrb[7].mxu0  ;;  %v653_v57 = vadd.f32 %v487_v48, %v457_v25  ;;  %v201_v61 = vsel %vm182_vm1, %v651_v56, 0.0  ;;  %v667_v0 = vadd.f32 %v457_v25, %v167_v47 }
  0xe5   :  { %v170_v55 = vpop.f32.mrb[7].mxu1  ;;  %217 = vadd.xlane.f32.xlu1 %v216_v52  ;;  %v665_v63 = vadd.f32 %v457_v25, %v138_v54  ;;  %v195_v3 = vsel %vm182_vm1, %v663_v62, 0.0  ;;  %v681_v7 = vadd.f32 %v495_v49, %v457_v25  ;;  %v225_v9 = vsel %vm182_vm1, %v679_v6, 0.0 }
  0xe6   :  { %208 = vadd.xlane.f32.xlu0 %v207_v53  ;;  %v204_v60 = vsel %vm182_vm1, %v653_v57, 0.0  ;;  %v669_v1 = vadd.f32 %v457_v25, %v170_v55  ;;  %v219_v5 = vsel %vm182_vm1, %v667_v0, 0.0 }
  0xe7   :  { %v198_v2 = vsel %vm182_vm1, %v665_v63, 0.0  ;;  %v228_v8 = vsel %vm182_vm1, %v681_v7, 0.0 }
  0xe8   :  { %v222_v4 = vsel %vm182_vm1, %v669_v1, 0.0 }
  0xe9   :  { %211 = vadd.xlane.f32.xlu1 %v210_v58 }
  0xea   :  { %187 = vadd.xlane.f32.xlu0 %v186_v59 }
  0xed   :  { %205 = vadd.xlane.f32.xlu1 %v204_v60 }
  0xee   :  { %202 = vadd.xlane.f32.xlu0 %v201_v61 }
  0xf1   :  { %199 = vadd.xlane.f32.xlu1 %v198_v2 }
  0xf2   :  { %196 = vadd.xlane.f32.xlu0 %v195_v3 }
  0xf5   :  { %223 = vadd.xlane.f32.xlu1 %v222_v4 }
  0xf6   :  { %220 = vadd.xlane.f32.xlu0 %v219_v5 }
  0xf9   :  { %229 = vadd.xlane.f32.xlu1 %v228_v8 }
  0xfa   :  { %226 = vadd.xlane.f32.xlu0 %v225_v9 }
 0x16a   :  { %v191_v11 = vpop.xlane.xlu1 %190 }
 0x16b   :  { %v215_v10 = vpop.xlane.xlu0 %214  ;;  %v233_v13 = vmul.f32 0.125, %v191_v11 }
 0x16c   :  { %v241_v12 = vmul.f32 0.125, %v215_v10 }
 0x16d   :  { %v691_v15 = vsub.f32 %v623_v28, %v233_v13 }
 0x16e   :  { %v688_v14 = vsub.f32 %v625_v29, %v241_v12  ;;  %v194_v16 = vpop.xlane.xlu1 %193 }
 0x16f   :  { %v185_v17 = vpop.xlane.xlu0 %184  ;;  %v234_v18 = vmul.f32 0.125, %v194_v16  ;;  %v265_v20 = vmul.f32 %v691_v15, %v691_v15 }
 0x170   :  { %v231_v19 = vmul.f32 0.125, %v185_v17  ;;  %v273_v24 = vmul.f32 %v688_v14, %v688_v14 }
 0x171   :  { %v696_v21 = vsub.f32 %v629_v35, %v234_v18  ;;  %v285_v23 = vsel %vm182_vm1, %v265_v20, 0.0 }
 0x172   :  { %v699_v22 = vsub.f32 %v627_v34, %v231_v19  ;;  %v218_v25 = vpop.xlane.xlu1 %217  ;;  %286 = vadd.xlane.f32.xlu0 %v285_v23  ;;  %v309_v34 = vsel %vm182_vm1, %v273_v24, 0.0 }
 0x173   :  { %v209_v26 = vpop.xlane.xlu0 %208  ;;  %v242_v27 = vmul.f32 0.125, %v218_v25  ;;  %v266_v29 = vmul.f32 %v696_v21, %v696_v21 }
 0x174   :  { %v239_v28 = vmul.f32 0.125, %v209_v26  ;;  %v263_v30 = vmul.f32 %v699_v22, %v699_v22 }
 0x175   :  { %v709_v31 = vsub.f32 %v637_v41, %v242_v27  ;;  %v288_v33 = vsel %vm182_vm1, %v266_v29, 0.0 }
 0x176   :  { %v712_v32 = vsub.f32 %v635_v40, %v239_v28  ;;  %v212_v35 = vpop.xlane.xlu1 %211  ;;  %289 = vadd.xlane.f32.xlu1 %v288_v33  ;;  %310 = vadd.xlane.f32.xlu0 %v309_v34  ;;  %v279_v42 = vsel %vm182_vm1, %v263_v30, 0.0 }
 0x177   :  { %v188_v36 = vpop.xlane.xlu0 %187  ;;  %v240_v37 = vmul.f32 0.125, %v212_v35  ;;  %v274_v39 = vmul.f32 %v709_v31, %v709_v31 }
 0x178   :  { %v232_v38 = vmul.f32 0.125, %v188_v36  ;;  %v271_v44 = vmul.f32 %v712_v32, %v712_v32 }
 0x179   :  { %v720_v41 = vsub.f32 %v645_v51, %v240_v37  ;;  %v312_v43 = vsel %vm182_vm1, %v274_v39, 0.0 }
 0x17a   :  { %v723_v40 = vsub.f32 %v643_v50, %v232_v38  ;;  %v206_v45 = vpop.xlane.xlu1 %205  ;;  %313 = vadd.xlane.f32.xlu1 %v312_v43  ;;  %280 = vadd.xlane.f32.xlu0 %v279_v42  ;;  %v303_v53 = vsel %vm182_vm1, %v271_v44, 0.0 }
 0x17b   :  { %v203_v46 = vpop.xlane.xlu0 %202  ;;  %v238_v47 = vmul.f32 0.125, %v206_v45  ;;  %v272_v51 = vmul.f32 %v720_v41, %v720_v41 }
 0x17c   :  { %v237_v48 = vmul.f32 0.125, %v203_v46  ;;  %v264_v49 = vmul.f32 %v723_v40, %v723_v40 }
 0x17d   :  { %v733_v50 = vsub.f32 %v653_v57, %v238_v47  ;;  %v306_v2 = vsel %vm182_vm1, %v272_v51, 0.0 }
 0x17e   :  { %v736_v52 = vsub.f32 %v651_v56, %v237_v48  ;;  %v282_v54 = vsel %vm182_vm1, %v264_v49, 0.0  ;;  %v200_v55 = vpop.xlane.xlu1 %199  ;;  %304 = vadd.xlane.f32.xlu0 %v303_v53 }
 0x17f   :  { %283 = vadd.xlane.f32.xlu1 %v282_v54  ;;  %v197_v58 = vpop.xlane.xlu0 %196  ;;  %v236_v59 = vmul.f32 0.125, %v200_v55  ;;  %v270_v4 = vmul.f32 %v733_v50, %v733_v50 }
 0x180   :  { %v235_v60 = vmul.f32 0.125, %v197_v58  ;;  %v269_v61 = vmul.f32 %v736_v52, %v736_v52  ;;  %v786_v58 = vld [vmem:[%s908_s3] ss:$0 sm:$0xff] }
 0x181   :  { %v744_v57 = vsub.f32 %v665_v63, %v236_v59  ;;  %v300_v13 = vsel %vm182_vm1, %v270_v4, 0.0  ;;  %v792_v4 = vld [vmem:[%s909_s4] ss:$0 sm:$0xff] }
 0x182   :  { %v747_v56 = vsub.f32 %v663_v62, %v235_v60  ;;  %v297_v3 = vsel %vm182_vm1, %v269_v61, 0.0  ;;  %v224_v5 = vpop.xlane.xlu1 %223 }
 0x183   :  { %307 = vadd.xlane.f32.xlu1 %v306_v2  ;;  %298 = vadd.xlane.f32.xlu0 %v297_v3  ;;  %v221_v8 = vpop.xlane.xlu0 %220  ;;  %v244_v9 = vmul.f32 0.125, %v224_v5  ;;  %v268_v63 = vmul.f32 %v744_v57, %v744_v57 }
 0x184   :  { %v243_v10 = vmul.f32 0.125, %v221_v8  ;;  %v267_v11 = vmul.f32 %v747_v56, %v747_v56 }
 0x185   :  { %v757_v62 = vsub.f32 %v669_v1, %v244_v9  ;;  %v294_v24 = vsel %vm182_vm1, %v268_v63, 0.0 }
 0x186   :  { %v760_v12 = vsub.f32 %v667_v0, %v243_v10  ;;  %v291_v16 = vsel %vm182_vm1, %v267_v11, 0.0  ;;  %v230_v17 = vpop.xlane.xlu1 %229 }
 0x187   :  { %301 = vadd.xlane.f32.xlu1 %v300_v13  ;;  %292 = vadd.xlane.f32.xlu0 %v291_v16  ;;  %v227_v18 = vpop.xlane.xlu0 %226  ;;  %v246_v19 = vmul.f32 0.125, %v230_v17  ;;  %v276_v26 = vmul.f32 %v757_v62, %v757_v62 }
 0x188   :  { %v245_v20 = vmul.f32 0.125, %v227_v18  ;;  %v275_v23 = vmul.f32 %v760_v12, %v760_v12 }
 0x189   :  { %v768_v1 = vsub.f32 %v681_v7, %v246_v19  ;;  %v318_v28 = vsel %vm182_vm1, %v276_v26, 0.0 }
 0x18a   :  { %v771_v0 = vsub.f32 %v679_v6, %v245_v20  ;;  %v315_v25 = vsel %vm182_vm1, %v275_v23, 0.0 }
 0x18b   :  { %295 = vadd.xlane.f32.xlu1 %v294_v24  ;;  %316 = vadd.xlane.f32.xlu0 %v315_v25  ;;  %v278_v7 = vmul.f32 %v768_v1, %v768_v1 }
 0x18c   :  { %v277_v27 = vmul.f32 %v771_v0, %v771_v0 }
 0x18d   :  { %v324_v6 = vsel %vm182_vm1, %v278_v7, 0.0 }
 0x18e   :  { %v321_v29 = vsel %vm182_vm1, %v277_v27, 0.0 }
 0x18f   :  { %319 = vadd.xlane.f32.xlu1 %v318_v28  ;;  %322 = vadd.xlane.f32.xlu0 %v321_v29 }
 0x193   :  { %325 = vadd.xlane.f32.xlu1 %v324_v6 }
 0x1ff   :  { %v287_v30 = vpop.xlane.xlu0 %286 }
 0x200   :  { %v329_v33 = vmul.f32 0.125, %v287_v30 }
 0x202   :  { %v345_v34 = vadd.f32 1e-05, %v329_v33 }
 0x203   :  { %v290_v35 = vpop.xlane.xlu1 %289  ;;  %v311_v36 = vpop.xlane.xlu0 %310 }
 0x204   :  { %499 = vrsqrt.f32 %v345_v34  ;;  %v330_v37 = vmul.f32 0.125, %v290_v35  ;;  %v337_v38 = vmul.f32 0.125, %v311_v36 }
 0x206   :  { %v346_v39 = vadd.f32 1e-05, %v330_v37  ;;  %v353_v42 = vadd.f32 1e-05, %v337_v38 }
 0x207   :  { %v314_v43 = vpop.xlane.xlu1 %313  ;;  %v281_v44 = vpop.xlane.xlu0 %280 }
 0x208   :  { %501 = vrsqrt.f32 %v346_v39  ;;  %v338_v45 = vmul.f32 0.125, %v314_v43  ;;  %v327_v46 = vmul.f32 0.125, %v281_v44 }
 0x209   :  { %503 = vrsqrt.f32 %v353_v42 }
 0x20a   :  { %v354_v47 = vadd.f32 1e-05, %v338_v45  ;;  %v343_v48 = vadd.f32 1e-05, %v327_v46 }
 0x20b   :  { %v305_v51 = vpop.xlane.xlu0 %304 }
 0x20c   :  { %v284_v49 = vpop.xlane.xlu1 %283  ;;  %505 = vrsqrt.f32 %v354_v47  ;;  %v335_v54 = vmul.f32 0.125, %v305_v51 }
 0x20d   :  { %v328_v53 = vmul.f32 0.125, %v284_v49  ;;  %507 = vrsqrt.f32 %v343_v48 }
 0x20e   :  { %v500_v55 = vpop.eup %499  ;;  %v351_v60 = vadd.f32 1e-05, %v335_v54 }
 0x20f   :  { %v344_v59 = vadd.f32 1e-05, %v328_v53  ;;  %v377_v61 = vmul.f32 %v500_v55, %v691_v15 }
 0x210   :  { %v308_v2 = vpop.xlane.xlu1 %307  ;;  %v299_v3 = vpop.xlane.xlu0 %298 }
 0x211   :  { %509 = vrsqrt.f32 %v344_v59  ;;  %v336_v5 = vmul.f32 0.125, %v308_v2  ;;  %v333_v8 = vmul.f32 0.125, %v299_v3  ;;  %v400_v9 = vmul.f32 %v786_v58, %v377_v61 }
 0x212   :  { %511 = vrsqrt.f32 %v351_v60  ;;  %v502_v10 = vpop.eup %501 }
 0x213   :  { %v352_v11 = vadd.f32 1e-05, %v336_v5  ;;  %v349_v63 = vadd.f32 1e-05, %v333_v8  ;;  %v504_v13 = vpop.eup %503  ;;  %v423_v16 = vadd.f32 %v792_v4, %v400_v9  ;;  %v378_v15 = vmul.f32 %v502_v10, %v696_v21 }
 0x214   :  { %v302_v17 = vpop.xlane.xlu1 %301  ;;  %v293_v18 = vpop.xlane.xlu0 %292  ;;  %v385_v19 = vmul.f32 %v504_v13, %v688_v14 }
 0x215   :  { %513 = vrsqrt.f32 %v352_v11  ;;  %v334_v20 = vmul.f32 0.125, %v302_v17  ;;  %v331_v23 = vmul.f32 0.125, %v293_v18  ;;  %439 = vst.msk [vmem:[%s910_s5 + $0x10] sm:$0xff] %vm182_vm1, %v423_v16  ;;  %v401_v24 = vmul.f32 %v786_v58, %v378_v15 }
 0x216   :  { %515 = vrsqrt.f32 %v349_v63  ;;  %v506_v25 = vpop.eup %505  ;;  %v408_v26 = vmul.f32 %v786_v58, %v385_v19 }
 0x217   :  { %v350_v27 = vadd.f32 1e-05, %v334_v20  ;;  %v347_v21 = vadd.f32 1e-05, %v331_v23  ;;  %v508_v28 = vpop.eup %507  ;;  %v424_v29 = vadd.f32 %v792_v4, %v401_v24  ;;  %v386_v14 = vmul.f32 %v506_v25, %v709_v31 }
 0x218   :  { %v296_v7 = vpop.xlane.xlu1 %295  ;;  %v317_v6 = vpop.xlane.xlu0 %316  ;;  %v431_v30 = vadd.f32 %v792_v4, %v408_v26  ;;  %v375_v33 = vmul.f32 %v508_v28, %v699_v22 }
 0x219   :  { %517 = vrsqrt.f32 %v350_v27  ;;  %v332_v34 = vmul.f32 0.125, %v296_v7  ;;  %440 = vst.msk [vmem:[%s910_s5 + $0x18] sm:$0xff] %vm182_vm1, %v424_v29  ;;  %v409_v35 = vmul.f32 %v786_v58, %v386_v14  ;;  %v339_v36 = vmul.f32 0.125, %v317_v6 }
 0x21a   :  { %519 = vrsqrt.f32 %v347_v21  ;;  %447 = vst.msk [vmem:[%s910_s5 + $0x50] sm:$0xff] %vm182_vm1, %v431_v30  ;;  %v398_v31 = vmul.f32 %v786_v58, %v375_v33 }
 0x21b   :  { %v510_v37 = vpop.eup %509  ;;  %v348_v22 = vadd.f32 1e-05, %v332_v34  ;;  %v432_v39 = vadd.f32 %v792_v4, %v409_v35  ;;  %v355_v43 = vadd.f32 1e-05, %v339_v36 }
 0x21c   :  { %v512_v38 = vpop.eup %511  ;;  %v376_v42 = vmul.f32 %v510_v37, %v723_v40  ;;  %v320_v44 = vpop.xlane.xlu1 %319  ;;  %v421_v46 = vadd.f32 %v792_v4, %v398_v31 }
 0x21d   :  { %v323_v45 = vpop.xlane.xlu0 %322  ;;  %v383_v47 = vmul.f32 %v512_v38, %v712_v32  ;;  %521 = vrsqrt.f32 %v348_v22  ;;  %v340_v48 = vmul.f32 0.125, %v320_v44  ;;  %448 = vst.msk [vmem:[%s910_s5 + $0x58] sm:$0xff] %vm182_vm1, %v432_v39 }
 0x21e   :  { %v399_v49 = vmul.f32 %v786_v58, %v376_v42  ;;  %523 = vrsqrt.f32 %v355_v43  ;;  %v341_v51 = vmul.f32 0.125, %v323_v45  ;;  %437 = vst.msk [vmem:[%s910_s5] sm:$0xff] %vm182_vm1, %v421_v46 }
 0x21f   :  { %v514_v53 = vpop.eup %513  ;;  %v406_v40 = vmul.f32 %v786_v58, %v383_v47  ;;  %v356_v32 = vadd.f32 1e-05, %v340_v48 }
 0x220   :  { %v516_v54 = vpop.eup %515  ;;  %v422_v55 = vadd.f32 %v792_v4, %v399_v49  ;;  %v384_v59 = vmul.f32 %v514_v53, %v720_v41  ;;  %v357_v60 = vadd.f32 1e-05, %v341_v51  ;;  %v326_v61 = vpop.xlane.xlu1 %325 }
 0x221   :  { %v429_v2 = vadd.f32 %v792_v4, %v406_v40  ;;  %v381_v3 = vmul.f32 %v516_v54, %v736_v52  ;;  %525 = vrsqrt.f32 %v356_v32  ;;  %v342_v5 = vmul.f32 0.125, %v326_v61 }
 0x222   :  { %438 = vst.msk [vmem:[%s910_s5 + $0x8] sm:$0xff] %vm182_vm1, %v422_v55  ;;  %v407_v8 = vmul.f32 %v786_v58, %v384_v59  ;;  %527 = vrsqrt.f32 %v357_v60 }
 0x223   :  { %v518_v9 = vpop.eup %517  ;;  %445 = vst.msk [vmem:[%s910_s5 + $0x40] sm:$0xff] %vm182_vm1, %v429_v2  ;;  %v404_v41 = vmul.f32 %v786_v58, %v381_v3  ;;  %v358_v10 = vadd.f32 1e-05, %v342_v5 }
 0x224   :  { %v520_v52 = vpop.eup %519  ;;  %v430_v11 = vadd.f32 %v792_v4, %v407_v8  ;;  %v382_v63 = vmul.f32 %v518_v9, %v733_v50 }
 0x225   :  { %v427_v13 = vadd.f32 %v792_v4, %v404_v41  ;;  %v379_v16 = vmul.f32 %v520_v52, %v747_v56  ;;  %529 = vrsqrt.f32 %v358_v10 }
 0x226   :  { %446 = vst.msk [vmem:[%s910_s5 + $0x48] sm:$0xff] %vm182_vm1, %v430_v11  ;;  %v405_v15 = vmul.f32 %v786_v58, %v382_v63 }
 0x227   :  { %v522_v17 = vpop.eup %521  ;;  %443 = vst.msk [vmem:[%s910_s5 + $0x30] sm:$0xff] %vm182_vm1, %v427_v13  ;;  %v402_v50 = vmul.f32 %v786_v58, %v379_v16 }
 0x228   :  { %v524_v18 = vpop.eup %523  ;;  %v428_v19 = vadd.f32 %v792_v4, %v405_v15  ;;  %v380_v56 = vmul.f32 %v522_v17, %v744_v57 }
 0x229   :  { %v425_v20 = vadd.f32 %v792_v4, %v402_v50  ;;  %v387_v23 = vmul.f32 %v524_v18, %v760_v12 }
 0x22a   :  { %444 = vst.msk [vmem:[%s910_s5 + $0x38] sm:$0xff] %vm182_vm1, %v428_v19  ;;  %v403_v24 = vmul.f32 %v786_v58, %v380_v56 }
 0x22b   :  { %v526_v25 = vpop.eup %525  ;;  %441 = vst.msk [vmem:[%s910_s5 + $0x20] sm:$0xff] %vm182_vm1, %v425_v20  ;;  %v410_v26 = vmul.f32 %v786_v58, %v387_v23 }
 0x22c   :  { %v528_v57 = vpop.eup %527  ;;  %v426_v27 = vadd.f32 %v792_v4, %v403_v24  ;;  %v388_v12 = vmul.f32 %v526_v25, %v757_v62 }
 0x22d   :  { %v433_v21 = vadd.f32 %v792_v4, %v410_v26  ;;  %v389_v28 = vmul.f32 %v528_v57, %v771_v0 }
 0x22e   :  { %442 = vst.msk [vmem:[%s910_s5 + $0x28] sm:$0xff] %vm182_vm1, %v426_v27  ;;  %v411_v29 = vmul.f32 %v786_v58, %v388_v12 }
 0x22f   :  { %v530_v14 = vpop.eup %529  ;;  %449 = vst.msk [vmem:[%s910_s5 + $0x60] sm:$0xff] %vm182_vm1, %v433_v21  ;;  %v412_v7 = vmul.f32 %v786_v58, %v389_v28 }
 0x230   :  { %v434_v62 = vadd.f32 %v792_v4, %v411_v29  ;;  %v390_v6 = vmul.f32 %v530_v14, %v768_v1 }
 0x231   :  { %v435_v0 = vadd.f32 %v792_v4, %v412_v7 }
 0x232   :  { %450 = vst.msk [vmem:[%s910_s5 + $0x68] sm:$0xff] %vm182_vm1, %v434_v62  ;;  %v413_v30 = vmul.f32 %v786_v58, %v390_v6 }
 0x233   :  { %451 = vst.msk [vmem:[%s910_s5 + $0x70] sm:$0xff] %vm182_vm1, %v435_v0 }
 0x234   :  { %v436_v33 = vadd.f32 %v792_v4, %v413_v30 }
 0x236   :  { %452 = vst.msk [vmem:[%s910_s5 + $0x78] sm:$0xff] %vm182_vm1, %v436_v33 }

// kernel: pixel_swin_t_forward.18
= control target key start
LH: loop header
LB: loop body
LE: loop exit
PB: predicated region body
PF: predicated region fallthrough
CT: control target
= control target key end

     0   :  { %vm31_vm0 = vcmask 130048   ;;  %vm232_vm1 = vcmask 261120   ;;  %s481_s0 = inlined_call_operand.vmem [shape: f32[32,16], index: 0, kind: input, shape index: {}]   ;;  %s482_s3 = inlined_call_operand.vmem [shape: bf16[16,32], index: 3, kind: input, shape index: {}]   ;;  %s483_s1 = inlined_call_operand.vmem [shape: f32[1,16], index: 1, kind: input, shape index: {}]   ;;  %s484_s2 = inlined_call_operand.vmem [shape: f32[1,16], index: 2, kind: input, shape index: {}]   ;;  %s485_s5 = inlined_call_operand.vmem [shape: bf16[32,16], index: 5, kind: input, shape index: {}]   ;;  %s486_s4 = inlined_call_operand.vmem [shape: f32[1,32], index: 4, kind: input, shape index: {}]   ;;  %s487_s6 = inlined_call_operand.vmem [shape: f32[1,16], index: 6, kind: input, shape index: {}]   ;;  %s488_s7 = inlined_call_operand.vmem [shape: f32[32,16], index: 7, kind: output, shape index: {}]  }
   0x1   :  { %v405_v0 = vld [vmem:[%s481_s0] sm:$0xff]  ;;  %v410_v1 = vld [vmem:[%s481_s0 + $0x10] sm:$0xff]  ;;  %v415_v2 = vld [vmem:[%s481_s0 + $0x8] sm:$0xff] }
   0x2   :  { %v32_v3 = vsel %vm31_vm0, %v405_v0, 0.0  ;;  %v38_v4 = vsel %vm31_vm0, %v410_v1, 0.0  ;;  %v424_v5 = vld [vmem:[%s481_s0 + $0x18] sm:$0xff]  ;;  %v35_v6 = vsel %vm31_vm0, %v415_v2, 0.0  ;;  %v343_v28 = vld [vmem:[%s482_s3] sm:$0xff]   ;;  %v345_v62 = vld [vmem:[%s485_s5 + $0x8] sm:$0xff]  }
   0x3   :  { %33 = vadd.xlane.f32.xlu0 %v32_v3  ;;  %39 = vadd.xlane.f32.xlu1 %v38_v4  ;;  %v41_v7 = vsel %vm31_vm0, %v424_v5, 0.0  ;;  %v311_v43 = vld [vmem:[%s483_s1] ss:$0 sm:$0xff] }
   0x4   :  { %329 = vmatprep.subr.bf16.mxu0 %v343_v28  ;;  %v312_v49 = vld [vmem:[%s484_s2] ss:$0 sm:$0xff] }
   0x5   :  { %330 = vmatpush3.bf16.msra.mxu0 %v343_v28  ;;  %v344_v61 = vld [vmem:[%s485_s5] sm:$0xff]  }
   0x6   :  { %335 = vmatprep.subr.bf16.mxu1 %v344_v61  ;;  %v313_v63 = vld [vmem:[%s486_s4] ss:$0 sm:$0xff] }
   0x7   :  { %36 = vadd.xlane.f32.xlu0 %v35_v6  ;;  %42 = vadd.xlane.f32.xlu1 %v41_v7 }
   0x8   :  { %336 = vmatpush3.bf16.msra.mxu1 %v344_v61 }
   0x9   :  { %337 = vmatprep.subr.bf16.mxu1 %v345_v62 }
   0xc   :  { %338 = vmatpush3.bf16.msra.mxu1 %v345_v62 }
  0x90   :  { %v34_v8 = vpop.xlane.xlu0 %33  ;;  %v40_v9 = vpop.xlane.xlu1 %39 }
  0x91   :  { %v44_v10 = vmul.f32 0.0625, %v34_v8  ;;  %v46_v11 = vmul.f32 0.0625, %v40_v9 }
  0x93   :  { %v48_v12 = vsub.f32 %v405_v0, %v44_v10  ;;  %v50_v13 = vsub.f32 %v410_v1, %v46_v11 }
  0x94   :  { %v37_v14 = vpop.xlane.xlu0 %36  ;;  %v43_v15 = vpop.xlane.xlu1 %42 }
  0x95   :  { %v45_v16 = vmul.f32 0.0625, %v37_v14  ;;  %v47_v17 = vmul.f32 0.0625, %v43_v15  ;;  %v52_v18 = vmul.f32 %v48_v12, %v48_v12  ;;  %v54_v19 = vmul.f32 %v50_v13, %v50_v13 }
  0x97   :  { %v49_v20 = vsub.f32 %v415_v2, %v45_v16  ;;  %v51_v21 = vsub.f32 %v424_v5, %v47_v17  ;;  %v56_v22 = vsel %vm31_vm0, %v52_v18, 0.0  ;;  %v62_v23 = vsel %vm31_vm0, %v54_v19, 0.0 }
  0x98   :  { %57 = vadd.xlane.f32.xlu0 %v56_v22 }
  0x99   :  { %v53_v24 = vmul.f32 %v49_v20, %v49_v20  ;;  %v55_v25 = vmul.f32 %v51_v21, %v51_v21 }
  0x9b   :  { %v59_v26 = vsel %vm31_vm0, %v53_v24, 0.0  ;;  %v65_v27 = vsel %vm31_vm0, %v55_v25, 0.0 }
  0x9c   :  { %63 = vadd.xlane.f32.xlu0 %v62_v23  ;;  %60 = vadd.xlane.f32.xlu1 %v59_v26 }
  0xa0   :  { %66 = vadd.xlane.f32.xlu1 %v65_v27 }
 0x125   :  { %v58_v29 = vpop.xlane.xlu0 %57 }
 0x126   :  { %v68_v30 = vmul.f32 0.0625, %v58_v29 }
 0x128   :  { %v72_v31 = vadd.f32 1e-05, %v68_v30 }
 0x129   :  { %v61_v32 = vpop.xlane.xlu1 %60  ;;  %v64_v33 = vpop.xlane.xlu0 %63 }
 0x12a   :  { %346 = vrsqrt.f32 %v72_v31  ;;  %v69_v34 = vmul.f32 0.0625, %v61_v32  ;;  %v70_v35 = vmul.f32 0.0625, %v64_v33 }
 0x12c   :  { %v73_v36 = vadd.f32 1e-05, %v69_v34  ;;  %v74_v37 = vadd.f32 1e-05, %v70_v35 }
 0x12d   :  { %v67_v38 = vpop.xlane.xlu1 %66 }
 0x12e   :  { %348 = vrsqrt.f32 %v73_v36  ;;  %v71_v39 = vmul.f32 0.0625, %v67_v38 }
 0x12f   :  { %350 = vrsqrt.f32 %v74_v37 }
 0x130   :  { %v75_v40 = vadd.f32 1e-05, %v71_v39 }
 0x132   :  { %352 = vrsqrt.f32 %v75_v40 }
 0x134   :  { %v347_v41 = vpop.eup %346 }
 0x135   :  { %v80_v42 = vmul.f32 %v347_v41, %v48_v12 }
 0x137   :  { %v91_v47 = vmul.f32 %v311_v43, %v80_v42 }
 0x138   :  { %v349_v44 = vpop.eup %348 }
 0x139   :  { %v351_v45 = vpop.eup %350  ;;  %v81_v46 = vmul.f32 %v349_v44, %v49_v20  ;;  %v102_v53 = vadd.f32 %v312_v49, %v91_v47 }
 0x13a   :  { %v82_v48 = vmul.f32 %v351_v45, %v50_v13 }
 0x13b   :  { %v92_v50 = vmul.f32 %v311_v43, %v81_v46 }
 0x13c   :  { %v353_v51 = vpop.eup %352  ;;  %v93_v55 = vmul.f32 %v311_v43, %v82_v48 }
 0x13d   :  { %v83_v52 = vmul.f32 %v353_v51, %v51_v21  ;;  %v103_v54 = vadd.f32 %v312_v49, %v92_v50  ;;  %v321_v51 = vld [vmem:[%s487_s6] ss:$0 sm:$0xff] }
 0x13e   :  { %v104_v58 = vadd.f32 %v312_v49, %v93_v55 }
 0x13f   :  { %v106_v56 = vpack.c.bf16 %v103_v54, %v102_v53  ;;  %v94_v57 = vmul.f32 %v311_v43, %v83_v52 }
 0x141   :  { %331 = vmatprep.mubr.msk.bf16.mxu0 %vm31_vm0, %v106_v56  ;;  %v105_v59 = vadd.f32 %v312_v49, %v94_v57 }
 0x143   :  { %v107_v60 = vpack.c.bf16 %v105_v59, %v104_v58 }
 0x145   :  { %332 = vmatmul.mubr.msk.bf16.vlgmr.msra.gmra.mrb[0].mxu0 %vm31_vm0, %v107_v60 }
 0x218   :  { %v333_v3 = vpop.f32.mrb[0].mxu0 }
 0x219   :  { %v172_v4 = vadd.f32 %v333_v3, %v313_v63  ;;  %v163_v6 = vpop.f32.mrb[1].mxu0 }
 0x21a   :  { %v164_v7 = vadd.f32 %v313_v63, %v163_v6  ;;  %v334_v8 = vpop.f32.mrb[2].mxu0 }
 0x21b   :  { %v180_v9 = vmul.f32 %v172_v4, %v172_v4  ;;  %v175_v10 = vadd.f32 %v334_v8, %v313_v63  ;;  %v166_v11 = vpop.f32.mrb[3].mxu0 }
 0x21c   :  { %v178_v12 = vmul.f32 %v164_v7, %v164_v7  ;;  %v167_v13 = vadd.f32 %v313_v63, %v166_v11 }
 0x21d   :  { %v184_v14 = vmul.f32 %v180_v9, %v172_v4  ;;  %v181_v15 = vmul.f32 %v175_v10, %v175_v10 }
 0x21e   :  { %v182_v16 = vmul.f32 %v178_v12, %v164_v7  ;;  %v179_v17 = vmul.f32 %v167_v13, %v167_v13 }
 0x21f   :  { %v188_v18 = vmul.f32 0.044715, %v184_v14  ;;  %v185_v19 = vmul.f32 %v181_v15, %v175_v10 }
 0x220   :  { %v186_v20 = vmul.f32 0.044715, %v182_v16  ;;  %v183_v21 = vmul.f32 %v179_v17, %v167_v13 }
 0x221   :  { %v192_v22 = vadd.f32 %v188_v18, %v172_v4  ;;  %v189_v23 = vmul.f32 0.044715, %v185_v19 }
 0x222   :  { %v190_v24 = vadd.f32 %v186_v20, %v164_v7  ;;  %v187_v25 = vmul.f32 0.044715, %v183_v21 }
 0x223   :  { %v196_v26 = vmul.f32 0.7978846, %v192_v22  ;;  %v193_v27 = vadd.f32 %v189_v23, %v175_v10 }
 0x224   :  { %v194_v28 = vmul.f32 0.7978846, %v190_v24  ;;  %v191_v29 = vadd.f32 %v187_v25, %v167_v13 }
 0x225   :  { %354 = vtanh.f32 %v196_v26  ;;  %v197_v30 = vmul.f32 0.7978846, %v193_v27 }
 0x226   :  { %v195_v31 = vmul.f32 0.7978846, %v191_v29  ;;  %356 = vtanh.f32 %v194_v28 }
 0x227   :  { %358 = vtanh.f32 %v197_v30 }
 0x228   :  { %360 = vtanh.f32 %v195_v31 }
 0x22f   :  { %v355_v32 = vpop.eup %354 }
 0x230   :  { %v357_v33 = vpop.eup %356  ;;  %v204_v34 = vadd.f32 1.0, %v355_v32 }
 0x231   :  { %v359_v35 = vpop.eup %358  ;;  %v202_v36 = vadd.f32 1.0, %v357_v33 }
 0x232   :  { %v361_v37 = vpop.eup %360  ;;  %v208_v38 = vmul.f32 0.5, %v204_v34  ;;  %v205_v39 = vadd.f32 1.0, %v359_v35 }
 0x233   :  { %v203_v40 = vadd.f32 1.0, %v361_v37  ;;  %v206_v41 = vmul.f32 0.5, %v202_v36 }
 0x234   :  { %v209_v42 = vmul.f32 0.5, %v205_v39  ;;  %v212_v44 = vmul.f32 %v208_v38, %v172_v4 }
 0x235   :  { %v207_v43 = vmul.f32 0.5, %v203_v40  ;;  %v210_v46 = vmul.f32 %v206_v41, %v164_v7 }
 0x236   :  { %v213_v45 = vmul.f32 %v209_v42, %v175_v10 }
 0x237   :  { %v211_v47 = vmul.f32 %v207_v43, %v167_v13 }
 0x238   :  { %v215_v48 = vpack.c.bf16 %v213_v45, %v212_v44 }
 0x239   :  { %v214_v49 = vpack.c.bf16 %v211_v47, %v210_v46 }
 0x23b   :  { %339 = vmatprep.mubr.msk.bf16.mxu1 %vm232_vm1, %v214_v49 }
 0x23c   :  { %340 = vmatmul.mubr.msk.bf16.vlgmr.msra.gmra.mrb[0].mxu1 %vm232_vm1, %v215_v48 }
 0x30f   :  { %v341_v50 = vpop.f32.mrb[0].mxu1 }
 0x310   :  { %v290_v52 = vadd.f32 %v341_v50, %v410_v1  ;;  %v273_v53 = vpop.f32.mrb[1].mxu1 }
 0x311   :  { %v288_v54 = vadd.f32 %v273_v53, %v405_v0  ;;  %v342_v55 = vpop.f32.mrb[2].mxu1 }
 0x312   :  { %v301_v56 = vadd.f32 %v321_v51, %v290_v52  ;;  %v291_v57 = vadd.f32 %v342_v55, %v424_v5  ;;  %v276_v58 = vpop.f32.mrb[3].mxu1 }
 0x313   :  { %v299_v59 = vadd.f32 %v321_v51, %v288_v54  ;;  %v289_v60 = vadd.f32 %v276_v58, %v415_v2 }
 0x314   :  { %305 = vst.msk [vmem:[%s488_s7 + $0x10] sm:$0xff] %vm31_vm0, %v301_v56  ;;  %v302_v61 = vadd.f32 %v321_v51, %v291_v57 }
 0x315   :  { %303 = vst.msk [vmem:[%s488_s7] sm:$0xff] %vm31_vm0, %v299_v59  ;;  %v300_v0 = vadd.f32 %v321_v51, %v289_v60 }
 0x316   :  { %306 = vst.msk [vmem:[%s488_s7 + $0x18] sm:$0xff] %vm31_vm0, %v302_v61 }
 0x317   :  { %304 = vst.msk [vmem:[%s488_s7 + $0x8] sm:$0xff] %vm31_vm0, %v300_v0 }

// kernel: pixel_swin_t_forward.21
= control target key start
LH: loop header
LB: loop body
LE: loop exit
PB: predicated region body
PF: predicated region fallthrough
CT: control target
= control target key end

     0   :  { %vm15_vm0 = vcmask 261120   ;;  %s89_s0 = inlined_call_operand.vmem [shape: f32[8,32], index: 0, kind: input, shape index: {}]   ;;  %s90_s1 = inlined_call_operand.vmem [shape: f32[1,32], index: 1, kind: input, shape index: {}]   ;;  %s91_s2 = inlined_call_operand.vmem [shape: f32[1,32], index: 2, kind: input, shape index: {}]   ;;  %s92_s3 = inlined_call_operand.vmem [shape: f32[8,32], index: 3, kind: output, shape index: {}]  }
   0x1   :  { %v14_v0 = vld [vmem:[%s89_s0] sm:$0xff] }
   0x2   :  { %v16_v1 = vsel %vm15_vm0, %v14_v0, 0.0  ;;  %v50_v11 = vld [vmem:[%s90_s1] ss:$0 sm:$0xff] }
   0x3   :  { %17 = vadd.xlane.f32.xlu0 %v16_v1  ;;  %v51_v13 = vld [vmem:[%s91_s2] ss:$0 sm:$0xff] }
  0x90   :  { %v18_v2 = vpop.xlane.xlu0 %17 }
  0x91   :  { %v19_v3 = vmul.f32 0.03125, %v18_v2 }
  0x93   :  { %v20_v4 = vsub.f32 %v14_v0, %v19_v3 }
  0x95   :  { %v21_v5 = vmul.f32 %v20_v4, %v20_v4 }
  0x97   :  { %v22_v6 = vsel %vm15_vm0, %v21_v5, 0.0 }
  0x98   :  { %23 = vadd.xlane.f32.xlu0 %v22_v6 }
 0x125   :  { %v24_v7 = vpop.xlane.xlu0 %23 }
 0x126   :  { %v25_v8 = vmul.f32 0.03125, %v24_v7 }
 0x128   :  { %v26_v9 = vadd.f32 1e-05, %v25_v8 }
 0x12a   :  { %52 = vrsqrt.f32 %v26_v9 }
 0x134   :  { %v53_v10 = vpop.eup %52 }
 0x135   :  { %v28_v12 = vmul.f32 %v53_v10, %v20_v4 }
 0x137   :  { %v36_v14 = vmul.f32 %v50_v11, %v28_v12 }
 0x139   :  { %v44_v15 = vadd.f32 %v51_v13, %v36_v14 }
 0x13b   :  { %45 = vst.msk [vmem:[%s92_s3] sm:$0xff] %vm15_vm0, %v44_v15 }

// kernel: pixel_swin_t_forward.19
= control target key start
LH: loop header
LB: loop body
LE: loop exit
PB: predicated region body
PF: predicated region fallthrough
CT: control target
= control target key end

     0   :  { %v174_v0 = vmov 0.0   ;;  %vm175_vm0 = vmmov 0   ;;  %vm62_vm1 = vcmask 523264   ;;  %vm106_vm2 = vcmask 261120   ;;  %s236_s1 = inlined_call_operand.vmem [shape: bf16[64,32], index: 1, kind: input, shape index: {}]   ;;  %s237_s0 = inlined_call_operand.vmem [shape: f32[8,64], index: 0, kind: input, shape index: {}]   ;;  %s238_s2 = inlined_call_operand.vmem [shape: f32[1,32], index: 2, kind: input, shape index: {}]   ;;  %s239_s3 = inlined_call_operand.vmem [shape: f32[1,32], index: 3, kind: input, shape index: {}]   ;;  %s240_s4 = inlined_call_operand.vmem [shape: f32[1,32], index: 4, kind: input, shape index: {}]   ;;  %s241_s5 = inlined_call_operand.vmem [shape: f32[8,32], index: 5, kind: output, shape index: {}]  }
   0x1   :  { %154 = vmatprep.subr.bf16.mxu0 %v174_v0  ;;  %v168_v1 = vld [vmem:[%s236_s1] sm:$0xff]   ;;  %162 = vmatprep.mubr.msk.bf16.mxu0 %vm175_vm0, %v174_v0  ;;  %v169_v2 = vld [vmem:[%s236_s1 + $0x8] sm:$0xff]   ;;  %v170_v3 = vld [vmem:[%s236_s1 + $0x10] sm:$0xff]  }
   0x2   :  { %155 = vmatpush3.bf16.msra.mxu0 %v168_v1  ;;  %v171_v4 = vld [vmem:[%s236_s1 + $0x18] sm:$0xff]   ;;  %v21_v5 = vld [vmem:[%s237_s0] sm:$0xff] }
   0x3   :  { %156 = vmatprep.subr.bf16.mxu0 %v174_v0  ;;  %v22_v6 = vpack.c.bf16 %v21_v5, %v21_v5  ;;  %v141_v7 = vld [vmem:[%s238_s2] ss:$0 sm:$0xff] }
   0x4   :  { %v147_v23 = vld [vmem:[%s239_s3] ss:$0 sm:$0xff] }
   0x5   :  { %v148_v25 = vld [vmem:[%s240_s4] ss:$0 sm:$0xff] }
   0x6   :  { %157 = vmatpush3.bf16.msra.mxu0 %v169_v2 }
   0x7   :  { %158 = vmatprep.subr.bf16.mxu0 %v174_v0 }
   0xa   :  { %159 = vmatpush3.bf16.msra.mxu0 %v170_v3 }
   0xb   :  { %160 = vmatprep.subr.bf16.mxu0 %v174_v0 }
   0xe   :  { %161 = vmatpush3.bf16.msra.mxu0 %v171_v4 }
  0x11   :  { %163 = vmatmul.mubr.msk.bf16.vlgmr.msra.gmra.mrb[0].mxu0 %vm62_vm1, %v22_v6 }
  0xe4   :  { %v100_v8 = vpop.f32.mrb[0].mxu0 }
  0xe5   :  { %v101_v9 = vadd.f32 %v141_v7, %v100_v8  ;;  %v164_v10 = vpop.f32.mrb[1].mxu0 }
  0xe6   :  { %v103_v11 = vpop.f32.mrb[2].mxu0 }
  0xe7   :  { %v165_v12 = vpop.f32.mrb[3].mxu0  ;;  %v107_v13 = vsel %vm106_vm2, %v101_v9, 0.0 }
  0xe8   :  { %108 = vadd.xlane.f32.xlu0 %v107_v13 }
 0x175   :  { %v109_v14 = vpop.xlane.xlu0 %108 }
 0x176   :  { %v110_v15 = vmul.f32 0.03125, %v109_v14 }
 0x178   :  { %v111_v16 = vsub.f32 %v101_v9, %v110_v15 }
 0x17a   :  { %v112_v17 = vmul.f32 %v111_v16, %v111_v16 }
 0x17c   :  { %v113_v18 = vsel %vm106_vm2, %v112_v17, 0.0 }
 0x17d   :  { %114 = vadd.xlane.f32.xlu0 %v113_v18 }
 0x20a   :  { %v115_v19 = vpop.xlane.xlu0 %114 }
 0x20b   :  { %v116_v20 = vmul.f32 0.03125, %v115_v19 }
 0x20d   :  { %v117_v21 = vadd.f32 1e-05, %v116_v20 }
 0x20f   :  { %172 = vrsqrt.f32 %v117_v21 }
 0x219   :  { %v173_v22 = vpop.eup %172 }
 0x21a   :  { %v119_v24 = vmul.f32 %v173_v22, %v111_v16 }
 0x21c   :  { %v127_v26 = vmul.f32 %v147_v23, %v119_v24 }
 0x21e   :  { %v135_v27 = vadd.f32 %v148_v25, %v127_v26 }
 0x220   :  { %136 = vst.msk [vmem:[%s241_s5] sm:$0xff] %vm106_vm2, %v135_v27 }

// kernel: pixel_swin_t_forward.22
= control target key start
LH: loop header
LB: loop body
LE: loop exit
PB: predicated region body
PF: predicated region fallthrough
CT: control target
= control target key end

     0   :  { %vm21_vm0 = vcmask 7168   ;;  %v125_v0 = vmov 0.0   ;;  %vm126_vm1 = vmmov 0   ;;  %vm42_vm2 = vcmask 261120   ;;  %s165_s1 = inlined_call_operand.vmem [shape: bf16[32,1], index: 1, kind: input, shape index: {}]   ;;  %s166_s0 = inlined_call_operand.vmem [shape: f32[8,32], index: 0, kind: input, shape index: {}]   ;;  %s167_s2 = inlined_call_operand.<no memory space> [shape: f32[1,1], index: 2, kind: input, shape index: {}]   ;;  %s168_s3 = inlined_call_operand.vmem [shape: f32[8,1], index: 3, kind: output, shape index: {}]  }
   0x1   :  { %22 = vst.msk [vmem:[#allocation2] sm:$0xff] %vm21_vm0, %v125_v0  ;;  %113 = vmatprep.subr.bf16.mxu0 %v125_v0  ;;  %v123_v1 = vld [vmem:[%s165_s1] sm:$0xff]   ;;  %117 = vmatprep.mubr.msk.bf16.mxu0 %vm126_vm1, %v125_v0  ;;  %v8_v2 = vstv %s167_s2  ;;  %v124_v3 = vld [vmem:[%s165_s1 + $0x8] sm:$0xff]  }
   0x2   :  { %9 = vst [vmem:[#allocation3] sm:$0x1] %v8_v2  ;;  %114 = vmatpush3.bf16.msra.mxu0 %v123_v1  ;;  %v24_v4 = vld [vmem:[%s166_s0] sm:$0xff] }
   0x3   :  { %115 = vmatprep.subr.bf16.mxu0 %v125_v0  ;;  %v25_v5 = vpack.c.bf16 %v24_v4, %v24_v4 }
   0x6   :  { %116 = vmatpush3.bf16.msra.mxu0 %v124_v3 }
   0x8   :  { %v23_v6 = vld [vmem:[#allocation2] sm:$0xff] }
   0x9   :  { %118 = vmatmul.mubr.msk.bf16.vlgmr.msra.gmra.mrb[0].mxu0 %vm42_vm2, %v25_v5  ;;  %v109_v12 = vld [vmem:[#allocation3] ss:$0 sm:$0xff] }
  0xdc   :  { %v80_v7 = vpop.f32.mrb[0].mxu0 }
  0xdd   :  { %v86_v8 = vadd.f32 %v80_v7, %v23_v6  ;;  %v119_v9 = vpop.f32.mrb[1].mxu0 }
  0xde   :  { %v83_v10 = vpop.f32.mrb[2].mxu0 }
  0xdf   :  { %88 = vst.msk [vmem:[#allocation2] sm:$0xff] %vm21_vm0, %v86_v8  ;;  %v120_v11 = vpop.f32.mrb[3].mxu0 }
  0xe6   :  { %v92_v13 = vld [vmem:[#allocation2] sm:$0xff] }
  0xe7   :  { %v100_v14 = vadd.f32 %v109_v12, %v92_v13 }
  0xe9   :  { %101 = vst.msk [vmem:[%s168_s3] sm:$0xff] %vm21_vm0, %v100_v14 }

// kernel: pixel_swin_t_forward.20
= control target key start
LH: loop header
LB: loop body
LE: loop exit
PB: predicated region body
PF: predicated region fallthrough
CT: control target
= control target key end

     0   :  { %vm28_vm0 = vcmask 261120   ;;  %v277_v8 = vmov 0.0   ;;  %vm278_vm1 = vmmov 0   ;;  %vm167_vm2 = vcmask 523264   ;;  %s364_s0 = inlined_call_operand.vmem [shape: f32[8,32], index: 0, kind: input, shape index: {}]   ;;  %s365_s3 = inlined_call_operand.vmem [shape: bf16[32,64], index: 3, kind: input, shape index: {}]   ;;  %s366_s1 = inlined_call_operand.vmem [shape: f32[1,32], index: 1, kind: input, shape index: {}]   ;;  %s367_s2 = inlined_call_operand.vmem [shape: f32[1,32], index: 2, kind: input, shape index: {}]   ;;  %s368_s5 = inlined_call_operand.vmem [shape: bf16[64,32], index: 5, kind: input, shape index: {}]   ;;  %s369_s4 = inlined_call_operand.vmem [shape: f32[1,64], index: 4, kind: input, shape index: {}]   ;;  %s370_s6 = inlined_call_operand.vmem [shape: f32[1,32], index: 6, kind: input, shape index: {}]   ;;  %s371_s7 = inlined_call_operand.vmem [shape: f32[8,32], index: 7, kind: output, shape index: {}]  }
   0x1   :  { %v322_v0 = vld [vmem:[%s364_s0] sm:$0xff]  ;;  %245 = vmatprep.subr.bf16.mxu0 %v277_v8  ;;  %253 = vmatprep.subr.bf16.mxu1 %v277_v8  ;;  %v268_v9 = vld [vmem:[%s365_s3 + $0x8] sm:$0xff]   ;;  %v271_v22 = vld [vmem:[%s368_s5 + $0x10] sm:$0xff]  }
   0x2   :  { %v29_v1 = vsel %vm28_vm0, %v322_v0, 0.0  ;;  %v267_v7 = vld [vmem:[%s365_s3] sm:$0xff]   ;;  %249 = vmatprep.mubr.msk.bf16.mxu0 %vm278_vm1, %v277_v8  ;;  %261 = vmatprep.mubr.msk.bf16.mxu1 %vm278_vm1, %v277_v8  ;;  %v270_v21 = vld [vmem:[%s368_s5 + $0x8] sm:$0xff]   ;;  %v272_v23 = vld [vmem:[%s368_s5 + $0x18] sm:$0xff]  }
   0x3   :  { %30 = vadd.xlane.f32.xlu0 %v29_v1  ;;  %246 = vmatpush3.bf16.msra.mxu0 %v267_v7  ;;  %v225_v14 = vld [vmem:[%s366_s1] ss:$0 sm:$0xff] }
   0x4   :  { %247 = vmatprep.subr.bf16.mxu0 %v277_v8  ;;  %v226_v16 = vld [vmem:[%s367_s2] ss:$0 sm:$0xff] }
   0x5   :  { %v269_v20 = vld [vmem:[%s368_s5] sm:$0xff]  }
   0x6   :  { %254 = vmatpush3.bf16.msra.mxu1 %v269_v20  ;;  %v227_v24 = vld [vmem:[%s369_s4] ss:$0 sm:$0xff] }
   0x7   :  { %248 = vmatpush3.bf16.msra.mxu0 %v268_v9  ;;  %255 = vmatprep.subr.bf16.mxu1 %v277_v8  ;;  %v236_v41 = vld [vmem:[%s370_s6] ss:$0 sm:$0xff] }
   0xa   :  { %256 = vmatpush3.bf16.msra.mxu1 %v270_v21 }
   0xb   :  { %257 = vmatprep.subr.bf16.mxu1 %v277_v8 }
   0xe   :  { %258 = vmatpush3.bf16.msra.mxu1 %v271_v22 }
   0xf   :  { %259 = vmatprep.subr.bf16.mxu1 %v277_v8 }
  0x12   :  { %260 = vmatpush3.bf16.msra.mxu1 %v272_v23 }
  0x90   :  { %v31_v2 = vpop.xlane.xlu0 %30 }
  0x91   :  { %v32_v3 = vmul.f32 0.03125, %v31_v2 }
  0x93   :  { %v33_v4 = vsub.f32 %v322_v0, %v32_v3 }
  0x95   :  { %v34_v5 = vmul.f32 %v33_v4, %v33_v4 }
  0x97   :  { %v35_v6 = vsel %vm28_vm0, %v34_v5, 0.0 }
  0x98   :  { %36 = vadd.xlane.f32.xlu0 %v35_v6 }
 0x125   :  { %v37_v10 = vpop.xlane.xlu0 %36 }
 0x126   :  { %v38_v11 = vmul.f32 0.03125, %v37_v10 }
 0x128   :  { %v39_v12 = vadd.f32 1e-05, %v38_v11 }
 0x12a   :  { %273 = vrsqrt.f32 %v39_v12 }
 0x134   :  { %v274_v13 = vpop.eup %273 }
 0x135   :  { %v41_v15 = vmul.f32 %v274_v13, %v33_v4 }
 0x137   :  { %v49_v17 = vmul.f32 %v225_v14, %v41_v15 }
 0x139   :  { %v57_v18 = vadd.f32 %v226_v16, %v49_v17 }
 0x13b   :  { %v58_v19 = vpack.c.bf16 %v57_v18, %v57_v18 }
 0x13d   :  { %250 = vmatmul.mubr.msk.bf16.vlgmr.msra.gmra.mrb[0].mxu0 %vm28_vm0, %v58_v19 }
 0x210   :  { %v119_v25 = vpop.f32.mrb[0].mxu0 }
 0x211   :  { %v120_v26 = vadd.f32 %v227_v24, %v119_v25  ;;  %v251_v27 = vpop.f32.mrb[1].mxu0 }
 0x212   :  { %v122_v28 = vpop.f32.mrb[2].mxu0 }
 0x213   :  { %v125_v29 = vmul.f32 %v120_v26, %v120_v26  ;;  %v252_v30 = vpop.f32.mrb[3].mxu0 }
 0x215   :  { %v126_v31 = vmul.f32 %v125_v29, %v120_v26 }
 0x217   :  { %v127_v32 = vmul.f32 0.044715, %v126_v31 }
 0x219   :  { %v128_v33 = vadd.f32 %v127_v32, %v120_v26 }
 0x21b   :  { %v129_v34 = vmul.f32 0.7978846, %v128_v33 }
 0x21d   :  { %275 = vtanh.f32 %v129_v34 }
 0x227   :  { %v276_v35 = vpop.eup %275 }
 0x228   :  { %v131_v36 = vadd.f32 1.0, %v276_v35 }
 0x22a   :  { %v132_v37 = vmul.f32 0.5, %v131_v36 }
 0x22c   :  { %v133_v38 = vmul.f32 %v132_v37, %v120_v26 }
 0x22e   :  { %v134_v39 = vpack.c.bf16 %v133_v38, %v133_v38 }
 0x230   :  { %262 = vmatmul.mubr.msk.bf16.vlgmr.msra.gmra.mrb[0].mxu1 %vm167_vm2, %v134_v39 }
 0x303   :  { %v205_v40 = vpop.f32.mrb[0].mxu1 }
 0x304   :  { %v211_v42 = vadd.f32 %v205_v40, %v322_v0  ;;  %v263_v43 = vpop.f32.mrb[1].mxu1 }
 0x305   :  { %v208_v44 = vpop.f32.mrb[2].mxu1 }
 0x306   :  { %v219_v45 = vadd.f32 %v236_v41, %v211_v42  ;;  %v264_v46 = vpop.f32.mrb[3].mxu1 }
 0x308   :  { %220 = vst.msk [vmem:[%s371_s7] sm:$0xff] %vm28_vm0, %v219_v45 }

// kernel: pixel_swin_t_forward.23
= control target key start
LH: loop header
LB: loop body
LE: loop exit
PB: predicated region body
PF: predicated region fallthrough
CT: control target
= control target key end

     0   :  { %s580_s12 = smov 0   ;;  %s582_s13 = smov 0   ;;  %s627_s0 = inlined_call_operand.vmem [shape: f32[2,4], index: 0, kind: input, shape index: {}]   ;;  %s628_s1 = inlined_call_operand.vmem [shape: bf16[4,6400], index: 1, kind: input, shape index: {}]   ;;  %s629_s2 = inlined_call_operand.vmem [shape: f32[1,6400], index: 2, kind: input, shape index: {}]   ;;  %s630_s3 = inlined_call_operand.vmem [shape: f32[2,6400], index: 3, kind: output, shape index: {}]  }
   0x1   :  { %s584_s14 = smov 0  }
   0x2 LB: > { %s28_s15 = sadd.s32 1, %s551_s13  ;;  %p495_p0 = scmp.ge.s32.totalorder %s555_s14, 1  ;;  %s555_s14 = sphi %s584_s14, %s13_s14   ;;  %s551_s13 = sphi %s582_s13, %s632_s13   ;;  %s547_s12 = sphi %s580_s12, %s631_s12  }
   0x3   : > { %p30_p1 = scmp.ge.s32.totalorder %s28_s15, 25  ;;  %p189_p2 = scmp.lt.s32.totalorder %s555_s14, 26 }
   0x5   : > { %s634_s15 = smov (%p30_p1, %s28_s15), 0  ;;  %p190_p3 = pnand %p495_p0, %p189_p2 }
   0x6   : > { %s496_s16 = sshll.u32 (!%p190_p3), %s547_s12, 1  ;;  %v557_v0 = vmov (!%p190_p3), 0   ;;  %vm287_vm0 = vcmask (!%p190_p3), 1041408   ;;  %v271_v2 = vld [vmem:[%s627_s0] sm:$0x3] (!%p190_p3)  ;;  %vm283_vm1 = vcmask (!%p190_p3), 31744   ;;  %v341_v7 = vlaneseq (!%p190_p3) }
   0x7   : > { %193 = sbr.rel (%p190_p3) target bundleno = 254 (0xfe), region = 32  ;;  %p242_p4 = scmp.lt.s32.totalorder (!%p190_p3), %s496_s16, 49  ;;  %326 = vmatprep.mubr.bf16.mxu0 (!%p190_p3), %v557_v0  ;;  %v272_v5 = vpack.c.bf16 (!%p190_p3), %v271_v2, %v271_v2  ;;  %v558_v6 = vmov (!%p190_p3), 0.0   ;;  %v559_v8 = vmov (!%p190_p3), 1983009808  }
   0x8   : > { %269 = vst [vmem:[#allocation2] sm:$0xf] (!%p190_p3), %v558_v6  ;;  %v339_v9 = vunpack.c.l.s4 (!%p190_p3), %v559_v8  ;;  %v342_v10 = vshrl.u32 (!%p190_p3), %v341_v7, 7 }
   0xa   : > { %v340_v11 = vunpack.c.0.s8 (!%p190_p3), %v339_v9  ;;  %v356_v12 = vsub.s32 (!%p190_p3), 0, %v342_v10  ;;  %v360_v13 = vsub.s32 (!%p190_p3), 1, %v342_v10 }
   0xc   : > { %v343_v15 = vsub.s32 (!%p190_p3), %v340_v11, %v342_v10 }
   0xe   : > { %s636_s16 = smov (!%p242_p4, %s496_s16), 49 }
   0xf   : > { %s497_s17 = sshll.u32 %s636_s16, 1  ;;  %s252_s25 = scalar_lea.vmem %s629_s2, %s636_s16  ;;  %v270_v20 = vld [vmem:[#allocation2] sm:$0xf] }
  0x10   : > { %s247_s20 = scalar_lea.vmem %s628_s1, %s497_s17  ;;  %v352_v16 = vld [vmem:[%s252_s25] sm:$0x3]  ;;  %s262_s28 = scalar_lea.vmem %s630_s3, %s497_s17 }
  0x11   : > { %v501_v1 = vld.sshfl [vmem:[%s247_s20] sm:$0x33 pattern:$0x76325410]  ;;  %v357_v22 = vrot.slane %v352_v16, %v356_v12  ;;  %v361_v23 = vrot.slane %v352_v16, %v360_v13 }
  0x12   : > { %v282_v3 = vcombine.high %v501_v1, %v501_v1  ;;  %v289_v4 = vsel %vm287_vm0, %v501_v1, 0 }
  0x13   : > { %v362_v26 = vcombine.low %v357_v22, %v361_v23 }
  0x14   : > { %502 = vmatprep.subr.msk.bf16.mxu0 %vm287_vm0, %v282_v3 }
  0x15   : > { %295 = vmatpush1.bf16.msra.mxu0 %v289_v4  ;;  %v369_v27 = vrot.slane %v362_v26, %v343_v15 }
  0x18   : > { %503 = vmatmul.mubr.msk.bf16.vlgmr.msra.gmra.mrb[0].mxu0 %vm283_vm1, %v272_v5 }
  0xeb   : > { %v328_v14 = vpop.f32.mrb[0].mxu0 }
  0xec   : > { %v330_v17 = vpop.f32.mrb[1].mxu0 }
  0xed   : > { %v337_v18 = vcombine.low %v328_v14, %v330_v17  ;;  %v332_v19 = vpop.f32.mrb[2].mxu0 }
  0xee   : > { %v333_v21 = vpop.f32.mrb[3].mxu0 }
  0xef   : > { %v344_v24 = vrot.slane %v337_v18, %v343_v15 }
  0xf1   : > { %v346_v25 = vadd.f32 %v344_v24, %v270_v20 }
  0xf3   : > { %347 = vst [vmem:[#allocation2] sm:$0xf] %v346_v25 }
  0xfa   : > { %v351_v28 = vld [vmem:[#allocation2] sm:$0xf] }
  0xfb   : > { %v371_v29 = vadd.f32 %v369_v27, %v351_v28 }
  0xfd   : > { %372 = vst [vmem:[%s262_s28] sm:$0xf] %v371_v29 }
  0xfe PF: > { %s13_s14 = sadd.s32 1, %s555_s14   ;;  %s631_s12 = smov %s551_s13 }
  0xff   : > { %p10_p5 = scmp.ge.s32.totalorder %s13_s14, 27   ;;  %s632_s13 = smov %s634_s15 }
 0x101   :  { %12 = sbr.rel (!%p10_p5) target bundleno = 2 (0x2), region = 76 }

// kernel: pixel_swin_t_forward.25
= control target key start
LH: loop header
LB: loop body
LE: loop exit
PB: predicated region body
PF: predicated region fallthrough
CT: control target
= control target key end

     0   :  { %vm89_vm0 = vcmask 654336   ;;  %s320_s0 = inlined_call_operand.vmem [shape: f32[160,80], index: 0, kind: input, shape index: {}]   ;;  %s321_s1 = inlined_call_operand.vmem [shape: f32[1,80], index: 1, kind: input, shape index: {}]   ;;  %s322_s2 = inlined_call_operand.vmem [shape: f32[1,80], index: 2, kind: input, shape index: {}]   ;;  %s323_s3 = inlined_call_operand.hbm [shape: f32[160,80], index: 3, kind: output, shape index: {}]  }
   0x1   :  { %v15_v0 = vld [vmem:[%s320_s0] sm:$0xff]  ;;  %v16_v4 = vld [vmem:[%s320_s0 + $0x8] sm:$0xff]  ;;  %v17_v5 = vld [vmem:[%s320_s0 + $0x10] sm:$0xff] }
   0x2   :  { %v184_v1 = vld [vmem:[%s321_s1] ss:$0 sm:$0xff]  ;;  %v18_v6 = vld [vmem:[%s320_s0 + $0x18] sm:$0xff]  ;;  %v20_v11 = vld [vmem:[%s320_s0 + $0x28] sm:$0xff] }
   0x3   :  { %v189_v2 = vld [vmem:[%s322_s2] ss:$0 sm:$0xff]  ;;  %v42_v3 = vmul.f32 %v184_v1, %v15_v0  ;;  %v43_v7 = vmul.f32 %v184_v1, %v16_v4  ;;  %v44_v8 = vmul.f32 %v184_v1, %v17_v5  ;;  %v45_v9 = vmul.f32 %v184_v1, %v18_v6  ;;  %v21_v12 = vld [vmem:[%s320_s0 + $0x30] sm:$0xff]  ;;  %v22_v17 = vld [vmem:[%s320_s0 + $0x38] sm:$0xff] }
   0x4   :  { %v19_v10 = vld [vmem:[%s320_s0 + $0x20] sm:$0xff]  ;;  %v47_v15 = vmul.f32 %v184_v1, %v20_v11  ;;  %v48_v16 = vmul.f32 %v184_v1, %v21_v12  ;;  %v24_v19 = vld [vmem:[%s320_s0 + $0x48] sm:$0xff]  ;;  %v49_v23 = vmul.f32 %v184_v1, %v22_v17  ;;  %v25_v24 = vld [vmem:[%s320_s0 + $0x50] sm:$0xff] }
   0x5   :  { %v69_v13 = vadd.f32 %v189_v2, %v42_v3  ;;  %v46_v14 = vmul.f32 %v184_v1, %v19_v10  ;;  %v23_v18 = vld [vmem:[%s320_s0 + $0x40] sm:$0xff]  ;;  %v70_v20 = vadd.f32 %v189_v2, %v43_v7  ;;  %v71_v21 = vadd.f32 %v189_v2, %v44_v8  ;;  %v26_v25 = vld [vmem:[%s320_s0 + $0x58] sm:$0xff]  ;;  %v28_v31 = vld [vmem:[%s320_s0 + $0x68] sm:$0xff] }
   0x6   :  { %v72_v22 = vadd.f32 %v189_v2, %v45_v9  ;;  %v27_v26 = vld [vmem:[%s320_s0 + $0x60] sm:$0xff]  ;;  %v74_v28 = vadd.f32 %v189_v2, %v47_v15  ;;  %v75_v29 = vadd.f32 %v189_v2, %v48_v16  ;;  %v50_v30 = vmul.f32 %v184_v1, %v23_v18  ;;  %v29_v32 = vld [vmem:[%s320_s0 + $0x70] sm:$0xff]  ;;  %v30_v33 = vld [vmem:[%s320_s0 + $0x78] sm:$0xff] }
   0x7   :  { %90 = vst.msk [vmem:[#allocation2] sm:$0xff] %vm89_vm0, %v69_v13  ;;  %v73_v27 = vadd.f32 %v189_v2, %v46_v14  ;;  %91 = vst.msk [vmem:[#allocation2 + $0x8] sm:$0xff] %vm89_vm0, %v70_v20  ;;  %v76_v34 = vadd.f32 %v189_v2, %v49_v23  ;;  %v51_v35 = vmul.f32 %v184_v1, %v24_v19  ;;  %v31_v38 = vld [vmem:[%s320_s0 + $0x80] sm:$0xff]  ;;  %v32_v39 = vld [vmem:[%s320_s0 + $0x88] sm:$0xff] }
   0x8   :  { %92 = vst.msk [vmem:[#allocation2 + $0x10] sm:$0xff] %vm89_vm0, %v71_v21  ;;  %93 = vst.msk [vmem:[#allocation2 + $0x18] sm:$0xff] %vm89_vm0, %v72_v22  ;;  %v52_v36 = vmul.f32 %v184_v1, %v25_v24  ;;  %v53_v37 = vmul.f32 %v184_v1, %v26_v25  ;;  %v77_v40 = vadd.f32 %v189_v2, %v50_v30  ;;  %v33_v44 = vld [vmem:[%s320_s0 + $0x90] sm:$0xff]  ;;  %v34_v45 = vld [vmem:[%s320_s0 + $0x98] sm:$0xff] }
   0x9   :  { %94 = vst.msk [vmem:[#allocation2 + $0x20] sm:$0xff] %vm89_vm0, %v73_v27  ;;  %95 = vst.msk [vmem:[#allocation2 + $0x28] sm:$0xff] %vm89_vm0, %v74_v28  ;;  %v54_v41 = vmul.f32 %v184_v1, %v27_v26  ;;  %v55_v42 = vmul.f32 %v184_v1, %v28_v31  ;;  %v56_v43 = vmul.f32 %v184_v1, %v29_v32 }
   0xa   :  { %96 = vst.msk [vmem:[#allocation2 + $0x30] sm:$0xff] %vm89_vm0, %v75_v29 }
   0xb   :  { %8 = vsyncpa [#allocation3], 0  ;;  %97 = vst.msk [vmem:[#allocation2 + $0x38] sm:$0xff] %vm89_vm0, %v76_v34  ;;  %v78_v46 = vadd.f32 %v189_v2, %v51_v35  ;;  %v79_v47 = vadd.f32 %v189_v2, %v52_v36  ;;  %v80_v48 = vadd.f32 %v189_v2, %v53_v37  ;;  %v57_v49 = vmul.f32 %v184_v1, %v30_v33  ;;  %s155_s0 = smov [#allocation2]  }
   0xc   :  { %98 = vst.msk [vmem:[#allocation2 + $0x40] sm:$0xff] %vm89_vm0, %v77_v40  ;;  %v81_v50 = vadd.f32 %v189_v2, %v54_v41  ;;  %v82_v51 = vadd.f32 %v189_v2, %v55_v42  ;;  %v83_v52 = vadd.f32 %v189_v2, %v56_v43  ;;  %v58_v53 = vmul.f32 %v184_v1, %v31_v38  ;;  %s115_s25 = sshll.u32 %s155_s0, 4  ;;  %s116_s25 = int_to_ptr.vmem [resolvable:$true] %s115_s25 }
   0xd   :  { %99 = vst.msk [vmem:[#allocation2 + $0x48] sm:$0xff] %vm89_vm0, %v78_v46  ;;  %100 = vst.msk [vmem:[#allocation2 + $0x50] sm:$0xff] %vm89_vm0, %v79_v47  ;;  %v84_v54 = vadd.f32 %v189_v2, %v57_v49  ;;  %v59_v55 = vmul.f32 %v184_v1, %v32_v39  ;;  %v60_v56 = vmul.f32 %v184_v1, %v33_v44  ;;  %s131_s26 = scalar_lea.vmem %s116_s25, 2560  ;;  %p136_p1 = scmp.lt.s32.totalorder %s116_s25, %s116_s25 }
   0xe   :  { %101 = vst.msk [vmem:[#allocation2 + $0x58] sm:$0xff] %vm89_vm0, %v80_v48  ;;  %v61_v57 = vmul.f32 %v184_v1, %v34_v45  ;;  %102 = vst.msk [vmem:[#allocation2 + $0x60] sm:$0xff] %vm89_vm0, %v81_v50  ;;  %v85_v58 = vadd.f32 %v189_v2, %v58_v53  ;;  %p132_p0 = scmp.ne.s32.totalorder %s116_s25, %s131_s26  ;;  %p137_p2 = scmp.lt.s32.totalorder %s131_s26, %s131_s26 }
   0xf   :  { %103 = vst.msk [vmem:[#allocation2 + $0x68] sm:$0xff] %vm89_vm0, %v82_v51  ;;  %104 = vst.msk [vmem:[#allocation2 + $0x70] sm:$0xff] %vm89_vm0, %v83_v52  ;;  %v86_v59 = vadd.f32 %v189_v2, %v59_v55  ;;  %v87_v60 = vadd.f32 %v189_v2, %v60_v56 }
  0x10   :  { %105 = vst.msk [vmem:[#allocation2 + $0x78] sm:$0xff] %vm89_vm0, %v84_v54  ;;  %v88_v61 = vadd.f32 %v189_v2, %v61_v57  ;;  %106 = vst.msk [vmem:[#allocation2 + $0x80] sm:$0xff] %vm89_vm0, %v85_v58  ;;  %p138_p3 = por %p137_p2, %p136_p1 }
  0x11   :  { %107 = vst.msk [vmem:[#allocation2 + $0x88] sm:$0xff] %vm89_vm0, %v86_v59  ;;  %108 = vst.msk [vmem:[#allocation2 + $0x90] sm:$0xff] %vm89_vm0, %v87_v60 }
  0x12   :  { %109 = vst.msk [vmem:[#allocation2 + $0x98] sm:$0xff] %vm89_vm0, %v88_v61  ;;  %p139_p4 = pnand %p138_p3, %p132_p0 }
  0x14   :  { %142 = shalt.err (!%p139_p4)
}
  0x15   :  { %s143_s29 = scalar_lea.hbm %s323_s3, 2560 }
  0x16   :  { %p144_p5 = scmp.ne.s32.totalorder %s323_s3, %s143_s29  ;;  %p147_p6 = scmp.lt.u32.totalorder %s143_s29, %s323_s3 }
  0x18   :  { %p149_p7 = pnand %p147_p6, %p144_p5 }
  0x1a   :  { %152 = shalt.err (!%p149_p7)
}
  0x1b   :  { %s156_s7 = smov 128   ;;  %s157_s8 = smov 8  }
  0x1c   :  { %121 = dma.vmem_to_hbm [thread:$0]  %s116_s25, 2560, %s323_s3, [#allocation3], %s156_s7, %s156_s7, %s157_s8  }
  0x1d   :  { %153 = dma.done.wait [#allocation3], 2560  }
  0x1e   :  { %154 = vsyncadd [#allocation3], 4294964736 }
  0x1f   :  { %125 = vsyncpa [#allocation3], 1 }

// kernel: pixel_swin_t_forward.24
= control target key start
LH: loop header
LB: loop body
LE: loop exit
PB: predicated region body
PF: predicated region fallthrough
CT: control target
= control target key end

     0   :  { %vm14_vm0 = vcmask 647168   ;;  %vm38_vm1 = vcmask 654336   ;;  %v164_v0 = vmov 0.0   ;;  %s302_s0 = inlined_call_operand.vmem [shape: f32[160,80], index: 0, kind: input, shape index: {}]   ;;  %s303_s1 = inlined_call_operand.vmem [shape: f32[1,80], index: 1, kind: output, shape index: {0}]   ;;  %s304_s2 = inlined_call_operand.vmem [shape: f32[1,80], index: 2, kind: output, shape index: {1}]  }
   0x1   :  { %15 = vst.msk [vmem:[%s303_s1] sm:$0x1] %vm14_vm0, %v164_v0  ;;  %v17_v1 = vld [vmem:[%s302_s0] sm:$0xff]  ;;  %v18_v2 = vld [vmem:[%s302_s0 + $0x8] sm:$0xff]  ;;  %v19_v3 = vld [vmem:[%s302_s0 + $0x10] sm:$0xff] }
   0x2   :  { %16 = vst.msk [vmem:[%s304_s2] sm:$0x1] %vm14_vm0, %v164_v0  ;;  %v39_v4 = vsel %vm38_vm1, %v17_v1, 0.0  ;;  %v40_v5 = vsel %vm38_vm1, %v18_v2, 0.0  ;;  %v42_v6 = vsel %vm38_vm1, %v19_v3, 0.0  ;;  %v20_v7 = vld [vmem:[%s302_s0 + $0x18] sm:$0xff]  ;;  %v88_v18 = vmul.f32 %v17_v1, %v17_v1 }
   0x3   :  { %v41_v8 = vadd.f32 %v40_v5, %v39_v4  ;;  %v44_v9 = vsel %vm38_vm1, %v20_v7, 0.0  ;;  %v21_v10 = vld [vmem:[%s302_s0 + $0x20] sm:$0xff]  ;;  %v22_v13 = vld [vmem:[%s302_s0 + $0x28] sm:$0xff]  ;;  %v23_v16 = vld [vmem:[%s302_s0 + $0x30] sm:$0xff]  ;;  %v89_v19 = vmul.f32 %v18_v2, %v18_v2  ;;  %v90_v21 = vmul.f32 %v19_v3, %v19_v3 }
   0x4   :  { %v46_v12 = vsel %vm38_vm1, %v21_v10, 0.0  ;;  %v48_v15 = vsel %vm38_vm1, %v22_v13, 0.0  ;;  %v50_v20 = vsel %vm38_vm1, %v23_v16, 0.0  ;;  %v24_v22 = vld [vmem:[%s302_s0 + $0x38] sm:$0xff]  ;;  %v91_v24 = vmul.f32 %v20_v7, %v20_v7  ;;  %v25_v26 = vld [vmem:[%s302_s0 + $0x40] sm:$0xff]  ;;  %v26_v34 = vld [vmem:[%s302_s0 + $0x48] sm:$0xff] }
   0x5   :  { %v43_v11 = vadd.f32 %v42_v6, %v41_v8  ;;  %v52_v25 = vsel %vm38_vm1, %v24_v22, 0.0  ;;  %v92_v28 = vmul.f32 %v21_v10, %v21_v10  ;;  %v108_v29 = vsel %vm38_vm1, %v88_v18, 0.0  ;;  %v27_v40 = vld [vmem:[%s302_s0 + $0x50] sm:$0xff]  ;;  %v28_v46 = vld [vmem:[%s302_s0 + $0x58] sm:$0xff]  ;;  %v29_v52 = vld [vmem:[%s302_s0 + $0x60] sm:$0xff] }
   0x6   :  { %v109_v30 = vsel %vm38_vm1, %v89_v19, 0.0  ;;  %v54_v31 = vsel %vm38_vm1, %v25_v26, 0.0  ;;  %v111_v33 = vsel %vm38_vm1, %v90_v21, 0.0  ;;  %v93_v36 = vmul.f32 %v22_v13, %v22_v13  ;;  %v30_v58 = vld [vmem:[%s302_s0 + $0x68] sm:$0xff]  ;;  %v31_v0 = vld [vmem:[%s302_s0 + $0x70] sm:$0xff]  ;;  %v32_v6 = vld [vmem:[%s302_s0 + $0x78] sm:$0xff] }
   0x7   :  { %v45_v14 = vadd.f32 %v44_v9, %v43_v11  ;;  %v110_v32 = vadd.f32 %v109_v30, %v108_v29  ;;  %v113_v37 = vsel %vm38_vm1, %v91_v24, 0.0  ;;  %v56_v38 = vsel %vm38_vm1, %v26_v34, 0.0  ;;  %v34_v18 = vld [vmem:[%s302_s0 + $0x88] sm:$0xff]  ;;  %v35_v24 = vld [vmem:[%s302_s0 + $0x90] sm:$0xff]  ;;  %v36_v30 = vld [vmem:[%s302_s0 + $0x98] sm:$0xff] }
   0x8   :  { %v94_v42 = vmul.f32 %v23_v16, %v23_v16  ;;  %v115_v43 = vsel %vm38_vm1, %v92_v28, 0.0  ;;  %v58_v44 = vsel %vm38_vm1, %v27_v40, 0.0  ;;  %v95_v48 = vmul.f32 %v24_v22, %v24_v22 }
   0x9   :  { %v47_v17 = vadd.f32 %v46_v12, %v45_v14  ;;  %v112_v39 = vadd.f32 %v111_v33, %v110_v32  ;;  %v117_v49 = vsel %vm38_vm1, %v93_v36, 0.0  ;;  %v60_v50 = vsel %vm38_vm1, %v28_v46, 0.0  ;;  %v33_v12 = vld [vmem:[%s302_s0 + $0x80] sm:$0xff] }
   0xa   :  { %v96_v54 = vmul.f32 %v25_v26, %v25_v26  ;;  %v119_v55 = vsel %vm38_vm1, %v94_v42, 0.0  ;;  %v62_v56 = vsel %vm38_vm1, %v29_v52, 0.0  ;;  %v97_v60 = vmul.f32 %v26_v34, %v26_v34 }
   0xb   :  { %v49_v23 = vadd.f32 %v48_v15, %v47_v17  ;;  %v114_v45 = vadd.f32 %v113_v37, %v112_v39  ;;  %v121_v61 = vsel %vm38_vm1, %v95_v48, 0.0  ;;  %v64_v62 = vsel %vm38_vm1, %v30_v58, 0.0 }
   0xc   :  { %v98_v2 = vmul.f32 %v27_v40, %v27_v40  ;;  %v123_v3 = vsel %vm38_vm1, %v96_v54, 0.0  ;;  %v66_v4 = vsel %vm38_vm1, %v31_v0, 0.0  ;;  %v99_v8 = vmul.f32 %v28_v46, %v28_v46 }
   0xd   :  { %v51_v27 = vadd.f32 %v50_v20, %v49_v23  ;;  %v116_v51 = vadd.f32 %v115_v43, %v114_v45  ;;  %v125_v9 = vsel %vm38_vm1, %v97_v60, 0.0  ;;  %v68_v10 = vsel %vm38_vm1, %v32_v6, 0.0 }
   0xe   :  { %v100_v14 = vmul.f32 %v29_v52, %v29_v52  ;;  %v127_v15 = vsel %vm38_vm1, %v98_v2, 0.0  ;;  %v70_v16 = vsel %vm38_vm1, %v33_v12, 0.0  ;;  %v101_v20 = vmul.f32 %v30_v58, %v30_v58 }
   0xf   :  { %v53_v35 = vadd.f32 %v52_v25, %v51_v27  ;;  %v118_v57 = vadd.f32 %v117_v49, %v116_v51  ;;  %v129_v21 = vsel %vm38_vm1, %v99_v8, 0.0  ;;  %v72_v22 = vsel %vm38_vm1, %v34_v18, 0.0 }
  0x10   :  { %v102_v26 = vmul.f32 %v31_v0, %v31_v0  ;;  %v131_v27 = vsel %vm38_vm1, %v100_v14, 0.0  ;;  %v74_v28 = vsel %vm38_vm1, %v35_v24, 0.0  ;;  %v103_v32 = vmul.f32 %v32_v6, %v32_v6 }
  0x11   :  { %v55_v41 = vadd.f32 %v54_v31, %v53_v35  ;;  %v120_v63 = vadd.f32 %v119_v55, %v118_v57  ;;  %v133_v33 = vsel %vm38_vm1, %v101_v20, 0.0  ;;  %v76_v34 = vsel %vm38_vm1, %v36_v30, 0.0 }
  0x12   :  { %v104_v37 = vmul.f32 %v33_v12, %v33_v12  ;;  %v137_v42 = vsel %vm38_vm1, %v103_v32, 0.0  ;;  %v106_v45 = vmul.f32 %v35_v24, %v35_v24  ;;  %v107_v49 = vmul.f32 %v36_v30, %v36_v30 }
  0x13   :  { %v57_v47 = vadd.f32 %v56_v38, %v55_v41  ;;  %v122_v5 = vadd.f32 %v121_v61, %v120_v63  ;;  %v135_v38 = vsel %vm38_vm1, %v102_v26, 0.0  ;;  %v105_v41 = vmul.f32 %v34_v18, %v34_v18 }
  0x14   :  { %v139_v46 = vsel %vm38_vm1, %v104_v37, 0.0 }
  0x15   :  { %v59_v53 = vadd.f32 %v58_v44, %v57_v47  ;;  %v124_v11 = vadd.f32 %v123_v3, %v122_v5 }
  0x17   :  { %v61_v59 = vadd.f32 %v60_v50, %v59_v53  ;;  %v126_v17 = vadd.f32 %v125_v9, %v124_v11  ;;  %v141_v50 = vsel %vm38_vm1, %v105_v41, 0.0  ;;  %v143_v53 = vsel %vm38_vm1, %v106_v45, 0.0 }
  0x19   :  { %v63_v1 = vadd.f32 %v62_v56, %v61_v59  ;;  %v128_v23 = vadd.f32 %v127_v15, %v126_v17  ;;  %v145_v56 = vsel %vm38_vm1, %v107_v49, 0.0  ;;  %v37_v59 = vld [vmem:[%s303_s1] sm:$0x1] }
  0x1b   :  { %v65_v7 = vadd.f32 %v64_v62, %v63_v1  ;;  %v130_v29 = vadd.f32 %v129_v21, %v128_v23 }
  0x1d   :  { %v67_v13 = vadd.f32 %v66_v4, %v65_v7  ;;  %v132_v35 = vadd.f32 %v131_v27, %v130_v29  ;;  %v87_v4 = vld [vmem:[%s304_s2] sm:$0x1] }
  0x1f   :  { %v69_v19 = vadd.f32 %v68_v10, %v67_v13  ;;  %v134_v39 = vadd.f32 %v133_v33, %v132_v35 }
  0x21   :  { %v71_v25 = vadd.f32 %v70_v16, %v69_v19  ;;  %v136_v43 = vadd.f32 %v135_v38, %v134_v39 }
  0x23   :  { %v73_v31 = vadd.f32 %v72_v22, %v71_v25  ;;  %v138_v47 = vadd.f32 %v137_v42, %v136_v43 }
  0x25   :  { %v75_v36 = vadd.f32 %v74_v28, %v73_v31  ;;  %v140_v51 = vadd.f32 %v139_v46, %v138_v47 }
  0x27   :  { %v77_v40 = vadd.f32 %v76_v34, %v75_v36  ;;  %v142_v54 = vadd.f32 %v141_v50, %v140_v51 }
  0x29   :  { %v78_v44 = vrot.slane %v77_v40, 4  ;;  %v144_v57 = vadd.f32 %v143_v53, %v142_v54 }
  0x2b   :  { %v79_v48 = vadd.f32 %v78_v44, %v77_v40  ;;  %v146_v60 = vadd.f32 %v145_v56, %v144_v57 }
  0x2d   :  { %v80_v52 = vrot.slane %v79_v48, 2  ;;  %v147_v62 = vrot.slane %v146_v60, 4 }
  0x2f   :  { %v81_v55 = vadd.f32 %v80_v52, %v79_v48  ;;  %v148_v0 = vadd.f32 %v147_v62, %v146_v60 }
  0x31   :  { %v82_v58 = vrot.slane %v81_v55, 1  ;;  %v149_v1 = vrot.slane %v148_v0, 2 }
  0x33   :  { %v83_v61 = vadd.f32 %v82_v58, %v81_v55  ;;  %v150_v2 = vadd.f32 %v149_v1, %v148_v0 }
  0x35   :  { %v84_v63 = vadd.f32 %v83_v61, %v37_v59  ;;  %v151_v3 = vrot.slane %v150_v2, 1 }
  0x37   :  { %86 = vst.msk [vmem:[%s303_s1] sm:$0x1] %vm14_vm0, %v84_v63  ;;  %v152_v5 = vadd.f32 %v151_v3, %v150_v2 }
  0x39   :  { %v153_v6 = vadd.f32 %v152_v5, %v87_v4 }
  0x3b   :  { %154 = vst.msk [vmem:[%s304_s2] sm:$0x1] %vm14_vm0, %v153_v6 }

</bundles_post_ra>
